<compile_context>
chip_gen: v7x
topology: tpu7x:2x2x1
jax: 0.10.0
libtpu: 0.0.40
codegen_flags: <defaults>
</compile_context>

<pallas_src>
import functools

import jax
import jax.numpy as jnp
from jax import lax
from jax.experimental import pallas as pl
from jax.experimental.pallas import tpu as pltpu


# --------------------------------------------------------------------------
# helpers
# --------------------------------------------------------------------------
def _round_up(x, m):
    return (x + m - 1) // m * m


def _tile(dim, base, cap):
    """Tile size: a multiple of `base`, <= cap, dividing round_up(dim, base)."""
    padded = _round_up(dim, base)
    best = base
    t = base
    while t <= min(cap, padded):
        if padded % t == 0:
            best = t
        t += base
    return best, padded


# --------------------------------------------------------------------------
# Tiled matmul + bias (+ReLU) kernel  (bf16 operands, f32 accumulation)
# --------------------------------------------------------------------------
def _matmul_bias_kernel(x_ref, w_ref, b_ref, o_ref, acc_ref, *, relu, nk):
    k = pl.program_id(2)

    @pl.when(k == 0)
    def _():
        acc_ref[...] = jnp.zeros_like(acc_ref)

    acc_ref[...] += jnp.dot(x_ref[...], w_ref[...],
                            preferred_element_type=jnp.float32)

    @pl.when(k == nk - 1)
    def _():
        out = acc_ref[...] + b_ref[...]
        if relu:
            out = jnp.maximum(out, 0.0)
        o_ref[...] = out.astype(o_ref.dtype)


def matmul_bias(x, w, b, relu=False):
    """(M,K) @ (K,N) + b[N], optional fused ReLU, tiled & pipelined on the MXU."""
    M, K = x.shape
    K2, N = w.shape
    assert K == K2
    tm, Mp = _tile(M, 8, 256)
    tn, Np = _tile(N, 128, 256)
    tk, Kp = _tile(K, 128, 1024)

    if (Mp, Kp) != (M, K):
        x = jnp.pad(x, ((0, Mp - M), (0, Kp - K)))
    if (Kp, Np) != (K, N):
        w = jnp.pad(w, ((0, Kp - K), (0, Np - N)))
    bm = b.reshape(1, N).astype(jnp.float32)
    if Np != N:
        bm = jnp.pad(bm, ((0, 0), (0, Np - N)))
    xb = x.astype(jnp.bfloat16)
    wb = w.astype(jnp.bfloat16)

    nk = Kp // tk
    out = pl.pallas_call(
        functools.partial(_matmul_bias_kernel, relu=relu, nk=nk),
        grid=(Mp // tm, Np // tn, nk),
        in_specs=[
            pl.BlockSpec((tm, tk), lambda i, j, k: (i, k)),
            pl.BlockSpec((tk, tn), lambda i, j, k: (k, j)),
            pl.BlockSpec((1, tn), lambda i, j, k: (0, j)),
        ],
        out_specs=pl.BlockSpec((tm, tn), lambda i, j, k: (i, j)),
        out_shape=jax.ShapeDtypeStruct((Mp, Np), jnp.float32),
        scratch_shapes=[pltpu.VMEM((tm, tn), jnp.float32)],
        compiler_params=pltpu.CompilerParams(
            dimension_semantics=("parallel", "parallel", "arbitrary")),
        cost_estimate=pl.CostEstimate(
            flops=2 * Mp * Np * Kp,
            transcendentals=0,
            bytes_accessed=Mp * Kp * 2 + Kp * Np * 2 + Mp * Np * 4),
    )(xb, wb, bm)
    if (Mp, Np) != (M, N):
        out = out[:M, :N]
    return out


# --------------------------------------------------------------------------
# 2x2 / stride-2 max pool (NHWC, single-pass lane-dense kernel)
# --------------------------------------------------------------------------
def _maxpool_kernel(x_ref, o_ref):
    tm, w2, c = o_ref.shape
    x = x_ref[...].reshape(tm, 2, w2, 2, c)    # leading-dim split only
    o_ref[...] = jnp.max(x, axis=(1, 3))


def maxpool2x2(x):
    """x: (B, H, W, C) NHWC -> (B, H//2, W//2, C)."""
    B, H, W, C = x.shape
    H2, W2 = H // 2, W // 2
    R = B * H2
    xr = x.reshape(B * H, W2, 2, C)            # pure row-major reshape
    tm, Rp = _tile(R, 1, 256)
    if Rp != R:
        xr = jnp.pad(xr, ((0, 2 * (Rp - R)), (0, 0), (0, 0), (0, 0)))
    out = pl.pallas_call(
        _maxpool_kernel,
        grid=(Rp // tm,),
        in_specs=[pl.BlockSpec((2 * tm, W2, 2, C), lambda i: (i, 0, 0, 0))],
        out_specs=pl.BlockSpec((tm, W2, C), lambda i: (i, 0, 0)),
        out_shape=jax.ShapeDtypeStruct((Rp, W2, C), jnp.float32),
        compiler_params=pltpu.CompilerParams(
            dimension_semantics=("parallel",)),
    )(xr)
    if Rp != R:
        out = out[:R]
    return out.reshape(B, H2, W2, C)


# --------------------------------------------------------------------------
# Bidirectional GRU (ReNet): hoisted input projection + fused recurrence
# --------------------------------------------------------------------------
_H_PAD = 128   # hidden 100 -> 128 so each gate is a 128-lane-aligned slab


def _pad_gru_direction(wi, wh, bi, bh, h, hp):
    """Zero-pad each gate block (r,z,n) from h to hp columns and W_hh's hidden
    input dim from h to hp rows. Padded lanes stay exactly zero through the
    recurrence, so valid lanes are bit-identical in math to the unpadded GRU."""
    def pad_cols(m):
        parts = [jnp.pad(m[:, g * h:(g + 1) * h], ((0, 0), (0, hp - h)))
                 for g in range(3)]
        return jnp.concatenate(parts, axis=-1)
    wi_p = pad_cols(wi)
    wh_p = jnp.pad(pad_cols(wh), ((0, hp - h), (0, 0)))
    bi_p = pad_cols(bi)
    bh_p = pad_cols(bh)
    return wi_p, wh_p, bi_p, bh_p


def _bigru_kernel(gi_ref, whh_ref, bhh_ref, of_ref, ob_ref, hcat):
    """Bidirectional GRU recurrence (PyTorch gate order r, z, n).

    gi_ref : (T, tn, 6*Hp) precomputed x @ W_ih + b_ih;
             cols [0:3Hp] = forward gates, [3Hp:6Hp] = backward gates.
    whh_ref: (2*Hp, 6*Hp) block-diagonal [W_hh_fwd, 0; 0, W_hh_bwd].
    of_ref : (T, tn, Hp) forward hidden states; ob_ref backward (time-aligned).
    hcat   : (tn, 2*Hp) scratch holding [h_fwd | h_bwd].
    """
    T = gi_ref.shape[0]
    Hp = of_ref.shape[2]
    hcat[...] = jnp.zeros_like(hcat)
    bhh = bhh_ref[...]                 # loaded once, outside the time loop

    def cell(gi, gh, h):
        r = jax.nn.sigmoid(gi[:, 0:Hp] + gh[:, 0:Hp])
        z = jax.nn.sigmoid(gi[:, Hp:2 * Hp] + gh[:, Hp:2 * Hp])
        n = jnp.tanh(gi[:, 2 * Hp:3 * Hp] + r * gh[:, 2 * Hp:3 * Hp])
        return (1.0 - z) * n + z * h

    def body(t, carry):
        tb = T - 1 - t
        # one fused MXU dot covers both directions' hidden projections
        gh = jnp.dot(hcat[...], whh_ref[...],
                     preferred_element_type=jnp.float32) + bhh
        hf = cell(gi_ref[t, :, 0:3 * Hp], gh[:, 0:3 * Hp], hcat[:, 0:Hp])
        hb = cell(gi_ref[tb, :, 3 * Hp:6 * Hp], gh[:, 3 * Hp:6 * Hp],
                  hcat[:, Hp:2 * Hp])
        hcat[:, 0:Hp] = hf
        hcat[:, Hp:2 * Hp] = hb
        of_ref[t] = hf
        ob_ref[tb] = hb
        return carry

    lax.fori_loop(0, T, body, 0)


def bigru(x_tnc, params):
    """x_tnc: (T, N, C) time-major -> (T, N, 2H) bidirectional GRU output."""
    T, N, C = x_tnc.shape
    wif, whf, bif, bhf, wib, whb, bib, bhb = params
    H = whf.shape[0]
    Hp = _H_PAD
    wif_p, whf_p, bif_p, bhf_p = _pad_gru_direction(wif, whf, bif, bhf, H, Hp)
    wib_p, whb_p, bib_p, bhb_p = _pad_gru_direction(wib, whb, bib, bhb, H, Hp)

    # Hoisted input projection for ALL timesteps and both directions: one
    # well-shaped MXU matmul instead of 2*T tiny ones inside the recurrence.
    wi_cat = jnp.concatenate([wif_p, wib_p], axis=-1)            # (C, 6*Hp)
    bi_cat = jnp.concatenate([bif_p, bib_p], axis=-1)            # (1, 6*Hp)
    gi = matmul_bias(x_tnc.reshape(T * N, C), wi_cat, bi_cat.reshape(-1))
    gi = gi.reshape(T, N, 6 * Hp)

    # Block-diagonal hidden weights: fwd + bwd share one dot per timestep.
    zero = jnp.zeros((Hp, 3 * Hp), jnp.float32)
    whh_bd = jnp.concatenate(
        [jnp.concatenate([whf_p, zero], axis=-1),
         jnp.concatenate([zero, whb_p], axis=-1)], axis=0)       # (2Hp, 6Hp)
    bh_cat = jnp.concatenate([bhf_p, bhb_p], axis=-1)            # (1, 6Hp)

    # Tile the independent sequence-batch dim N across a parallel grid axis.
    tn = min(_round_up(N, 8), 64)
    Np = _round_up(N, tn)
    if Np != N:
        gi = jnp.pad(gi, ((0, 0), (0, Np - N), (0, 0)))

    # TODO(synk): for large T the (T, tn, 6Hp) gi block should be streamed
    # timestep-wise with a manual double-buffered DMA instead of being
    # resident in VMEM for the whole sequence.
    of, ob = pl.pallas_call(
        _bigru_kernel,
        grid=(Np // tn,),
        in_specs=[
            pl.BlockSpec((T, tn, 6 * Hp), lambda i: (0, i, 0)),
            pl.BlockSpec((2 * Hp, 6 * Hp), lambda i: (0, 0)),
            pl.BlockSpec((1, 6 * Hp), lambda i: (0, 0)),
        ],
        out_specs=[
            pl.BlockSpec((T, tn, Hp), lambda i: (0, i, 0)),
            pl.BlockSpec((T, tn, Hp), lambda i: (0, i, 0)),
        ],
        out_shape=[
            jax.ShapeDtypeStruct((T, Np, Hp), jnp.float32),
            jax.ShapeDtypeStruct((T, Np, Hp), jnp.float32),
        ],
        scratch_shapes=[pltpu.VMEM((tn, 2 * Hp), jnp.float32)],
        compiler_params=pltpu.CompilerParams(
            dimension_semantics=("parallel",)),
    )(gi, whh_bd, bh_cat)
    # slice away the hidden padding (128 -> 100) and batch padding
    return jnp.concatenate([of[:, :N, :H], ob[:, :N, :H]], axis=-1)


# --------------------------------------------------------------------------
# Layer wrappers (NHWC glue around the Pallas kernels)
# --------------------------------------------------------------------------
def conv3x3_relu(x, w, b):
    """Conv2d(k=3, pad=1) + ReLU on NHWC via tap-major patches + tiled matmul.
    w: (Cout, Cin, 3, 3) PyTorch layout."""
    B, H, W, C = x.shape
    Cout = w.shape[0]
    xp = jnp.pad(x, ((0, 0), (1, 1), (1, 1), (0, 0)))
    # TODO(synk): fuse the 9 shifted taps into the matmul kernel (accumulating
    # shifted matmuls) to avoid materializing the 9x patch slab in HBM.
    taps = [xp[:, dy:dy + H, dx:dx + W, :] for dy in range(3) for dx in range(3)]
    pat = jnp.concatenate(taps, axis=-1).reshape(B * H * W, 9 * C)
    wm = jnp.transpose(w, (2, 3, 1, 0)).reshape(9 * C, Cout)   # rows (ky,kx,ci)
    out = matmul_bias(pat, wm, b, relu=True)
    return out.reshape(B, H, W, Cout)


def convtranspose2x2_relu(x, w, b):
    """ConvTranspose2d(k=2, s=2) + ReLU on NHWC; w: (Cin, Cout, 2, 2)."""
    B, H, W, C = x.shape
    Cout = w.shape[1]
    wm = jnp.transpose(w, (0, 2, 3, 1)).reshape(C, 4 * Cout)   # cols (ky,kx,co)
    bm = jnp.tile(b, 4)
    out = matmul_bias(x.reshape(B * H * W, C), wm, bm, relu=True)
    out = out.reshape(B, H, W, 2, 2, Cout)
    out = jnp.transpose(out, (0, 1, 3, 2, 4, 5)).reshape(B, 2 * H, 2 * W, Cout)
    return out


def conv1x1(x, w, b):
    """Conv2d(k=1) on NHWC; w: (Cout, Cin, 1, 1)."""
    B, H, W, C = x.shape
    Cout = w.shape[0]
    wm = w.reshape(Cout, C).T
    out = matmul_bias(x.reshape(B * H * W, C), wm, b, relu=False)
    return out.reshape(B, H, W, Cout)


def renet_forward(x, hor_params, ver_params):
    """ReNet with patch_size=(1,1): horizontal then vertical BiGRU. x: NHWC."""
    def rnn_dir(x, params, ver):
        if ver:
            x = jnp.transpose(x, (0, 2, 1, 3))      # swap H/W, C stays on lanes
        B, Hh, Ww, C = x.shape
        xt = jnp.transpose(x.reshape(B * Hh, Ww, C), (1, 0, 2))   # (T, N, C)
        out = bigru(xt, params)                                    # (T, N, 2H)
        out = jnp.transpose(out, (1, 0, 2)).reshape(B, Hh, Ww, -1)
        if ver:
            out = jnp.transpose(out, (0, 2, 1, 3))
        return out

    x = rnn_dir(x, hor_params, ver=False)
    x = rnn_dir(x, ver_params, ver=True)
    return x


# --------------------------------------------------------------------------
# ReSeg forward (NHWC internally, NCHW in / out to match PyTorch)
# --------------------------------------------------------------------------
def reseg_forward(x_nchw, params):
    x = jnp.transpose(x_nchw, (0, 2, 3, 1))          # single NCHW -> NHWC
    vp = params['vgg']
    # SkipVGG16 (VGG16 cfg 'D', in_channels=2, first 16 layers, skips at 3, 8)
    h = conv3x3_relu(x, *vp[0])          # 2   -> 64
    h = conv3x3_relu(h, *vp[1])          # 64  -> 64
    first_skip = h                       # (B, H, W, 64)
    h = maxpool2x2(h)
    h = conv3x3_relu(h, *vp[2])          # 64  -> 128
    h = conv3x3_relu(h, *vp[3])          # 128 -> 128
    second_skip = h                      # (B, H/2, W/2, 128)
    h = maxpool2x2(h)
    h = conv3x3_relu(h, *vp[4])          # 128 -> 256
    h = conv3x3_relu(h, *vp[5])          # 256 -> 256
    h = conv3x3_relu(h, *vp[6])          # 256 -> 256

    h = renet_forward(h, *params['renet1'])             # (B, H/4, W/4, 200)
    h = renet_forward(h, *params['renet2'])              # (B, H/4, W/4, 200)

    d = convtranspose2x2_relu(h, *params['up1'])          # (B, H/2, W/2, 100)
    d = jnp.concatenate([d, second_skip], axis=-1)        # (..., 228)
    d = convtranspose2x2_relu(d, *params['up2'])          # (B, H, W, 100)
    d = jnp.concatenate([d, first_skip], axis=-1)         # (..., 164)
    o = conv1x1(d, *params['final'])                      # (B, H, W, 1)
    return jnp.transpose(o, (0, 3, 1, 2))                 # back to NCHW


# --------------------------------------------------------------------------
# Deterministic synthetic parameters (shapes from the PyTorch __init__)
# --------------------------------------------------------------------------
def init_params(key):
    keys = iter(jax.random.split(key, 64))

    def rnd(shape):
        return jax.random.normal(next(keys), shape, jnp.float32) * 0.05

    def conv_p(cin, cout, k):
        return rnd((cout, cin, k, k)), rnd((cout,))

    def convT_p(cin, cout):
        return rnd((cin, cout, 2, 2)), rnd((cout,))

    def gru_p(cin, h):
        # forward + reverse: W_ih^T, W_hh^T, b_ih, b_hh (gate order r,z,n)
        return (rnd((cin, 3 * h)), rnd((h, 3 * h)), rnd((1, 3 * h)), rnd((1, 3 * h)),
                rnd((cin, 3 * h)), rnd((h, 3 * h)), rnd((1, 3 * h)), rnd((1, 3 * h)))

    params = {
        'vgg': [conv_p(2, 64, 3), conv_p(64, 64, 3),
                conv_p(64, 128, 3), conv_p(128, 128, 3),
                conv_p(128, 256, 3), conv_p(256, 256, 3), conv_p(256, 256, 3)],
        'renet1': (gru_p(256, 100), gru_p(200, 100)),
        'renet2': (gru_p(200, 100), gru_p(200, 100)),
        'up1': convT_p(200, 100),
        'up2': convT_p(100 + 128, 100),
        'final': conv_p(100 + 64, 1, 1),
    }
    return params


if __name__ == "__main__":
    key = jax.random.PRNGKey(0)
    kx, kp = jax.random.split(key)
    # ReSeg's VGG trunk is built with in_channels=2 (see make_layers).
    x = jax.random.normal(kx, (2, 2, 16, 16), jnp.float32)
    params = init_params(kp)

    out = jax.jit(reseg_forward)(x, params)
    out = jax.block_until_ready(out)
    assert out.shape == (2, 1, 16, 16), out.shape
    assert out.dtype == jnp.float32
    print("KERNEL_OK")
</pallas_src>

<mosaic_0001>
module attributes {stable_mosaic.version = 11 : i64} {
  func.func @_matmul_bias_kernel(%arg0: i32, %arg1: i32, %arg2: i32, %arg3: memref<256x128xbf16, #tpu.memory_space<vmem>>, %arg4: memref<128x128xbf16, #tpu.memory_space<vmem>>, %arg5: memref<1x128xf32, #tpu.memory_space<vmem>>, %arg6: memref<256x128xf32, #tpu.memory_space<vmem>>, %arg7: memref<256x128xf32, #tpu.memory_space<vmem>>) attributes {dimension_semantics = [#tpu.dimension_semantics<parallel>, #tpu.dimension_semantics<parallel>, #tpu.dimension_semantics<arbitrary>], iteration_bounds = array<i64: 2, 1, 1>, scalar_prefetch = 0 : i64, scratch_operands = 1 : i64, tpu.core_type = #tpu.core_type<tc>, window_params = [{transform_indices = @transform_0, window_bounds = array<i64: 256, 128>}, {transform_indices = @transform_1, window_bounds = array<i64: 128, 128>}, {transform_indices = @transform_2, window_bounds = array<i64: 1, 128>}, {transform_indices = @transform_3, window_bounds = array<i64: 256, 128>}]} {
    %c0_i32 = arith.constant 0 : i32
    %0 = arith.cmpi eq, %arg2, %c0_i32 : i32
    %1 = arith.extui %0 : i1 to i32
    %c0_i32_0 = arith.constant 0 : i32
    %2 = arith.cmpi ne, %1, %c0_i32_0 : i32
    scf.if %2 {
      %cst_10 = arith.constant 0.000000e+00 : f32
      %12 = vector.broadcast %cst_10 : f32 to vector<256x128xf32>
      %c0_11 = arith.constant 0 : index
      %c0_12 = arith.constant 0 : index
      %13 = vector.load %arg7[%c0_11, %c0_12] : memref<256x128xf32, #tpu.memory_space<vmem>>, vector<256x128xf32>
      tpu.vector_store %arg7[%c0_11, %c0_12], %12 {strides = array<i32>} : memref<256x128xf32, #tpu.memory_space<vmem>>, vector<256x128xf32>,
    } else {
    }
    %c0 = arith.constant 0 : index
    %c0_1 = arith.constant 0 : index
    %3 = vector.load %arg7[%c0, %c0_1] : memref<256x128xf32, #tpu.memory_space<vmem>>, vector<256x128xf32>
    %c0_2 = arith.constant 0 : index
    %c0_3 = arith.constant 0 : index
    %4 = vector.load %arg3[%c0_2, %c0_3] : memref<256x128xbf16, #tpu.memory_space<vmem>>, vector<256x128xbf16>
    %c0_4 = arith.constant 0 : index
    %c0_5 = arith.constant 0 : index
    %5 = vector.load %arg4[%c0_4, %c0_5] : memref<128x128xbf16, #tpu.memory_space<vmem>>, vector<128x128xbf16>
    %cst = arith.constant dense<0.000000e+00> : vector<256x128xf32>
    %6 = tpu.matmul %4, %5, %cst {dimension_numbers = #tpu.dot_dimension_numbers<[1], [0], [0], [1], [0, 0, 1, 1], [], []>} : vector<256x128xbf16>, vector<128x128xbf16>, vector<256x128xf32> -> vector<256x128xf32>
    %7 = arith.addf %3, %6 : vector<256x128xf32>
    %c0_6 = arith.constant 0 : index
    %c0_7 = arith.constant 0 : index
    %8 = vector.load %arg7[%c0_6, %c0_7] : memref<256x128xf32, #tpu.memory_space<vmem>>, vector<256x128xf32>
    tpu.vector_store %arg7[%c0_6, %c0_7], %7 {strides = array<i32>} : memref<256x128xf32, #tpu.memory_space<vmem>>, vector<256x128xf32>,
    %c0_i32_8 = arith.constant 0 : i32
    %9 = arith.cmpi eq, %arg2, %c0_i32_8 : i32
    %10 = arith.extui %9 : i1 to i32
    %c0_i32_9 = arith.constant 0 : i32
    %11 = arith.cmpi ne, %10, %c0_i32_9 : i32
    scf.if %11 {
      %c0_10 = arith.constant 0 : index
      %c0_11 = arith.constant 0 : index
      %12 = vector.load %arg7[%c0_10, %c0_11] : memref<256x128xf32, #tpu.memory_space<vmem>>, vector<256x128xf32>
      %c0_12 = arith.constant 0 : index
      %c0_13 = arith.constant 0 : index
      %13 = vector.load %arg5[%c0_12, %c0_13] : memref<1x128xf32, #tpu.memory_space<vmem>>, vector<1x128xf32>
      %14 = vector.broadcast %13 : vector<1x128xf32> to vector<256x128xf32>
      %15 = arith.addf %12, %14 : vector<256x128xf32>
      %cst_14 = arith.constant 0.000000e+00 : f32
      %16 = vector.broadcast %cst_14 : f32 to vector<256x128xf32>
      %17 = arith.maximumf %15, %16 : vector<256x128xf32>
      %c0_15 = arith.constant 0 : index
      %c0_16 = arith.constant 0 : index
      %18 = vector.load %arg6[%c0_15, %c0_16] : memref<256x128xf32, #tpu.memory_space<vmem>>, vector<256x128xf32>
      tpu.vector_store %arg6[%c0_15, %c0_16], %17 {strides = array<i32>} : memref<256x128xf32, #tpu.memory_space<vmem>>, vector<256x128xf32>,
    } else {
    }
    return
  }
  func.func @transform_0(%arg0: i32, %arg1: i32, %arg2: i32) -> (i32, i32) {
    %c0_i32 = arith.constant 0 : i32
    return %arg0, %arg2 : i32, i32
  }
  func.func @transform_1(%arg0: i32, %arg1: i32, %arg2: i32) -> (i32, i32) {
    %c0_i32 = arith.constant 0 : i32
    return %arg2, %arg1 : i32, i32
  }
  func.func @transform_2(%arg0: i32, %arg1: i32, %arg2: i32) -> (i32, i32) {
    %c0_i32 = arith.constant 0 : i32
    %c0_i32_0 = arith.constant 0 : i32
    return %c0_i32, %arg1 : i32, i32
  }
  func.func @transform_3(%arg0: i32, %arg1: i32, %arg2: i32) -> (i32, i32) {
    %c0_i32 = arith.constant 0 : i32
    return %arg0, %arg1 : i32, i32
  }
}

module attributes {stable_mosaic.version = 11 : i64} {
  func.func @_maxpool_kernel(%arg0: i32, %arg1: memref<32x8x2x64xf32, #tpu.memory_space<vmem>>, %arg2: memref<16x8x64xf32, #tpu.memory_space<vmem>>) attributes {dimension_semantics = [#tpu.dimension_semantics<parallel>], iteration_bounds = array<i64: 1>, scalar_prefetch = 0 : i64, scratch_operands = 0 : i64, tpu.core_type = #tpu.core_type<tc>, window_params = [{transform_indices = @transform_0, window_bounds = array<i64: 32, 8, 2, 64>}, {transform_indices = @transform_1, window_bounds = array<i64: 16, 8, 64>}]} {
    %c0 = arith.constant 0 : index
    %c0_0 = arith.constant 0 : index
    %c0_1 = arith.constant 0 : index
    %c0_2 = arith.constant 0 : index
    %0 = vector.load %arg1[%c0, %c0_0, %c0_1, %c0_2] : memref<32x8x2x64xf32, #tpu.memory_space<vmem>>, vector<32x8x2x64xf32>
    %1 = vector.shape_cast %0 : vector<32x8x2x64xf32> to vector<16x2x8x2x64xf32>
    %cst = arith.constant dense<0xFF800000> : vector<16x8x64xf32>
    %2 = vector.multi_reduction <maximumf>, %1, %cst [1, 3] : vector<16x2x8x2x64xf32> to vector<16x8x64xf32>
    %c0_3 = arith.constant 0 : index
    %c0_4 = arith.constant 0 : index
    %c0_5 = arith.constant 0 : index
    %3 = vector.load %arg2[%c0_3, %c0_4, %c0_5] : memref<16x8x64xf32, #tpu.memory_space<vmem>>, vector<16x8x64xf32>
    tpu.vector_store %arg2[%c0_3, %c0_4, %c0_5], %2 {strides = array<i32>} : memref<16x8x64xf32, #tpu.memory_space<vmem>>, vector<16x8x64xf32>,
    return
  }
  func.func @transform_0(%arg0: i32) -> (i32, i32, i32, i32) {
    %c0_i32 = arith.constant 0 : i32
    %c0_i32_0 = arith.constant 0 : i32
    %c0_i32_1 = arith.constant 0 : i32
    %c0_i32_2 = arith.constant 0 : i32
    return %arg0, %c0_i32, %c0_i32_0, %c0_i32_1 : i32, i32, i32, i32
  }
  func.func @transform_1(%arg0: i32) -> (i32, i32, i32) {
    %c0_i32 = arith.constant 0 : i32
    %c0_i32_0 = arith.constant 0 : i32
    %c0_i32_1 = arith.constant 0 : i32
    return %arg0, %c0_i32, %c0_i32_0 : i32, i32, i32
  }
}

module attributes {stable_mosaic.version = 11 : i64} {
  func.func @_matmul_bias_kernel(%arg0: i32, %arg1: i32, %arg2: i32, %arg3: memref<256x640xbf16, #tpu.memory_space<vmem>>, %arg4: memref<640x128xbf16, #tpu.memory_space<vmem>>, %arg5: memref<1x128xf32, #tpu.memory_space<vmem>>, %arg6: memref<256x128xf32, #tpu.memory_space<vmem>>, %arg7: memref<256x128xf32, #tpu.memory_space<vmem>>) attributes {dimension_semantics = [#tpu.dimension_semantics<parallel>, #tpu.dimension_semantics<parallel>, #tpu.dimension_semantics<arbitrary>], iteration_bounds = array<i64: 2, 1, 1>, scalar_prefetch = 0 : i64, scratch_operands = 1 : i64, tpu.core_type = #tpu.core_type<tc>, window_params = [{transform_indices = @transform_0, window_bounds = array<i64: 256, 640>}, {transform_indices = @transform_1, window_bounds = array<i64: 640, 128>}, {transform_indices = @transform_2, window_bounds = array<i64: 1, 128>}, {transform_indices = @transform_3, window_bounds = array<i64: 256, 128>}]} {
    %c0_i32 = arith.constant 0 : i32
    %0 = arith.cmpi eq, %arg2, %c0_i32 : i32
    %1 = arith.extui %0 : i1 to i32
    %c0_i32_0 = arith.constant 0 : i32
    %2 = arith.cmpi ne, %1, %c0_i32_0 : i32
    scf.if %2 {
      %cst_10 = arith.constant 0.000000e+00 : f32
      %12 = vector.broadcast %cst_10 : f32 to vector<256x128xf32>
      %c0_11 = arith.constant 0 : index
      %c0_12 = arith.constant 0 : index
      %13 = vector.load %arg7[%c0_11, %c0_12] : memref<256x128xf32, #tpu.memory_space<vmem>>, vector<256x128xf32>
      tpu.vector_store %arg7[%c0_11, %c0_12], %12 {strides = array<i32>} : memref<256x128xf32, #tpu.memory_space<vmem>>, vector<256x128xf32>,
    } else {
    }
    %c0 = arith.constant 0 : index
    %c0_1 = arith.constant 0 : index
    %3 = vector.load %arg7[%c0, %c0_1] : memref<256x128xf32, #tpu.memory_space<vmem>>, vector<256x128xf32>
    %c0_2 = arith.constant 0 : index
    %c0_3 = arith.constant 0 : index
    %4 = vector.load %arg3[%c0_2, %c0_3] : memref<256x640xbf16, #tpu.memory_space<vmem>>, vector<256x640xbf16>
    %c0_4 = arith.constant 0 : index
    %c0_5 = arith.constant 0 : index
    %5 = vector.load %arg4[%c0_4, %c0_5] : memref<640x128xbf16, #tpu.memory_space<vmem>>, vector<640x128xbf16>
    %cst = arith.constant dense<0.000000e+00> : vector<256x128xf32>
    %6 = tpu.matmul %4, %5, %cst {dimension_numbers = #tpu.dot_dimension_numbers<[1], [0], [0], [1], [0, 0, 1, 1], [], []>} : vector<256x640xbf16>, vector<640x128xbf16>, vector<256x128xf32> -> vector<256x128xf32>
    %7 = arith.addf %3, %6 : vector<256x128xf32>
    %c0_6 = arith.constant 0 : index
    %c0_7 = arith.constant 0 : index
    %8 = vector.load %arg7[%c0_6, %c0_7] : memref<256x128xf32, #tpu.memory_space<vmem>>, vector<256x128xf32>
    tpu.vector_store %arg7[%c0_6, %c0_7], %7 {strides = array<i32>} : memref<256x128xf32, #tpu.memory_space<vmem>>, vector<256x128xf32>,
    %c0_i32_8 = arith.constant 0 : i32
    %9 = arith.cmpi eq, %arg2, %c0_i32_8 : i32
    %10 = arith.extui %9 : i1 to i32
    %c0_i32_9 = arith.constant 0 : i32
    %11 = arith.cmpi ne, %10, %c0_i32_9 : i32
    scf.if %11 {
      %c0_10 = arith.constant 0 : index
      %c0_11 = arith.constant 0 : index
      %12 = vector.load %arg7[%c0_10, %c0_11] : memref<256x128xf32, #tpu.memory_space<vmem>>, vector<256x128xf32>
      %c0_12 = arith.constant 0 : index
      %c0_13 = arith.constant 0 : index
      %13 = vector.load %arg5[%c0_12, %c0_13] : memref<1x128xf32, #tpu.memory_space<vmem>>, vector<1x128xf32>
      %14 = vector.broadcast %13 : vector<1x128xf32> to vector<256x128xf32>
      %15 = arith.addf %12, %14 : vector<256x128xf32>
      %cst_14 = arith.constant 0.000000e+00 : f32
      %16 = vector.broadcast %cst_14 : f32 to vector<256x128xf32>
      %17 = arith.maximumf %15, %16 : vector<256x128xf32>
      %c0_15 = arith.constant 0 : index
      %c0_16 = arith.constant 0 : index
      %18 = vector.load %arg6[%c0_15, %c0_16] : memref<256x128xf32, #tpu.memory_space<vmem>>, vector<256x128xf32>
      tpu.vector_store %arg6[%c0_15, %c0_16], %17 {strides = array<i32>} : memref<256x128xf32, #tpu.memory_space<vmem>>, vector<256x128xf32>,
    } else {
    }
    return
  }
  func.func @transform_0(%arg0: i32, %arg1: i32, %arg2: i32) -> (i32, i32) {
    %c0_i32 = arith.constant 0 : i32
    return %arg0, %arg2 : i32, i32
  }
  func.func @transform_1(%arg0: i32, %arg1: i32, %arg2: i32) -> (i32, i32) {
    %c0_i32 = arith.constant 0 : i32
    return %arg2, %arg1 : i32, i32
  }
  func.func @transform_2(%arg0: i32, %arg1: i32, %arg2: i32) -> (i32, i32) {
    %c0_i32 = arith.constant 0 : i32
    %c0_i32_0 = arith.constant 0 : i32
    return %c0_i32, %arg1 : i32, i32
  }
  func.func @transform_3(%arg0: i32, %arg1: i32, %arg2: i32) -> (i32, i32) {
    %c0_i32 = arith.constant 0 : i32
    return %arg0, %arg1 : i32, i32
  }
}

module attributes {stable_mosaic.version = 11 : i64} {
  func.func @_matmul_bias_kernel(%arg0: i32, %arg1: i32, %arg2: i32, %arg3: memref<128x640xbf16, #tpu.memory_space<vmem>>, %arg4: memref<640x128xbf16, #tpu.memory_space<vmem>>, %arg5: memref<1x128xf32, #tpu.memory_space<vmem>>, %arg6: memref<128x128xf32, #tpu.memory_space<vmem>>, %arg7: memref<128x128xf32, #tpu.memory_space<vmem>>) attributes {dimension_semantics = [#tpu.dimension_semantics<parallel>, #tpu.dimension_semantics<parallel>, #tpu.dimension_semantics<arbitrary>], iteration_bounds = array<i64: 1, 1, 1>, scalar_prefetch = 0 : i64, scratch_operands = 1 : i64, tpu.core_type = #tpu.core_type<tc>, window_params = [{transform_indices = @transform_0, window_bounds = array<i64: 128, 640>}, {transform_indices = @transform_1, window_bounds = array<i64: 640, 128>}, {transform_indices = @transform_2, window_bounds = array<i64: 1, 128>}, {transform_indices = @transform_3, window_bounds = array<i64: 128, 128>}]} {
    %c0_i32 = arith.constant 0 : i32
    %0 = arith.cmpi eq, %arg2, %c0_i32 : i32
    %1 = arith.extui %0 : i1 to i32
    %c0_i32_0 = arith.constant 0 : i32
    %2 = arith.cmpi ne, %1, %c0_i32_0 : i32
    scf.if %2 {
      %cst_10 = arith.constant 0.000000e+00 : f32
      %12 = vector.broadcast %cst_10 : f32 to vector<128x128xf32>
      %c0_11 = arith.constant 0 : index
      %c0_12 = arith.constant 0 : index
      %13 = vector.load %arg7[%c0_11, %c0_12] : memref<128x128xf32, #tpu.memory_space<vmem>>, vector<128x128xf32>
      tpu.vector_store %arg7[%c0_11, %c0_12], %12 {strides = array<i32>} : memref<128x128xf32, #tpu.memory_space<vmem>>, vector<128x128xf32>,
    } else {
    }
    %c0 = arith.constant 0 : index
    %c0_1 = arith.constant 0 : index
    %3 = vector.load %arg7[%c0, %c0_1] : memref<128x128xf32, #tpu.memory_space<vmem>>, vector<128x128xf32>
    %c0_2 = arith.constant 0 : index
    %c0_3 = arith.constant 0 : index
    %4 = vector.load %arg3[%c0_2, %c0_3] : memref<128x640xbf16, #tpu.memory_space<vmem>>, vector<128x640xbf16>
    %c0_4 = arith.constant 0 : index
    %c0_5 = arith.constant 0 : index
    %5 = vector.load %arg4[%c0_4, %c0_5] : memref<640x128xbf16, #tpu.memory_space<vmem>>, vector<640x128xbf16>
    %cst = arith.constant dense<0.000000e+00> : vector<128x128xf32>
    %6 = tpu.matmul %4, %5, %cst {dimension_numbers = #tpu.dot_dimension_numbers<[1], [0], [0], [1], [0, 0, 1, 1], [], []>} : vector<128x640xbf16>, vector<640x128xbf16>, vector<128x128xf32> -> vector<128x128xf32>
    %7 = arith.addf %3, %6 : vector<128x128xf32>
    %c0_6 = arith.constant 0 : index
    %c0_7 = arith.constant 0 : index
    %8 = vector.load %arg7[%c0_6, %c0_7] : memref<128x128xf32, #tpu.memory_space<vmem>>, vector<128x128xf32>
    tpu.vector_store %arg7[%c0_6, %c0_7], %7 {strides = array<i32>} : memref<128x128xf32, #tpu.memory_space<vmem>>, vector<128x128xf32>,
    %c0_i32_8 = arith.constant 0 : i32
    %9 = arith.cmpi eq, %arg2, %c0_i32_8 : i32
    %10 = arith.extui %9 : i1 to i32
    %c0_i32_9 = arith.constant 0 : i32
    %11 = arith.cmpi ne, %10, %c0_i32_9 : i32
    scf.if %11 {
      %c0_10 = arith.constant 0 : index
      %c0_11 = arith.constant 0 : index
      %12 = vector.load %arg7[%c0_10, %c0_11] : memref<128x128xf32, #tpu.memory_space<vmem>>, vector<128x128xf32>
      %c0_12 = arith.constant 0 : index
      %c0_13 = arith.constant 0 : index
      %13 = vector.load %arg5[%c0_12, %c0_13] : memref<1x128xf32, #tpu.memory_space<vmem>>, vector<1x128xf32>
      %14 = vector.broadcast %13 : vector<1x128xf32> to vector<128x128xf32>
      %15 = arith.addf %12, %14 : vector<128x128xf32>
      %cst_14 = arith.constant 0.000000e+00 : f32
      %16 = vector.broadcast %cst_14 : f32 to vector<128x128xf32>
      %17 = arith.maximumf %15, %16 : vector<128x128xf32>
      %c0_15 = arith.constant 0 : index
      %c0_16 = arith.constant 0 : index
      %18 = vector.load %arg6[%c0_15, %c0_16] : memref<128x128xf32, #tpu.memory_space<vmem>>, vector<128x128xf32>
      tpu.vector_store %arg6[%c0_15, %c0_16], %17 {strides = array<i32>} : memref<128x128xf32, #tpu.memory_space<vmem>>, vector<128x128xf32>,
    } else {
    }
    return
  }
  func.func @transform_0(%arg0: i32, %arg1: i32, %arg2: i32) -> (i32, i32) {
    %c0_i32 = arith.constant 0 : i32
    return %arg0, %arg2 : i32, i32
  }
  func.func @transform_1(%arg0: i32, %arg1: i32, %arg2: i32) -> (i32, i32) {
    %c0_i32 = arith.constant 0 : i32
    return %arg2, %arg1 : i32, i32
  }
  func.func @transform_2(%arg0: i32, %arg1: i32, %arg2: i32) -> (i32, i32) {
    %c0_i32 = arith.constant 0 : i32
    %c0_i32_0 = arith.constant 0 : i32
    return %c0_i32, %arg1 : i32, i32
  }
  func.func @transform_3(%arg0: i32, %arg1: i32, %arg2: i32) -> (i32, i32) {
    %c0_i32 = arith.constant 0 : i32
    return %arg0, %arg1 : i32, i32
  }
}

module attributes {stable_mosaic.version = 11 : i64} {
  func.func @_matmul_bias_kernel(%arg0: i32, %arg1: i32, %arg2: i32, %arg3: memref<128x384xbf16, #tpu.memory_space<vmem>>, %arg4: memref<384x128xbf16, #tpu.memory_space<vmem>>, %arg5: memref<1x128xf32, #tpu.memory_space<vmem>>, %arg6: memref<128x128xf32, #tpu.memory_space<vmem>>, %arg7: memref<128x128xf32, #tpu.memory_space<vmem>>) attributes {dimension_semantics = [#tpu.dimension_semantics<parallel>, #tpu.dimension_semantics<parallel>, #tpu.dimension_semantics<arbitrary>], iteration_bounds = array<i64: 1, 1, 3>, scalar_prefetch = 0 : i64, scratch_operands = 1 : i64, tpu.core_type = #tpu.core_type<tc>, window_params = [{transform_indices = @transform_0, window_bounds = array<i64: 128, 384>}, {transform_indices = @transform_1, window_bounds = array<i64: 384, 128>}, {transform_indices = @transform_2, window_bounds = array<i64: 1, 128>}, {transform_indices = @transform_3, window_bounds = array<i64: 128, 128>}]} {
    %c0_i32 = arith.constant 0 : i32
    %0 = arith.cmpi eq, %arg2, %c0_i32 : i32
    %1 = arith.extui %0 : i1 to i32
    %c0_i32_0 = arith.constant 0 : i32
    %2 = arith.cmpi ne, %1, %c0_i32_0 : i32
    scf.if %2 {
      %cst_9 = arith.constant 0.000000e+00 : f32
      %12 = vector.broadcast %cst_9 : f32 to vector<128x128xf32>
      %c0_10 = arith.constant 0 : index
      %c0_11 = arith.constant 0 : index
      %13 = vector.load %arg7[%c0_10, %c0_11] : memref<128x128xf32, #tpu.memory_space<vmem>>, vector<128x128xf32>
      tpu.vector_store %arg7[%c0_10, %c0_11], %12 {strides = array<i32>} : memref<128x128xf32, #tpu.memory_space<vmem>>, vector<128x128xf32>,
    } else {
    }
    %c0 = arith.constant 0 : index
    %c0_1 = arith.constant 0 : index
    %3 = vector.load %arg7[%c0, %c0_1] : memref<128x128xf32, #tpu.memory_space<vmem>>, vector<128x128xf32>
    %c0_2 = arith.constant 0 : index
    %c0_3 = arith.constant 0 : index
    %4 = vector.load %arg3[%c0_2, %c0_3] : memref<128x384xbf16, #tpu.memory_space<vmem>>, vector<128x384xbf16>
    %c0_4 = arith.constant 0 : index
    %c0_5 = arith.constant 0 : index
    %5 = vector.load %arg4[%c0_4, %c0_5] : memref<384x128xbf16, #tpu.memory_space<vmem>>, vector<384x128xbf16>
    %cst = arith.constant dense<0.000000e+00> : vector<128x128xf32>
    %6 = tpu.matmul %4, %5, %cst {dimension_numbers = #tpu.dot_dimension_numbers<[1], [0], [0], [1], [0, 0, 1, 1], [], []>} : vector<128x384xbf16>, vector<384x128xbf16>, vector<128x128xf32> -> vector<128x128xf32>
    %7 = arith.addf %3, %6 : vector<128x128xf32>
    %c0_6 = arith.constant 0 : index
    %c0_7 = arith.constant 0 : index
    %8 = vector.load %arg7[%c0_6, %c0_7] : memref<128x128xf32, #tpu.memory_space<vmem>>, vector<128x128xf32>
    tpu.vector_store %arg7[%c0_6, %c0_7], %7 {strides = array<i32>} : memref<128x128xf32, #tpu.memory_space<vmem>>, vector<128x128xf32>,
    %c2_i32 = arith.constant 2 : i32
    %9 = arith.cmpi eq, %arg2, %c2_i32 : i32
    %10 = arith.extui %9 : i1 to i32
    %c0_i32_8 = arith.constant 0 : i32
    %11 = arith.cmpi ne, %10, %c0_i32_8 : i32
    scf.if %11 {
      %c0_9 = arith.constant 0 : index
      %c0_10 = arith.constant 0 : index
      %12 = vector.load %arg7[%c0_9, %c0_10] : memref<128x128xf32, #tpu.memory_space<vmem>>, vector<128x128xf32>
      %c0_11 = arith.constant 0 : index
      %c0_12 = arith.constant 0 : index
      %13 = vector.load %arg5[%c0_11, %c0_12] : memref<1x128xf32, #tpu.memory_space<vmem>>, vector<1x128xf32>
      %14 = vector.broadcast %13 : vector<1x128xf32> to vector<128x128xf32>
      %15 = arith.addf %12, %14 : vector<128x128xf32>
      %cst_13 = arith.constant 0.000000e+00 : f32
      %16 = vector.broadcast %cst_13 : f32 to vector<128x128xf32>
      %17 = arith.maximumf %15, %16 : vector<128x128xf32>
      %c0_14 = arith.constant 0 : index
      %c0_15 = arith.constant 0 : index
      %18 = vector.load %arg6[%c0_14, %c0_15] : memref<128x128xf32, #tpu.memory_space<vmem>>, vector<128x128xf32>
      tpu.vector_store %arg6[%c0_14, %c0_15], %17 {strides = array<i32>} : memref<128x128xf32, #tpu.memory_space<vmem>>, vector<128x128xf32>,
    } else {
    }
    return
  }
  func.func @transform_0(%arg0: i32, %arg1: i32, %arg2: i32) -> (i32, i32) {
    %c0_i32 = arith.constant 0 : i32
    return %arg0, %arg2 : i32, i32
  }
  func.func @transform_1(%arg0: i32, %arg1: i32, %arg2: i32) -> (i32, i32) {
    %c0_i32 = arith.constant 0 : i32
    return %arg2, %arg1 : i32, i32
  }
  func.func @transform_2(%arg0: i32, %arg1: i32, %arg2: i32) -> (i32, i32) {
    %c0_i32 = arith.constant 0 : i32
    %c0_i32_0 = arith.constant 0 : i32
    return %c0_i32, %arg1 : i32, i32
  }
  func.func @transform_3(%arg0: i32, %arg1: i32, %arg2: i32) -> (i32, i32) {
    %c0_i32 = arith.constant 0 : i32
    return %arg0, %arg1 : i32, i32
  }
}

module attributes {stable_mosaic.version = 11 : i64} {
  func.func @_maxpool_kernel(%arg0: i32, %arg1: memref<16x4x2x128xf32, #tpu.memory_space<vmem>>, %arg2: memref<8x4x128xf32, #tpu.memory_space<vmem>>) attributes {dimension_semantics = [#tpu.dimension_semantics<parallel>], iteration_bounds = array<i64: 1>, scalar_prefetch = 0 : i64, scratch_operands = 0 : i64, tpu.core_type = #tpu.core_type<tc>, window_params = [{transform_indices = @transform_0, window_bounds = array<i64: 16, 4, 2, 128>}, {transform_indices = @transform_1, window_bounds = array<i64: 8, 4, 128>}]} {
    %c0 = arith.constant 0 : index
    %c0_0 = arith.constant 0 : index
    %c0_1 = arith.constant 0 : index
    %c0_2 = arith.constant 0 : index
    %0 = vector.load %arg1[%c0, %c0_0, %c0_1, %c0_2] : memref<16x4x2x128xf32, #tpu.memory_space<vmem>>, vector<16x4x2x128xf32>
    %1 = vector.shape_cast %0 : vector<16x4x2x128xf32> to vector<8x2x4x2x128xf32>
    %cst = arith.constant dense<0xFF800000> : vector<8x4x128xf32>
    %2 = vector.multi_reduction <maximumf>, %1, %cst [1, 3] : vector<8x2x4x2x128xf32> to vector<8x4x128xf32>
    %c0_3 = arith.constant 0 : index
    %c0_4 = arith.constant 0 : index
    %c0_5 = arith.constant 0 : index
    %3 = vector.load %arg2[%c0_3, %c0_4, %c0_5] : memref<8x4x128xf32, #tpu.memory_space<vmem>>, vector<8x4x128xf32>
    tpu.vector_store %arg2[%c0_3, %c0_4, %c0_5], %2 {strides = array<i32>} : memref<8x4x128xf32, #tpu.memory_space<vmem>>, vector<8x4x128xf32>,
    return
  }
  func.func @transform_0(%arg0: i32) -> (i32, i32, i32, i32) {
    %c0_i32 = arith.constant 0 : i32
    %c0_i32_0 = arith.constant 0 : i32
    %c0_i32_1 = arith.constant 0 : i32
    %c0_i32_2 = arith.constant 0 : i32
    return %arg0, %c0_i32, %c0_i32_0, %c0_i32_1 : i32, i32, i32, i32
  }
  func.func @transform_1(%arg0: i32) -> (i32, i32, i32) {
    %c0_i32 = arith.constant 0 : i32
    %c0_i32_0 = arith.constant 0 : i32
    %c0_i32_1 = arith.constant 0 : i32
    return %arg0, %c0_i32, %c0_i32_0 : i32, i32, i32
  }
}

module attributes {stable_mosaic.version = 11 : i64} {
  func.func @_matmul_bias_kernel(%arg0: i32, %arg1: i32, %arg2: i32, %arg3: memref<32x384xbf16, #tpu.memory_space<vmem>>, %arg4: memref<384x256xbf16, #tpu.memory_space<vmem>>, %arg5: memref<1x256xf32, #tpu.memory_space<vmem>>, %arg6: memref<32x256xf32, #tpu.memory_space<vmem>>, %arg7: memref<32x256xf32, #tpu.memory_space<vmem>>) attributes {dimension_semantics = [#tpu.dimension_semantics<parallel>, #tpu.dimension_semantics<parallel>, #tpu.dimension_semantics<arbitrary>], iteration_bounds = array<i64: 1, 1, 3>, scalar_prefetch = 0 : i64, scratch_operands = 1 : i64, tpu.core_type = #tpu.core_type<tc>, window_params = [{transform_indices = @transform_0, window_bounds = array<i64: 32, 384>}, {transform_indices = @transform_1, window_bounds = array<i64: 384, 256>}, {transform_indices = @transform_2, window_bounds = array<i64: 1, 256>}, {transform_indices = @transform_3, window_bounds = array<i64: 32, 256>}]} {
    %c0_i32 = arith.constant 0 : i32
    %0 = arith.cmpi eq, %arg2, %c0_i32 : i32
    %1 = arith.extui %0 : i1 to i32
    %c0_i32_0 = arith.constant 0 : i32
    %2 = arith.cmpi ne, %1, %c0_i32_0 : i32
    scf.if %2 {
      %cst_9 = arith.constant 0.000000e+00 : f32
      %12 = vector.broadcast %cst_9 : f32 to vector<32x256xf32>
      %c0_10 = arith.constant 0 : index
      %c0_11 = arith.constant 0 : index
      %13 = vector.load %arg7[%c0_10, %c0_11] : memref<32x256xf32, #tpu.memory_space<vmem>>, vector<32x256xf32>
      tpu.vector_store %arg7[%c0_10, %c0_11], %12 {strides = array<i32>} : memref<32x256xf32, #tpu.memory_space<vmem>>, vector<32x256xf32>,
    } else {
    }
    %c0 = arith.constant 0 : index
    %c0_1 = arith.constant 0 : index
    %3 = vector.load %arg7[%c0, %c0_1] : memref<32x256xf32, #tpu.memory_space<vmem>>, vector<32x256xf32>
    %c0_2 = arith.constant 0 : index
    %c0_3 = arith.constant 0 : index
    %4 = vector.load %arg3[%c0_2, %c0_3] : memref<32x384xbf16, #tpu.memory_space<vmem>>, vector<32x384xbf16>
    %c0_4 = arith.constant 0 : index
    %c0_5 = arith.constant 0 : index
    %5 = vector.load %arg4[%c0_4, %c0_5] : memref<384x256xbf16, #tpu.memory_space<vmem>>, vector<384x256xbf16>
    %cst = arith.constant dense<0.000000e+00> : vector<32x256xf32>
    %6 = tpu.matmul %4, %5, %cst {dimension_numbers = #tpu.dot_dimension_numbers<[1], [0], [0], [1], [0, 0, 1, 1], [], []>} : vector<32x384xbf16>, vector<384x256xbf16>, vector<32x256xf32> -> vector<32x256xf32>
    %7 = arith.addf %3, %6 : vector<32x256xf32>
    %c0_6 = arith.constant 0 : index
    %c0_7 = arith.constant 0 : index
    %8 = vector.load %arg7[%c0_6, %c0_7] : memref<32x256xf32, #tpu.memory_space<vmem>>, vector<32x256xf32>
    tpu.vector_store %arg7[%c0_6, %c0_7], %7 {strides = array<i32>} : memref<32x256xf32, #tpu.memory_space<vmem>>, vector<32x256xf32>,
    %c2_i32 = arith.constant 2 : i32
    %9 = arith.cmpi eq, %arg2, %c2_i32 : i32
    %10 = arith.extui %9 : i1 to i32
    %c0_i32_8 = arith.constant 0 : i32
    %11 = arith.cmpi ne, %10, %c0_i32_8 : i32
    scf.if %11 {
      %c0_9 = arith.constant 0 : index
      %c0_10 = arith.constant 0 : index
      %12 = vector.load %arg7[%c0_9, %c0_10] : memref<32x256xf32, #tpu.memory_space<vmem>>, vector<32x256xf32>
      %c0_11 = arith.constant 0 : index
      %c0_12 = arith.constant 0 : index
      %13 = vector.load %arg5[%c0_11, %c0_12] : memref<1x256xf32, #tpu.memory_space<vmem>>, vector<1x256xf32>
      %14 = vector.broadcast %13 : vector<1x256xf32> to vector<32x256xf32>
      %15 = arith.addf %12, %14 : vector<32x256xf32>
      %cst_13 = arith.constant 0.000000e+00 : f32
      %16 = vector.broadcast %cst_13 : f32 to vector<32x256xf32>
      %17 = arith.maximumf %15, %16 : vector<32x256xf32>
      %c0_14 = arith.constant 0 : index
      %c0_15 = arith.constant 0 : index
      %18 = vector.load %arg6[%c0_14, %c0_15] : memref<32x256xf32, #tpu.memory_space<vmem>>, vector<32x256xf32>
      tpu.vector_store %arg6[%c0_14, %c0_15], %17 {strides = array<i32>} : memref<32x256xf32, #tpu.memory_space<vmem>>, vector<32x256xf32>,
    } else {
    }
    return
  }
  func.func @transform_0(%arg0: i32, %arg1: i32, %arg2: i32) -> (i32, i32) {
    %c0_i32 = arith.constant 0 : i32
    return %arg0, %arg2 : i32, i32
  }
  func.func @transform_1(%arg0: i32, %arg1: i32, %arg2: i32) -> (i32, i32) {
    %c0_i32 = arith.constant 0 : i32
    return %arg2, %arg1 : i32, i32
  }
  func.func @transform_2(%arg0: i32, %arg1: i32, %arg2: i32) -> (i32, i32) {
    %c0_i32 = arith.constant 0 : i32
    %c0_i32_0 = arith.constant 0 : i32
    return %c0_i32, %arg1 : i32, i32
  }
  func.func @transform_3(%arg0: i32, %arg1: i32, %arg2: i32) -> (i32, i32) {
    %c0_i32 = arith.constant 0 : i32
    return %arg0, %arg1 : i32, i32
  }
}

module attributes {stable_mosaic.version = 11 : i64} {
  func.func @_matmul_bias_kernel(%arg0: i32, %arg1: i32, %arg2: i32, %arg3: memref<32x768xbf16, #tpu.memory_space<vmem>>, %arg4: memref<768x256xbf16, #tpu.memory_space<vmem>>, %arg5: memref<1x256xf32, #tpu.memory_space<vmem>>, %arg6: memref<32x256xf32, #tpu.memory_space<vmem>>, %arg7: memref<32x256xf32, #tpu.memory_space<vmem>>) attributes {dimension_semantics = [#tpu.dimension_semantics<parallel>, #tpu.dimension_semantics<parallel>, #tpu.dimension_semantics<arbitrary>], iteration_bounds = array<i64: 1, 1, 3>, scalar_prefetch = 0 : i64, scratch_operands = 1 : i64, tpu.core_type = #tpu.core_type<tc>, window_params = [{transform_indices = @transform_0, window_bounds = array<i64: 32, 768>}, {transform_indices = @transform_1, window_bounds = array<i64: 768, 256>}, {transform_indices = @transform_2, window_bounds = array<i64: 1, 256>}, {transform_indices = @transform_3, window_bounds = array<i64: 32, 256>}]} {
    %c0_i32 = arith.constant 0 : i32
    %0 = arith.cmpi eq, %arg2, %c0_i32 : i32
    %1 = arith.extui %0 : i1 to i32
    %c0_i32_0 = arith.constant 0 : i32
    %2 = arith.cmpi ne, %1, %c0_i32_0 : i32
    scf.if %2 {
      %cst_9 = arith.constant 0.000000e+00 : f32
      %12 = vector.broadcast %cst_9 : f32 to vector<32x256xf32>
      %c0_10 = arith.constant 0 : index
      %c0_11 = arith.constant 0 : index
      %13 = vector.load %arg7[%c0_10, %c0_11] : memref<32x256xf32, #tpu.memory_space<vmem>>, vector<32x256xf32>
      tpu.vector_store %arg7[%c0_10, %c0_11], %12 {strides = array<i32>} : memref<32x256xf32, #tpu.memory_space<vmem>>, vector<32x256xf32>,
    } else {
    }
    %c0 = arith.constant 0 : index
    %c0_1 = arith.constant 0 : index
    %3 = vector.load %arg7[%c0, %c0_1] : memref<32x256xf32, #tpu.memory_space<vmem>>, vector<32x256xf32>
    %c0_2 = arith.constant 0 : index
    %c0_3 = arith.constant 0 : index
    %4 = vector.load %arg3[%c0_2, %c0_3] : memref<32x768xbf16, #tpu.memory_space<vmem>>, vector<32x768xbf16>
    %c0_4 = arith.constant 0 : index
    %c0_5 = arith.constant 0 : index
    %5 = vector.load %arg4[%c0_4, %c0_5] : memref<768x256xbf16, #tpu.memory_space<vmem>>, vector<768x256xbf16>
    %cst = arith.constant dense<0.000000e+00> : vector<32x256xf32>
    %6 = tpu.matmul %4, %5, %cst {dimension_numbers = #tpu.dot_dimension_numbers<[1], [0], [0], [1], [0, 0, 1, 1], [], []>} : vector<32x768xbf16>, vector<768x256xbf16>, vector<32x256xf32> -> vector<32x256xf32>
    %7 = arith.addf %3, %6 : vector<32x256xf32>
    %c0_6 = arith.constant 0 : index
    %c0_7 = arith.constant 0 : index
    %8 = vector.load %arg7[%c0_6, %c0_7] : memref<32x256xf32, #tpu.memory_space<vmem>>, vector<32x256xf32>
    tpu.vector_store %arg7[%c0_6, %c0_7], %7 {strides = array<i32>} : memref<32x256xf32, #tpu.memory_space<vmem>>, vector<32x256xf32>,
    %c2_i32 = arith.constant 2 : i32
    %9 = arith.cmpi eq, %arg2, %c2_i32 : i32
    %10 = arith.extui %9 : i1 to i32
    %c0_i32_8 = arith.constant 0 : i32
    %11 = arith.cmpi ne, %10, %c0_i32_8 : i32
    scf.if %11 {
      %c0_9 = arith.constant 0 : index
      %c0_10 = arith.constant 0 : index
      %12 = vector.load %arg7[%c0_9, %c0_10] : memref<32x256xf32, #tpu.memory_space<vmem>>, vector<32x256xf32>
      %c0_11 = arith.constant 0 : index
      %c0_12 = arith.constant 0 : index
      %13 = vector.load %arg5[%c0_11, %c0_12] : memref<1x256xf32, #tpu.memory_space<vmem>>, vector<1x256xf32>
      %14 = vector.broadcast %13 : vector<1x256xf32> to vector<32x256xf32>
      %15 = arith.addf %12, %14 : vector<32x256xf32>
      %cst_13 = arith.constant 0.000000e+00 : f32
      %16 = vector.broadcast %cst_13 : f32 to vector<32x256xf32>
      %17 = arith.maximumf %15, %16 : vector<32x256xf32>
      %c0_14 = arith.constant 0 : index
      %c0_15 = arith.constant 0 : index
      %18 = vector.load %arg6[%c0_14, %c0_15] : memref<32x256xf32, #tpu.memory_space<vmem>>, vector<32x256xf32>
      tpu.vector_store %arg6[%c0_14, %c0_15], %17 {strides = array<i32>} : memref<32x256xf32, #tpu.memory_space<vmem>>, vector<32x256xf32>,
    } else {
    }
    return
  }
  func.func @transform_0(%arg0: i32, %arg1: i32, %arg2: i32) -> (i32, i32) {
    %c0_i32 = arith.constant 0 : i32
    return %arg0, %arg2 : i32, i32
  }
  func.func @transform_1(%arg0: i32, %arg1: i32, %arg2: i32) -> (i32, i32) {
    %c0_i32 = arith.constant 0 : i32
    return %arg2, %arg1 : i32, i32
  }
  func.func @transform_2(%arg0: i32, %arg1: i32, %arg2: i32) -> (i32, i32) {
    %c0_i32 = arith.constant 0 : i32
    %c0_i32_0 = arith.constant 0 : i32
    return %c0_i32, %arg1 : i32, i32
  }
  func.func @transform_3(%arg0: i32, %arg1: i32, %arg2: i32) -> (i32, i32) {
    %c0_i32 = arith.constant 0 : i32
    return %arg0, %arg1 : i32, i32
  }
}

module attributes {stable_mosaic.version = 11 : i64} {
  func.func @_matmul_bias_kernel(%arg0: i32, %arg1: i32, %arg2: i32, %arg3: memref<32x256xbf16, #tpu.memory_space<vmem>>, %arg4: memref<256x256xbf16, #tpu.memory_space<vmem>>, %arg5: memref<1x256xf32, #tpu.memory_space<vmem>>, %arg6: memref<32x256xf32, #tpu.memory_space<vmem>>, %arg7: memref<32x256xf32, #tpu.memory_space<vmem>>) attributes {dimension_semantics = [#tpu.dimension_semantics<parallel>, #tpu.dimension_semantics<parallel>, #tpu.dimension_semantics<arbitrary>], iteration_bounds = array<i64: 1, 3, 1>, scalar_prefetch = 0 : i64, scratch_operands = 1 : i64, tpu.core_type = #tpu.core_type<tc>, window_params = [{transform_indices = @transform_0, window_bounds = array<i64: 32, 256>}, {transform_indices = @transform_1, window_bounds = array<i64: 256, 256>}, {transform_indices = @transform_2, window_bounds = array<i64: 1, 256>}, {transform_indices = @transform_3, window_bounds = array<i64: 32, 256>}]} {
    %c0_i32 = arith.constant 0 : i32
    %0 = arith.cmpi eq, %arg2, %c0_i32 : i32
    %1 = arith.extui %0 : i1 to i32
    %c0_i32_0 = arith.constant 0 : i32
    %2 = arith.cmpi ne, %1, %c0_i32_0 : i32
    scf.if %2 {
      %cst_10 = arith.constant 0.000000e+00 : f32
      %12 = vector.broadcast %cst_10 : f32 to vector<32x256xf32>
      %c0_11 = arith.constant 0 : index
      %c0_12 = arith.constant 0 : index
      %13 = vector.load %arg7[%c0_11, %c0_12] : memref<32x256xf32, #tpu.memory_space<vmem>>, vector<32x256xf32>
      tpu.vector_store %arg7[%c0_11, %c0_12], %12 {strides = array<i32>} : memref<32x256xf32, #tpu.memory_space<vmem>>, vector<32x256xf32>,
    } else {
    }
    %c0 = arith.constant 0 : index
    %c0_1 = arith.constant 0 : index
    %3 = vector.load %arg7[%c0, %c0_1] : memref<32x256xf32, #tpu.memory_space<vmem>>, vector<32x256xf32>
    %c0_2 = arith.constant 0 : index
    %c0_3 = arith.constant 0 : index
    %4 = vector.load %arg3[%c0_2, %c0_3] : memref<32x256xbf16, #tpu.memory_space<vmem>>, vector<32x256xbf16>
    %c0_4 = arith.constant 0 : index
    %c0_5 = arith.constant 0 : index
    %5 = vector.load %arg4[%c0_4, %c0_5] : memref<256x256xbf16, #tpu.memory_space<vmem>>, vector<256x256xbf16>
    %cst = arith.constant dense<0.000000e+00> : vector<32x256xf32>
    %6 = tpu.matmul %4, %5, %cst {dimension_numbers = #tpu.dot_dimension_numbers<[1], [0], [0], [1], [0, 0, 1, 1], [], []>} : vector<32x256xbf16>, vector<256x256xbf16>, vector<32x256xf32> -> vector<32x256xf32>
    %7 = arith.addf %3, %6 : vector<32x256xf32>
    %c0_6 = arith.constant 0 : index
    %c0_7 = arith.constant 0 : index
    %8 = vector.load %arg7[%c0_6, %c0_7] : memref<32x256xf32, #tpu.memory_space<vmem>>, vector<32x256xf32>
    tpu.vector_store %arg7[%c0_6, %c0_7], %7 {strides = array<i32>} : memref<32x256xf32, #tpu.memory_space<vmem>>, vector<32x256xf32>,
    %c0_i32_8 = arith.constant 0 : i32
    %9 = arith.cmpi eq, %arg2, %c0_i32_8 : i32
    %10 = arith.extui %9 : i1 to i32
    %c0_i32_9 = arith.constant 0 : i32
    %11 = arith.cmpi ne, %10, %c0_i32_9 : i32
    scf.if %11 {
      %c0_10 = arith.constant 0 : index
      %c0_11 = arith.constant 0 : index
      %12 = vector.load %arg7[%c0_10, %c0_11] : memref<32x256xf32, #tpu.memory_space<vmem>>, vector<32x256xf32>
      %c0_12 = arith.constant 0 : index
      %c0_13 = arith.constant 0 : index
      %13 = vector.load %arg5[%c0_12, %c0_13] : memref<1x256xf32, #tpu.memory_space<vmem>>, vector<1x256xf32>
      %14 = vector.broadcast %13 : vector<1x256xf32> to vector<32x256xf32>
      %15 = arith.addf %12, %14 : vector<32x256xf32>
      %c0_14 = arith.constant 0 : index
      %c0_15 = arith.constant 0 : index
      %16 = vector.load %arg6[%c0_14, %c0_15] : memref<32x256xf32, #tpu.memory_space<vmem>>, vector<32x256xf32>
      tpu.vector_store %arg6[%c0_14, %c0_15], %15 {strides = array<i32>} : memref<32x256xf32, #tpu.memory_space<vmem>>, vector<32x256xf32>,
    } else {
    }
    return
  }
  func.func @transform_0(%arg0: i32, %arg1: i32, %arg2: i32) -> (i32, i32) {
    %c0_i32 = arith.constant 0 : i32
    return %arg0, %arg2 : i32, i32
  }
  func.func @transform_1(%arg0: i32, %arg1: i32, %arg2: i32) -> (i32, i32) {
    %c0_i32 = arith.constant 0 : i32
    return %arg2, %arg1 : i32, i32
  }
  func.func @transform_2(%arg0: i32, %arg1: i32, %arg2: i32) -> (i32, i32) {
    %c0_i32 = arith.constant 0 : i32
    %c0_i32_0 = arith.constant 0 : i32
    return %c0_i32, %arg1 : i32, i32
  }
  func.func @transform_3(%arg0: i32, %arg1: i32, %arg2: i32) -> (i32, i32) {
    %c0_i32 = arith.constant 0 : i32
    return %arg0, %arg1 : i32, i32
  }
}

module attributes {stable_mosaic.version = 11 : i64} {
  func.func @_bigru_kernel(%arg0: i32, %arg1: memref<4x8x768xf32, #tpu.memory_space<vmem>>, %arg2: memref<256x768xf32, #tpu.memory_space<vmem>>, %arg3: memref<1x768xf32, #tpu.memory_space<vmem>>, %arg4: memref<4x8x128xf32, #tpu.memory_space<vmem>>, %arg5: memref<4x8x128xf32, #tpu.memory_space<vmem>>, %arg6: memref<8x256xf32, #tpu.memory_space<vmem>>) attributes {dimension_semantics = [#tpu.dimension_semantics<parallel>], iteration_bounds = array<i64: 1>, scalar_prefetch = 0 : i64, scratch_operands = 1 : i64, tpu.core_type = #tpu.core_type<tc>, window_params = [{transform_indices = @transform_0, window_bounds = array<i64: 4, 8, 768>}, {pipeline_mode = #tpu.pipeline_mode<synchronous>, transform_indices = @transform_1, window_bounds = array<i64: 256, 768>}, {pipeline_mode = #tpu.pipeline_mode<synchronous>, transform_indices = @transform_2, window_bounds = array<i64: 1, 768>}, {transform_indices = @transform_3, window_bounds = array<i64: 4, 8, 128>}, {transform_indices = @transform_4, window_bounds = array<i64: 4, 8, 128>}]} {
    %cst = arith.constant 0.000000e+00 : f32
    %0 = vector.broadcast %cst : f32 to vector<8x256xf32>
    %c0 = arith.constant 0 : index
    %c0_0 = arith.constant 0 : index
    %1 = vector.load %arg6[%c0, %c0_0] : memref<8x256xf32, #tpu.memory_space<vmem>>, vector<8x256xf32>
    tpu.vector_store %arg6[%c0, %c0_0], %0 {strides = array<i32>} : memref<8x256xf32, #tpu.memory_space<vmem>>, vector<8x256xf32>,
    %c0_1 = arith.constant 0 : index
    %c0_2 = arith.constant 0 : index
    %2 = vector.load %arg3[%c0_1, %c0_2] : memref<1x768xf32, #tpu.memory_space<vmem>>, vector<1x768xf32>
    %c0_i32 = arith.constant 0 : i32
    %c4_i32 = arith.constant 4 : i32
    %3 = arith.addi %c0_i32, %c4_i32 : i32
    %c1_i32 = arith.constant 1 : i32
    scf.for %arg7 = %c0_i32 to %3 step %c1_i32  : i32 {
      %c3_i32 = arith.constant 3 : i32
      %4 = arith.subi %c3_i32, %arg7 : i32
      %c0_4 = arith.constant 0 : index
      %c0_5 = arith.constant 0 : index
      %5 = vector.load %arg6[%c0_4, %c0_5] : memref<8x256xf32, #tpu.memory_space<vmem>>, vector<8x256xf32>
      %c0_6 = arith.constant 0 : index
      %c0_7 = arith.constant 0 : index
      %6 = vector.load %arg2[%c0_6, %c0_7] : memref<256x768xf32, #tpu.memory_space<vmem>>, vector<256x768xf32>
      %cst_8 = arith.constant dense<0.000000e+00> : vector<8x768xf32>
      %7 = tpu.matmul %5, %6, %cst_8 {dimension_numbers = #tpu.dot_dimension_numbers<[1], [0], [0], [1], [0, 0, 1, 1], [], []>} : vector<8x256xf32>, vector<256x768xf32>, vector<8x768xf32> -> vector<8x768xf32>
      %8 = vector.broadcast %2 : vector<1x768xf32> to vector<8x768xf32>
      %9 = arith.addf %7, %8 : vector<8x768xf32>
      %10 = arith.index_cast %arg7 : i32 to index
      %c0_9 = arith.constant 0 : index
      %c0_10 = arith.constant 0 : index
      %11 = vector.load %arg1[%10, %c0_9, %c0_10] : memref<4x8x768xf32, #tpu.memory_space<vmem>>, vector<1x8x384xf32>
      %12 = vector.shape_cast %11 : vector<1x8x384xf32> to vector<8x384xf32>
      %13 = vector.extract_strided_slice %9 {offsets = [0, 0], sizes = [8, 384], strides = [1, 1]} : vector<8x768xf32> to vector<8x384xf32>
      %c0_11 = arith.constant 0 : index
      %c0_12 = arith.constant 0 : index
      %14 = vector.load %arg6[%c0_11, %c0_12] : memref<8x256xf32, #tpu.memory_space<vmem>>, vector<8x128xf32>
      %15 = vector.extract_strided_slice %12 {offsets = [0, 0], sizes = [8, 128], strides = [1, 1]} : vector<8x384xf32> to vector<8x128xf32>
      %16 = vector.extract_strided_slice %13 {offsets = [0, 0], sizes = [8, 128], strides = [1, 1]} : vector<8x384xf32> to vector<8x128xf32>
      %17 = arith.addf %15, %16 : vector<8x128xf32>
      %18 = arith.negf %17 : vector<8x128xf32>
      %19 = math.exp %18 : vector<8x128xf32>
      %cst_13 = arith.constant 1.000000e+00 : f32
      %20 = vector.broadcast %cst_13 : f32 to vector<8x128xf32>
      %21 = arith.addf %20, %19 : vector<8x128xf32>
      %22 = arith.divf %20, %21 : vector<8x128xf32>
      %23 = vector.extract_strided_slice %12 {offsets = [0, 128], sizes = [8, 128], strides = [1, 1]} : vector<8x384xf32> to vector<8x128xf32>
      %24 = vector.extract_strided_slice %13 {offsets = [0, 128], sizes = [8, 128], strides = [1, 1]} : vector<8x384xf32> to vector<8x128xf32>
      %25 = arith.addf %23, %24 : vector<8x128xf32>
      %26 = arith.negf %25 : vector<8x128xf32>
      %27 = math.exp %26 : vector<8x128xf32>
      %cst_14 = arith.constant 1.000000e+00 : f32
      %28 = vector.broadcast %cst_14 : f32 to vector<8x128xf32>
      %29 = arith.addf %28, %27 : vector<8x128xf32>
      %30 = arith.divf %28, %29 : vector<8x128xf32>
      %31 = vector.extract_strided_slice %12 {offsets = [0, 256], sizes = [8, 128], strides = [1, 1]} : vector<8x384xf32> to vector<8x128xf32>
      %32 = vector.extract_strided_slice %13 {offsets = [0, 256], sizes = [8, 128], strides = [1, 1]} : vector<8x384xf32> to vector<8x128xf32>
      %33 = arith.mulf %22, %32 : vector<8x128xf32>
      %34 = arith.addf %31, %33 : vector<8x128xf32>
      %35 = math.tanh %34 : vector<8x128xf32>
      %cst_15 = arith.constant 1.000000e+00 : f32
      %36 = vector.broadcast %cst_15 : f32 to vector<8x128xf32>
      %37 = arith.subf %36, %30 : vector<8x128xf32>
      %38 = arith.mulf %37, %35 : vector<8x128xf32>
      %39 = arith.mulf %30, %14 : vector<8x128xf32>
      %40 = arith.addf %38, %39 : vector<8x128xf32>
      %41 = arith.index_cast %4 : i32 to index
      %c0_16 = arith.constant 0 : index
      %c384 = arith.constant 384 : index
      %42 = vector.load %arg1[%41, %c0_16, %c384] : memref<4x8x768xf32, #tpu.memory_space<vmem>>, vector<1x8x384xf32>
      %43 = vector.shape_cast %42 : vector<1x8x384xf32> to vector<8x384xf32>
      %44 = vector.extract_strided_slice %9 {offsets = [0, 384], sizes = [8, 384], strides = [1, 1]} : vector<8x768xf32> to vector<8x384xf32>
      %c0_17 = arith.constant 0 : index
      %c128 = arith.constant 128 : index
      %45 = vector.load %arg6[%c0_17, %c128] : memref<8x256xf32, #tpu.memory_space<vmem>>, vector<8x128xf32>
      %46 = vector.extract_strided_slice %43 {offsets = [0, 0], sizes = [8, 128], strides = [1, 1]} : vector<8x384xf32> to vector<8x128xf32>
      %47 = vector.extract_strided_slice %44 {offsets = [0, 0], sizes = [8, 128], strides = [1, 1]} : vector<8x384xf32> to vector<8x128xf32>
      %48 = arith.addf %46, %47 : vector<8x128xf32>
      %49 = arith.negf %48 : vector<8x128xf32>
      %50 = math.exp %49 : vector<8x128xf32>
      %cst_18 = arith.constant 1.000000e+00 : f32
      %51 = vector.broadcast %cst_18 : f32 to vector<8x128xf32>
      %52 = arith.addf %51, %50 : vector<8x128xf32>
      %53 = arith.divf %51, %52 : vector<8x128xf32>
      %54 = vector.extract_strided_slice %43 {offsets = [0, 128], sizes = [8, 128], strides = [1, 1]} : vector<8x384xf32> to vector<8x128xf32>
      %55 = vector.extract_strided_slice %44 {offsets = [0, 128], sizes = [8, 128], strides = [1, 1]} : vector<8x384xf32> to vector<8x128xf32>
      %56 = arith.addf %54, %55 : vector<8x128xf32>
      %57 = arith.negf %56 : vector<8x128xf32>
      %58 = math.exp %57 : vector<8x128xf32>
      %cst_19 = arith.constant 1.000000e+00 : f32
      %59 = vector.broadcast %cst_19 : f32 to vector<8x128xf32>
      %60 = arith.addf %59, %58 : vector<8x128xf32>
      %61 = arith.divf %59, %60 : vector<8x128xf32>
      %62 = vector.extract_strided_slice %43 {offsets = [0, 256], sizes = [8, 128], strides = [1, 1]} : vector<8x384xf32> to vector<8x128xf32>
      %63 = vector.extract_strided_slice %44 {offsets = [0, 256], sizes = [8, 128], strides = [1, 1]} : vector<8x384xf32> to vector<8x128xf32>
      %64 = arith.mulf %53, %63 : vector<8x128xf32>
      %65 = arith.addf %62, %64 : vector<8x128xf32>
      %66 = math.tanh %65 : vector<8x128xf32>
      %cst_20 = arith.constant 1.000000e+00 : f32
      %67 = vector.broadcast %cst_20 : f32 to vector<8x128xf32>
      %68 = arith.subf %67, %61 : vector<8x128xf32>
      %69 = arith.mulf %68, %66 : vector<8x128xf32>
      %70 = arith.mulf %61, %45 : vector<8x128xf32>
      %71 = arith.addf %69, %70 : vector<8x128xf32>
      %c0_21 = arith.constant 0 : index
      %c0_22 = arith.constant 0 : index
      %72 = vector.load %arg6[%c0_21, %c0_22] : memref<8x256xf32, #tpu.memory_space<vmem>>, vector<8x128xf32>
      tpu.vector_store %arg6[%c0_21, %c0_22], %40 {strides = array<i32>} : memref<8x256xf32, #tpu.memory_space<vmem>>, vector<8x128xf32>,
      %c0_23 = arith.constant 0 : index
      %c128_24 = arith.constant 128 : index
      %73 = vector.load %arg6[%c0_23, %c128_24] : memref<8x256xf32, #tpu.memory_space<vmem>>, vector<8x128xf32>
      tpu.vector_store %arg6[%c0_23, %c128_24], %71 {strides = array<i32>} : memref<8x256xf32, #tpu.memory_space<vmem>>, vector<8x128xf32>,
      %74 = arith.index_cast %arg7 : i32 to index
      %c0_25 = arith.constant 0 : index
      %c0_26 = arith.constant 0 : index
      %75 = vector.load %arg4[%74, %c0_25, %c0_26] : memref<4x8x128xf32, #tpu.memory_space<vmem>>, vector<1x8x128xf32>
      %76 = vector.shape_cast %75 : vector<1x8x128xf32> to vector<8x128xf32>
      %77 = vector.shape_cast %40 : vector<8x128xf32> to vector<1x8x128xf32>
      tpu.vector_store %arg4[%74, %c0_25, %c0_26], %77 {strides = array<i32>} : memref<4x8x128xf32, #tpu.memory_space<vmem>>, vector<1x8x128xf32>,
      %78 = arith.index_cast %4 : i32 to index
      %c0_27 = arith.constant 0 : index
      %c0_28 = arith.constant 0 : index
      %79 = vector.load %arg5[%78, %c0_27, %c0_28] : memref<4x8x128xf32, #tpu.memory_space<vmem>>, vector<1x8x128xf32>
      %80 = vector.shape_cast %79 : vector<1x8x128xf32> to vector<8x128xf32>
      %81 = vector.shape_cast %71 : vector<8x128xf32> to vector<1x8x128xf32>
      tpu.vector_store %arg5[%78, %c0_27, %c0_28], %81 {strides = array<i32>} : memref<4x8x128xf32, #tpu.memory_space<vmem>>, vector<1x8x128xf32>,
    }
    %c4_i32_3 = arith.constant 4 : i32
    return
  }
  func.func @transform_0(%arg0: i32) -> (i32, i32, i32) {
    %c0_i32 = arith.constant 0 : i32
    %c0_i32_0 = arith.constant 0 : i32
    %c0_i32_1 = arith.constant 0 : i32
    return %c0_i32, %arg0, %c0_i32_0 : i32, i32, i32
  }
  func.func @transform_1(%arg0: i32) -> (i32, i32) {
    %c0_i32 = arith.constant 0 : i32
    %c0_i32_0 = arith.constant 0 : i32
    %c0_i32_1 = arith.constant 0 : i32
    return %c0_i32, %c0_i32_0 : i32, i32
  }
  func.func @transform_2(%arg0: i32) -> (i32, i32) {
    %c0_i32 = arith.constant 0 : i32
    %c0_i32_0 = arith.constant 0 : i32
    %c0_i32_1 = arith.constant 0 : i32
    return %c0_i32, %c0_i32_0 : i32, i32
  }
  func.func @transform_3(%arg0: i32) -> (i32, i32, i32) {
    %c0_i32 = arith.constant 0 : i32
    %c0_i32_0 = arith.constant 0 : i32
    %c0_i32_1 = arith.constant 0 : i32
    return %c0_i32, %arg0, %c0_i32_0 : i32, i32, i32
  }
  func.func @transform_4(%arg0: i32) -> (i32, i32, i32) {
    %c0_i32 = arith.constant 0 : i32
    %c0_i32_0 = arith.constant 0 : i32
    %c0_i32_1 = arith.constant 0 : i32
    return %c0_i32, %arg0, %c0_i32_0 : i32, i32, i32
  }
}

module attributes {stable_mosaic.version = 11 : i64} {
  func.func @_matmul_bias_kernel(%arg0: i32, %arg1: i32, %arg2: i32, %arg3: memref<32x256xbf16, #tpu.memory_space<vmem>>, %arg4: memref<256x256xbf16, #tpu.memory_space<vmem>>, %arg5: memref<1x256xf32, #tpu.memory_space<vmem>>, %arg6: memref<32x256xf32, #tpu.memory_space<vmem>>, %arg7: memref<32x256xf32, #tpu.memory_space<vmem>>) attributes {dimension_semantics = [#tpu.dimension_semantics<parallel>, #tpu.dimension_semantics<parallel>, #tpu.dimension_semantics<arbitrary>], iteration_bounds = array<i64: 1, 2, 1>, scalar_prefetch = 0 : i64, scratch_operands = 1 : i64, tpu.core_type = #tpu.core_type<tc>, window_params = [{transform_indices = @transform_0, window_bounds = array<i64: 32, 256>}, {transform_indices = @transform_1, window_bounds = array<i64: 256, 256>}, {transform_indices = @transform_2, window_bounds = array<i64: 1, 256>}, {transform_indices = @transform_3, window_bounds = array<i64: 32, 256>}]} {
    %c0_i32 = arith.constant 0 : i32
    %0 = arith.cmpi eq, %arg2, %c0_i32 : i32
    %1 = arith.extui %0 : i1 to i32
    %c0_i32_0 = arith.constant 0 : i32
    %2 = arith.cmpi ne, %1, %c0_i32_0 : i32
    scf.if %2 {
      %cst_10 = arith.constant 0.000000e+00 : f32
      %12 = vector.broadcast %cst_10 : f32 to vector<32x256xf32>
      %c0_11 = arith.constant 0 : index
      %c0_12 = arith.constant 0 : index
      %13 = vector.load %arg7[%c0_11, %c0_12] : memref<32x256xf32, #tpu.memory_space<vmem>>, vector<32x256xf32>
      tpu.vector_store %arg7[%c0_11, %c0_12], %12 {strides = array<i32>} : memref<32x256xf32, #tpu.memory_space<vmem>>, vector<32x256xf32>,
    } else {
    }
    %c0 = arith.constant 0 : index
    %c0_1 = arith.constant 0 : index
    %3 = vector.load %arg7[%c0, %c0_1] : memref<32x256xf32, #tpu.memory_space<vmem>>, vector<32x256xf32>
    %c0_2 = arith.constant 0 : index
    %c0_3 = arith.constant 0 : index
    %4 = vector.load %arg3[%c0_2, %c0_3] : memref<32x256xbf16, #tpu.memory_space<vmem>>, vector<32x256xbf16>
    %c0_4 = arith.constant 0 : index
    %c0_5 = arith.constant 0 : index
    %5 = vector.load %arg4[%c0_4, %c0_5] : memref<256x256xbf16, #tpu.memory_space<vmem>>, vector<256x256xbf16>
    %cst = arith.constant dense<0.000000e+00> : vector<32x256xf32>
    %6 = tpu.matmul %4, %5, %cst {dimension_numbers = #tpu.dot_dimension_numbers<[1], [0], [0], [1], [0, 0, 1, 1], [], []>} : vector<32x256xbf16>, vector<256x256xbf16>, vector<32x256xf32> -> vector<32x256xf32>
    %7 = arith.addf %3, %6 : vector<32x256xf32>
    %c0_6 = arith.constant 0 : index
    %c0_7 = arith.constant 0 : index
    %8 = vector.load %arg7[%c0_6, %c0_7] : memref<32x256xf32, #tpu.memory_space<vmem>>, vector<32x256xf32>
    tpu.vector_store %arg7[%c0_6, %c0_7], %7 {strides = array<i32>} : memref<32x256xf32, #tpu.memory_space<vmem>>, vector<32x256xf32>,
    %c0_i32_8 = arith.constant 0 : i32
    %9 = arith.cmpi eq, %arg2, %c0_i32_8 : i32
    %10 = arith.extui %9 : i1 to i32
    %c0_i32_9 = arith.constant 0 : i32
    %11 = arith.cmpi ne, %10, %c0_i32_9 : i32
    scf.if %11 {
      %c0_10 = arith.constant 0 : index
      %c0_11 = arith.constant 0 : index
      %12 = vector.load %arg7[%c0_10, %c0_11] : memref<32x256xf32, #tpu.memory_space<vmem>>, vector<32x256xf32>
      %c0_12 = arith.constant 0 : index
      %c0_13 = arith.constant 0 : index
      %13 = vector.load %arg5[%c0_12, %c0_13] : memref<1x256xf32, #tpu.memory_space<vmem>>, vector<1x256xf32>
      %14 = vector.broadcast %13 : vector<1x256xf32> to vector<32x256xf32>
      %15 = arith.addf %12, %14 : vector<32x256xf32>
      %cst_14 = arith.constant 0.000000e+00 : f32
      %16 = vector.broadcast %cst_14 : f32 to vector<32x256xf32>
      %17 = arith.maximumf %15, %16 : vector<32x256xf32>
      %c0_15 = arith.constant 0 : index
      %c0_16 = arith.constant 0 : index
      %18 = vector.load %arg6[%c0_15, %c0_16] : memref<32x256xf32, #tpu.memory_space<vmem>>, vector<32x256xf32>
      tpu.vector_store %arg6[%c0_15, %c0_16], %17 {strides = array<i32>} : memref<32x256xf32, #tpu.memory_space<vmem>>, vector<32x256xf32>,
    } else {
    }
    return
  }
  func.func @transform_0(%arg0: i32, %arg1: i32, %arg2: i32) -> (i32, i32) {
    %c0_i32 = arith.constant 0 : i32
    return %arg0, %arg2 : i32, i32
  }
  func.func @transform_1(%arg0: i32, %arg1: i32, %arg2: i32) -> (i32, i32) {
    %c0_i32 = arith.constant 0 : i32
    return %arg2, %arg1 : i32, i32
  }
  func.func @transform_2(%arg0: i32, %arg1: i32, %arg2: i32) -> (i32, i32) {
    %c0_i32 = arith.constant 0 : i32
    %c0_i32_0 = arith.constant 0 : i32
    return %c0_i32, %arg1 : i32, i32
  }
  func.func @transform_3(%arg0: i32, %arg1: i32, %arg2: i32) -> (i32, i32) {
    %c0_i32 = arith.constant 0 : i32
    return %arg0, %arg1 : i32, i32
  }
}

module attributes {stable_mosaic.version = 11 : i64} {
  func.func @_matmul_bias_kernel(%arg0: i32, %arg1: i32, %arg2: i32, %arg3: memref<128x256xbf16, #tpu.memory_space<vmem>>, %arg4: memref<256x256xbf16, #tpu.memory_space<vmem>>, %arg5: memref<1x256xf32, #tpu.memory_space<vmem>>, %arg6: memref<128x256xf32, #tpu.memory_space<vmem>>, %arg7: memref<128x256xf32, #tpu.memory_space<vmem>>) attributes {dimension_semantics = [#tpu.dimension_semantics<parallel>, #tpu.dimension_semantics<parallel>, #tpu.dimension_semantics<arbitrary>], iteration_bounds = array<i64: 1, 2, 1>, scalar_prefetch = 0 : i64, scratch_operands = 1 : i64, tpu.core_type = #tpu.core_type<tc>, window_params = [{transform_indices = @transform_0, window_bounds = array<i64: 128, 256>}, {transform_indices = @transform_1, window_bounds = array<i64: 256, 256>}, {transform_indices = @transform_2, window_bounds = array<i64: 1, 256>}, {transform_indices = @transform_3, window_bounds = array<i64: 128, 256>}]} {
    %c0_i32 = arith.constant 0 : i32
    %0 = arith.cmpi eq, %arg2, %c0_i32 : i32
    %1 = arith.extui %0 : i1 to i32
    %c0_i32_0 = arith.constant 0 : i32
    %2 = arith.cmpi ne, %1, %c0_i32_0 : i32
    scf.if %2 {
      %cst_10 = arith.constant 0.000000e+00 : f32
      %12 = vector.broadcast %cst_10 : f32 to vector<128x256xf32>
      %c0_11 = arith.constant 0 : index
      %c0_12 = arith.constant 0 : index
      %13 = vector.load %arg7[%c0_11, %c0_12] : memref<128x256xf32, #tpu.memory_space<vmem>>, vector<128x256xf32>
      tpu.vector_store %arg7[%c0_11, %c0_12], %12 {strides = array<i32>} : memref<128x256xf32, #tpu.memory_space<vmem>>, vector<128x256xf32>,
    } else {
    }
    %c0 = arith.constant 0 : index
    %c0_1 = arith.constant 0 : index
    %3 = vector.load %arg7[%c0, %c0_1] : memref<128x256xf32, #tpu.memory_space<vmem>>, vector<128x256xf32>
    %c0_2 = arith.constant 0 : index
    %c0_3 = arith.constant 0 : index
    %4 = vector.load %arg3[%c0_2, %c0_3] : memref<128x256xbf16, #tpu.memory_space<vmem>>, vector<128x256xbf16>
    %c0_4 = arith.constant 0 : index
    %c0_5 = arith.constant 0 : index
    %5 = vector.load %arg4[%c0_4, %c0_5] : memref<256x256xbf16, #tpu.memory_space<vmem>>, vector<256x256xbf16>
    %cst = arith.constant dense<0.000000e+00> : vector<128x256xf32>
    %6 = tpu.matmul %4, %5, %cst {dimension_numbers = #tpu.dot_dimension_numbers<[1], [0], [0], [1], [0, 0, 1, 1], [], []>} : vector<128x256xbf16>, vector<256x256xbf16>, vector<128x256xf32> -> vector<128x256xf32>
    %7 = arith.addf %3, %6 : vector<128x256xf32>
    %c0_6 = arith.constant 0 : index
    %c0_7 = arith.constant 0 : index
    %8 = vector.load %arg7[%c0_6, %c0_7] : memref<128x256xf32, #tpu.memory_space<vmem>>, vector<128x256xf32>
    tpu.vector_store %arg7[%c0_6, %c0_7], %7 {strides = array<i32>} : memref<128x256xf32, #tpu.memory_space<vmem>>, vector<128x256xf32>,
    %c0_i32_8 = arith.constant 0 : i32
    %9 = arith.cmpi eq, %arg2, %c0_i32_8 : i32
    %10 = arith.extui %9 : i1 to i32
    %c0_i32_9 = arith.constant 0 : i32
    %11 = arith.cmpi ne, %10, %c0_i32_9 : i32
    scf.if %11 {
      %c0_10 = arith.constant 0 : index
      %c0_11 = arith.constant 0 : index
      %12 = vector.load %arg7[%c0_10, %c0_11] : memref<128x256xf32, #tpu.memory_space<vmem>>, vector<128x256xf32>
      %c0_12 = arith.constant 0 : index
      %c0_13 = arith.constant 0 : index
      %13 = vector.load %arg5[%c0_12, %c0_13] : memref<1x256xf32, #tpu.memory_space<vmem>>, vector<1x256xf32>
      %14 = vector.broadcast %13 : vector<1x256xf32> to vector<128x256xf32>
      %15 = arith.addf %12, %14 : vector<128x256xf32>
      %cst_14 = arith.constant 0.000000e+00 : f32
      %16 = vector.broadcast %cst_14 : f32 to vector<128x256xf32>
      %17 = arith.maximumf %15, %16 : vector<128x256xf32>
      %c0_15 = arith.constant 0 : index
      %c0_16 = arith.constant 0 : index
      %18 = vector.load %arg6[%c0_15, %c0_16] : memref<128x256xf32, #tpu.memory_space<vmem>>, vector<128x256xf32>
      tpu.vector_store %arg6[%c0_15, %c0_16], %17 {strides = array<i32>} : memref<128x256xf32, #tpu.memory_space<vmem>>, vector<128x256xf32>,
    } else {
    }
    return
  }
  func.func @transform_0(%arg0: i32, %arg1: i32, %arg2: i32) -> (i32, i32) {
    %c0_i32 = arith.constant 0 : i32
    return %arg0, %arg2 : i32, i32
  }
  func.func @transform_1(%arg0: i32, %arg1: i32, %arg2: i32) -> (i32, i32) {
    %c0_i32 = arith.constant 0 : i32
    return %arg2, %arg1 : i32, i32
  }
  func.func @transform_2(%arg0: i32, %arg1: i32, %arg2: i32) -> (i32, i32) {
    %c0_i32 = arith.constant 0 : i32
    %c0_i32_0 = arith.constant 0 : i32
    return %c0_i32, %arg1 : i32, i32
  }
  func.func @transform_3(%arg0: i32, %arg1: i32, %arg2: i32) -> (i32, i32) {
    %c0_i32 = arith.constant 0 : i32
    return %arg0, %arg1 : i32, i32
  }
}

module attributes {stable_mosaic.version = 11 : i64} {
  func.func @_matmul_bias_kernel(%arg0: i32, %arg1: i32, %arg2: i32, %arg3: memref<256x256xbf16, #tpu.memory_space<vmem>>, %arg4: memref<256x128xbf16, #tpu.memory_space<vmem>>, %arg5: memref<1x128xf32, #tpu.memory_space<vmem>>, %arg6: memref<256x128xf32, #tpu.memory_space<vmem>>, %arg7: memref<256x128xf32, #tpu.memory_space<vmem>>) attributes {dimension_semantics = [#tpu.dimension_semantics<parallel>, #tpu.dimension_semantics<parallel>, #tpu.dimension_semantics<arbitrary>], iteration_bounds = array<i64: 2, 1, 1>, scalar_prefetch = 0 : i64, scratch_operands = 1 : i64, tpu.core_type = #tpu.core_type<tc>, window_params = [{transform_indices = @transform_0, window_bounds = array<i64: 256, 256>}, {transform_indices = @transform_1, window_bounds = array<i64: 256, 128>}, {transform_indices = @transform_2, window_bounds = array<i64: 1, 128>}, {transform_indices = @transform_3, window_bounds = array<i64: 256, 128>}]} {
    %c0_i32 = arith.constant 0 : i32
    %0 = arith.cmpi eq, %arg2, %c0_i32 : i32
    %1 = arith.extui %0 : i1 to i32
    %c0_i32_0 = arith.constant 0 : i32
    %2 = arith.cmpi ne, %1, %c0_i32_0 : i32
    scf.if %2 {
      %cst_10 = arith.constant 0.000000e+00 : f32
      %12 = vector.broadcast %cst_10 : f32 to vector<256x128xf32>
      %c0_11 = arith.constant 0 : index
      %c0_12 = arith.constant 0 : index
      %13 = vector.load %arg7[%c0_11, %c0_12] : memref<256x128xf32, #tpu.memory_space<vmem>>, vector<256x128xf32>
      tpu.vector_store %arg7[%c0_11, %c0_12], %12 {strides = array<i32>} : memref<256x128xf32, #tpu.memory_space<vmem>>, vector<256x128xf32>,
    } else {
    }
    %c0 = arith.constant 0 : index
    %c0_1 = arith.constant 0 : index
    %3 = vector.load %arg7[%c0, %c0_1] : memref<256x128xf32, #tpu.memory_space<vmem>>, vector<256x128xf32>
    %c0_2 = arith.constant 0 : index
    %c0_3 = arith.constant 0 : index
    %4 = vector.load %arg3[%c0_2, %c0_3] : memref<256x256xbf16, #tpu.memory_space<vmem>>, vector<256x256xbf16>
    %c0_4 = arith.constant 0 : index
    %c0_5 = arith.constant 0 : index
    %5 = vector.load %arg4[%c0_4, %c0_5] : memref<256x128xbf16, #tpu.memory_space<vmem>>, vector<256x128xbf16>
    %cst = arith.constant dense<0.000000e+00> : vector<256x128xf32>
    %6 = tpu.matmul %4, %5, %cst {dimension_numbers = #tpu.dot_dimension_numbers<[1], [0], [0], [1], [0, 0, 1, 1], [], []>} : vector<256x256xbf16>, vector<256x128xbf16>, vector<256x128xf32> -> vector<256x128xf32>
    %7 = arith.addf %3, %6 : vector<256x128xf32>
    %c0_6 = arith.constant 0 : index
    %c0_7 = arith.constant 0 : index
    %8 = vector.load %arg7[%c0_6, %c0_7] : memref<256x128xf32, #tpu.memory_space<vmem>>, vector<256x128xf32>
    tpu.vector_store %arg7[%c0_6, %c0_7], %7 {strides = array<i32>} : memref<256x128xf32, #tpu.memory_space<vmem>>, vector<256x128xf32>,
    %c0_i32_8 = arith.constant 0 : i32
    %9 = arith.cmpi eq, %arg2, %c0_i32_8 : i32
    %10 = arith.extui %9 : i1 to i32
    %c0_i32_9 = arith.constant 0 : i32
    %11 = arith.cmpi ne, %10, %c0_i32_9 : i32
    scf.if %11 {
      %c0_10 = arith.constant 0 : index
      %c0_11 = arith.constant 0 : index
      %12 = vector.load %arg7[%c0_10, %c0_11] : memref<256x128xf32, #tpu.memory_space<vmem>>, vector<256x128xf32>
      %c0_12 = arith.constant 0 : index
      %c0_13 = arith.constant 0 : index
      %13 = vector.load %arg5[%c0_12, %c0_13] : memref<1x128xf32, #tpu.memory_space<vmem>>, vector<1x128xf32>
      %14 = vector.broadcast %13 : vector<1x128xf32> to vector<256x128xf32>
      %15 = arith.addf %12, %14 : vector<256x128xf32>
      %c0_14 = arith.constant 0 : index
      %c0_15 = arith.constant 0 : index
      %16 = vector.load %arg6[%c0_14, %c0_15] : memref<256x128xf32, #tpu.memory_space<vmem>>, vector<256x128xf32>
      tpu.vector_store %arg6[%c0_14, %c0_15], %15 {strides = array<i32>} : memref<256x128xf32, #tpu.memory_space<vmem>>, vector<256x128xf32>,
    } else {
    }
    return
  }
  func.func @transform_0(%arg0: i32, %arg1: i32, %arg2: i32) -> (i32, i32) {
    %c0_i32 = arith.constant 0 : i32
    return %arg0, %arg2 : i32, i32
  }
  func.func @transform_1(%arg0: i32, %arg1: i32, %arg2: i32) -> (i32, i32) {
    %c0_i32 = arith.constant 0 : i32
    return %arg2, %arg1 : i32, i32
  }
  func.func @transform_2(%arg0: i32, %arg1: i32, %arg2: i32) -> (i32, i32) {
    %c0_i32 = arith.constant 0 : i32
    %c0_i32_0 = arith.constant 0 : i32
    return %c0_i32, %arg1 : i32, i32
  }
  func.func @transform_3(%arg0: i32, %arg1: i32, %arg2: i32) -> (i32, i32) {
    %c0_i32 = arith.constant 0 : i32
    return %arg0, %arg1 : i32, i32
  }
}

</mosaic_0001>

<bundles_post_ra>
// kernel: reseg_forward.20
= control target key start
LH: loop header
LB: loop body
LE: loop exit
PB: predicated region body
PF: predicated region fallthrough
CT: control target
= control target key end

     0   :  { %s1212_s12 = smov 0   ;;  %s1214_s13 = smov 0   ;;  %s1362_s0 = inlined_call_operand.vmem [shape: bf16[512,128], index: 0, kind: input, shape index: {}]   ;;  %s1363_s1 = inlined_call_operand.vmem [shape: bf16[128,128], index: 1, kind: input, shape index: {}]   ;;  %s1364_s2 = inlined_call_operand.vmem [shape: f32[1,128], index: 2, kind: input, shape index: {}]   ;;  %s1365_s3 = inlined_call_operand.vmem [shape: f32[512,128], index: 3, kind: output, shape index: {}]  }
   0x1   :  { %s1216_s14 = smov 0  }
   0x2 LB: > { %s32_s15 = sadd.s32 1, %s1186_s13  ;;  %p1000_p0 = scmp.ge.s32.totalorder %s1190_s14, 1  ;;  %s1190_s14 = sphi %s1216_s14, %s13_s14   ;;  %s1186_s13 = sphi %s1214_s13, %s1367_s13   ;;  %s1182_s12 = sphi %s1212_s12, %s1366_s12  }
   0x3   : > { %p34_p1 = scmp.ge.s32.totalorder %s32_s15, 2  ;;  %p188_p2 = scmp.lt.s32.totalorder %s1190_s14, 3 }
   0x5   : > { %s1369_s15 = smov (%p34_p1, %s32_s15), 0  ;;  %p189_p3 = pnand %p1000_p0, %p188_p2 }
   0x6   : > { %v1144_v0 = vld [vmem:[%s1363_s1] sm:$0xff] (!%p189_p3)   ;;  %s1001_s18 = sshll.u32 (!%p189_p3), %s1182_s12, 5  ;;  %v1145_v1 = vld [vmem:[%s1363_s1 + $0x8] sm:$0xff] (!%p189_p3)   ;;  %v1146_v2 = vld [vmem:[%s1363_s1 + $0x10] sm:$0xff] (!%p189_p3)  }
   0x7   : > { %192 = sbr.rel (%p189_p3) target bundleno = 283 (0x11b), region = 32  ;;  %p230_p4 = scmp.lt.s32.totalorder (!%p189_p3), %s1001_s18, 63  ;;  %1056 = vmatprep.subr.bf16.mxu0 (!%p189_p3), %v1144_v0  ;;  %1104 = vmatprep.subr.bf16.mxu1 (!%p189_p3), %v1144_v0  ;;  %v1147_v3 = vld [vmem:[%s1363_s1 + $0x18] sm:$0xff] (!%p189_p3)   ;;  %v1148_v6 = vld [vmem:[%s1363_s1 + $0x20] sm:$0xff] (!%p189_p3)   ;;  %v1149_v7 = vld [vmem:[%s1363_s1 + $0x28] sm:$0xff] (!%p189_p3)  }
   0x8   : > { %1057 = vmatpush3.bf16.msra.mxu0 (!%p189_p3), %v1144_v0  ;;  %1112 = vmatpush3.bf16.msra.mxu1 (!%p189_p3), %v1144_v0  ;;  %v1150_v8 = vld [vmem:[%s1363_s1 + $0x30] sm:$0xff] (!%p189_p3)   ;;  %v1151_v9 = vld [vmem:[%s1363_s1 + $0x38] sm:$0xff] (!%p189_p3)   ;;  %v1281_v24 = vld [vmem:[%s1364_s2] ss:$0 sm:$0xff] (!%p189_p3) }
   0x9   : > { %1058 = vmatprep.subr.bf16.mxu0 (!%p189_p3), %v1145_v1  ;;  %1105 = vmatprep.subr.bf16.mxu1 (!%p189_p3), %v1145_v1 }
   0xc   : > { %1059 = vmatpush3.bf16.msra.mxu0 (!%p189_p3), %v1145_v1  ;;  %1113 = vmatpush3.bf16.msra.mxu1 (!%p189_p3), %v1145_v1 }
   0xd   : > { %1060 = vmatprep.subr.bf16.mxu0 (!%p189_p3), %v1146_v2  ;;  %1106 = vmatprep.subr.bf16.mxu1 (!%p189_p3), %v1146_v2 }
   0xe   : > { %s1371_s18 = smov (!%p230_p4, %s1001_s18), 63 }
   0xf   : > { %s1002_s23 = sshll.u32 %s1371_s18, 2  ;;  %s1004_s12 = sshll.u32 %s1371_s18, 3 }
  0x10   : > { %s1245_s26 = scalar_lea.vmem %s1362_s0, %s1002_s23  ;;  %1061 = vmatpush3.bf16.msra.mxu0 %v1146_v2  ;;  %1114 = vmatpush3.bf16.msra.mxu1 %v1146_v2  ;;  %s1289_s19 = scalar_lea.vmem %s1365_s3, %s1004_s12 }
  0x11   : > { %v1152_v4 = vld [vmem:[%s1245_s26] sm:$0xff]   ;;  %1062 = vmatprep.subr.bf16.mxu0 %v1147_v3  ;;  %1107 = vmatprep.subr.bf16.mxu1 %v1147_v3  ;;  %v1154_v10 = vld [vmem:[%s1245_s26 + $0x8] sm:$0xff]   ;;  %v1156_v12 = vld [vmem:[%s1245_s26 + $0x10] sm:$0xff]  }
  0x12   : > { %v1153_v5 = vld [vmem:[%s1245_s26 + $0x40] sm:$0xff]   ;;  %1072 = vmatprep.mubr.bf16.mxu0 %v1152_v4  ;;  %v1155_v11 = vld [vmem:[%s1245_s26 + $0x48] sm:$0xff]   ;;  %v1157_v13 = vld [vmem:[%s1245_s26 + $0x50] sm:$0xff]  }
  0x13   : > { %1088 = vmatprep.mubr.bf16.mxu1 %v1153_v5  ;;  %v1158_v14 = vld [vmem:[%s1245_s26 + $0x18] sm:$0xff]   ;;  %v1160_v16 = vld [vmem:[%s1245_s26 + $0x20] sm:$0xff]   ;;  %v1162_v18 = vld [vmem:[%s1245_s26 + $0x28] sm:$0xff]  }
  0x14   : > { %1063 = vmatpush3.bf16.msra.mxu0 %v1147_v3  ;;  %1115 = vmatpush3.bf16.msra.mxu1 %v1147_v3  ;;  %v1159_v15 = vld [vmem:[%s1245_s26 + $0x58] sm:$0xff]   ;;  %v1161_v17 = vld [vmem:[%s1245_s26 + $0x60] sm:$0xff]   ;;  %v1163_v19 = vld [vmem:[%s1245_s26 + $0x68] sm:$0xff]  }
  0x15   : > { %1064 = vmatprep.subr.bf16.mxu0 %v1148_v6  ;;  %1108 = vmatprep.subr.bf16.mxu1 %v1148_v6  ;;  %v1164_v20 = vld [vmem:[%s1245_s26 + $0x30] sm:$0xff]   ;;  %v1166_v22 = vld [vmem:[%s1245_s26 + $0x38] sm:$0xff]  }
  0x16   : > { %v1165_v21 = vld [vmem:[%s1245_s26 + $0x70] sm:$0xff]   ;;  %v1167_v23 = vld [vmem:[%s1245_s26 + $0x78] sm:$0xff]  }
  0x18   : > { %1065 = vmatpush3.bf16.msra.mxu0 %v1148_v6  ;;  %1116 = vmatpush3.bf16.msra.mxu1 %v1148_v6 }
  0x19   : > { %1066 = vmatprep.subr.bf16.mxu0 %v1149_v7  ;;  %1109 = vmatprep.subr.bf16.mxu1 %v1149_v7 }
  0x1c   : > { %1067 = vmatpush3.bf16.msra.mxu0 %v1149_v7  ;;  %1117 = vmatpush3.bf16.msra.mxu1 %v1149_v7 }
  0x1d   : > { %1068 = vmatprep.subr.bf16.mxu0 %v1150_v8  ;;  %1110 = vmatprep.subr.bf16.mxu1 %v1150_v8 }
  0x20   : > { %1069 = vmatpush3.bf16.msra.mxu0 %v1150_v8  ;;  %1118 = vmatpush3.bf16.msra.mxu1 %v1150_v8 }
  0x21   : > { %1070 = vmatprep.subr.bf16.mxu0 %v1151_v9  ;;  %1111 = vmatprep.subr.bf16.mxu1 %v1151_v9 }
  0x24   : > { %1071 = vmatpush3.bf16.msra.mxu0 %v1151_v9  ;;  %1119 = vmatpush3.bf16.msra.mxu1 %v1151_v9 }
  0x27   : > { %1073 = vmatmul.mubr.bf16.vlgmr.msra.gmra.mrb[0].mxu0 %v1154_v10  ;;  %1089 = vmatmul.mubr.bf16.vlgmr.msra.gmra.mrb[0].mxu1 %v1155_v11 }
  0x28   : > { %1076 = vmatprep.mubr.bf16.mxu0 %v1156_v12  ;;  %1092 = vmatprep.mubr.bf16.mxu1 %v1157_v13 }
  0x2f   : > { %1077 = vmatmul.mubr.bf16.gmra.mrb[4].mxu0 %v1158_v14  ;;  %1093 = vmatmul.mubr.bf16.gmra.mrb[4].mxu1 %v1159_v15 }
  0x30   : > { %1080 = vmatprep.mubr.bf16.mxu0 %v1160_v16  ;;  %1096 = vmatprep.mubr.bf16.mxu1 %v1161_v17 }
  0x37   : > { %1081 = vmatmul.mubr.bf16.gmra.mrb[8].mxu0 %v1162_v18  ;;  %1097 = vmatmul.mubr.bf16.gmra.mrb[8].mxu1 %v1163_v19 }
  0x38   : > { %1084 = vmatprep.mubr.bf16.mxu0 %v1164_v20  ;;  %1100 = vmatprep.mubr.bf16.mxu1 %v1165_v21 }
  0x3f   : > { %1085 = vmatmul.mubr.bf16.gmra.mrb[12].mxu0 %v1166_v22  ;;  %1101 = vmatmul.mubr.bf16.gmra.mrb[12].mxu1 %v1167_v23 }
  0xfa   : > { %v1074_v25 = vpop.f32.mrb[0].mxu0  ;;  %v1090_v26 = vpop.f32.mrb[0].mxu1 }
  0xfb   : > { %v789_v27 = vadd.f32 %v1074_v25, %v1281_v24  ;;  %v805_v28 = vadd.f32 %v1090_v26, %v1281_v24  ;;  %v554_v29 = vpop.f32.mrb[1].mxu0  ;;  %v618_v30 = vpop.f32.mrb[1].mxu1 }
  0xfc   : > { %v787_v31 = vadd.f32 %v1281_v24, %v554_v29  ;;  %v803_v32 = vadd.f32 %v1281_v24, %v618_v30  ;;  %v1075_v33 = vpop.f32.mrb[2].mxu0  ;;  %v1091_v34 = vpop.f32.mrb[2].mxu1 }
  0xfd   : > { %v821_v35 = vmax.f32 %v789_v27, 0.0  ;;  %v837_v36 = vmax.f32 %v805_v28, 0.0  ;;  %v790_v37 = vadd.f32 %v1075_v33, %v1281_v24  ;;  %v806_v38 = vadd.f32 %v1091_v34, %v1281_v24  ;;  %v557_v39 = vpop.f32.mrb[3].mxu0  ;;  %v621_v40 = vpop.f32.mrb[3].mxu1 }
  0xfe   : > { %v819_v41 = vmax.f32 %v787_v31, 0.0  ;;  %v835_v42 = vmax.f32 %v803_v32, 0.0  ;;  %v788_v43 = vadd.f32 %v1281_v24, %v557_v39  ;;  %v804_v44 = vadd.f32 %v1281_v24, %v621_v40 }
  0xff   : > { %853 = vst [vmem:[%s1289_s19 + $0x10] sm:$0xff] %v821_v35  ;;  %869 = vst [vmem:[%s1289_s19 + $0x90] sm:$0xff] %v837_v36  ;;  %v822_v45 = vmax.f32 %v790_v37, 0.0  ;;  %v838_v46 = vmax.f32 %v806_v38, 0.0 }
 0x100   : > { %851 = vst [vmem:[%s1289_s19] sm:$0xff] %v819_v41  ;;  %867 = vst [vmem:[%s1289_s19 + $0x80] sm:$0xff] %v835_v42  ;;  %v820_v47 = vmax.f32 %v788_v43, 0.0  ;;  %v836_v48 = vmax.f32 %v804_v44, 0.0 }
 0x101   : > { %854 = vst [vmem:[%s1289_s19 + $0x18] sm:$0xff] %v822_v45  ;;  %870 = vst [vmem:[%s1289_s19 + $0x98] sm:$0xff] %v838_v46 }
 0x102   : > { %852 = vst [vmem:[%s1289_s19 + $0x8] sm:$0xff] %v820_v47  ;;  %868 = vst [vmem:[%s1289_s19 + $0x88] sm:$0xff] %v836_v48  ;;  %v1078_v49 = vpop.f32.mrb[4].mxu0  ;;  %v1094_v50 = vpop.f32.mrb[4].mxu1 }
 0x103   : > { %v793_v51 = vadd.f32 %v1078_v49, %v1281_v24  ;;  %v809_v52 = vadd.f32 %v1094_v50, %v1281_v24  ;;  %v570_v53 = vpop.f32.mrb[5].mxu0  ;;  %v634_v54 = vpop.f32.mrb[5].mxu1 }
 0x104   : > { %v791_v55 = vadd.f32 %v1281_v24, %v570_v53  ;;  %v807_v56 = vadd.f32 %v1281_v24, %v634_v54  ;;  %v1079_v57 = vpop.f32.mrb[6].mxu0  ;;  %v1095_v58 = vpop.f32.mrb[6].mxu1 }
 0x105   : > { %v825_v59 = vmax.f32 %v793_v51, 0.0  ;;  %v841_v60 = vmax.f32 %v809_v52, 0.0  ;;  %v794_v61 = vadd.f32 %v1079_v57, %v1281_v24  ;;  %v810_v62 = vadd.f32 %v1095_v58, %v1281_v24  ;;  %v573_v63 = vpop.f32.mrb[7].mxu0  ;;  %v637_v0 = vpop.f32.mrb[7].mxu1 }
 0x106   : > { %v823_v1 = vmax.f32 %v791_v55, 0.0  ;;  %v839_v2 = vmax.f32 %v807_v56, 0.0  ;;  %v792_v3 = vadd.f32 %v1281_v24, %v573_v63  ;;  %v808_v4 = vadd.f32 %v1281_v24, %v637_v0 }
 0x107   : > { %857 = vst [vmem:[%s1289_s19 + $0x30] sm:$0xff] %v825_v59  ;;  %873 = vst [vmem:[%s1289_s19 + $0xb0] sm:$0xff] %v841_v60  ;;  %v826_v5 = vmax.f32 %v794_v61, 0.0  ;;  %v842_v6 = vmax.f32 %v810_v62, 0.0 }
 0x108   : > { %855 = vst [vmem:[%s1289_s19 + $0x20] sm:$0xff] %v823_v1  ;;  %871 = vst [vmem:[%s1289_s19 + $0xa0] sm:$0xff] %v839_v2  ;;  %v824_v7 = vmax.f32 %v792_v3, 0.0  ;;  %v840_v8 = vmax.f32 %v808_v4, 0.0 }
 0x109   : > { %858 = vst [vmem:[%s1289_s19 + $0x38] sm:$0xff] %v826_v5  ;;  %874 = vst [vmem:[%s1289_s19 + $0xb8] sm:$0xff] %v842_v6 }
 0x10a   : > { %856 = vst [vmem:[%s1289_s19 + $0x28] sm:$0xff] %v824_v7  ;;  %872 = vst [vmem:[%s1289_s19 + $0xa8] sm:$0xff] %v840_v8  ;;  %v1082_v9 = vpop.f32.mrb[8].mxu0  ;;  %v1098_v10 = vpop.f32.mrb[8].mxu1 }
 0x10b   : > { %v797_v11 = vadd.f32 %v1082_v9, %v1281_v24  ;;  %v813_v12 = vadd.f32 %v1098_v10, %v1281_v24  ;;  %v586_v13 = vpop.f32.mrb[9].mxu0  ;;  %v650_v14 = vpop.f32.mrb[9].mxu1 }
 0x10c   : > { %v795_v15 = vadd.f32 %v1281_v24, %v586_v13  ;;  %v811_v16 = vadd.f32 %v1281_v24, %v650_v14  ;;  %v1083_v17 = vpop.f32.mrb[10].mxu0  ;;  %v1099_v18 = vpop.f32.mrb[10].mxu1 }
 0x10d   : > { %v829_v19 = vmax.f32 %v797_v11, 0.0  ;;  %v845_v20 = vmax.f32 %v813_v12, 0.0  ;;  %v798_v21 = vadd.f32 %v1083_v17, %v1281_v24  ;;  %v814_v22 = vadd.f32 %v1099_v18, %v1281_v24  ;;  %v589_v23 = vpop.f32.mrb[11].mxu0  ;;  %v653_v25 = vpop.f32.mrb[11].mxu1 }
 0x10e   : > { %v827_v26 = vmax.f32 %v795_v15, 0.0  ;;  %v843_v27 = vmax.f32 %v811_v16, 0.0  ;;  %v796_v28 = vadd.f32 %v1281_v24, %v589_v23  ;;  %v812_v29 = vadd.f32 %v1281_v24, %v653_v25 }
 0x10f   : > { %861 = vst [vmem:[%s1289_s19 + $0x50] sm:$0xff] %v829_v19  ;;  %877 = vst [vmem:[%s1289_s19 + $0xd0] sm:$0xff] %v845_v20  ;;  %v830_v30 = vmax.f32 %v798_v21, 0.0  ;;  %v846_v31 = vmax.f32 %v814_v22, 0.0 }
 0x110   : > { %859 = vst [vmem:[%s1289_s19 + $0x40] sm:$0xff] %v827_v26  ;;  %875 = vst [vmem:[%s1289_s19 + $0xc0] sm:$0xff] %v843_v27  ;;  %v828_v32 = vmax.f32 %v796_v28, 0.0  ;;  %v844_v33 = vmax.f32 %v812_v29, 0.0 }
 0x111   : > { %862 = vst [vmem:[%s1289_s19 + $0x58] sm:$0xff] %v830_v30  ;;  %878 = vst [vmem:[%s1289_s19 + $0xd8] sm:$0xff] %v846_v31 }
 0x112   : > { %860 = vst [vmem:[%s1289_s19 + $0x48] sm:$0xff] %v828_v32  ;;  %876 = vst [vmem:[%s1289_s19 + $0xc8] sm:$0xff] %v844_v33  ;;  %v1086_v34 = vpop.f32.mrb[12].mxu0  ;;  %v1102_v35 = vpop.f32.mrb[12].mxu1 }
 0x113   : > { %v801_v36 = vadd.f32 %v1086_v34, %v1281_v24  ;;  %v817_v37 = vadd.f32 %v1102_v35, %v1281_v24  ;;  %v602_v38 = vpop.f32.mrb[13].mxu0  ;;  %v666_v39 = vpop.f32.mrb[13].mxu1 }
 0x114   : > { %v799_v40 = vadd.f32 %v1281_v24, %v602_v38  ;;  %v815_v41 = vadd.f32 %v1281_v24, %v666_v39  ;;  %v1087_v42 = vpop.f32.mrb[14].mxu0  ;;  %v1103_v43 = vpop.f32.mrb[14].mxu1 }
 0x115   : > { %v833_v44 = vmax.f32 %v801_v36, 0.0  ;;  %v849_v45 = vmax.f32 %v817_v37, 0.0  ;;  %v802_v46 = vadd.f32 %v1087_v42, %v1281_v24  ;;  %v818_v47 = vadd.f32 %v1103_v43, %v1281_v24  ;;  %v605_v48 = vpop.f32.mrb[15].mxu0  ;;  %v669_v49 = vpop.f32.mrb[15].mxu1 }
 0x116   : > { %v831_v50 = vmax.f32 %v799_v40, 0.0  ;;  %v847_v51 = vmax.f32 %v815_v41, 0.0  ;;  %v800_v52 = vadd.f32 %v1281_v24, %v605_v48  ;;  %v816_v53 = vadd.f32 %v1281_v24, %v669_v49 }
 0x117   : > { %865 = vst [vmem:[%s1289_s19 + $0x70] sm:$0xff] %v833_v44  ;;  %881 = vst [vmem:[%s1289_s19 + $0xf0] sm:$0xff] %v849_v45  ;;  %v834_v54 = vmax.f32 %v802_v46, 0.0  ;;  %v850_v55 = vmax.f32 %v818_v47, 0.0 }
 0x118   : > { %863 = vst [vmem:[%s1289_s19 + $0x60] sm:$0xff] %v831_v50  ;;  %879 = vst [vmem:[%s1289_s19 + $0xe0] sm:$0xff] %v847_v51  ;;  %v832_v56 = vmax.f32 %v800_v52, 0.0  ;;  %v848_v57 = vmax.f32 %v816_v53, 0.0 }
 0x119   : > { %866 = vst [vmem:[%s1289_s19 + $0x78] sm:$0xff] %v834_v54  ;;  %882 = vst [vmem:[%s1289_s19 + $0xf8] sm:$0xff] %v850_v55 }
 0x11a   : > { %864 = vst [vmem:[%s1289_s19 + $0x68] sm:$0xff] %v832_v56  ;;  %880 = vst [vmem:[%s1289_s19 + $0xe8] sm:$0xff] %v848_v57 }
 0x11b PF: > { %s13_s14 = sadd.s32 1, %s1190_s14   ;;  %s1366_s12 = smov %s1186_s13 }
 0x11c   : > { %p10_p5 = scmp.ge.s32.totalorder %s13_s14, 4   ;;  %s1367_s13 = smov %s1369_s15 }
 0x11e   :  { %12 = sbr.rel (!%p10_p5) target bundleno = 2 (0x2), region = 76 }

// kernel: reseg_forward.22
= control target key start
LH: loop header
LB: loop body
LE: loop exit
PB: predicated region body
PF: predicated region fallthrough
CT: control target
= control target key end

     0   :  { %vm264_vm0 = vcmask 517120   ;;  %vm1545_vm1 = vcmask 1041409   ;;  %vm1547_vm2 = vcmask 1042434   ;;  %vm1549_vm3 = vcmask 1043459   ;;  %s3310_s0 = inlined_call_operand.vmem [shape: f32[32,8,2,64], index: 0, kind: input, shape index: {}]   ;;  %s3311_s1 = inlined_call_operand.vmem [shape: f32[16,8,64], index: 1, kind: output, shape index: {}]  }
   0x1   :  { %v8_v0 = vld [vmem:[%s3310_s0] sm:$0x3]  ;;  %v9_v1 = vld [vmem:[%s3310_s0 + $0x2] sm:$0x3]  ;;  %v16_v2 = vld [vmem:[%s3310_s0 + $0x10] sm:$0x3] }
   0x2   :  { %v17_v3 = vld [vmem:[%s3310_s0 + $0x12] sm:$0x3]  ;;  %v10_v4 = vld [vmem:[%s3310_s0 + $0x4] sm:$0x3]  ;;  %v18_v5 = vld [vmem:[%s3310_s0 + $0x14] sm:$0x3] }
   0x3   :  { %v11_v6 = vld [vmem:[%s3310_s0 + $0x6] sm:$0x3]  ;;  %v12_v7 = vld [vmem:[%s3310_s0 + $0x8] sm:$0x3]  ;;  %v19_v8 = vld [vmem:[%s3310_s0 + $0x16] sm:$0x3] }
   0x4   :  { %v20_v9 = vld [vmem:[%s3310_s0 + $0x18] sm:$0x3]  ;;  %v265_v10 = vsel %vm264_vm0, %v8_v0, -inf  ;;  %v266_v11 = vsel %vm264_vm0, %v16_v2, -inf  ;;  %v274_v12 = vsel %vm264_vm0, %v9_v1, -inf  ;;  %v275_v13 = vsel %vm264_vm0, %v17_v3, -inf }
   0x5   :  { %v13_v14 = vld [vmem:[%s3310_s0 + $0xa] sm:$0x3]  ;;  %v21_v15 = vld [vmem:[%s3310_s0 + $0x1a] sm:$0x3]  ;;  %v267_v16 = vmax.f32 %v265_v10, %v266_v11  ;;  %v276_v17 = vmax.f32 %v274_v12, %v275_v13  ;;  %v283_v18 = vsel %vm264_vm0, %v10_v4, -inf  ;;  %v284_v19 = vsel %vm264_vm0, %v18_v5, -inf }
   0x6   :  { %v14_v20 = vld [vmem:[%s3310_s0 + $0xc] sm:$0x3]  ;;  %v285_v21 = vmax.f32 %v283_v18, %v284_v19  ;;  %v292_v22 = vsel %vm264_vm0, %v11_v6, -inf  ;;  %v293_v23 = vsel %vm264_vm0, %v19_v8, -inf  ;;  %v301_v24 = vsel %vm264_vm0, %v12_v7, -inf }
   0x7   :  { %v22_v25 = vld [vmem:[%s3310_s0 + $0x1c] sm:$0x3]  ;;  %v268_v26 = vrot.slane %v267_v16, 4  ;;  %v277_v27 = vrot.slane %v276_v17, 4  ;;  %v294_v28 = vmax.f32 %v292_v22, %v293_v23  ;;  %v302_v29 = vsel %vm264_vm0, %v20_v9, -inf }
   0x8   :  { %v286_v30 = vrot.slane %v285_v21, 4  ;;  %v303_v31 = vmax.f32 %v301_v24, %v302_v29  ;;  %v310_v32 = vsel %vm264_vm0, %v13_v14, -inf  ;;  %v311_v33 = vsel %vm264_vm0, %v21_v15, -inf  ;;  %v15_v34 = vld [vmem:[%s3310_s0 + $0xe] sm:$0x3] }
   0x9   :  { %v269_v35 = vmax.f32 %v267_v16, %v268_v26  ;;  %v278_v36 = vmax.f32 %v276_v17, %v277_v27  ;;  %v295_v37 = vrot.slane %v294_v28, 4  ;;  %v312_v38 = vmax.f32 %v310_v32, %v311_v33  ;;  %v23_v43 = vld [vmem:[%s3310_s0 + $0x1e] sm:$0x3]  ;;  %v24_v0 = vld [vmem:[%s3310_s0 + $0x20] sm:$0x3] }
   0xa   :  { %v287_v39 = vmax.f32 %v285_v21, %v286_v30  ;;  %v304_v40 = vrot.slane %v303_v31, 4  ;;  %v319_v41 = vsel %vm264_vm0, %v14_v20, -inf  ;;  %v320_v42 = vsel %vm264_vm0, %v22_v25, -inf  ;;  %v32_v1 = vld [vmem:[%s3310_s0 + $0x30] sm:$0x3] }
   0xb   :  { %v270_v44 = vrot.slane %v269_v35, 2  ;;  %v279_v45 = vrot.slane %v278_v36, 2  ;;  %v296_v46 = vmax.f32 %v294_v28, %v295_v37  ;;  %v313_v47 = vrot.slane %v312_v38, 4  ;;  %v25_v6 = vld [vmem:[%s3310_s0 + $0x22] sm:$0x3] }
   0xc   :  { %v288_v48 = vrot.slane %v287_v39, 2  ;;  %v305_v49 = vmax.f32 %v303_v31, %v304_v40  ;;  %v321_v50 = vmax.f32 %v319_v41, %v320_v42  ;;  %v328_v51 = vsel %vm264_vm0, %v15_v34, -inf  ;;  %v26_v7 = vld [vmem:[%s3310_s0 + $0x24] sm:$0x3]  ;;  %v33_v12 = vld [vmem:[%s3310_s0 + $0x32] sm:$0x3] }
   0xd   :  { %v271_v52 = vmax.f32 %v269_v35, %v270_v44  ;;  %v280_v53 = vmax.f32 %v278_v36, %v279_v45  ;;  %v297_v54 = vrot.slane %v296_v46, 2  ;;  %v314_v55 = vmax.f32 %v312_v38, %v313_v47  ;;  %v27_v17 = vld [vmem:[%s3310_s0 + $0x26] sm:$0x3]  ;;  %v28_v22 = vld [vmem:[%s3310_s0 + $0x28] sm:$0x3] }
   0xe   :  { %v289_v56 = vmax.f32 %v287_v39, %v288_v48  ;;  %v306_v57 = vrot.slane %v305_v49, 2  ;;  %v322_v58 = vrot.slane %v321_v50, 4  ;;  %v329_v59 = vsel %vm264_vm0, %v23_v43, -inf  ;;  %v34_v23 = vld [vmem:[%s3310_s0 + $0x34] sm:$0x3] }
   0xf   :  { %v272_v60 = vrot.slane %v271_v52, 1  ;;  %v281_v61 = vrot.slane %v280_v53, 1  ;;  %v298_v62 = vmax.f32 %v296_v46, %v297_v54  ;;  %v315_v63 = vrot.slane %v314_v55, 2  ;;  %v35_v24 = vld [vmem:[%s3310_s0 + $0x36] sm:$0x3] }
  0x10   :  { %v290_v2 = vrot.slane %v289_v56, 1  ;;  %v307_v3 = vmax.f32 %v305_v49, %v306_v57  ;;  %v323_v4 = vmax.f32 %v321_v50, %v322_v58  ;;  %v330_v5 = vmax.f32 %v328_v51, %v329_v59  ;;  %v29_v29 = vld [vmem:[%s3310_s0 + $0x2a] sm:$0x3]  ;;  %v36_v34 = vld [vmem:[%s3310_s0 + $0x38] sm:$0x3] }
  0x11   :  { %v1787_v8 = vmax.f32 %v271_v52, %v272_v60  ;;  %v1789_v9 = vmax.f32 %v280_v53, %v281_v61  ;;  %v299_v10 = vrot.slane %v298_v62, 1  ;;  %v316_v11 = vmax.f32 %v314_v55, %v315_v63  ;;  %v30_v43 = vld [vmem:[%s3310_s0 + $0x2c] sm:$0x3]  ;;  %v37_v44 = vld [vmem:[%s3310_s0 + $0x3a] sm:$0x3] }
  0x12   :  { %v1794_v13 = vmax.f32 %v289_v56, %v290_v2  ;;  %v308_v14 = vrot.slane %v307_v3, 1  ;;  %v324_v15 = vrot.slane %v323_v4, 2  ;;  %v331_v16 = vrot.slane %v330_v5, 4  ;;  %v38_v53 = vld [vmem:[%s3310_s0 + $0x3c] sm:$0x3] }
  0x13   :  { %v1799_v18 = vmax.f32 %v298_v62, %v299_v10  ;;  %v317_v19 = vrot.slane %v316_v11, 1  ;;  %v337_v20 = vsel %vm264_vm0, %v24_v0, -inf  ;;  %v338_v21 = vsel %vm264_vm0, %v32_v1, -inf  ;;  %v31_v62 = vld [vmem:[%s3310_s0 + $0x2e] sm:$0x3] }
  0x14   :  { %v1812_v25 = vmax.f32 %v307_v3, %v308_v14  ;;  %v325_v26 = vmax.f32 %v323_v4, %v324_v15  ;;  %v332_v27 = vmax.f32 %v330_v5, %v331_v16  ;;  %v339_v28 = vmax.f32 %v337_v20, %v338_v21  ;;  %v40_v20 = vld [vmem:[%s3310_s0 + $0x40] sm:$0x3] }
  0x15   :  { %v1817_v30 = vmax.f32 %v316_v11, %v317_v19  ;;  %v346_v31 = vsel %vm264_vm0, %v25_v6, -inf  ;;  %v347_v32 = vsel %vm264_vm0, %v33_v12, -inf  ;;  %v355_v33 = vsel %vm264_vm0, %v26_v7, -inf  ;;  %v39_v7 = vld [vmem:[%s3310_s0 + $0x3e] sm:$0x3] }
  0x16   :  { %v326_v35 = vrot.slane %v325_v26, 1  ;;  %v333_v36 = vrot.slane %v332_v27, 2  ;;  %v340_v37 = vrot.slane %v339_v28, 4  ;;  %v348_v38 = vmax.f32 %v346_v31, %v347_v32  ;;  %v41_v32 = vld [vmem:[%s3310_s0 + $0x42] sm:$0x3] }
  0x17   :  { %v356_v39 = vsel %vm264_vm0, %v34_v23, -inf  ;;  %v364_v40 = vsel %vm264_vm0, %v27_v17, -inf  ;;  %v365_v41 = vsel %vm264_vm0, %v35_v24, -inf  ;;  %v373_v42 = vsel %vm264_vm0, %v28_v22, -inf }
  0x18   :  { %v1835_v45 = vmax.f32 %v325_v26, %v326_v35  ;;  %v334_v46 = vmax.f32 %v332_v27, %v333_v36  ;;  %v341_v47 = vmax.f32 %v339_v28, %v340_v37  ;;  %v349_v48 = vrot.slane %v348_v38, 4  ;;  %v48_v26 = vld [vmem:[%s3310_s0 + $0x50] sm:$0x3]  ;;  %v42_v37 = vld [vmem:[%s3310_s0 + $0x44] sm:$0x3] }
  0x19   :  { %v357_v49 = vmax.f32 %v355_v33, %v356_v39  ;;  %v366_v50 = vmax.f32 %v364_v40, %v365_v41  ;;  %v374_v51 = vsel %vm264_vm0, %v36_v34, -inf  ;;  %v382_v52 = vsel %vm264_vm0, %v29_v29, -inf }
  0x1a   :  { %v335_v54 = vrot.slane %v334_v46, 1  ;;  %v342_v55 = vrot.slane %v341_v47, 2  ;;  %v350_v56 = vmax.f32 %v348_v38, %v349_v48  ;;  %v375_v57 = vmax.f32 %v373_v42, %v374_v51  ;;  %v49_v42 = vld [vmem:[%s3310_s0 + $0x52] sm:$0x3]  ;;  %v50_v48 = vld [vmem:[%s3310_s0 + $0x54] sm:$0x3] }
  0x1b   :  { %v358_v58 = vrot.slane %v357_v49, 4  ;;  %v367_v59 = vrot.slane %v366_v50, 4  ;;  %v383_v60 = vsel %vm264_vm0, %v37_v44, -inf  ;;  %v391_v61 = vsel %vm264_vm0, %v30_v43, -inf }
  0x1c   :  { %v1847_v63 = vmax.f32 %v334_v46, %v335_v54  ;;  %v343_v0 = vmax.f32 %v341_v47, %v342_v55  ;;  %v351_v1 = vrot.slane %v350_v56, 2  ;;  %v376_v2 = vrot.slane %v375_v57, 4 }
  0x1d   :  { %v359_v3 = vmax.f32 %v357_v49, %v358_v58  ;;  %v368_v4 = vmax.f32 %v366_v50, %v367_v59  ;;  %v384_v5 = vmax.f32 %v382_v52, %v383_v60  ;;  %v392_v6 = vsel %vm264_vm0, %v38_v53, -inf  ;;  %v43_v53 = vld [vmem:[%s3310_s0 + $0x46] sm:$0x3]  ;;  %v51_v58 = vld [vmem:[%s3310_s0 + $0x56] sm:$0x3] }
  0x1e   :  { %v344_v10 = vrot.slane %v343_v0, 1  ;;  %v352_v11 = vmax.f32 %v350_v56, %v351_v1  ;;  %v377_v12 = vmax.f32 %v375_v57, %v376_v2  ;;  %v393_v14 = vmax.f32 %v391_v61, %v392_v6  ;;  %v52_v6 = vld [vmem:[%s3310_s0 + $0x58] sm:$0x3] }
  0x1f   :  { %v360_v15 = vrot.slane %v359_v3, 2  ;;  %v369_v16 = vrot.slane %v368_v4, 2  ;;  %v385_v17 = vrot.slane %v384_v5, 4  ;;  %v400_v19 = vsel %vm264_vm0, %v31_v62, -inf }
  0x20   :  { %v1857_v21 = vmax.f32 %v343_v0, %v344_v10  ;;  %v353_v22 = vrot.slane %v352_v11, 1  ;;  %v378_v23 = vrot.slane %v377_v12, 2  ;;  %v394_v24 = vrot.slane %v393_v14, 4  ;;  %v44_v0 = vld [vmem:[%s3310_s0 + $0x48] sm:$0x3] }
  0x21   :  { %v361_v27 = vmax.f32 %v359_v3, %v360_v15  ;;  %v370_v28 = vmax.f32 %v368_v4, %v369_v16  ;;  %v386_v29 = vmax.f32 %v384_v5, %v385_v17  ;;  %v401_v31 = vsel %vm264_vm0, %v39_v7, -inf  ;;  %v45_v5 = vld [vmem:[%s3310_s0 + $0x4a] sm:$0x3] }
  0x22   :  { %v1866_v33 = vmax.f32 %v352_v11, %v353_v22  ;;  %v379_v34 = vmax.f32 %v377_v12, %v378_v23  ;;  %v395_v35 = vmax.f32 %v393_v14, %v394_v24  ;;  %v402_v36 = vmax.f32 %v400_v19, %v401_v31  ;;  %v46_v14 = vld [vmem:[%s3310_s0 + $0x4c] sm:$0x3] }
  0x23   :  { %v362_v38 = vrot.slane %v361_v27, 1  ;;  %v371_v39 = vrot.slane %v370_v28, 1  ;;  %v387_v40 = vrot.slane %v386_v29, 2  ;;  %v409_v41 = vsel %vm264_vm0, %v40_v20, -inf  ;;  %v53_v20 = vld [vmem:[%s3310_s0 + $0x5a] sm:$0x3] }
  0x24   :  { %v380_v43 = vrot.slane %v379_v34, 1  ;;  %v396_v44 = vrot.slane %v395_v35, 2  ;;  %v403_v46 = vrot.slane %v402_v36, 4  ;;  %v410_v47 = vsel %vm264_vm0, %v48_v26, -inf }
  0x25   :  { %v1879_v49 = vmax.f32 %v361_v27, %v362_v38  ;;  %v1881_v50 = vmax.f32 %v370_v28, %v371_v39  ;;  %v388_v51 = vmax.f32 %v386_v29, %v387_v40  ;;  %v411_v52 = vmax.f32 %v409_v41, %v410_v47 }
  0x26   :  { %v1886_v54 = vmax.f32 %v379_v34, %v380_v43  ;;  %v397_v55 = vmax.f32 %v395_v35, %v396_v44  ;;  %v404_v56 = vmax.f32 %v402_v36, %v403_v46  ;;  %v418_v57 = vsel %vm264_vm0, %v41_v32, -inf  ;;  %v47_v32 = vld [vmem:[%s3310_s0 + $0x4e] sm:$0x3]  ;;  %v54_v34 = vld [vmem:[%s3310_s0 + $0x5c] sm:$0x3] }
  0x27   :  { %v389_v59 = vrot.slane %v388_v51, 1  ;;  %v412_v60 = vrot.slane %v411_v52, 4  ;;  %v419_v61 = vsel %vm264_vm0, %v49_v42, -inf  ;;  %v427_v62 = vsel %vm264_vm0, %v42_v37, -inf  ;;  %v55_v43 = vld [vmem:[%s3310_s0 + $0x5e] sm:$0x3] }
  0x28   :  { %v398_v1 = vrot.slane %v397_v55, 1  ;;  %v405_v2 = vrot.slane %v404_v56, 2  ;;  %v420_v3 = vmax.f32 %v418_v57, %v419_v61  ;;  %v428_v4 = vsel %vm264_vm0, %v50_v48, -inf }
  0x29   :  { %v1904_v7 = vmax.f32 %v388_v51, %v389_v59  ;;  %v413_v10 = vmax.f32 %v411_v52, %v412_v60  ;;  %v429_v11 = vmax.f32 %v427_v62, %v428_v4  ;;  %v436_v12 = vsel %vm264_vm0, %v43_v53, -inf }
  0x2a   :  { %v1910_v15 = vmax.f32 %v397_v55, %v398_v1  ;;  %v406_v16 = vmax.f32 %v404_v56, %v405_v2  ;;  %v421_v17 = vrot.slane %v420_v3, 4  ;;  %v437_v19 = vsel %vm264_vm0, %v51_v58, -inf  ;;  %v56_v56 = vld [vmem:[%s3310_s0 + $0x60] sm:$0x3]  ;;  %v57_v2 = vld [vmem:[%s3310_s0 + $0x62] sm:$0x3] }
  0x2b   :  { %v414_v22 = vrot.slane %v413_v10, 2  ;;  %v430_v23 = vrot.slane %v429_v11, 4  ;;  %v438_v24 = vmax.f32 %v436_v12, %v437_v19  ;;  %v445_v26 = vsel %vm264_vm0, %v44_v0, -inf  ;;  %v65_v19 = vld [vmem:[%s3310_s0 + $0x72] sm:$0x3] }
  0x2c   :  { %v407_v27 = vrot.slane %v406_v16, 1  ;;  %v422_v28 = vmax.f32 %v420_v3, %v421_v17  ;;  %v446_v29 = vsel %vm264_vm0, %v52_v6, -inf  ;;  %v454_v31 = vsel %vm264_vm0, %v45_v5, -inf  ;;  %v64_v3 = vld [vmem:[%s3310_s0 + $0x70] sm:$0x3] }
  0x2d   :  { %v415_v35 = vmax.f32 %v413_v10, %v414_v22  ;;  %v431_v36 = vmax.f32 %v429_v11, %v430_v23  ;;  %v439_v37 = vrot.slane %v438_v24, 4  ;;  %v447_v38 = vmax.f32 %v445_v26, %v446_v29  ;;  %v58_v17 = vld [vmem:[%s3310_s0 + $0x64] sm:$0x3] }
  0x2e   :  { %v1925_v39 = vmax.f32 %v406_v16, %v407_v27  ;;  %v423_v40 = vrot.slane %v422_v28, 2  ;;  %v455_v41 = vsel %vm264_vm0, %v53_v20, -inf  ;;  %v463_v42 = vsel %vm264_vm0, %v46_v14, -inf }
  0x2f   :  { %v416_v44 = vrot.slane %v415_v35, 1  ;;  %v432_v46 = vrot.slane %v431_v36, 2  ;;  %v440_v47 = vmax.f32 %v438_v24, %v439_v37  ;;  %v448_v48 = vrot.slane %v447_v38, 4 }
  0x30   :  { %v424_v51 = vmax.f32 %v422_v28, %v423_v40  ;;  %v456_v52 = vmax.f32 %v454_v31, %v455_v41  ;;  %v464_v53 = vsel %vm264_vm0, %v54_v34, -inf  ;;  %v472_v55 = vsel %vm264_vm0, %v47_v32, -inf  ;;  %v59_v31 = vld [vmem:[%s3310_s0 + $0x66] sm:$0x3]  ;;  %v66_v32 = vld [vmem:[%s3310_s0 + $0x74] sm:$0x3] }
  0x31   :  { %v1937_v57 = vmax.f32 %v415_v35, %v416_v44  ;;  %v433_v58 = vmax.f32 %v431_v36, %v432_v46  ;;  %v441_v59 = vrot.slane %v440_v47, 2  ;;  %v449_v60 = vmax.f32 %v447_v38, %v448_v48  ;;  %v67_v44 = vld [vmem:[%s3310_s0 + $0x76] sm:$0x3] }
  0x32   :  { %v425_v61 = vrot.slane %v424_v51, 1  ;;  %v457_v62 = vrot.slane %v456_v52, 4  ;;  %v465_v0 = vmax.f32 %v463_v42, %v464_v53  ;;  %v473_v1 = vsel %vm264_vm0, %v55_v43, -inf  ;;  %v60_v43 = vld [vmem:[%s3310_s0 + $0x68] sm:$0x3] }
  0x33   :  { %v434_v4 = vrot.slane %v433_v58, 1  ;;  %v442_v5 = vmax.f32 %v440_v47, %v441_v59  ;;  %v450_v6 = vrot.slane %v449_v60, 2  ;;  %v474_v10 = vmax.f32 %v472_v55, %v473_v1  ;;  %v68_v59 = vld [vmem:[%s3310_s0 + $0x78] sm:$0x3]  ;;  %v62_v1 = vld [vmem:[%s3310_s0 + $0x6c] sm:$0x3] }
  0x34   :  { %v1946_v11 = vmax.f32 %v424_v51, %v425_v61  ;;  %v458_v12 = vmax.f32 %v456_v52, %v457_v62  ;;  %v466_v14 = vrot.slane %v465_v0, 4  ;;  %v481_v16 = vsel %vm264_vm0, %v56_v56, -inf }
  0x35   :  { %v1955_v20 = vmax.f32 %v433_v58, %v434_v4  ;;  %v443_v22 = vrot.slane %v442_v5, 1  ;;  %v451_v23 = vmax.f32 %v449_v60, %v450_v6  ;;  %v475_v24 = vrot.slane %v474_v10, 4  ;;  %v61_v58 = vld [vmem:[%s3310_s0 + $0x6a] sm:$0x3]  ;;  %v69_v6 = vld [vmem:[%s3310_s0 + $0x7a] sm:$0x3] }
  0x36   :  { %v459_v26 = vrot.slane %v458_v12, 2  ;;  %v467_v27 = vmax.f32 %v465_v0, %v466_v14  ;;  %v482_v28 = vsel %vm264_vm0, %v64_v3, -inf  ;;  %v490_v29 = vsel %vm264_vm0, %v57_v2, -inf }
  0x37   :  { %v1965_v34 = vmax.f32 %v442_v5, %v443_v22  ;;  %v452_v35 = vrot.slane %v451_v23, 1  ;;  %v476_v36 = vmax.f32 %v474_v10, %v475_v24  ;;  %v483_v37 = vmax.f32 %v481_v16, %v482_v28  ;;  %v63_v24 = vld [vmem:[%s3310_s0 + $0x6e] sm:$0x3] }
  0x38   :  { %v460_v38 = vmax.f32 %v458_v12, %v459_v26  ;;  %v468_v40 = vrot.slane %v467_v27, 2  ;;  %v491_v41 = vsel %vm264_vm0, %v65_v19, -inf  ;;  %v499_v42 = vsel %vm264_vm0, %v58_v17, -inf  ;;  %v70_v26 = vld [vmem:[%s3310_s0 + $0x7c] sm:$0x3] }
  0x39   :  { %v1975_v46 = vmax.f32 %v451_v23, %v452_v35  ;;  %v477_v47 = vrot.slane %v476_v36, 2  ;;  %v484_v48 = vrot.slane %v483_v37, 4  ;;  %v492_v51 = vmax.f32 %v490_v29, %v491_v41 }
  0x3a   :  { %v461_v52 = vrot.slane %v460_v38, 1  ;;  %v469_v53 = vmax.f32 %v467_v27, %v468_v40  ;;  %v500_v55 = vsel %vm264_vm0, %v66_v32, -inf  ;;  %v508_v56 = vsel %vm264_vm0, %v59_v31, -inf }
  0x3b   :  { %v478_v60 = vmax.f32 %v476_v36, %v477_v47  ;;  %v485_v61 = vmax.f32 %v483_v37, %v484_v48  ;;  %v493_v62 = vrot.slane %v492_v51, 4  ;;  %v501_v0 = vmax.f32 %v499_v42, %v500_v55 }
  0x3c   :  { %v1988_v2 = vmax.f32 %v460_v38, %v461_v52  ;;  %v470_v3 = vrot.slane %v469_v53, 1  ;;  %v509_v4 = vsel %vm264_vm0, %v67_v44, -inf  ;;  %v517_v5 = vsel %vm264_vm0, %v60_v43, -inf  ;;  %v71_v38 = vld [vmem:[%s3310_s0 + $0x7e] sm:$0x3] }
  0x3d   :  { %v479_v10 = vrot.slane %v478_v60, 1  ;;  %v486_v12 = vrot.slane %v485_v61, 2  ;;  %v494_v14 = vmax.f32 %v492_v51, %v493_v62  ;;  %v502_v16 = vrot.slane %v501_v0, 4  ;;  %v72_v52 = vld [vmem:[%s3310_s0 + $0x80] sm:$0x3] }
  0x3e   :  { %v1995_v17 = vmax.f32 %v469_v53, %v470_v3  ;;  %v510_v19 = vmax.f32 %v508_v56, %v509_v4  ;;  %v518_v22 = vsel %vm264_vm0, %v68_v59, -inf  ;;  %v526_v23 = vsel %vm264_vm0, %v61_v58, -inf  ;;  %v80_v59 = vld [vmem:[%s3310_s0 + $0x90] sm:$0x3] }
  0x3f   :  { %v2005_v27 = vmax.f32 %v478_v60, %v479_v10  ;;  %v487_v28 = vmax.f32 %v485_v61, %v486_v12  ;;  %v495_v29 = vrot.slane %v494_v14, 2  ;;  %v503_v31 = vmax.f32 %v501_v0, %v502_v16  ;;  %v81_v10 = vld [vmem:[%s3310_s0 + $0x92] sm:$0x3] }
  0x40   :  { %v511_v32 = vrot.slane %v510_v19, 4  ;;  %v519_v35 = vmax.f32 %v517_v5, %v518_v22  ;;  %v527_v36 = vsel %vm264_vm0, %v69_v6, -inf  ;;  %v535_v37 = vsel %vm264_vm0, %v62_v1, -inf  ;;  %v73_v1 = vld [vmem:[%s3310_s0 + $0x82] sm:$0x3] }
  0x41   :  { %v488_v40 = vrot.slane %v487_v28, 1  ;;  %v496_v41 = vmax.f32 %v494_v14, %v495_v29  ;;  %v504_v42 = vrot.slane %v503_v31, 2  ;;  %v528_v43 = vmax.f32 %v526_v23, %v527_v36  ;;  %v82_v36 = vld [vmem:[%s3310_s0 + $0x94] sm:$0x3] }
  0x42   :  { %v512_v44 = vmax.f32 %v510_v19, %v511_v32  ;;  %v520_v47 = vrot.slane %v519_v35, 4  ;;  %v536_v48 = vsel %vm264_vm0, %v70_v26, -inf  ;;  %v544_v51 = vsel %vm264_vm0, %v63_v24, -inf }
  0x43   :  { %v2017_v53 = vmax.f32 %v487_v28, %v488_v40  ;;  %v497_v55 = vrot.slane %v496_v41, 1  ;;  %v505_v56 = vmax.f32 %v503_v31, %v504_v42  ;;  %v529_v58 = vrot.slane %v528_v43, 4  ;;  %v74_v28 = vld [vmem:[%s3310_s0 + $0x84] sm:$0x3]  ;;  %v75_v42 = vld [vmem:[%s3310_s0 + $0x86] sm:$0x3] }
  0x44   :  { %v513_v60 = vrot.slane %v512_v44, 2  ;;  %v521_v61 = vmax.f32 %v519_v35, %v520_v47  ;;  %v537_v62 = vmax.f32 %v535_v37, %v536_v48  ;;  %v545_v0 = vsel %vm264_vm0, %v71_v38, -inf }
  0x45   :  { %v2026_v3 = vmax.f32 %v496_v41, %v497_v55  ;;  %v506_v4 = vrot.slane %v505_v56, 1  ;;  %v530_v5 = vmax.f32 %v528_v43, %v529_v58  ;;  %v546_v6 = vmax.f32 %v544_v51, %v545_v0  ;;  %v83_v51 = vld [vmem:[%s3310_s0 + $0x96] sm:$0x3]  ;;  %v76_v0 = vld [vmem:[%s3310_s0 + $0x88] sm:$0x3] }
  0x46   :  { %v514_v12 = vmax.f32 %v512_v44, %v513_v60  ;;  %v522_v14 = vrot.slane %v521_v61, 2  ;;  %v538_v16 = vrot.slane %v537_v62, 4  ;;  %v553_v19 = vsel %vm264_vm0, %v72_v52, -inf }
  0x47   :  { %v2032_v22 = vmax.f32 %v505_v56, %v506_v4  ;;  %v531_v23 = vrot.slane %v530_v5, 2  ;;  %v547_v24 = vrot.slane %v546_v6, 4  ;;  %v554_v26 = vsel %vm264_vm0, %v80_v59, -inf }
  0x48   :  { %v515_v29 = vrot.slane %v514_v12, 1  ;;  %v523_v31 = vmax.f32 %v521_v61, %v522_v14  ;;  %v539_v32 = vmax.f32 %v537_v62, %v538_v16  ;;  %v555_v35 = vmax.f32 %v553_v19, %v554_v26 }
  0x49   :  { %v532_v37 = vmax.f32 %v530_v5, %v531_v23  ;;  %v548_v38 = vmax.f32 %v546_v6, %v547_v24  ;;  %v562_v40 = vsel %vm264_vm0, %v73_v1, -inf  ;;  %v563_v41 = vsel %vm264_vm0, %v81_v10, -inf  ;;  %v84_v1 = vld [vmem:[%s3310_s0 + $0x98] sm:$0x3]  ;;  %v77_v23 = vld [vmem:[%s3310_s0 + $0x8a] sm:$0x3] }
  0x4a   :  { %v2046_v43 = vmax.f32 %v514_v12, %v515_v29  ;;  %v524_v44 = vrot.slane %v523_v31, 1  ;;  %v540_v47 = vrot.slane %v539_v32, 2  ;;  %v556_v48 = vrot.slane %v555_v35, 4  ;;  %v85_v24 = vld [vmem:[%s3310_s0 + $0x9a] sm:$0x3] }
  0x4b   :  { %v533_v52 = vrot.slane %v532_v37, 1  ;;  %v549_v55 = vrot.slane %v548_v38, 2  ;;  %v564_v56 = vmax.f32 %v562_v40, %v563_v41  ;;  %v571_v58 = vsel %vm264_vm0, %v74_v28, -inf  ;;  %v86_v40 = vld [vmem:[%s3310_s0 + $0x9c] sm:$0x3] }
  0x4c   :  { %v2052_v59 = vmax.f32 %v523_v31, %v524_v44  ;;  %v541_v60 = vmax.f32 %v539_v32, %v540_v47  ;;  %v557_v61 = vmax.f32 %v555_v35, %v556_v48  ;;  %v572_v62 = vsel %vm264_vm0, %v82_v36, -inf }
  0x4d   :  { %v2061_v4 = vmax.f32 %v532_v37, %v533_v52  ;;  %v550_v5 = vmax.f32 %v548_v38, %v549_v55  ;;  %v565_v6 = vrot.slane %v564_v56, 4  ;;  %v573_v10 = vmax.f32 %v571_v58, %v572_v62  ;;  %v78_v38 = vld [vmem:[%s3310_s0 + $0x8c] sm:$0x3]  ;;  %v87_v58 = vld [vmem:[%s3310_s0 + $0x9e] sm:$0x3] }
  0x4e   :  { %v542_v12 = vrot.slane %v541_v60, 1  ;;  %v558_v14 = vrot.slane %v557_v61, 2  ;;  %v580_v16 = vsel %vm264_vm0, %v75_v42, -inf  ;;  %v581_v19 = vsel %vm264_vm0, %v83_v51, -inf }
  0x4f   :  { %v551_v26 = vrot.slane %v550_v5, 1  ;;  %v566_v28 = vmax.f32 %v564_v56, %v565_v6  ;;  %v574_v29 = vrot.slane %v573_v10, 4  ;;  %v582_v31 = vmax.f32 %v580_v16, %v581_v19  ;;  %v79_v56 = vld [vmem:[%s3310_s0 + $0x8e] sm:$0x3] }
  0x50   :  { %v2071_v32 = vmax.f32 %v541_v60, %v542_v12  ;;  %v559_v35 = vmax.f32 %v557_v61, %v558_v14  ;;  %v589_v36 = vsel %vm264_vm0, %v76_v0, -inf  ;;  %v590_v37 = vsel %vm264_vm0, %v84_v1, -inf  ;;  %v88_v12 = vld [vmem:[%s3310_s0 + $0xa0] sm:$0x3] }
  0x51   :  { %v2081_v41 = vmax.f32 %v550_v5, %v551_v26  ;;  %v567_v42 = vrot.slane %v566_v28, 2  ;;  %v575_v44 = vmax.f32 %v573_v10, %v574_v29  ;;  %v583_v47 = vrot.slane %v582_v31, 4 }
  0x52   :  { %v560_v48 = vrot.slane %v559_v35, 1  ;;  %v591_v51 = vmax.f32 %v589_v36, %v590_v37  ;;  %v598_v52 = vsel %vm264_vm0, %v77_v23, -inf  ;;  %v599_v55 = vsel %vm264_vm0, %v85_v24, -inf  ;;  %v96_v24 = vld [vmem:[%s3310_s0 + $0xb0] sm:$0x3] }
  0x53   :  { %3312 = vst [vmem:[#allocation2_spill] sm:$0xff] %v2081_v41  ;;  %v568_v60 = vmax.f32 %v566_v28, %v567_v42  ;;  %v576_v61 = vrot.slane %v575_v44, 2  ;;  %v584_v62 = vmax.f32 %v582_v31, %v583_v47  ;;  %v600_v0 = vmax.f32 %v598_v52, %v599_v55  ;;  %v97_v42 = vld [vmem:[%s3310_s0 + $0xb2] sm:$0x3] }
  0x54   :  { %v2091_v1 = vmax.f32 %v559_v35, %v560_v48  ;;  %v592_v5 = vrot.slane %v591_v51, 4  ;;  %v607_v6 = vsel %vm264_vm0, %v78_v38, -inf  ;;  %v608_v10 = vsel %vm264_vm0, %v86_v40, -inf  ;;  %v89_v35 = vld [vmem:[%s3310_s0 + $0xa2] sm:$0x3] }
  0x55   :  { %v569_v14 = vrot.slane %v568_v60, 1  ;;  %v577_v16 = vmax.f32 %v575_v44, %v576_v61  ;;  %v585_v19 = vrot.slane %v584_v62, 2  ;;  %v601_v23 = vrot.slane %v600_v0, 4  ;;  %v98_v61 = vld [vmem:[%s3310_s0 + $0xb4] sm:$0x3] }
  0x56   :  { %v593_v26 = vmax.f32 %v591_v51, %v592_v5  ;;  %v609_v28 = vmax.f32 %v607_v6, %v608_v10  ;;  %v616_v29 = vsel %vm264_vm0, %v79_v56, -inf  ;;  %v617_v31 = vsel %vm264_vm0, %v87_v58, -inf }
  0x57   :  { %v2106_v36 = vmax.f32 %v568_v60, %v569_v14  ;;  %v578_v37 = vrot.slane %v577_v16, 1  ;;  %v586_v38 = vmax.f32 %v584_v62, %v585_v19  ;;  %v602_v40 = vmax.f32 %v600_v0, %v601_v23  ;;  %v90_v60 = vld [vmem:[%s3310_s0 + $0xa4] sm:$0x3]  ;;  %v91_v19 = vld [vmem:[%s3310_s0 + $0xa6] sm:$0x3] }
  0x58   :  { %v594_v44 = vrot.slane %v593_v26, 2  ;;  %v610_v47 = vrot.slane %v609_v28, 4  ;;  %v618_v48 = vmax.f32 %v616_v29, %v617_v31  ;;  %v625_v51 = vsel %vm264_vm0, %v88_v12, -inf }
  0x59   :  { %v2112_v52 = vmax.f32 %v577_v16, %v578_v37  ;;  %v587_v55 = vrot.slane %v586_v38, 1  ;;  %v603_v56 = vrot.slane %v602_v40, 2  ;;  %v626_v58 = vsel %vm264_vm0, %v96_v24, -inf }
  0x5a   :  { %v595_v62 = vmax.f32 %v593_v26, %v594_v44  ;;  %v611_v0 = vmax.f32 %v609_v28, %v610_v47  ;;  %v619_v5 = vrot.slane %v618_v48, 4  ;;  %v627_v6 = vmax.f32 %v625_v51, %v626_v58  ;;  %v99_v26 = vld [vmem:[%s3310_s0 + $0xb6] sm:$0x3]  ;;  %v100_v51 = vld [vmem:[%s3310_s0 + $0xb8] sm:$0x3] }
  0x5b   :  { %v2121_v10 = vmax.f32 %v586_v38, %v587_v55  ;;  %v604_v12 = vmax.f32 %v602_v40, %v603_v56  ;;  %v634_v14 = vsel %vm264_vm0, %v89_v35, -inf  ;;  %v635_v16 = vsel %vm264_vm0, %v97_v42, -inf  ;;  %v92_v40 = vld [vmem:[%s3310_s0 + $0xa8] sm:$0x3] }
  0x5c   :  { %v596_v23 = vrot.slane %v595_v62, 1  ;;  %v612_v24 = vrot.slane %v611_v0, 2  ;;  %v620_v29 = vmax.f32 %v618_v48, %v619_v5  ;;  %v628_v31 = vrot.slane %v627_v6, 4 }
  0x5d   :  { %v605_v28 = vrot.slane %v604_v12, 1  ;;  %v636_v37 = vmax.f32 %v634_v14, %v635_v16  ;;  %v643_v38 = vsel %vm264_vm0, %v90_v60, -inf  ;;  %v644_v35 = vsel %vm264_vm0, %v98_v61, -inf }
  0x5e   :  { %v2136_v42 = vmax.f32 %v595_v62, %v596_v23  ;;  %v613_v44 = vmax.f32 %v611_v0, %v612_v24  ;;  %v621_v47 = vrot.slane %v620_v29, 2  ;;  %v629_v48 = vmax.f32 %v627_v6, %v628_v31  ;;  %v93_v62 = vld [vmem:[%s3310_s0 + $0xaa] sm:$0x3]  ;;  %v101_v0 = vld [vmem:[%s3310_s0 + $0xba] sm:$0x3] }
  0x5f   :  { %v2141_v55 = vmax.f32 %v604_v12, %v605_v28  ;;  %v637_v56 = vrot.slane %v636_v37, 4  ;;  %v645_v58 = vmax.f32 %v643_v38, %v644_v35  ;;  %v652_v60 = vsel %vm264_vm0, %v91_v19, -inf  ;;  %v102_v38 = vld [vmem:[%s3310_s0 + $0xbc] sm:$0x3] }
  0x60   :  { %3313 = vst [vmem:[#allocation3_spill] sm:$0xff] %v2136_v42  ;;  %v614_v61 = vrot.slane %v613_v44, 1  ;;  %v622_v5 = vmax.f32 %v620_v29, %v621_v47  ;;  %v630_v14 = vrot.slane %v629_v48, 2  ;;  %v653_v16 = vsel %vm264_vm0, %v99_v26, -inf  ;;  %v94_v26 = vld [vmem:[%s3310_s0 + $0xac] sm:$0x3] }
  0x61   :  { %3314 = vst [vmem:[#allocation4_spill] sm:$0xff] %v2141_v55  ;;  %v638_v6 = vmax.f32 %v636_v37, %v637_v56  ;;  %v646_v12 = vrot.slane %v645_v58, 4  ;;  %v654_v23 = vmax.f32 %v652_v60, %v653_v16  ;;  %v661_v24 = vsel %vm264_vm0, %v92_v40, -inf }
  0x62   :  { %v2152_v31 = vmax.f32 %v613_v44, %v614_v61  ;;  %v623_v19 = vrot.slane %v622_v5, 1  ;;  %v631_v29 = vmax.f32 %v629_v48, %v630_v14  ;;  %v662_v28 = vsel %vm264_vm0, %v100_v51, -inf  ;;  %v95_v51 = vld [vmem:[%s3310_s0 + $0xae] sm:$0x3]  ;;  %v103_v61 = vld [vmem:[%s3310_s0 + $0xbe] sm:$0x3] }
  0x63   :  { %v639_v35 = vrot.slane %v638_v6, 2  ;;  %v647_v37 = vmax.f32 %v645_v58, %v646_v12  ;;  %v655_v47 = vrot.slane %v654_v23, 4  ;;  %v663_v56 = vmax.f32 %v661_v24, %v662_v28 }
  0x64   :  { %3315 = vst [vmem:[#allocation5_spill] sm:$0xff] %v2152_v31  ;;  %v2161_v60 = vmax.f32 %v622_v5, %v623_v19  ;;  %v632_v40 = vrot.slane %v631_v29, 1  ;;  %v670_v44 = vsel %vm264_vm0, %v93_v62, -inf  ;;  %v671_v48 = vsel %vm264_vm0, %v101_v0, -inf  ;;  %v104_v0 = vld [vmem:[%s3310_s0 + $0xc0] sm:$0x3] }
  0x65   :  { %v640_v14 = vmax.f32 %v638_v6, %v639_v35  ;;  %v648_v16 = vrot.slane %v647_v37, 2  ;;  %v656_v58 = vmax.f32 %v654_v23, %v655_v47  ;;  %v664_v12 = vrot.slane %v663_v56, 4  ;;  %v112_v6 = vld [vmem:[%s3310_s0 + $0xd0] sm:$0x3] }
  0x66   :  { %3316 = vst [vmem:[#allocation6_spill] sm:$0xff] %v2161_v60  ;;  %v2171_v24 = vmax.f32 %v631_v29, %v632_v40  ;;  %v672_v5 = vmax.f32 %v670_v44, %v671_v48  ;;  %v679_v19 = vsel %vm264_vm0, %v94_v26, -inf  ;;  %v680_v62 = vsel %vm264_vm0, %v102_v38, -inf }
  0x67   :  { %v641_v28 = vrot.slane %v640_v14, 1  ;;  %v649_v60 = vmax.f32 %v647_v37, %v648_v16  ;;  %v657_v31 = vrot.slane %v656_v58, 2  ;;  %v665_v55 = vmax.f32 %v663_v56, %v664_v12  ;;  %v105_v37 = vld [vmem:[%s3310_s0 + $0xc2] sm:$0x3]  ;;  %v113_v56 = vld [vmem:[%s3310_s0 + $0xd2] sm:$0x3] }
  0x68   :  { %3317 = vst [vmem:[#allocation7_spill] sm:$0xff] %v2171_v24  ;;  %v673_v23 = vrot.slane %v672_v5, 4  ;;  %v681_v29 = vmax.f32 %v679_v19, %v680_v62  ;;  %v688_v35 = vsel %vm264_vm0, %v95_v51, -inf  ;;  %v689_v26 = vsel %vm264_vm0, %v103_v61, -inf  ;;  %v114_v62 = vld [vmem:[%s3310_s0 + $0xd4] sm:$0x3] }
  0x69   :  { %v2183_v47 = vmax.f32 %v640_v14, %v641_v28  ;;  %v650_v38 = vrot.slane %v649_v60, 1  ;;  %v658_v40 = vmax.f32 %v656_v58, %v657_v31  ;;  %v666_v44 = vrot.slane %v665_v55, 2  ;;  %v106_v58 = vld [vmem:[%s3310_s0 + $0xc4] sm:$0x3] }
  0x6a   :  { %v674_v48 = vmax.f32 %v672_v5, %v673_v23  ;;  %v682_v16 = vrot.slane %v681_v29, 4  ;;  %v690_v12 = vmax.f32 %v688_v35, %v689_v26  ;;  %v697_v51 = vsel %vm264_vm0, %v104_v0, -inf }
  0x6b   :  { %3318 = vst [vmem:[#allocation8_spill] sm:$0xff] %v2183_v47  ;;  %v2192_v19 = vmax.f32 %v649_v60, %v650_v38  ;;  %v659_v61 = vrot.slane %v658_v40, 1  ;;  %v667_v14 = vmax.f32 %v665_v55, %v666_v44  ;;  %v698_v31 = vsel %vm264_vm0, %v112_v6, -inf  ;;  %v107_v6 = vld [vmem:[%s3310_s0 + $0xc6] sm:$0x3] }
  0x6c   :  { %v675_v28 = vrot.slane %v674_v48, 2  ;;  %v683_v5 = vmax.f32 %v681_v29, %v682_v16  ;;  %v691_v23 = vrot.slane %v690_v12, 4  ;;  %v699_v35 = vmax.f32 %v697_v51, %v698_v31  ;;  %v115_v38 = vld [vmem:[%s3310_s0 + $0xd6] sm:$0x3] }
  0x6d   :  { %3319 = vst [vmem:[#allocation9_spill] sm:$0xff] %v2192_v19  ;;  %v2201_v26 = vmax.f32 %v658_v40, %v659_v61  ;;  %v668_v60 = vrot.slane %v667_v14, 1  ;;  %v706_v0 = vsel %vm264_vm0, %v105_v37, -inf  ;;  %v707_v55 = vsel %vm264_vm0, %v113_v56, -inf  ;;  %v108_v56 = vld [vmem:[%s3310_s0 + $0xc8] sm:$0x3] }
  0x6e   :  { %v676_v44 = vmax.f32 %v674_v48, %v675_v28  ;;  %v684_v19 = vrot.slane %v683_v5, 2  ;;  %v692_v29 = vmax.f32 %v690_v12, %v691_v23  ;;  %v700_v16 = vrot.slane %v699_v35, 4  ;;  %v116_v48 = vld [vmem:[%s3310_s0 + $0xd8] sm:$0x3] }
  0x6f   :  { %3320 = vst [vmem:[#allocation10_spill] sm:$0xff] %v2201_v26  ;;  %v2211_v51 = vmax.f32 %v667_v14, %v668_v60  ;;  %v708_v40 = vmax.f32 %v706_v0, %v707_v55  ;;  %v715_v61 = vsel %vm264_vm0, %v106_v58, -inf  ;;  %v716_v37 = vsel %vm264_vm0, %v114_v62, -inf }
  0x70   :  { %v677_v31 = vrot.slane %v676_v44, 1  ;;  %v685_v26 = vmax.f32 %v683_v5, %v684_v19  ;;  %v693_v41 = vrot.slane %v692_v29, 2  ;;  %v701_v47 = vmax.f32 %v699_v35, %v700_v16  ;;  %v109_v19 = vld [vmem:[%s3310_s0 + $0xca] sm:$0x3]  ;;  %v117_v5 = vld [vmem:[%s3310_s0 + $0xda] sm:$0x3] }
  0x71   :  { %3321 = vst [vmem:[#allocation11_spill] sm:$0xff] %v2211_v51  ;;  %v709_v12 = vrot.slane %v708_v40, 4  ;;  %v717_v14 = vmax.f32 %v715_v61, %v716_v37  ;;  %v724_v28 = vsel %vm264_vm0, %v107_v6, -inf  ;;  %v725_v58 = vsel %vm264_vm0, %v115_v38, -inf  ;;  %v118_v37 = vld [vmem:[%s3310_s0 + $0xdc] sm:$0x3] }
  0x72   :  { %v2223_v23 = vmax.f32 %v676_v44, %v677_v31  ;;  %v686_v62 = vrot.slane %v685_v26, 1  ;;  %v694_v60 = vmax.f32 %v692_v29, %v693_v41  ;;  %v702_v0 = vrot.slane %v701_v47, 2  ;;  %v110_v29 = vld [vmem:[%s3310_s0 + $0xcc] sm:$0x3] }
  0x73   :  { %v710_v35 = vmax.f32 %v708_v40, %v709_v12  ;;  %v718_v55 = vrot.slane %v717_v14, 4  ;;  %v726_v16 = vmax.f32 %v724_v28, %v725_v58  ;;  %v733_v6 = vsel %vm264_vm0, %v108_v56, -inf }
  0x74   :  { %3322 = vst [vmem:[#allocation12_spill] sm:$0xff] %v2223_v23  ;;  %v2232_v61 = vmax.f32 %v685_v26, %v686_v62  ;;  %v695_v38 = vrot.slane %v694_v60, 1  ;;  %v703_v44 = vmax.f32 %v701_v47, %v702_v0  ;;  %v734_v41 = vsel %vm264_vm0, %v116_v48, -inf  ;;  %v111_v48 = vld [vmem:[%s3310_s0 + $0xce] sm:$0x3] }
  0x75   :  { %v711_v31 = vrot.slane %v710_v35, 2  ;;  %v719_v40 = vmax.f32 %v717_v14, %v718_v55  ;;  %v727_v12 = vrot.slane %v726_v16, 4  ;;  %v735_v28 = vmax.f32 %v733_v6, %v734_v41  ;;  %v119_v62 = vld [vmem:[%s3310_s0 + $0xde] sm:$0x3] }
  0x76   :  { %3323 = vst [vmem:[#allocation13_spill] sm:$0xff] %v2232_v61  ;;  %v2241_v58 = vmax.f32 %v694_v60, %v695_v38  ;;  %v704_v26 = vrot.slane %v703_v44, 1  ;;  %v742_v56 = vsel %vm264_vm0, %v109_v19, -inf  ;;  %v743_v47 = vsel %vm264_vm0, %v117_v5, -inf  ;;  %v120_v5 = vld [vmem:[%s3310_s0 + $0xe0] sm:$0x3] }
  0x77   :  { %v712_v0 = vmax.f32 %v710_v35, %v711_v31  ;;  %v720_v61 = vrot.slane %v719_v40, 2  ;;  %v728_v14 = vmax.f32 %v726_v16, %v727_v12  ;;  %v736_v55 = vrot.slane %v735_v28, 4  ;;  %v128_v35 = vld [vmem:[%s3310_s0 + $0xf0] sm:$0x3] }
  0x78   :  { %3324 = vst [vmem:[#allocation14_spill] sm:$0xff] %v2241_v58  ;;  %v2251_v6 = vmax.f32 %v703_v44, %v704_v26  ;;  %v744_v60 = vmax.f32 %v742_v56, %v743_v47  ;;  %v751_v38 = vsel %vm264_vm0, %v110_v29, -inf  ;;  %v752_v19 = vsel %vm264_vm0, %v118_v37, -inf }
  0x79   :  { %v713_v41 = vrot.slane %v712_v0, 1  ;;  %v721_v58 = vmax.f32 %v719_v40, %v720_v61  ;;  %v729_v23 = vrot.slane %v728_v14, 2  ;;  %v737_v51 = vmax.f32 %v735_v28, %v736_v55  ;;  %v121_v61 = vld [vmem:[%s3310_s0 + $0xe2] sm:$0x3]  ;;  %v129_v40 = vld [vmem:[%s3310_s0 + $0xf2] sm:$0x3] }
  0x7a   :  { %3325 = vst [vmem:[#allocation15_spill] sm:$0xff] %v2251_v6  ;;  %v745_v16 = vrot.slane %v744_v60, 4  ;;  %v753_v44 = vmax.f32 %v751_v38, %v752_v19  ;;  %v760_v31 = vsel %vm264_vm0, %v111_v48, -inf  ;;  %v761_v29 = vsel %vm264_vm0, %v119_v62, -inf  ;;  %v130_v19 = vld [vmem:[%s3310_s0 + $0xf4] sm:$0x3] }
  0x7b   :  { %v2263_v12 = vmax.f32 %v712_v0, %v713_v41  ;;  %v722_v37 = vrot.slane %v721_v58, 1  ;;  %v730_v26 = vmax.f32 %v728_v14, %v729_v23  ;;  %v738_v56 = vrot.slane %v737_v51, 2  ;;  %v122_v14 = vld [vmem:[%s3310_s0 + $0xe4] sm:$0x3] }
  0x7c   :  { %v746_v28 = vmax.f32 %v744_v60, %v745_v16  ;;  %v754_v47 = vrot.slane %v753_v44, 4  ;;  %v762_v55 = vmax.f32 %v760_v31, %v761_v29  ;;  %v769_v48 = vsel %vm264_vm0, %v120_v5, -inf }
  0x7d   :  { %3326 = vst [vmem:[#allocation16_spill] sm:$0xff] %v2263_v12  ;;  %v2272_v38 = vmax.f32 %v721_v58, %v722_v37  ;;  %v731_v62 = vrot.slane %v730_v26, 1  ;;  %v739_v0 = vmax.f32 %v737_v51, %v738_v56  ;;  %v770_v23 = vsel %vm264_vm0, %v128_v35, -inf  ;;  %v123_v35 = vld [vmem:[%s3310_s0 + $0xe6] sm:$0x3] }
  0x7e   :  { %v747_v41 = vrot.slane %v746_v28, 2  ;;  %v755_v60 = vmax.f32 %v753_v44, %v754_v47  ;;  %v763_v16 = vrot.slane %v762_v55, 4  ;;  %v771_v31 = vmax.f32 %v769_v48, %v770_v23  ;;  %v131_v37 = vld [vmem:[%s3310_s0 + $0xf6] sm:$0x3] }
  0x7f   :  { %3327 = vst [vmem:[#allocation17_spill] sm:$0xff] %v2272_v38  ;;  %v2281_v29 = vmax.f32 %v730_v26, %v731_v62  ;;  %v740_v58 = vrot.slane %v739_v0, 1  ;;  %v778_v5 = vsel %vm264_vm0, %v121_v61, -inf  ;;  %v779_v51 = vsel %vm264_vm0, %v129_v40, -inf  ;;  %v124_v40 = vld [vmem:[%s3310_s0 + $0xe8] sm:$0x3] }
  0x80   :  { %v748_v56 = vmax.f32 %v746_v28, %v747_v41  ;;  %v756_v38 = vrot.slane %v755_v60, 2  ;;  %v764_v44 = vmax.f32 %v762_v55, %v763_v16  ;;  %v772_v47 = vrot.slane %v771_v31, 4  ;;  %v132_v28 = vld [vmem:[%s3310_s0 + $0xf8] sm:$0x3] }
  0x81   :  { %3328 = vst [vmem:[#allocation18_spill] sm:$0xff] %v2281_v29  ;;  %v2291_v48 = vmax.f32 %v739_v0, %v740_v58  ;;  %v780_v26 = vmax.f32 %v778_v5, %v779_v51  ;;  %v787_v62 = vsel %vm264_vm0, %v122_v14, -inf  ;;  %v788_v61 = vsel %vm264_vm0, %v130_v19, -inf }
  0x82   :  { %v749_v23 = vrot.slane %v748_v56, 1  ;;  %v757_v29 = vmax.f32 %v755_v60, %v756_v38  ;;  %v765_v12 = vrot.slane %v764_v44, 2  ;;  %v773_v6 = vmax.f32 %v771_v31, %v772_v47  ;;  %v125_v38 = vld [vmem:[%s3310_s0 + $0xea] sm:$0x3]  ;;  %v133_v60 = vld [vmem:[%s3310_s0 + $0xfa] sm:$0x3] }
  0x83   :  { %3329 = vst [vmem:[#allocation19_spill] sm:$0xff] %v2291_v48  ;;  %v781_v55 = vrot.slane %v780_v26, 4  ;;  %v789_v0 = vmax.f32 %v787_v62, %v788_v61  ;;  %v796_v41 = vsel %vm264_vm0, %v123_v35, -inf  ;;  %v797_v14 = vsel %vm264_vm0, %v131_v37, -inf  ;;  %v134_v61 = vld [vmem:[%s3310_s0 + $0xfc] sm:$0x3] }
  0x84   :  { %v2303_v16 = vmax.f32 %v748_v56, %v749_v23  ;;  %v758_v19 = vrot.slane %v757_v29, 1  ;;  %v766_v58 = vmax.f32 %v764_v44, %v765_v12  ;;  %v774_v5 = vrot.slane %v773_v6, 2  ;;  %v126_v44 = vld [vmem:[%s3310_s0 + $0xec] sm:$0x3] }
  0x85   :  { %v782_v31 = vmax.f32 %v780_v26, %v781_v55  ;;  %v790_v51 = vrot.slane %v789_v0, 4  ;;  %v798_v47 = vmax.f32 %v796_v41, %v797_v14  ;;  %v805_v35 = vsel %vm264_vm0, %v124_v40, -inf }
  0x86   :  { %3330 = vst [vmem:[#allocation20_spill] sm:$0xff] %v2303_v16  ;;  %v2312_v62 = vmax.f32 %v757_v29, %v758_v19  ;;  %v767_v37 = vrot.slane %v766_v58, 1  ;;  %v775_v56 = vmax.f32 %v773_v6, %v774_v5  ;;  %v806_v12 = vsel %vm264_vm0, %v132_v28, -inf  ;;  %v127_v28 = vld [vmem:[%s3310_s0 + $0xee] sm:$0x3] }
  0x87   :  { %v783_v23 = vrot.slane %v782_v31, 2  ;;  %v791_v26 = vmax.f32 %v789_v0, %v790_v51  ;;  %v799_v55 = vrot.slane %v798_v47, 4  ;;  %v807_v41 = vmax.f32 %v805_v35, %v806_v12  ;;  %v135_v19 = vld [vmem:[%s3310_s0 + $0xfe] sm:$0x3] }
  0x88   :  { %3331 = vst [vmem:[#allocation21_spill] sm:$0xff] %v2312_v62  ;;  %v2321_v14 = vmax.f32 %v766_v58, %v767_v37  ;;  %v776_v29 = vrot.slane %v775_v56, 1  ;;  %v814_v40 = vsel %vm264_vm0, %v125_v38, -inf  ;;  %v815_v6 = vsel %vm264_vm0, %v133_v60, -inf  ;;  %v136_v60 = vld [vmem:[%s3310_s0 + $0x100] sm:$0x3] }
  0x89   :  { %v784_v5 = vmax.f32 %v782_v31, %v783_v23  ;;  %v792_v62 = vrot.slane %v791_v26, 2  ;;  %v800_v0 = vmax.f32 %v798_v47, %v799_v55  ;;  %v808_v51 = vrot.slane %v807_v41, 4  ;;  %v144_v31 = vld [vmem:[%s3310_s0 + $0x110] sm:$0x3] }
  0x8a   :  { %3332 = vst [vmem:[#allocation22_spill] sm:$0xff] %v2321_v14  ;;  %v2331_v35 = vmax.f32 %v775_v56, %v776_v29  ;;  %v816_v58 = vmax.f32 %v814_v40, %v815_v6  ;;  %v823_v37 = vsel %vm264_vm0, %v126_v44, -inf  ;;  %v824_v38 = vsel %vm264_vm0, %v134_v61, -inf }
  0x8b   :  { %v785_v12 = vrot.slane %v784_v5, 1  ;;  %v793_v14 = vmax.f32 %v791_v26, %v792_v62  ;;  %v801_v16 = vrot.slane %v800_v0, 2  ;;  %v809_v48 = vmax.f32 %v807_v41, %v808_v51  ;;  %v137_v62 = vld [vmem:[%s3310_s0 + $0x102] sm:$0x3]  ;;  %v145_v26 = vld [vmem:[%s3310_s0 + $0x112] sm:$0x3] }
  0x8c   :  { %3333 = vst [vmem:[#allocation23_spill] sm:$0xff] %v2331_v35  ;;  %v817_v47 = vrot.slane %v816_v58, 4  ;;  %v825_v56 = vmax.f32 %v823_v37, %v824_v38  ;;  %v832_v23 = vsel %vm264_vm0, %v127_v28, -inf  ;;  %v833_v44 = vsel %vm264_vm0, %v135_v19, -inf  ;;  %v146_v38 = vld [vmem:[%s3310_s0 + $0x114] sm:$0x3] }
  0x8d   :  { %v2343_v55 = vmax.f32 %v784_v5, %v785_v12  ;;  %v794_v61 = vrot.slane %v793_v14, 1  ;;  %v802_v29 = vmax.f32 %v800_v0, %v801_v16  ;;  %v810_v40 = vrot.slane %v809_v48, 2  ;;  %v138_v0 = vld [vmem:[%s3310_s0 + $0x104] sm:$0x3] }
  0x8e   :  { %v818_v41 = vmax.f32 %v816_v58, %v817_v47  ;;  %v826_v6 = vrot.slane %v825_v56, 4  ;;  %v834_v51 = vmax.f32 %v832_v23, %v833_v44  ;;  %v841_v28 = vsel %vm264_vm0, %v136_v60, -inf }
  0x8f   :  { %3334 = vst [vmem:[#allocation24_spill] sm:$0xff] %v2343_v55  ;;  %v2352_v37 = vmax.f32 %v793_v14, %v794_v61  ;;  %v803_v19 = vrot.slane %v802_v29, 1  ;;  %v811_v5 = vmax.f32 %v809_v48, %v810_v40  ;;  %v842_v16 = vsel %vm264_vm0, %v144_v31, -inf  ;;  %v139_v31 = vld [vmem:[%s3310_s0 + $0x106] sm:$0x3] }
  0x90   :  { %v819_v12 = vrot.slane %v818_v41, 2  ;;  %v827_v58 = vmax.f32 %v825_v56, %v826_v6  ;;  %v835_v47 = vrot.slane %v834_v51, 4  ;;  %v843_v23 = vmax.f32 %v841_v28, %v842_v16  ;;  %v147_v61 = vld [vmem:[%s3310_s0 + $0x116] sm:$0x3] }
  0x91   :  { %3335 = vst [vmem:[#allocation25_spill] sm:$0xff] %v2352_v37  ;;  %v2361_v44 = vmax.f32 %v802_v29, %v803_v19  ;;  %v812_v14 = vrot.slane %v811_v5, 1  ;;  %v850_v60 = vsel %vm264_vm0, %v137_v62, -inf  ;;  %v851_v48 = vsel %vm264_vm0, %v145_v26, -inf  ;;  %v140_v26 = vld [vmem:[%s3310_s0 + $0x108] sm:$0x3] }
  0x92   :  { %v820_v40 = vmax.f32 %v818_v41, %v819_v12  ;;  %v828_v37 = vrot.slane %v827_v58, 2  ;;  %v836_v56 = vmax.f32 %v834_v51, %v835_v47  ;;  %v844_v6 = vrot.slane %v843_v23, 4  ;;  %v148_v41 = vld [vmem:[%s3310_s0 + $0x118] sm:$0x3] }
  0x93   :  { %3336 = vst [vmem:[#allocation26_spill] sm:$0xff] %v2361_v44  ;;  %v2371_v28 = vmax.f32 %v811_v5, %v812_v14  ;;  %v852_v29 = vmax.f32 %v850_v60, %v851_v48  ;;  %v859_v19 = vsel %vm264_vm0, %v138_v0, -inf  ;;  %v860_v62 = vsel %vm264_vm0, %v146_v38, -inf }
  0x94   :  { %v821_v16 = vrot.slane %v820_v40, 1  ;;  %v829_v44 = vmax.f32 %v827_v58, %v828_v37  ;;  %v837_v55 = vrot.slane %v836_v56, 2  ;;  %v845_v35 = vmax.f32 %v843_v23, %v844_v6  ;;  %v141_v37 = vld [vmem:[%s3310_s0 + $0x10a] sm:$0x3]  ;;  %v149_v58 = vld [vmem:[%s3310_s0 + $0x11a] sm:$0x3] }
  0x95   :  { %3337 = vst [vmem:[#allocation27_spill] sm:$0xff] %v2371_v28  ;;  %v853_v51 = vrot.slane %v852_v29, 4  ;;  %v861_v5 = vmax.f32 %v859_v19, %v860_v62  ;;  %v868_v12 = vsel %vm264_vm0, %v139_v31, -inf  ;;  %v869_v0 = vsel %vm264_vm0, %v147_v61, -inf  ;;  %v150_v62 = vld [vmem:[%s3310_s0 + $0x11c] sm:$0x3] }
  0x96   :  { %v2383_v47 = vmax.f32 %v820_v40, %v821_v16  ;;  %v830_v38 = vrot.slane %v829_v44, 1  ;;  %v838_v14 = vmax.f32 %v836_v56, %v837_v55  ;;  %v846_v60 = vrot.slane %v845_v35, 2  ;;  %v142_v56 = vld [vmem:[%s3310_s0 + $0x10c] sm:$0x3] }
  0x97   :  { %v854_v23 = vmax.f32 %v852_v29, %v853_v51  ;;  %v862_v48 = vrot.slane %v861_v5, 4  ;;  %v870_v6 = vmax.f32 %v868_v12, %v869_v0  ;;  %v877_v31 = vsel %vm264_vm0, %v140_v26, -inf }
  0x98   :  { %3338 = vst [vmem:[#allocation28_spill] sm:$0xff] %v2383_v47  ;;  %v2392_v19 = vmax.f32 %v829_v44, %v830_v38  ;;  %v839_v61 = vrot.slane %v838_v14, 1  ;;  %v847_v40 = vmax.f32 %v845_v35, %v846_v60  ;;  %v878_v55 = vsel %vm264_vm0, %v148_v41, -inf  ;;  %v143_v41 = vld [vmem:[%s3310_s0 + $0x10e] sm:$0x3] }
  0x99   :  { %v855_v16 = vrot.slane %v854_v23, 2  ;;  %v863_v29 = vmax.f32 %v861_v5, %v862_v48  ;;  %v871_v51 = vrot.slane %v870_v6, 4  ;;  %v879_v12 = vmax.f32 %v877_v31, %v878_v55  ;;  %v151_v38 = vld [vmem:[%s3310_s0 + $0x11e] sm:$0x3] }
  0x9a   :  { %3339 = vst [vmem:[#allocation29_spill] sm:$0xff] %v2392_v19  ;;  %v2401_v0 = vmax.f32 %v838_v14, %v839_v61  ;;  %v848_v44 = vrot.slane %v847_v40, 1  ;;  %v886_v26 = vsel %vm264_vm0, %v141_v37, -inf  ;;  %v887_v35 = vsel %vm264_vm0, %v149_v58, -inf  ;;  %v152_v58 = vld [vmem:[%s3310_s0 + $0x120] sm:$0x3] }
  0x9b   :  { %v856_v60 = vmax.f32 %v854_v23, %v855_v16  ;;  %v864_v19 = vrot.slane %v863_v29, 2  ;;  %v872_v5 = vmax.f32 %v870_v6, %v871_v51  ;;  %v880_v48 = vrot.slane %v879_v12, 4  ;;  %v160_v23 = vld [vmem:[%s3310_s0 + $0x130] sm:$0x3] }
  0x9c   :  { %3340 = vst [vmem:[#allocation30_spill] sm:$0xff] %v2401_v0  ;;  %v2411_v31 = vmax.f32 %v847_v40, %v848_v44  ;;  %v888_v14 = vmax.f32 %v886_v26, %v887_v35  ;;  %v895_v61 = vsel %vm264_vm0, %v142_v56, -inf  ;;  %v896_v37 = vsel %vm264_vm0, %v150_v62, -inf }
  0x9d   :  { %v857_v55 = vrot.slane %v856_v60, 1  ;;  %v865_v0 = vmax.f32 %v863_v29, %v864_v19  ;;  %v873_v47 = vrot.slane %v872_v5, 2  ;;  %v881_v28 = vmax.f32 %v879_v12, %v880_v48  ;;  %v153_v19 = vld [vmem:[%s3310_s0 + $0x122] sm:$0x3]  ;;  %v161_v29 = vld [vmem:[%s3310_s0 + $0x132] sm:$0x3] }
  0x9e   :  { %3341 = vst [vmem:[#allocation31_spill] sm:$0xff] %v2411_v31  ;;  %v889_v6 = vrot.slane %v888_v14, 4  ;;  %v897_v40 = vmax.f32 %v895_v61, %v896_v37  ;;  %v904_v16 = vsel %vm264_vm0, %v143_v41, -inf  ;;  %v905_v56 = vsel %vm264_vm0, %v151_v38, -inf  ;;  %v162_v37 = vld [vmem:[%s3310_s0 + $0x134] sm:$0x3] }
  0x9f   :  { %v2423_v51 = vmax.f32 %v856_v60, %v857_v55  ;;  %v866_v62 = vrot.slane %v865_v0, 1  ;;  %v874_v44 = vmax.f32 %v872_v5, %v873_v47  ;;  %v882_v26 = vrot.slane %v881_v28, 2  ;;  %v154_v5 = vld [vmem:[%s3310_s0 + $0x124] sm:$0x3] }
  0xa0   :  { %v890_v12 = vmax.f32 %v888_v14, %v889_v6  ;;  %v898_v35 = vrot.slane %v897_v40, 4  ;;  %v906_v48 = vmax.f32 %v904_v16, %v905_v56  ;;  %v913_v41 = vsel %vm264_vm0, %v152_v58, -inf }
  0xa1   :  { %3342 = vst [vmem:[#allocation32_spill] sm:$0xff] %v2423_v51  ;;  %v2432_v61 = vmax.f32 %v865_v0, %v866_v62  ;;  %v875_v38 = vrot.slane %v874_v44, 1  ;;  %v883_v60 = vmax.f32 %v881_v28, %v882_v26  ;;  %v914_v47 = vsel %vm264_vm0, %v160_v23, -inf  ;;  %v155_v23 = vld [vmem:[%s3310_s0 + $0x126] sm:$0x3] }
  0xa2   :  { %v891_v55 = vrot.slane %v890_v12, 2  ;;  %v899_v14 = vmax.f32 %v897_v40, %v898_v35  ;;  %v907_v6 = vrot.slane %v906_v48, 4  ;;  %v915_v16 = vmax.f32 %v913_v41, %v914_v47  ;;  %v163_v62 = vld [vmem:[%s3310_s0 + $0x136] sm:$0x3] }
  0xa3   :  { %3343 = vst [vmem:[#allocation33_spill] sm:$0xff] %v2432_v61  ;;  %v2441_v56 = vmax.f32 %v874_v44, %v875_v38  ;;  %v884_v0 = vrot.slane %v883_v60, 1  ;;  %v922_v58 = vsel %vm264_vm0, %v153_v19, -inf  ;;  %v923_v28 = vsel %vm264_vm0, %v161_v29, -inf  ;;  %v156_v29 = vld [vmem:[%s3310_s0 + $0x128] sm:$0x3] }
  0xa4   :  { %v892_v26 = vmax.f32 %v890_v12, %v891_v55  ;;  %v900_v61 = vrot.slane %v899_v14, 2  ;;  %v908_v40 = vmax.f32 %v906_v48, %v907_v6  ;;  %v916_v35 = vrot.slane %v915_v16, 4  ;;  %v164_v12 = vld [vmem:[%s3310_s0 + $0x138] sm:$0x3] }
  0xa5   :  { %3344 = vst [vmem:[#allocation34_spill] sm:$0xff] %v2441_v56  ;;  %v2451_v41 = vmax.f32 %v883_v60, %v884_v0  ;;  %v924_v44 = vmax.f32 %v922_v58, %v923_v28  ;;  %v931_v38 = vsel %vm264_vm0, %v154_v5, -inf  ;;  %v932_v19 = vsel %vm264_vm0, %v162_v37, -inf }
  0xa6   :  { %v893_v47 = vrot.slane %v892_v26, 1  ;;  %v901_v56 = vmax.f32 %v899_v14, %v900_v61  ;;  %v909_v51 = vrot.slane %v908_v40, 2  ;;  %v917_v31 = vmax.f32 %v915_v16, %v916_v35  ;;  %v157_v61 = vld [vmem:[%s3310_s0 + $0x12a] sm:$0x3]  ;;  %v165_v14 = vld [vmem:[%s3310_s0 + $0x13a] sm:$0x3] }
  0xa7   :  { %3345 = vst [vmem:[#allocation35_spill] sm:$0xff] %v2451_v41  ;;  %v925_v48 = vrot.slane %v924_v44, 4  ;;  %v933_v60 = vmax.f32 %v931_v38, %v932_v19  ;;  %v940_v55 = vsel %vm264_vm0, %v155_v23, -inf  ;;  %v941_v5 = vsel %vm264_vm0, %v163_v62, -inf  ;;  %v166_v19 = vld [vmem:[%s3310_s0 + $0x13c] sm:$0x3] }
  0xa8   :  { %v2463_v6 = vmax.f32 %v892_v26, %v893_v47  ;;  %v902_v37 = vrot.slane %v901_v56, 1  ;;  %v910_v0 = vmax.f32 %v908_v40, %v909_v51  ;;  %v918_v58 = vrot.slane %v917_v31, 2  ;;  %v158_v40 = vld [vmem:[%s3310_s0 + $0x12c] sm:$0x3] }
  0xa9   :  { %v926_v16 = vmax.f32 %v924_v44, %v925_v48  ;;  %v934_v28 = vrot.slane %v933_v60, 4  ;;  %v942_v35 = vmax.f32 %v940_v55, %v941_v5  ;;  %v949_v23 = vsel %vm264_vm0, %v156_v29, -inf }
  0xaa   :  { %3346 = vst [vmem:[#allocation36_spill] sm:$0xff] %v2463_v6  ;;  %v2472_v38 = vmax.f32 %v901_v56, %v902_v37  ;;  %v911_v62 = vrot.slane %v910_v0, 1  ;;  %v919_v26 = vmax.f32 %v917_v31, %v918_v58  ;;  %v950_v51 = vsel %vm264_vm0, %v164_v12, -inf  ;;  %v159_v12 = vld [vmem:[%s3310_s0 + $0x12e] sm:$0x3] }
  0xab   :  { %v927_v47 = vrot.slane %v926_v16, 2  ;;  %v935_v44 = vmax.f32 %v933_v60, %v934_v28  ;;  %v943_v48 = vrot.slane %v942_v35, 4  ;;  %v951_v55 = vmax.f32 %v949_v23, %v950_v51  ;;  %v167_v37 = vld [vmem:[%s3310_s0 + $0x13e] sm:$0x3] }
  0xac   :  { %3347 = vst [vmem:[#allocation37_spill] sm:$0xff] %v2472_v38  ;;  %v2481_v5 = vmax.f32 %v910_v0, %v911_v62  ;;  %v920_v56 = vrot.slane %v919_v26, 1  ;;  %v958_v29 = vsel %vm264_vm0, %v157_v61, -inf  ;;  %v959_v31 = vsel %vm264_vm0, %v165_v14, -inf  ;;  %v168_v14 = vld [vmem:[%s3310_s0 + $0x140] sm:$0x3] }
  0xad   :  { %v928_v58 = vmax.f32 %v926_v16, %v927_v47  ;;  %v936_v38 = vrot.slane %v935_v44, 2  ;;  %v944_v60 = vmax.f32 %v942_v35, %v943_v48  ;;  %v952_v28 = vrot.slane %v951_v55, 4  ;;  %v176_v16 = vld [vmem:[%s3310_s0 + $0x150] sm:$0x3] }
  0xae   :  { %3348 = vst [vmem:[#allocation38_spill] sm:$0xff] %v2481_v5  ;;  %v2491_v23 = vmax.f32 %v919_v26, %v920_v56  ;;  %v960_v0 = vmax.f32 %v958_v29, %v959_v31  ;;  %v967_v62 = vsel %vm264_vm0, %v158_v40, -inf  ;;  %v968_v61 = vsel %vm264_vm0, %v166_v19, -inf }
  0xaf   :  { %v929_v51 = vrot.slane %v928_v58, 1  ;;  %v937_v5 = vmax.f32 %v935_v44, %v936_v38  ;;  %v945_v6 = vrot.slane %v944_v60, 2  ;;  %v953_v41 = vmax.f32 %v951_v55, %v952_v28  ;;  %v169_v38 = vld [vmem:[%s3310_s0 + $0x142] sm:$0x3]  ;;  %v177_v44 = vld [vmem:[%s3310_s0 + $0x152] sm:$0x3] }
  0xb0   :  { %3349 = vst [vmem:[#allocation39_spill] sm:$0xff] %v2491_v23  ;;  %v961_v35 = vrot.slane %v960_v0, 4  ;;  %v969_v26 = vmax.f32 %v967_v62, %v968_v61  ;;  %v976_v47 = vsel %vm264_vm0, %v159_v12, -inf  ;;  %v977_v40 = vsel %vm264_vm0, %v167_v37, -inf  ;;  %v178_v61 = vld [vmem:[%s3310_s0 + $0x154] sm:$0x3] }
  0xb1   :  { %v2503_v48 = vmax.f32 %v928_v58, %v929_v51  ;;  %v938_v19 = vrot.slane %v937_v5, 1  ;;  %v946_v56 = vmax.f32 %v944_v60, %v945_v6  ;;  %v954_v29 = vrot.slane %v953_v41, 2  ;;  %v170_v60 = vld [vmem:[%s3310_s0 + $0x144] sm:$0x3] }
  0xb2   :  { %v962_v55 = vmax.f32 %v960_v0, %v961_v35  ;;  %v970_v31 = vrot.slane %v969_v26, 4  ;;  %v978_v28 = vmax.f32 %v976_v47, %v977_v40  ;;  %v985_v12 = vsel %vm264_vm0, %v168_v14, -inf }
  0xb3   :  { %3350 = vst [vmem:[#allocation40_spill] sm:$0xff] %v2503_v48  ;;  %v2512_v62 = vmax.f32 %v937_v5, %v938_v19  ;;  %v947_v37 = vrot.slane %v946_v56, 1  ;;  %v955_v58 = vmax.f32 %v953_v41, %v954_v29  ;;  %v986_v6 = vsel %vm264_vm0, %v176_v16, -inf  ;;  %v171_v16 = vld [vmem:[%s3310_s0 + $0x146] sm:$0x3] }
  0xb4   :  { %v963_v51 = vrot.slane %v962_v55, 2  ;;  %v971_v0 = vmax.f32 %v969_v26, %v970_v31  ;;  %v979_v35 = vrot.slane %v978_v28, 4  ;;  %v987_v47 = vmax.f32 %v985_v12, %v986_v6  ;;  %v179_v19 = vld [vmem:[%s3310_s0 + $0x156] sm:$0x3] }
  0xb5   :  { %3351 = vst [vmem:[#allocation41_spill] sm:$0xff] %v2512_v62  ;;  %v2521_v40 = vmax.f32 %v946_v56, %v947_v37  ;;  %v956_v5 = vrot.slane %v955_v58, 1  ;;  %v994_v14 = vsel %vm264_vm0, %v169_v38, -inf  ;;  %v995_v41 = vsel %vm264_vm0, %v177_v44, -inf  ;;  %v172_v44 = vld [vmem:[%s3310_s0 + $0x148] sm:$0x3] }
  0xb6   :  { %v964_v29 = vmax.f32 %v962_v55, %v963_v51  ;;  %v972_v62 = vrot.slane %v971_v0, 2  ;;  %v980_v26 = vmax.f32 %v978_v28, %v979_v35  ;;  %v988_v31 = vrot.slane %v987_v47, 4  ;;  %v180_v55 = vld [vmem:[%s3310_s0 + $0x158] sm:$0x3] }
  0xb7   :  { %3352 = vst [vmem:[#allocation42_spill] sm:$0xff] %v2521_v40  ;;  %v2531_v12 = vmax.f32 %v955_v58, %v956_v5  ;;  %v996_v56 = vmax.f32 %v994_v14, %v995_v41  ;;  %v1003_v37 = vsel %vm264_vm0, %v170_v60, -inf  ;;  %v1004_v38 = vsel %vm264_vm0, %v178_v61, -inf }
  0xb8   :  { %v965_v6 = vrot.slane %v964_v29, 1  ;;  %v973_v40 = vmax.f32 %v971_v0, %v972_v62  ;;  %v981_v48 = vrot.slane %v980_v26, 2  ;;  %v989_v23 = vmax.f32 %v987_v47, %v988_v31  ;;  %v173_v62 = vld [vmem:[%s3310_s0 + $0x14a] sm:$0x3]  ;;  %v181_v0 = vld [vmem:[%s3310_s0 + $0x15a] sm:$0x3] }
  0xb9   :  { %3353 = vst [vmem:[#allocation43_spill] sm:$0xff] %v2531_v12  ;;  %v997_v28 = vrot.slane %v996_v56, 4  ;;  %v1005_v58 = vmax.f32 %v1003_v37, %v1004_v38  ;;  %v1012_v51 = vsel %vm264_vm0, %v171_v16, -inf  ;;  %v1013_v60 = vsel %vm264_vm0, %v179_v19, -inf  ;;  %v182_v38 = vld [vmem:[%s3310_s0 + $0x15c] sm:$0x3] }
  0xba   :  { %v2543_v35 = vmax.f32 %v964_v29, %v965_v6  ;;  %v974_v61 = vrot.slane %v973_v40, 1  ;;  %v982_v5 = vmax.f32 %v980_v26, %v981_v48  ;;  %v990_v14 = vrot.slane %v989_v23, 2  ;;  %v174_v26 = vld [vmem:[%s3310_s0 + $0x14c] sm:$0x3] }
  0xbb   :  { %v998_v47 = vmax.f32 %v996_v56, %v997_v28  ;;  %v1006_v41 = vrot.slane %v1005_v58, 4  ;;  %v1014_v31 = vmax.f32 %v1012_v51, %v1013_v60  ;;  %v1021_v16 = vsel %vm264_vm0, %v172_v44, -inf }
  0xbc   :  { %3354 = vst [vmem:[#allocation44_spill] sm:$0xff] %v2543_v35  ;;  %v2552_v37 = vmax.f32 %v973_v40, %v974_v61  ;;  %v983_v19 = vrot.slane %v982_v5, 1  ;;  %v991_v29 = vmax.f32 %v989_v23, %v990_v14  ;;  %v1022_v48 = vsel %vm264_vm0, %v180_v55, -inf  ;;  %v175_v55 = vld [vmem:[%s3310_s0 + $0x14e] sm:$0x3] }
  0xbd   :  { %v999_v6 = vrot.slane %v998_v47, 2  ;;  %v1007_v56 = vmax.f32 %v1005_v58, %v1006_v41  ;;  %v1015_v28 = vrot.slane %v1014_v31, 4  ;;  %v1023_v51 = vmax.f32 %v1021_v16, %v1022_v48  ;;  %v183_v61 = vld [vmem:[%s3310_s0 + $0x15e] sm:$0x3] }
  0xbe   :  { %3355 = vst [vmem:[#allocation45_spill] sm:$0xff] %v2552_v37  ;;  %v2561_v60 = vmax.f32 %v982_v5, %v983_v19  ;;  %v992_v40 = vrot.slane %v991_v29, 1  ;;  %v1030_v44 = vsel %vm264_vm0, %v173_v62, -inf  ;;  %v1031_v23 = vsel %vm264_vm0, %v181_v0, -inf  ;;  %v184_v0 = vld [vmem:[%s3310_s0 + $0x160] sm:$0x3] }
  0xbf   :  { %v1000_v14 = vmax.f32 %v998_v47, %v999_v6  ;;  %v1008_v37 = vrot.slane %v1007_v56, 2  ;;  %v1016_v58 = vmax.f32 %v1014_v31, %v1015_v28  ;;  %v1024_v41 = vrot.slane %v1023_v51, 4  ;;  %v192_v47 = vld [vmem:[%s3310_s0 + $0x170] sm:$0x3] }
  0xc0   :  { %3356 = vst [vmem:[#allocation46_spill] sm:$0xff] %v2561_v60  ;;  %v2571_v16 = vmax.f32 %v991_v29, %v992_v40  ;;  %v1032_v5 = vmax.f32 %v1030_v44, %v1031_v23  ;;  %v1039_v19 = vsel %vm264_vm0, %v174_v26, -inf  ;;  %v1040_v62 = vsel %vm264_vm0, %v182_v38, -inf }
  0xc1   :  { %v1001_v48 = vrot.slane %v1000_v14, 1  ;;  %v1009_v60 = vmax.f32 %v1007_v56, %v1008_v37  ;;  %v1017_v35 = vrot.slane %v1016_v58, 2  ;;  %v1025_v12 = vmax.f32 %v1023_v51, %v1024_v41  ;;  %v185_v37 = vld [vmem:[%s3310_s0 + $0x162] sm:$0x3]  ;;  %v193_v56 = vld [vmem:[%s3310_s0 + $0x172] sm:$0x3] }
  0xc2   :  { %3357 = vst [vmem:[#allocation47_spill] sm:$0xff] %v2571_v16  ;;  %v1033_v31 = vrot.slane %v1032_v5, 4  ;;  %v1041_v29 = vmax.f32 %v1039_v19, %v1040_v62  ;;  %v1048_v6 = vsel %vm264_vm0, %v175_v55, -inf  ;;  %v1049_v26 = vsel %vm264_vm0, %v183_v61, -inf  ;;  %v194_v62 = vld [vmem:[%s3310_s0 + $0x174] sm:$0x3] }
  0xc3   :  { %v2583_v28 = vmax.f32 %v1000_v14, %v1001_v48  ;;  %v1010_v38 = vrot.slane %v1009_v60, 1  ;;  %v1018_v40 = vmax.f32 %v1016_v58, %v1017_v35  ;;  %v1026_v44 = vrot.slane %v1025_v12, 2  ;;  %v186_v58 = vld [vmem:[%s3310_s0 + $0x164] sm:$0x3] }
  0xc4   :  { %v1034_v51 = vmax.f32 %v1032_v5, %v1033_v31  ;;  %v1042_v23 = vrot.slane %v1041_v29, 4  ;;  %v1050_v41 = vmax.f32 %v1048_v6, %v1049_v26  ;;  %v1057_v55 = vsel %vm264_vm0, %v184_v0, -inf }
  0xc5   :  { %3358 = vst [vmem:[#allocation48_spill] sm:$0xff] %v2583_v28  ;;  %v2592_v19 = vmax.f32 %v1009_v60, %v1010_v38  ;;  %v1019_v61 = vrot.slane %v1018_v40, 1  ;;  %v1027_v14 = vmax.f32 %v1025_v12, %v1026_v44  ;;  %v1058_v35 = vsel %vm264_vm0, %v192_v47, -inf  ;;  %v187_v47 = vld [vmem:[%s3310_s0 + $0x166] sm:$0x3] }
  0xc6   :  { %v1035_v48 = vrot.slane %v1034_v51, 2  ;;  %v1043_v5 = vmax.f32 %v1041_v29, %v1042_v23  ;;  %v1051_v31 = vrot.slane %v1050_v41, 4  ;;  %v1059_v6 = vmax.f32 %v1057_v55, %v1058_v35  ;;  %v195_v38 = vld [vmem:[%s3310_s0 + $0x176] sm:$0x3] }
  0xc7   :  { %3359 = vst [vmem:[#allocation49_spill] sm:$0xff] %v2592_v19  ;;  %v2601_v26 = vmax.f32 %v1018_v40, %v1019_v61  ;;  %v1028_v60 = vrot.slane %v1027_v14, 1  ;;  %v1066_v0 = vsel %vm264_vm0, %v185_v37, -inf  ;;  %v1067_v12 = vsel %vm264_vm0, %v193_v56, -inf  ;;  %v188_v56 = vld [vmem:[%s3310_s0 + $0x168] sm:$0x3] }
  0xc8   :  { %v1036_v44 = vmax.f32 %v1034_v51, %v1035_v48  ;;  %v1044_v19 = vrot.slane %v1043_v5, 2  ;;  %v1052_v29 = vmax.f32 %v1050_v41, %v1051_v31  ;;  %v1060_v23 = vrot.slane %v1059_v6, 4  ;;  %v196_v51 = vld [vmem:[%s3310_s0 + $0x178] sm:$0x3] }
  0xc9   :  { %3360 = vst [vmem:[#allocation50_spill] sm:$0xff] %v2601_v26  ;;  %v2611_v55 = vmax.f32 %v1027_v14, %v1028_v60  ;;  %v1068_v40 = vmax.f32 %v1066_v0, %v1067_v12  ;;  %v1075_v61 = vsel %vm264_vm0, %v186_v58, -inf  ;;  %v1076_v37 = vsel %vm264_vm0, %v194_v62, -inf }
  0xca   :  { %v1037_v35 = vrot.slane %v1036_v44, 1  ;;  %v1045_v26 = vmax.f32 %v1043_v5, %v1044_v19  ;;  %v1053_v28 = vrot.slane %v1052_v29, 2  ;;  %v1061_v16 = vmax.f32 %v1059_v6, %v1060_v23  ;;  %v189_v19 = vld [vmem:[%s3310_s0 + $0x16a] sm:$0x3]  ;;  %v197_v5 = vld [vmem:[%s3310_s0 + $0x17a] sm:$0x3] }
  0xcb   :  { %3361 = vst [vmem:[#allocation51_spill] sm:$0xff] %v2611_v55  ;;  %v1069_v41 = vrot.slane %v1068_v40, 4  ;;  %v1077_v14 = vmax.f32 %v1075_v61, %v1076_v37  ;;  %v1084_v48 = vsel %vm264_vm0, %v187_v47, -inf  ;;  %v1085_v58 = vsel %vm264_vm0, %v195_v38, -inf  ;;  %v198_v37 = vld [vmem:[%s3310_s0 + $0x17c] sm:$0x3] }
  0xcc   :  { %v2623_v31 = vmax.f32 %v1036_v44, %v1037_v35  ;;  %v1046_v62 = vrot.slane %v1045_v26, 1  ;;  %v1054_v60 = vmax.f32 %v1052_v29, %v1053_v28  ;;  %v1062_v0 = vrot.slane %v1061_v16, 2  ;;  %v190_v29 = vld [vmem:[%s3310_s0 + $0x16c] sm:$0x3] }
  0xcd   :  { %v1070_v6 = vmax.f32 %v1068_v40, %v1069_v41  ;;  %v1078_v12 = vrot.slane %v1077_v14, 4  ;;  %v1086_v23 = vmax.f32 %v1084_v48, %v1085_v58  ;;  %v1093_v47 = vsel %vm264_vm0, %v188_v56, -inf }
  0xce   :  { %3362 = vst [vmem:[#allocation52_spill] sm:$0xff] %v2623_v31  ;;  %v2632_v61 = vmax.f32 %v1045_v26, %v1046_v62  ;;  %v1055_v38 = vrot.slane %v1054_v60, 1  ;;  %v1063_v44 = vmax.f32 %v1061_v16, %v1062_v0  ;;  %v1094_v28 = vsel %vm264_vm0, %v196_v51, -inf  ;;  %v191_v51 = vld [vmem:[%s3310_s0 + $0x16e] sm:$0x3] }
  0xcf   :  { %v1071_v35 = vrot.slane %v1070_v6, 2  ;;  %v1079_v40 = vmax.f32 %v1077_v14, %v1078_v12  ;;  %v1087_v41 = vrot.slane %v1086_v23, 4  ;;  %v1095_v48 = vmax.f32 %v1093_v47, %v1094_v28  ;;  %v199_v62 = vld [vmem:[%s3310_s0 + $0x17e] sm:$0x3] }
  0xd0   :  { %3363 = vst [vmem:[#allocation53_spill] sm:$0xff] %v2632_v61  ;;  %v2641_v58 = vmax.f32 %v1054_v60, %v1055_v38  ;;  %v1064_v26 = vrot.slane %v1063_v44, 1  ;;  %v1102_v56 = vsel %vm264_vm0, %v189_v19, -inf  ;;  %v1103_v16 = vsel %vm264_vm0, %v197_v5, -inf  ;;  %v200_v5 = vld [vmem:[%s3310_s0 + $0x180] sm:$0x3] }
  0xd1   :  { %v1072_v0 = vmax.f32 %v1070_v6, %v1071_v35  ;;  %v1080_v61 = vrot.slane %v1079_v40, 2  ;;  %v1088_v14 = vmax.f32 %v1086_v23, %v1087_v41  ;;  %v1096_v12 = vrot.slane %v1095_v48, 4  ;;  %v208_v6 = vld [vmem:[%s3310_s0 + $0x190] sm:$0x3] }
  0xd2   :  { %3364 = vst [vmem:[#allocation54_spill] sm:$0xff] %v2641_v58  ;;  %v2651_v47 = vmax.f32 %v1063_v44, %v1064_v26  ;;  %v1104_v60 = vmax.f32 %v1102_v56, %v1103_v16  ;;  %v1111_v38 = vsel %vm264_vm0, %v190_v29, -inf  ;;  %v1112_v19 = vsel %vm264_vm0, %v198_v37, -inf }
  0xd3   :  { %v1073_v28 = vrot.slane %v1072_v0, 1  ;;  %v1081_v58 = vmax.f32 %v1079_v40, %v1080_v61  ;;  %v1089_v31 = vrot.slane %v1088_v14, 2  ;;  %v1097_v55 = vmax.f32 %v1095_v48, %v1096_v12  ;;  %v201_v61 = vld [vmem:[%s3310_s0 + $0x182] sm:$0x3]  ;;  %v209_v40 = vld [vmem:[%s3310_s0 + $0x192] sm:$0x3] }
  0xd4   :  { %3365 = vst [vmem:[#allocation55_spill] sm:$0xff] %v2651_v47  ;;  %v1105_v23 = vrot.slane %v1104_v60, 4  ;;  %v1113_v44 = vmax.f32 %v1111_v38, %v1112_v19  ;;  %v1120_v35 = vsel %vm264_vm0, %v191_v51, -inf  ;;  %v1121_v29 = vsel %vm264_vm0, %v199_v62, -inf  ;;  %v210_v19 = vld [vmem:[%s3310_s0 + $0x194] sm:$0x3] }
  0xd5   :  { %v2663_v41 = vmax.f32 %v1072_v0, %v1073_v28  ;;  %v1082_v37 = vrot.slane %v1081_v58, 1  ;;  %v1090_v26 = vmax.f32 %v1088_v14, %v1089_v31  ;;  %v1098_v56 = vrot.slane %v1097_v55, 2  ;;  %v202_v14 = vld [vmem:[%s3310_s0 + $0x184] sm:$0x3] }
  0xd6   :  { %v1106_v48 = vmax.f32 %v1104_v60, %v1105_v23  ;;  %v1114_v16 = vrot.slane %v1113_v44, 4  ;;  %v1122_v12 = vmax.f32 %v1120_v35, %v1121_v29  ;;  %v1129_v51 = vsel %vm264_vm0, %v200_v5, -inf }
  0xd7   :  { %3366 = vst [vmem:[#allocation56_spill] sm:$0xff] %v2663_v41  ;;  %v2672_v38 = vmax.f32 %v1081_v58, %v1082_v37  ;;  %v1091_v62 = vrot.slane %v1090_v26, 1  ;;  %v1099_v0 = vmax.f32 %v1097_v55, %v1098_v56  ;;  %v1130_v31 = vsel %vm264_vm0, %v208_v6, -inf  ;;  %v203_v6 = vld [vmem:[%s3310_s0 + $0x186] sm:$0x3] }
  0xd8   :  { %v1107_v28 = vrot.slane %v1106_v48, 2  ;;  %v1115_v60 = vmax.f32 %v1113_v44, %v1114_v16  ;;  %v1123_v23 = vrot.slane %v1122_v12, 4  ;;  %v1131_v35 = vmax.f32 %v1129_v51, %v1130_v31  ;;  %v211_v37 = vld [vmem:[%s3310_s0 + $0x196] sm:$0x3] }
  0xd9   :  { %3367 = vst [vmem:[#allocation57_spill] sm:$0xff] %v2672_v38  ;;  %v2681_v29 = vmax.f32 %v1090_v26, %v1091_v62  ;;  %v1100_v58 = vrot.slane %v1099_v0, 1  ;;  %v1138_v5 = vsel %vm264_vm0, %v201_v61, -inf  ;;  %v1139_v55 = vsel %vm264_vm0, %v209_v40, -inf  ;;  %v204_v40 = vld [vmem:[%s3310_s0 + $0x188] sm:$0x3] }
  0xda   :  { %v1108_v56 = vmax.f32 %v1106_v48, %v1107_v28  ;;  %v1116_v38 = vrot.slane %v1115_v60, 2  ;;  %v1124_v44 = vmax.f32 %v1122_v12, %v1123_v23  ;;  %v1132_v16 = vrot.slane %v1131_v35, 4  ;;  %v212_v48 = vld [vmem:[%s3310_s0 + $0x198] sm:$0x3] }
  0xdb   :  { %3368 = vst [vmem:[#allocation58_spill] sm:$0xff] %v2681_v29  ;;  %v2691_v51 = vmax.f32 %v1099_v0, %v1100_v58  ;;  %v1140_v26 = vmax.f32 %v1138_v5, %v1139_v55  ;;  %v1147_v62 = vsel %vm264_vm0, %v202_v14, -inf  ;;  %v1148_v61 = vsel %vm264_vm0, %v210_v19, -inf }
  0xdc   :  { %v1109_v31 = vrot.slane %v1108_v56, 1  ;;  %v1117_v29 = vmax.f32 %v1115_v60, %v1116_v38  ;;  %v1125_v41 = vrot.slane %v1124_v44, 2  ;;  %v1133_v47 = vmax.f32 %v1131_v35, %v1132_v16  ;;  %v205_v38 = vld [vmem:[%s3310_s0 + $0x18a] sm:$0x3]  ;;  %v213_v60 = vld [vmem:[%s3310_s0 + $0x19a] sm:$0x3] }
  0xdd   :  { %3369 = vst [vmem:[#allocation59_spill] sm:$0xff] %v2691_v51  ;;  %v1141_v12 = vrot.slane %v1140_v26, 4  ;;  %v1149_v0 = vmax.f32 %v1147_v62, %v1148_v61  ;;  %v1156_v28 = vsel %vm264_vm0, %v203_v6, -inf  ;;  %v1157_v14 = vsel %vm264_vm0, %v211_v37, -inf  ;;  %v214_v61 = vld [vmem:[%s3310_s0 + $0x19c] sm:$0x3] }
  0xde   :  { %v2703_v23 = vmax.f32 %v1108_v56, %v1109_v31  ;;  %v1118_v19 = vrot.slane %v1117_v29, 1  ;;  %v1126_v58 = vmax.f32 %v1124_v44, %v1125_v41  ;;  %v1134_v5 = vrot.slane %v1133_v47, 2  ;;  %v206_v44 = vld [vmem:[%s3310_s0 + $0x18c] sm:$0x3] }
  0xdf   :  { %v1142_v35 = vmax.f32 %v1140_v26, %v1141_v12  ;;  %v1150_v55 = vrot.slane %v1149_v0, 4  ;;  %v1158_v16 = vmax.f32 %v1156_v28, %v1157_v14  ;;  %v1165_v6 = vsel %vm264_vm0, %v204_v40, -inf }
  0xe0   :  { %3370 = vst [vmem:[#allocation60_spill] sm:$0xff] %v2703_v23  ;;  %v2712_v62 = vmax.f32 %v1117_v29, %v1118_v19  ;;  %v1127_v37 = vrot.slane %v1126_v58, 1  ;;  %v1135_v56 = vmax.f32 %v1133_v47, %v1134_v5  ;;  %v1166_v41 = vsel %vm264_vm0, %v212_v48, -inf  ;;  %v207_v48 = vld [vmem:[%s3310_s0 + $0x18e] sm:$0x3] }
  0xe1   :  { %v1143_v31 = vrot.slane %v1142_v35, 2  ;;  %v1151_v26 = vmax.f32 %v1149_v0, %v1150_v55  ;;  %v1159_v12 = vrot.slane %v1158_v16, 4  ;;  %v1167_v28 = vmax.f32 %v1165_v6, %v1166_v41  ;;  %v215_v19 = vld [vmem:[%s3310_s0 + $0x19e] sm:$0x3] }
  0xe2   :  { %3371 = vst [vmem:[#allocation61_spill] sm:$0xff] %v2712_v62  ;;  %v2721_v14 = vmax.f32 %v1126_v58, %v1127_v37  ;;  %v1136_v29 = vrot.slane %v1135_v56, 1  ;;  %v1174_v40 = vsel %vm264_vm0, %v205_v38, -inf  ;;  %v1175_v47 = vsel %vm264_vm0, %v213_v60, -inf  ;;  %v216_v60 = vld [vmem:[%s3310_s0 + $0x1a0] sm:$0x3] }
  0xe3   :  { %v1144_v5 = vmax.f32 %v1142_v35, %v1143_v31  ;;  %v1152_v62 = vrot.slane %v1151_v26, 2  ;;  %v1160_v0 = vmax.f32 %v1158_v16, %v1159_v12  ;;  %v1168_v55 = vrot.slane %v1167_v28, 4  ;;  %v224_v35 = vld [vmem:[%s3310_s0 + $0x1b0] sm:$0x3] }
  0xe4   :  { %3372 = vst [vmem:[#allocation62_spill] sm:$0xff] %v2721_v14  ;;  %v2731_v6 = vmax.f32 %v1135_v56, %v1136_v29  ;;  %v1176_v58 = vmax.f32 %v1174_v40, %v1175_v47  ;;  %v1183_v37 = vsel %vm264_vm0, %v206_v44, -inf  ;;  %v1184_v38 = vsel %vm264_vm0, %v214_v61, -inf }
  0xe5   :  { %v1145_v41 = vrot.slane %v1144_v5, 1  ;;  %v1153_v14 = vmax.f32 %v1151_v26, %v1152_v62  ;;  %v1161_v23 = vrot.slane %v1160_v0, 2  ;;  %v1169_v51 = vmax.f32 %v1167_v28, %v1168_v55  ;;  %v217_v62 = vld [vmem:[%s3310_s0 + $0x1a2] sm:$0x3]  ;;  %v225_v26 = vld [vmem:[%s3310_s0 + $0x1b2] sm:$0x3] }
  0xe6   :  { %3373 = vst [vmem:[#allocation63_spill] sm:$0xff] %v2731_v6  ;;  %v1177_v16 = vrot.slane %v1176_v58, 4  ;;  %v1185_v56 = vmax.f32 %v1183_v37, %v1184_v38  ;;  %v1192_v31 = vsel %vm264_vm0, %v207_v48, -inf  ;;  %v1193_v44 = vsel %vm264_vm0, %v215_v19, -inf  ;;  %v226_v38 = vld [vmem:[%s3310_s0 + $0x1b4] sm:$0x3] }
  0xe7   :  { %v2743_v12 = vmax.f32 %v1144_v5, %v1145_v41  ;;  %v1154_v61 = vrot.slane %v1153_v14, 1  ;;  %v1162_v29 = vmax.f32 %v1160_v0, %v1161_v23  ;;  %v1170_v40 = vrot.slane %v1169_v51, 2  ;;  %v218_v0 = vld [vmem:[%s3310_s0 + $0x1a4] sm:$0x3] }
  0xe8   :  { %v1178_v28 = vmax.f32 %v1176_v58, %v1177_v16  ;;  %v1186_v47 = vrot.slane %v1185_v56, 4  ;;  %v1194_v55 = vmax.f32 %v1192_v31, %v1193_v44  ;;  %v1201_v48 = vsel %vm264_vm0, %v216_v60, -inf }
  0xe9   :  { %3374 = vst [vmem:[#allocation64_spill] sm:$0xff] %v2743_v12  ;;  %v2752_v37 = vmax.f32 %v1153_v14, %v1154_v61  ;;  %v1163_v19 = vrot.slane %v1162_v29, 1  ;;  %v1171_v5 = vmax.f32 %v1169_v51, %v1170_v40  ;;  %v1202_v23 = vsel %vm264_vm0, %v224_v35, -inf  ;;  %v219_v35 = vld [vmem:[%s3310_s0 + $0x1a6] sm:$0x3] }
  0xea   :  { %v1179_v41 = vrot.slane %v1178_v28, 2  ;;  %v1187_v58 = vmax.f32 %v1185_v56, %v1186_v47  ;;  %v1195_v16 = vrot.slane %v1194_v55, 4  ;;  %v1203_v31 = vmax.f32 %v1201_v48, %v1202_v23  ;;  %v227_v61 = vld [vmem:[%s3310_s0 + $0x1b6] sm:$0x3] }
  0xeb   :  { %3375 = vst [vmem:[#allocation65_spill] sm:$0xff] %v2752_v37  ;;  %v2761_v44 = vmax.f32 %v1162_v29, %v1163_v19  ;;  %v1172_v14 = vrot.slane %v1171_v5, 1  ;;  %v1210_v60 = vsel %vm264_vm0, %v217_v62, -inf  ;;  %v1211_v51 = vsel %vm264_vm0, %v225_v26, -inf  ;;  %v220_v26 = vld [vmem:[%s3310_s0 + $0x1a8] sm:$0x3] }
  0xec   :  { %v1180_v40 = vmax.f32 %v1178_v28, %v1179_v41  ;;  %v1188_v37 = vrot.slane %v1187_v58, 2  ;;  %v1196_v56 = vmax.f32 %v1194_v55, %v1195_v16  ;;  %v1204_v47 = vrot.slane %v1203_v31, 4  ;;  %v228_v28 = vld [vmem:[%s3310_s0 + $0x1b8] sm:$0x3] }
  0xed   :  { %3376 = vst [vmem:[#allocation66_spill] sm:$0xff] %v2761_v44  ;;  %v2771_v48 = vmax.f32 %v1171_v5, %v1172_v14  ;;  %v1212_v29 = vmax.f32 %v1210_v60, %v1211_v51  ;;  %v1219_v19 = vsel %vm264_vm0, %v218_v0, -inf  ;;  %v1220_v62 = vsel %vm264_vm0, %v226_v38, -inf }
  0xee   :  { %v1181_v23 = vrot.slane %v1180_v40, 1  ;;  %v1189_v44 = vmax.f32 %v1187_v58, %v1188_v37  ;;  %v1197_v12 = vrot.slane %v1196_v56, 2  ;;  %v1205_v6 = vmax.f32 %v1203_v31, %v1204_v47  ;;  %v221_v37 = vld [vmem:[%s3310_s0 + $0x1aa] sm:$0x3]  ;;  %v229_v58 = vld [vmem:[%s3310_s0 + $0x1ba] sm:$0x3] }
  0xef   :  { %3377 = vst [vmem:[#allocation67_spill] sm:$0xff] %v2771_v48  ;;  %v1213_v55 = vrot.slane %v1212_v29, 4  ;;  %v1221_v5 = vmax.f32 %v1219_v19, %v1220_v62  ;;  %v1228_v41 = vsel %vm264_vm0, %v219_v35, -inf  ;;  %v1229_v0 = vsel %vm264_vm0, %v227_v61, -inf  ;;  %v230_v62 = vld [vmem:[%s3310_s0 + $0x1bc] sm:$0x3] }
  0xf0   :  { %v2783_v16 = vmax.f32 %v1180_v40, %v1181_v23  ;;  %v1190_v38 = vrot.slane %v1189_v44, 1  ;;  %v1198_v14 = vmax.f32 %v1196_v56, %v1197_v12  ;;  %v1206_v60 = vrot.slane %v1205_v6, 2  ;;  %v222_v56 = vld [vmem:[%s3310_s0 + $0x1ac] sm:$0x3] }
  0xf1   :  { %v1214_v31 = vmax.f32 %v1212_v29, %v1213_v55  ;;  %v1222_v51 = vrot.slane %v1221_v5, 4  ;;  %v1230_v47 = vmax.f32 %v1228_v41, %v1229_v0  ;;  %v1237_v35 = vsel %vm264_vm0, %v220_v26, -inf }
  0xf2   :  { %3378 = vst [vmem:[#allocation68_spill] sm:$0xff] %v2783_v16  ;;  %v2792_v19 = vmax.f32 %v1189_v44, %v1190_v38  ;;  %v1199_v61 = vrot.slane %v1198_v14, 1  ;;  %v1207_v40 = vmax.f32 %v1205_v6, %v1206_v60  ;;  %v1238_v12 = vsel %vm264_vm0, %v228_v28, -inf  ;;  %v223_v28 = vld [vmem:[%s3310_s0 + $0x1ae] sm:$0x3] }
  0xf3   :  { %v1215_v23 = vrot.slane %v1214_v31, 2  ;;  %v1223_v29 = vmax.f32 %v1221_v5, %v1222_v51  ;;  %v1231_v55 = vrot.slane %v1230_v47, 4  ;;  %v1239_v41 = vmax.f32 %v1237_v35, %v1238_v12  ;;  %v231_v38 = vld [vmem:[%s3310_s0 + $0x1be] sm:$0x3] }
  0xf4   :  { %3379 = vst [vmem:[#allocation69_spill] sm:$0xff] %v2792_v19  ;;  %v2801_v0 = vmax.f32 %v1198_v14, %v1199_v61  ;;  %v1208_v44 = vrot.slane %v1207_v40, 1  ;;  %v1246_v26 = vsel %vm264_vm0, %v221_v37, -inf  ;;  %v1247_v6 = vsel %vm264_vm0, %v229_v58, -inf  ;;  %v232_v58 = vld [vmem:[%s3310_s0 + $0x1c0] sm:$0x3] }
  0xf5   :  { %v1216_v60 = vmax.f32 %v1214_v31, %v1215_v23  ;;  %v1224_v19 = vrot.slane %v1223_v29, 2  ;;  %v1232_v5 = vmax.f32 %v1230_v47, %v1231_v55  ;;  %v1240_v51 = vrot.slane %v1239_v41, 4  ;;  %v240_v31 = vld [vmem:[%s3310_s0 + $0x1d0] sm:$0x3] }
  0xf6   :  { %3380 = vst [vmem:[#allocation70_spill] sm:$0xff] %v2801_v0  ;;  %v2811_v35 = vmax.f32 %v1207_v40, %v1208_v44  ;;  %v1248_v14 = vmax.f32 %v1246_v26, %v1247_v6  ;;  %v1255_v61 = vsel %vm264_vm0, %v222_v56, -inf  ;;  %v1256_v37 = vsel %vm264_vm0, %v230_v62, -inf }
  0xf7   :  { %v1217_v12 = vrot.slane %v1216_v60, 1  ;;  %v1225_v0 = vmax.f32 %v1223_v29, %v1224_v19  ;;  %v1233_v16 = vrot.slane %v1232_v5, 2  ;;  %v1241_v48 = vmax.f32 %v1239_v41, %v1240_v51  ;;  %v233_v19 = vld [vmem:[%s3310_s0 + $0x1c2] sm:$0x3]  ;;  %v241_v29 = vld [vmem:[%s3310_s0 + $0x1d2] sm:$0x3] }
  0xf8   :  { %3381 = vst [vmem:[#allocation71_spill] sm:$0xff] %v2811_v35  ;;  %v1249_v47 = vrot.slane %v1248_v14, 4  ;;  %v1257_v40 = vmax.f32 %v1255_v61, %v1256_v37  ;;  %v1264_v23 = vsel %vm264_vm0, %v223_v28, -inf  ;;  %v1265_v56 = vsel %vm264_vm0, %v231_v38, -inf  ;;  %v242_v37 = vld [vmem:[%s3310_s0 + $0x1d4] sm:$0x3] }
  0xf9   :  { %v2823_v55 = vmax.f32 %v1216_v60, %v1217_v12  ;;  %v1226_v62 = vrot.slane %v1225_v0, 1  ;;  %v1234_v44 = vmax.f32 %v1232_v5, %v1233_v16  ;;  %v1242_v26 = vrot.slane %v1241_v48, 2  ;;  %v234_v5 = vld [vmem:[%s3310_s0 + $0x1c4] sm:$0x3] }
  0xfa   :  { %v1250_v41 = vmax.f32 %v1248_v14, %v1249_v47  ;;  %v1258_v6 = vrot.slane %v1257_v40, 4  ;;  %v1266_v51 = vmax.f32 %v1264_v23, %v1265_v56  ;;  %v1273_v28 = vsel %vm264_vm0, %v232_v58, -inf }
  0xfb   :  { %3382 = vst [vmem:[#allocation72_spill] sm:$0xff] %v2823_v55  ;;  %v2832_v61 = vmax.f32 %v1225_v0, %v1226_v62  ;;  %v1235_v38 = vrot.slane %v1234_v44, 1  ;;  %v1243_v60 = vmax.f32 %v1241_v48, %v1242_v26  ;;  %v1274_v16 = vsel %vm264_vm0, %v240_v31, -inf  ;;  %v235_v31 = vld [vmem:[%s3310_s0 + $0x1c6] sm:$0x3] }
  0xfc   :  { %v1251_v12 = vrot.slane %v1250_v41, 2  ;;  %v1259_v14 = vmax.f32 %v1257_v40, %v1258_v6  ;;  %v1267_v47 = vrot.slane %v1266_v51, 4  ;;  %v1275_v23 = vmax.f32 %v1273_v28, %v1274_v16  ;;  %v243_v62 = vld [vmem:[%s3310_s0 + $0x1d6] sm:$0x3] }
  0xfd   :  { %3383 = vst [vmem:[#allocation73_spill] sm:$0xff] %v2832_v61  ;;  %v2841_v56 = vmax.f32 %v1234_v44, %v1235_v38  ;;  %v1244_v0 = vrot.slane %v1243_v60, 1  ;;  %v1282_v58 = vsel %vm264_vm0, %v233_v19, -inf  ;;  %v1283_v48 = vsel %vm264_vm0, %v241_v29, -inf  ;;  %v236_v29 = vld [vmem:[%s3310_s0 + $0x1c8] sm:$0x3] }
  0xfe   :  { %v1252_v26 = vmax.f32 %v1250_v41, %v1251_v12  ;;  %v1260_v61 = vrot.slane %v1259_v14, 2  ;;  %v1268_v40 = vmax.f32 %v1266_v51, %v1267_v47  ;;  %v1276_v6 = vrot.slane %v1275_v23, 4  ;;  %v244_v41 = vld [vmem:[%s3310_s0 + $0x1d8] sm:$0x3] }
  0xff   :  { %3384 = vst [vmem:[#allocation74_spill] sm:$0xff] %v2841_v56  ;;  %v2851_v28 = vmax.f32 %v1243_v60, %v1244_v0  ;;  %v1284_v44 = vmax.f32 %v1282_v58, %v1283_v48  ;;  %v1291_v38 = vsel %vm264_vm0, %v234_v5, -inf  ;;  %v1292_v19 = vsel %vm264_vm0, %v242_v37, -inf }
 0x100   :  { %v1253_v16 = vrot.slane %v1252_v26, 1  ;;  %v1261_v56 = vmax.f32 %v1259_v14, %v1260_v61  ;;  %v1269_v55 = vrot.slane %v1268_v40, 2  ;;  %v1277_v35 = vmax.f32 %v1275_v23, %v1276_v6  ;;  %v237_v61 = vld [vmem:[%s3310_s0 + $0x1ca] sm:$0x3]  ;;  %v245_v14 = vld [vmem:[%s3310_s0 + $0x1da] sm:$0x3] }
 0x101   :  { %3385 = vst [vmem:[#allocation75_spill] sm:$0xff] %v2851_v28  ;;  %v1285_v51 = vrot.slane %v1284_v44, 4  ;;  %v1293_v60 = vmax.f32 %v1291_v38, %v1292_v19  ;;  %v1300_v12 = vsel %vm264_vm0, %v235_v31, -inf  ;;  %v1301_v5 = vsel %vm264_vm0, %v243_v62, -inf  ;;  %v246_v19 = vld [vmem:[%s3310_s0 + $0x1dc] sm:$0x3] }
 0x102   :  { %v2863_v47 = vmax.f32 %v1252_v26, %v1253_v16  ;;  %v1262_v37 = vrot.slane %v1261_v56, 1  ;;  %v1270_v0 = vmax.f32 %v1268_v40, %v1269_v55  ;;  %v1278_v58 = vrot.slane %v1277_v35, 2  ;;  %v238_v40 = vld [vmem:[%s3310_s0 + $0x1cc] sm:$0x3] }
 0x103   :  { %v1286_v23 = vmax.f32 %v1284_v44, %v1285_v51  ;;  %v1294_v48 = vrot.slane %v1293_v60, 4  ;;  %v1302_v6 = vmax.f32 %v1300_v12, %v1301_v5  ;;  %v1309_v31 = vsel %vm264_vm0, %v236_v29, -inf }
 0x104   :  { %3386 = vst [vmem:[#allocation76_spill] sm:$0xff] %v2863_v47  ;;  %v2872_v38 = vmax.f32 %v1261_v56, %v1262_v37  ;;  %v1271_v62 = vrot.slane %v1270_v0, 1  ;;  %v1279_v26 = vmax.f32 %v1277_v35, %v1278_v58  ;;  %v1310_v55 = vsel %vm264_vm0, %v244_v41, -inf  ;;  %v239_v41 = vld [vmem:[%s3310_s0 + $0x1ce] sm:$0x3] }
 0x105   :  { %v1287_v16 = vrot.slane %v1286_v23, 2  ;;  %v1295_v44 = vmax.f32 %v1293_v60, %v1294_v48  ;;  %v1303_v51 = vrot.slane %v1302_v6, 4  ;;  %v1311_v12 = vmax.f32 %v1309_v31, %v1310_v55  ;;  %v247_v37 = vld [vmem:[%s3310_s0 + $0x1de] sm:$0x3] }
 0x106   :  { %3387 = vst [vmem:[#allocation77_spill] sm:$0xff] %v2872_v38  ;;  %v2881_v5 = vmax.f32 %v1270_v0, %v1271_v62  ;;  %v1280_v56 = vrot.slane %v1279_v26, 1  ;;  %v1318_v29 = vsel %vm264_vm0, %v237_v61, -inf  ;;  %v1319_v35 = vsel %vm264_vm0, %v245_v14, -inf  ;;  %v248_v14 = vld [vmem:[%s3310_s0 + $0x1e0] sm:$0x3] }
 0x107   :  { %v1288_v58 = vmax.f32 %v1286_v23, %v1287_v16  ;;  %v1296_v38 = vrot.slane %v1295_v44, 2  ;;  %v1304_v60 = vmax.f32 %v1302_v6, %v1303_v51  ;;  %v1312_v48 = vrot.slane %v1311_v12, 4  ;;  %v256_v23 = vld [vmem:[%s3310_s0 + $0x1f0] sm:$0x3] }
 0x108   :  { %3388 = vst [vmem:[#allocation78_spill] sm:$0xff] %v2881_v5  ;;  %v2891_v31 = vmax.f32 %v1279_v26, %v1280_v56  ;;  %v1320_v0 = vmax.f32 %v1318_v29, %v1319_v35  ;;  %v1327_v62 = vsel %vm264_vm0, %v238_v40, -inf  ;;  %v1328_v61 = vsel %vm264_vm0, %v246_v19, -inf }
 0x109   :  { %v1289_v55 = vrot.slane %v1288_v58, 1  ;;  %v1297_v5 = vmax.f32 %v1295_v44, %v1296_v38  ;;  %v1305_v47 = vrot.slane %v1304_v60, 2  ;;  %v1313_v28 = vmax.f32 %v1311_v12, %v1312_v48  ;;  %v249_v38 = vld [vmem:[%s3310_s0 + $0x1e2] sm:$0x3]  ;;  %v257_v44 = vld [vmem:[%s3310_s0 + $0x1f2] sm:$0x3] }
 0x10a   :  { %3389 = vst [vmem:[#allocation79_spill] sm:$0xff] %v2891_v31  ;;  %v1321_v6 = vrot.slane %v1320_v0, 4  ;;  %v1329_v26 = vmax.f32 %v1327_v62, %v1328_v61  ;;  %v1336_v16 = vsel %vm264_vm0, %v239_v41, -inf  ;;  %v1337_v40 = vsel %vm264_vm0, %v247_v37, -inf  ;;  %v258_v61 = vld [vmem:[%s3310_s0 + $0x1f4] sm:$0x3] }
 0x10b   :  { %v2903_v51 = vmax.f32 %v1288_v58, %v1289_v55  ;;  %v1298_v19 = vrot.slane %v1297_v5, 1  ;;  %v1306_v56 = vmax.f32 %v1304_v60, %v1305_v47  ;;  %v1314_v29 = vrot.slane %v1313_v28, 2  ;;  %v250_v60 = vld [vmem:[%s3310_s0 + $0x1e4] sm:$0x3] }
 0x10c   :  { %v1322_v12 = vmax.f32 %v1320_v0, %v1321_v6  ;;  %v1330_v35 = vrot.slane %v1329_v26, 4  ;;  %v1338_v48 = vmax.f32 %v1336_v16, %v1337_v40  ;;  %v1345_v41 = vsel %vm264_vm0, %v248_v14, -inf }
 0x10d   :  { %3390 = vst [vmem:[#allocation80_spill] sm:$0xff] %v2903_v51  ;;  %v2912_v62 = vmax.f32 %v1297_v5, %v1298_v19  ;;  %v1307_v37 = vrot.slane %v1306_v56, 1  ;;  %v1315_v58 = vmax.f32 %v1313_v28, %v1314_v29  ;;  %v1346_v47 = vsel %vm264_vm0, %v256_v23, -inf  ;;  %v251_v23 = vld [vmem:[%s3310_s0 + $0x1e6] sm:$0x3] }
 0x10e   :  { %v1323_v55 = vrot.slane %v1322_v12, 2  ;;  %v1331_v0 = vmax.f32 %v1329_v26, %v1330_v35  ;;  %v1339_v6 = vrot.slane %v1338_v48, 4  ;;  %v1347_v16 = vmax.f32 %v1345_v41, %v1346_v47  ;;  %v259_v19 = vld [vmem:[%s3310_s0 + $0x1f6] sm:$0x3] }
 0x10f   :  { %3391 = vst [vmem:[#allocation81_spill] sm:$0xff] %v2912_v62  ;;  %v2921_v40 = vmax.f32 %v1306_v56, %v1307_v37  ;;  %v1316_v5 = vrot.slane %v1315_v58, 1  ;;  %v1354_v14 = vsel %vm264_vm0, %v249_v38, -inf  ;;  %v1355_v28 = vsel %vm264_vm0, %v257_v44, -inf  ;;  %v252_v44 = vld [vmem:[%s3310_s0 + $0x1e8] sm:$0x3] }
 0x110   :  { %v1324_v29 = vmax.f32 %v1322_v12, %v1323_v55  ;;  %v1332_v62 = vrot.slane %v1331_v0, 2  ;;  %v1340_v26 = vmax.f32 %v1338_v48, %v1339_v6  ;;  %v1348_v35 = vrot.slane %v1347_v16, 4  ;;  %v260_v12 = vld [vmem:[%s3310_s0 + $0x1f8] sm:$0x3] }
 0x111   :  { %3392 = vst [vmem:[#allocation82_spill] sm:$0xff] %v2921_v40  ;;  %v2931_v41 = vmax.f32 %v1315_v58, %v1316_v5  ;;  %v1356_v56 = vmax.f32 %v1354_v14, %v1355_v28  ;;  %v1363_v37 = vsel %vm264_vm0, %v250_v60, -inf  ;;  %v1364_v38 = vsel %vm264_vm0, %v258_v61, -inf }
 0x112   :  { %v1325_v47 = vrot.slane %v1324_v29, 1  ;;  %v1333_v40 = vmax.f32 %v1331_v0, %v1332_v62  ;;  %v1341_v51 = vrot.slane %v1340_v26, 2  ;;  %v1349_v31 = vmax.f32 %v1347_v16, %v1348_v35  ;;  %v253_v62 = vld [vmem:[%s3310_s0 + $0x1ea] sm:$0x3]  ;;  %v261_v0 = vld [vmem:[%s3310_s0 + $0x1fa] sm:$0x3] }
 0x113   :  { %3393 = vst [vmem:[#allocation83_spill] sm:$0xff] %v2931_v41  ;;  %v1357_v48 = vrot.slane %v1356_v56, 4  ;;  %v1365_v58 = vmax.f32 %v1363_v37, %v1364_v38  ;;  %v1372_v55 = vsel %vm264_vm0, %v251_v23, -inf  ;;  %v1373_v60 = vsel %vm264_vm0, %v259_v19, -inf  ;;  %v262_v38 = vld [vmem:[%s3310_s0 + $0x1fc] sm:$0x3] }
 0x114   :  { %v2943_v6 = vmax.f32 %v1324_v29, %v1325_v47  ;;  %v1334_v61 = vrot.slane %v1333_v40, 1  ;;  %v1342_v5 = vmax.f32 %v1340_v26, %v1341_v51  ;;  %v1350_v14 = vrot.slane %v1349_v31, 2  ;;  %v254_v26 = vld [vmem:[%s3310_s0 + $0x1ec] sm:$0x3] }
 0x115   :  { %v1358_v16 = vmax.f32 %v1356_v56, %v1357_v48  ;;  %v1366_v28 = vrot.slane %v1365_v58, 4  ;;  %v1374_v35 = vmax.f32 %v1372_v55, %v1373_v60  ;;  %v1381_v23 = vsel %vm264_vm0, %v252_v44, -inf }
 0x116   :  { %3394 = vst [vmem:[#allocation84_spill] sm:$0xff] %v2943_v6  ;;  %v2952_v37 = vmax.f32 %v1333_v40, %v1334_v61  ;;  %v1343_v19 = vrot.slane %v1342_v5, 1  ;;  %v1351_v29 = vmax.f32 %v1349_v31, %v1350_v14  ;;  %v1382_v51 = vsel %vm264_vm0, %v260_v12, -inf  ;;  %v255_v12 = vld [vmem:[%s3310_s0 + $0x1ee] sm:$0x3] }
 0x117   :  { %v1359_v47 = vrot.slane %v1358_v16, 2  ;;  %v1367_v56 = vmax.f32 %v1365_v58, %v1366_v28  ;;  %v1375_v48 = vrot.slane %v1374_v35, 4  ;;  %v1383_v55 = vmax.f32 %v1381_v23, %v1382_v51  ;;  %v263_v61 = vld [vmem:[%s3310_s0 + $0x1fe] sm:$0x3] }
 0x118   :  { %3395 = vst [vmem:[#allocation85_spill] sm:$0xff] %v2952_v37  ;;  %v2961_v60 = vmax.f32 %v1342_v5, %v1343_v19  ;;  %v1352_v40 = vrot.slane %v1351_v29, 1  ;;  %v1390_v44 = vsel %vm264_vm0, %v253_v62, -inf  ;;  %v1391_v31 = vsel %vm264_vm0, %v261_v0, -inf }
 0x119   :  { %v1360_v14 = vmax.f32 %v1358_v16, %v1359_v47  ;;  %v1368_v37 = vrot.slane %v1367_v56, 2  ;;  %v1376_v58 = vmax.f32 %v1374_v35, %v1375_v48  ;;  %v1384_v28 = vrot.slane %v1383_v55, 4 }
 0x11a   :  { %3396 = vst [vmem:[#allocation86_spill] sm:$0xff] %v2961_v60  ;;  %v2971_v23 = vmax.f32 %v1351_v29, %v1352_v40  ;;  %v1392_v5 = vmax.f32 %v1390_v44, %v1391_v31  ;;  %v1399_v19 = vsel %vm264_vm0, %v254_v26, -inf  ;;  %v1400_v62 = vsel %vm264_vm0, %v262_v38, -inf }
 0x11b   :  { %v1361_v0 = vrot.slane %v1360_v14, 1  ;;  %v1369_v51 = vmax.f32 %v1367_v56, %v1368_v37  ;;  %v1377_v60 = vrot.slane %v1376_v58, 2  ;;  %v1385_v6 = vmax.f32 %v1383_v55, %v1384_v28 }
 0x11c   :  { %v1393_v41 = vrot.slane %v1392_v5, 4  ;;  %v1401_v24 = vmax.f32 %v1399_v19, %v1400_v62  ;;  %v1408_v42 = vsel %vm264_vm0, %v255_v12, -inf  ;;  %v1409_v16 = vsel %vm264_vm0, %v263_v61, -inf }
 0x11d   :  { %v2977_v47 = vmax.f32 %v1360_v14, %v1361_v0  ;;  %v1370_v35 = vrot.slane %v1369_v51, 1  ;;  %v1378_v29 = vmax.f32 %v1376_v58, %v1377_v60  ;;  %v1386_v48 = vrot.slane %v1385_v6, 2 }
 0x11e   :  { %v1394_v40 = vmax.f32 %v1392_v5, %v1393_v41  ;;  %v1402_v44 = vrot.slane %v1401_v24, 4  ;;  %v1410_v26 = vmax.f32 %v1408_v42, %v1409_v16  ;;  %v1546_v55 = vsel %vm1545_vm1, %v1789_v9, %v1787_v8 }
 0x11f   :  { %v2979_v38 = vmax.f32 %v1369_v51, %v1370_v35  ;;  %v1379_v37 = vrot.slane %v1378_v29, 1  ;;  %v1387_v56 = vmax.f32 %v1385_v6, %v1386_v48  ;;  %v1548_v41 = vsel %vm1547_vm2, %v1794_v13, %v1546_v55  ;;  %v3398_v48 = vld [vmem:[#allocation7_spill] sm:$0xff]  ;;  %v3404_v55 = vld [vmem:[#allocation9_spill] sm:$0xff] }
 0x120   :  { %v1395_v31 = vrot.slane %v1394_v40, 2  ;;  %v1403_v12 = vmax.f32 %v1401_v24, %v1402_v44  ;;  %v1411_v61 = vrot.slane %v1410_v26, 4  ;;  %v1550_v6 = vsel %vm1549_vm3, %v1799_v18, %v1548_v41  ;;  %v3400_v44 = vld [vmem:[#allocation15_spill] sm:$0xff]  ;;  %v3407_v41 = vld [vmem:[#allocation10_spill] sm:$0xff] }
 0x121   :  { %v2984_v14 = vmax.f32 %v1378_v29, %v1379_v37  ;;  %v1388_v60 = vrot.slane %v1387_v56, 1  ;;  %vm1551_vm4 = vcmask 1044484   ;;  %vm1553_vm5 = vcmask 1045509   ;;  %v3402_v37 = vld [vmem:[#allocation2_spill] sm:$0xff] }
 0x122   :  { %v1396_v42 = vmax.f32 %v1394_v40, %v1395_v31  ;;  %v1404_v58 = vrot.slane %v1403_v12, 2  ;;  %v1412_v28 = vmax.f32 %v1410_v26, %v1411_v61  ;;  %vm1555_vm6 = vcmask 1046534   ;;  %v3399_v40 = vld [vmem:[#allocation8_spill] sm:$0xff]  ;;  %v3405_v31 = vld [vmem:[#allocation17_spill] sm:$0xff] }
 0x123   :  { %v2990_v5 = vmax.f32 %v1387_v56, %v1388_v60  ;;  %v1552_v19 = vsel %vm1551_vm4, %v1812_v25, %v1550_v6  ;;  %vm1557_vm7 = vcmask 1047559   ;;  %v1559_v62 = vsel %vm1545_vm1, %v1866_v33, %v1857_v21  ;;  %v3401_v26 = vld [vmem:[#allocation16_spill] sm:$0xff]  ;;  %v3406_v61 = vld [vmem:[#allocation5_spill] sm:$0xff]  ;;  %v3409_v6 = vld [vmem:[#allocation23_spill] sm:$0xff] }
 0x124   :  { %v1397_v8 = vrot.slane %v1396_v42, 1  ;;  %v1405_v9 = vmax.f32 %v1403_v12, %v1404_v58  ;;  %v1413_v24 = vrot.slane %v1412_v28, 2  ;;  %v1554_v13 = vsel %vm1553_vm5, %v1817_v30, %v1552_v19  ;;  %v3403_v56 = vld [vmem:[#allocation4_spill] sm:$0xff]  ;;  %v3408_v58 = vld [vmem:[#allocation18_spill] sm:$0xff] }
 0x125   :  { %v1566_v18 = vsel %vm1545_vm1, %v1946_v11, %v1937_v57  ;;  %v1556_v35 = vsel %vm1555_vm6, %v1835_v45, %v1554_v13  ;;  %v1560_v30 = vsel %vm1547_vm2, %v1879_v49, %v1559_v62  ;;  %v1573_v33 = vsel %vm1545_vm1, %v2026_v3, %v2017_v53  ;;  %v3412_v13 = vld [vmem:[#allocation11_spill] sm:$0xff] }
 0x126   :  { %v3002_v0 = vmax.f32 %v1396_v42, %v1397_v8  ;;  %v1406_v51 = vrot.slane %v1405_v9, 1  ;;  %v1414_v16 = vmax.f32 %v1412_v28, %v1413_v24  ;;  %v3008_v25 = vsel %vm1557_vm7, %v1847_v63, %v1556_v35  ;;  %v3410_v8 = vld [vmem:[#allocation24_spill] sm:$0xff]  ;;  %v3411_v24 = vld [vmem:[#allocation6_spill] sm:$0xff] }
 0x127   :  { %v1567_v21 = vsel %vm1547_vm2, %v1955_v20, %v1566_v18  ;;  %v1561_v45 = vsel %vm1549_vm3, %v1881_v50, %v1560_v30  ;;  %v1574_v20 = vsel %vm1547_vm2, %v2032_v22, %v1573_v33  ;;  %v1580_v53 = vsel %vm1545_vm1, %v2106_v36, %v2091_v1  ;;  %v3413_v18 = vld [vmem:[#allocation19_spill] sm:$0xff]  ;;  %v3415_v30 = vld [vmem:[#allocation12_spill] sm:$0xff] }
 0x128   :  { %v3017_v57 = vmax.f32 %v1405_v9, %v1406_v51  ;;  %v1415_v11 = vrot.slane %v1414_v16, 1  ;;  %v1568_v63 = vsel %vm1549_vm3, %v1965_v34, %v1567_v21  ;;  %v1562_v29 = vsel %vm1551_vm4, %v1886_v54, %v1561_v45  ;;  %v3416_v33 = vld [vmem:[#allocation20_spill] sm:$0xff]  ;;  %v3417_v45 = vld [vmem:[#allocation26_spill] sm:$0xff] }
 0x129   :  { %v1569_v49 = vsel %vm1551_vm4, %v1975_v46, %v1568_v63  ;;  %v1563_v50 = vsel %vm1553_vm5, %v1904_v7, %v1562_v29  ;;  %v1575_v54 = vsel %vm1549_vm3, %v2046_v43, %v1574_v20  ;;  %v1581_v36 = vsel %vm1547_vm2, %v2112_v52, %v1580_v53  ;;  %v3418_v29 = vld [vmem:[#allocation31_spill] sm:$0xff]  ;;  %v3420_v53 = vld [vmem:[#allocation13_spill] sm:$0xff] }
 0x12a   :  { %v3032_v3 = vmax.f32 %v1414_v16, %v1415_v11  ;;  %v1570_v34 = vsel %vm1553_vm5, %v1988_v2, %v1569_v49  ;;  %v1564_v46 = vsel %vm1555_vm6, %v1910_v15, %v1563_v50  ;;  %v1576_v1 = vsel %vm1551_vm4, %v2052_v59, %v1575_v54  ;;  %v3397_v59 = vld [vmem:[#allocation3_spill] sm:$0xff]  ;;  %v3414_v16 = vld [vmem:[#allocation25_spill] sm:$0xff]  ;;  %v3419_v49 = vld [vmem:[#allocation32_spill] sm:$0xff] }
 0x12b   :  { %v1571_v22 = vsel %vm1555_vm6, %v1995_v17, %v1570_v34  ;;  %v3050_v7 = vsel %vm1557_vm7, %v1925_v39, %v1564_v46  ;;  %v1577_v15 = vsel %vm1553_vm5, %v2061_v4, %v1576_v1  ;;  %v1582_v17 = vsel %vm1549_vm3, %v2121_v10, %v1581_v36  ;;  %v3421_v34 = vld [vmem:[#allocation21_spill] sm:$0xff]  ;;  %v3422_v46 = vld [vmem:[#allocation27_spill] sm:$0xff] }
 0x12c   :  { %v3054_v2 = vsel %vm1557_vm7, %v2005_v27, %v1571_v22  ;;  %v1578_v43 = vsel %vm1555_vm6, %v2071_v32, %v1577_v15  ;;  %v1583_v52 = vsel %vm1551_vm4, %v3397_v59, %v1582_v17  ;;  %v1587_v39 = vsel %vm1545_vm1, %v3399_v40, %v3398_v48  ;;  %v3423_v1 = vld [vmem:[#allocation33_spill] sm:$0xff]  ;;  %v3424_v15 = vld [vmem:[#allocation14_spill] sm:$0xff] }
 0x12d   :  { %v1594_v27 = vsel %vm1545_vm1, %v3401_v26, %v3400_v44  ;;  %v3072_v4 = vsel %vm1557_vm7, %v3402_v37, %v1578_v43  ;;  %v1584_v10 = vsel %vm1553_vm5, %v3403_v56, %v1583_v52  ;;  %v1588_v32 = vsel %vm1547_vm2, %v3404_v55, %v1587_v39  ;;  %v3425_v43 = vld [vmem:[#allocation22_spill] sm:$0xff]  ;;  %v3426_v52 = vld [vmem:[#allocation28_spill] sm:$0xff]  ;;  %v3428_v44 = vld [vmem:[#allocation29_spill] sm:$0xff] }
 0x12e   :  { %v1595_v12 = vsel %vm1547_vm2, %v3405_v31, %v1594_v27  ;;  %v1585_v60 = vsel %vm1555_vm6, %v3406_v61, %v1584_v10  ;;  %v1589_v42 = vsel %vm1549_vm3, %v3407_v41, %v1588_v32  ;;  %v1601_v9 = vsel %vm1545_vm1, %v3410_v8, %v3409_v6  ;;  %v3427_v40 = vld [vmem:[#allocation34_spill] sm:$0xff]  ;;  %v3429_v27 = vld [vmem:[#allocation35_spill] sm:$0xff]  ;;  %v3431_v10 = vld [vmem:[#allocation40_spill] sm:$0xff] }
 0x12f   :  { %v1596_v28 = vsel %vm1549_vm3, %v3408_v58, %v1595_v12  ;;  %v3091_v19 = vsel %vm1557_vm7, %v3411_v24, %v1585_v60  ;;  %v1590_v62 = vsel %vm1551_vm4, %v3412_v13, %v1589_v42  ;;  %v1602_v35 = vsel %vm1547_vm2, %v3414_v16, %v1601_v9  ;;  %v3430_v56 = vld [vmem:[#allocation39_spill] sm:$0xff]  ;;  %v3433_v31 = vld [vmem:[#allocation48_spill] sm:$0xff]  ;;  %v3434_v61 = vld [vmem:[#allocation30_spill] sm:$0xff] }
 0x130   :  { %v1597_v51 = vsel %vm1551_vm4, %v3413_v18, %v1596_v28  ;;  %v1591_v21 = vsel %vm1553_vm5, %v3415_v30, %v1590_v62  ;;  %v1603_v63 = vsel %vm1549_vm3, %v3417_v45, %v1602_v35  ;;  %v1608_v20 = vsel %vm1545_vm1, %v3419_v49, %v3418_v29  ;;  %v3432_v32 = vld [vmem:[#allocation47_spill] sm:$0xff]  ;;  %v3435_v41 = vld [vmem:[#allocation36_spill] sm:$0xff]  ;;  %v3436_v58 = vld [vmem:[#allocation41_spill] sm:$0xff] }
 0x131   :  { %v1598_v11 = vsel %vm1553_vm5, %v3416_v33, %v1597_v51  ;;  %v1592_v50 = vsel %vm1555_vm6, %v3420_v53, %v1591_v21  ;;  %v1604_v22 = vsel %vm1551_vm4, %v3422_v46, %v1603_v63  ;;  %v1609_v36 = vsel %vm1547_vm2, %v3423_v1, %v1608_v20  ;;  %v3437_v6 = vld [vmem:[#allocation49_spill] sm:$0xff]  ;;  %v3439_v13 = vld [vmem:[#allocation42_spill] sm:$0xff]  ;;  %v3441_v16 = vld [vmem:[#allocation55_spill] sm:$0xff] }
 0x132   :  { %v1599_v54 = vsel %vm1555_vm6, %v3421_v34, %v1598_v11  ;;  %v1593_v17 = vsel %vm1557_vm7, %v3424_v15, %v1592_v50  ;;  %v1605_v48 = vsel %vm1553_vm5, %v3426_v52, %v1604_v22  ;;  %v1610_v39 = vsel %vm1549_vm3, %v3427_v40, %v1609_v36  ;;  %v3438_v9 = vld [vmem:[#allocation37_spill] sm:$0xff]  ;;  %v3440_v18 = vld [vmem:[#allocation50_spill] sm:$0xff]  ;;  %v3442_v35 = vld [vmem:[#allocation56_spill] sm:$0xff] }
 0x133   :  { %v1600_v59 = vsel %vm1557_vm7, %v3425_v43, %v1599_v54  ;;  %v1606_v26 = vsel %vm1555_vm6, %v3428_v44, %v1605_v48  ;;  %v1611_v37 = vsel %vm1551_vm4, %v3429_v27, %v1610_v39  ;;  %v1615_v55 = vsel %vm1545_vm1, %v3431_v10, %v3430_v56  ;;  %v3443_v21 = vld [vmem:[#allocation38_spill] sm:$0xff]  ;;  %v3444_v11 = vld [vmem:[#allocation43_spill] sm:$0xff]  ;;  %v3446_v49 = vld [vmem:[#allocation57_spill] sm:$0xff] }
 0x134   :  { %v1622_v12 = vsel %vm1545_vm1, %v3433_v31, %v3432_v32  ;;  %v1607_v60 = vsel %vm1557_vm7, %v3434_v61, %v1606_v26  ;;  %v1612_v42 = vsel %vm1553_vm5, %v3435_v41, %v1611_v37  ;;  %v1616_v28 = vsel %vm1547_vm2, %v3436_v58, %v1615_v55  ;;  %v3445_v63 = vld [vmem:[#allocation51_spill] sm:$0xff]  ;;  %v3447_v53 = vld [vmem:[#allocation44_spill] sm:$0xff]  ;;  %v3449_v46 = vld [vmem:[#allocation58_spill] sm:$0xff] }
 0x135   :  { %v1623_v8 = vsel %vm1547_vm2, %v3437_v6, %v1622_v12  ;;  %v1613_v24 = vsel %vm1555_vm6, %v3438_v9, %v1612_v42  ;;  %v1617_v62 = vsel %vm1549_vm3, %v3439_v13, %v1616_v28  ;;  %v1629_v30 = vsel %vm1545_vm1, %v3442_v35, %v3441_v16  ;;  %v3448_v34 = vld [vmem:[#allocation52_spill] sm:$0xff]  ;;  %v3450_v1 = vld [vmem:[#allocation63_spill] sm:$0xff]  ;;  %v3452_v43 = vld [vmem:[#allocation45_spill] sm:$0xff] }
 0x136   :  { %v1624_v51 = vsel %vm1549_vm3, %v3440_v18, %v1623_v8  ;;  %v1614_v33 = vsel %vm1557_vm7, %v3443_v21, %v1613_v24  ;;  %v1618_v45 = vsel %vm1551_vm4, %v3444_v11, %v1617_v62  ;;  %v1630_v20 = vsel %vm1547_vm2, %v3446_v49, %v1629_v30  ;;  %v3451_v36 = vld [vmem:[#allocation64_spill] sm:$0xff]  ;;  %v3453_v48 = vld [vmem:[#allocation53_spill] sm:$0xff]  ;;  %v3454_v39 = vld [vmem:[#allocation59_spill] sm:$0xff] }
 0x137   :  { %v1625_v29 = vsel %vm1551_vm4, %v3445_v63, %v1624_v51  ;;  %v1619_v50 = vsel %vm1553_vm5, %v3447_v53, %v1618_v45  ;;  %v1631_v22 = vsel %vm1549_vm3, %v3449_v46, %v1630_v20  ;;  %v1636_v15 = vsel %vm1545_vm1, %v3451_v36, %v3450_v1  ;;  %v3455_v26 = vld [vmem:[#allocation65_spill] sm:$0xff]  ;;  %v3456_v37 = vld [vmem:[#allocation46_spill] sm:$0xff]  ;;  %v3458_v32 = vld [vmem:[#allocation60_spill] sm:$0xff] }
 0x138   :  { %v1626_v54 = vsel %vm1553_vm5, %v3448_v34, %v1625_v29  ;;  %v1620_v52 = vsel %vm1555_vm6, %v3452_v43, %v1619_v50  ;;  %v1632_v44 = vsel %vm1551_vm4, %v3454_v39, %v1631_v22  ;;  %v1637_v27 = vsel %vm1547_vm2, %v3455_v26, %v1636_v15  ;;  %v3457_v10 = vld [vmem:[#allocation54_spill] sm:$0xff]  ;;  %v3460_v41 = vld [vmem:[#allocation61_spill] sm:$0xff]  ;;  %v3461_v58 = vld [vmem:[#allocation67_spill] sm:$0xff] }
 0x139   :  { %v1627_v40 = vsel %vm1555_vm6, %v3453_v48, %v1626_v54  ;;  %v1621_v56 = vsel %vm1557_vm7, %v3456_v37, %v1620_v52  ;;  %v1633_v31 = vsel %vm1553_vm5, %v3458_v32, %v1632_v44  ;;  %v3459_v12 = vld [vmem:[#allocation66_spill] sm:$0xff]  ;;  %v3462_v6 = vld [vmem:[#allocation71_spill] sm:$0xff]  ;;  %v3463_v8 = vld [vmem:[#allocation72_spill] sm:$0xff]  ;;  %v1657_v34 = vsel %vm1545_vm1, %v2977_v47, %v2971_v23 }
 0x13a   :  { %v1628_v55 = vsel %vm1557_vm7, %v3457_v10, %v1627_v40  ;;  %v1638_v61 = vsel %vm1549_vm3, %v3459_v12, %v1637_v27  ;;  %v1634_v42 = vsel %vm1555_vm6, %v3460_v41, %v1633_v31  ;;  %v1643_v9 = vsel %vm1545_vm1, %v3463_v8, %v3462_v6  ;;  %v3464_v24 = vld [vmem:[#allocation79_spill] sm:$0xff]  ;;  %v3465_v13 = vld [vmem:[#allocation80_spill] sm:$0xff]  ;;  %v3466_v18 = vld [vmem:[#allocation62_spill] sm:$0xff] }
 0x13b   :  { %v1639_v28 = vsel %vm1551_vm4, %v3461_v58, %v1638_v61  ;;  %v1650_v62 = vsel %vm1545_vm1, %v3465_v13, %v3464_v24  ;;  %v1635_v51 = vsel %vm1557_vm7, %v3466_v18, %v1634_v42  ;;  %v3467_v16 = vld [vmem:[#allocation68_spill] sm:$0xff]  ;;  %v3468_v30 = vld [vmem:[#allocation73_spill] sm:$0xff]  ;;  %v3471_v49 = vld [vmem:[#allocation74_spill] sm:$0xff]  ;;  %v1658_v43 = vsel %vm1547_vm2, %v2979_v38, %v1657_v34 }
 0x13c   :  { %v1640_v35 = vsel %vm1553_vm5, %v3467_v16, %v1639_v28  ;;  %v1644_v21 = vsel %vm1547_vm2, %v3468_v30, %v1643_v9  ;;  %v3469_v11 = vld [vmem:[#allocation81_spill] sm:$0xff]  ;;  %v3472_v53 = vld [vmem:[#allocation82_spill] sm:$0xff]  ;;  %v3474_v22 = vld [vmem:[#allocation75_spill] sm:$0xff]  ;;  %v1659_v23 = vsel %vm1549_vm3, %v2984_v14, %v1658_v43  ;;  %vm1680_vm8 = vcmask 523264  }
 0x13d   :  { %v1651_v45 = vsel %vm1547_vm2, %v3469_v11, %v1650_v62  ;;  %v3470_v63 = vld [vmem:[#allocation69_spill] sm:$0xff]  ;;  %v1645_v20 = vsel %vm1549_vm3, %v3471_v49, %v1644_v21  ;;  %v3473_v54 = vld [vmem:[#allocation70_spill] sm:$0xff]  ;;  %v3475_v36 = vld [vmem:[#allocation83_spill] sm:$0xff]  ;;  %v1660_v37 = vsel %vm1551_vm4, %v2990_v5, %v1659_v23  ;;  %1681 = vst.msk [vmem:[%s3311_s1] sm:$0xff] %vm1680_vm8, %v3008_v25 }
 0x13e   :  { %v1641_v29 = vsel %vm1555_vm6, %v3470_v63, %v1640_v35  ;;  %v1652_v50 = vsel %vm1549_vm3, %v3472_v53, %v1651_v45  ;;  %v1646_v1 = vsel %vm1551_vm4, %v3474_v22, %v1645_v20  ;;  %v3476_v52 = vld [vmem:[#allocation76_spill] sm:$0xff]  ;;  %v3478_v47 = vld [vmem:[#allocation77_spill] sm:$0xff]  ;;  %1682 = vst.msk [vmem:[%s3311_s1 + $0x8] sm:$0xff] %vm1680_vm8, %v3050_v7  ;;  %1683 = vst.msk [vmem:[%s3311_s1 + $0x10] sm:$0xff] %vm1680_vm8, %v3054_v2 }
 0x13f   :  { %v1642_v46 = vsel %vm1557_vm7, %v3473_v54, %v1641_v29  ;;  %v1653_v15 = vsel %vm1551_vm4, %v3475_v36, %v1652_v50  ;;  %v1647_v48 = vsel %vm1553_vm5, %v3476_v52, %v1646_v1  ;;  %v3477_v40 = vld [vmem:[#allocation84_spill] sm:$0xff]  ;;  %v3479_v26 = vld [vmem:[#allocation85_spill] sm:$0xff]  ;;  %1684 = vst.msk [vmem:[%s3311_s1 + $0x18] sm:$0xff] %vm1680_vm8, %v3072_v4  ;;  %1685 = vst.msk [vmem:[%s3311_s1 + $0x20] sm:$0xff] %vm1680_vm8, %v3091_v19 }
 0x140   :  { %v1654_v39 = vsel %vm1553_vm5, %v3477_v40, %v1653_v15  ;;  %v1648_v44 = vsel %vm1555_vm6, %v3478_v47, %v1647_v48  ;;  %1686 = vst.msk [vmem:[%s3311_s1 + $0x28] sm:$0xff] %vm1680_vm8, %v1593_v17  ;;  %1687 = vst.msk [vmem:[%s3311_s1 + $0x30] sm:$0xff] %vm1680_vm8, %v1600_v59  ;;  %v3480_v38 = vld [vmem:[#allocation78_spill] sm:$0xff]  ;;  %v1661_v7 = vsel %vm1553_vm5, %v3002_v0, %v1660_v37 }
 0x141   :  { %v1655_v27 = vsel %vm1555_vm6, %v3479_v26, %v1654_v39  ;;  %1688 = vst.msk [vmem:[%s3311_s1 + $0x38] sm:$0xff] %vm1680_vm8, %v1607_v60  ;;  %1689 = vst.msk [vmem:[%s3311_s1 + $0x40] sm:$0xff] %vm1680_vm8, %v1614_v33  ;;  %v1649_v14 = vsel %vm1557_vm7, %v3480_v38, %v1648_v44  ;;  %v3481_v5 = vld [vmem:[#allocation86_spill] sm:$0xff]  ;;  %v1662_v2 = vsel %vm1555_vm6, %v3017_v57, %v1661_v7 }
 0x142   :  { %1690 = vst.msk [vmem:[%s3311_s1 + $0x48] sm:$0xff] %vm1680_vm8, %v1621_v56  ;;  %1691 = vst.msk [vmem:[%s3311_s1 + $0x50] sm:$0xff] %vm1680_vm8, %v1628_v55  ;;  %v1656_v25 = vsel %vm1557_vm7, %v3481_v5, %v1655_v27  ;;  %v1663_v4 = vsel %vm1557_vm7, %v3032_v3, %v1662_v2 }
 0x143   :  { %1692 = vst.msk [vmem:[%s3311_s1 + $0x58] sm:$0xff] %vm1680_vm8, %v1635_v51  ;;  %1693 = vst.msk [vmem:[%s3311_s1 + $0x60] sm:$0xff] %vm1680_vm8, %v1642_v46 }
 0x144   :  { %1694 = vst.msk [vmem:[%s3311_s1 + $0x68] sm:$0xff] %vm1680_vm8, %v1649_v14  ;;  %1695 = vst.msk [vmem:[%s3311_s1 + $0x70] sm:$0xff] %vm1680_vm8, %v1656_v25 }
 0x145   :  { %1696 = vst.msk [vmem:[%s3311_s1 + $0x78] sm:$0xff] %vm1680_vm8, %v1663_v4 }

// kernel: reseg_forward.21
= control target key start
LH: loop header
LB: loop body
LE: loop exit
PB: predicated region body
PF: predicated region fallthrough
CT: control target
= control target key end

     0   :  { %s2634_s12 = smov 0   ;;  %s2636_s13 = smov 0   ;;  %s3058_s0 = inlined_call_operand.vmem [shape: bf16[512,640], index: 0, kind: input, shape index: {}]   ;;  %s3059_s1 = inlined_call_operand.vmem [shape: bf16[640,128], index: 1, kind: input, shape index: {}]   ;;  %s3060_s2 = inlined_call_operand.vmem [shape: f32[1,128], index: 2, kind: input, shape index: {}]   ;;  %s3061_s3 = inlined_call_operand.vmem [shape: f32[512,128], index: 3, kind: output, shape index: {}]  }
   0x1   :  { %s2638_s14 = smov 0  }
   0x2 LB: > { %s32_s15 = sadd.s32 1, %s2608_s13  ;;  %p1973_p0 = scmp.ge.s32.totalorder %s2612_s14, 1  ;;  %s2612_s14 = sphi %s2638_s14, %s13_s14   ;;  %s2608_s13 = sphi %s2636_s13, %s3063_s13   ;;  %s2604_s12 = sphi %s2634_s12, %s3062_s12  }
   0x3   : > { %p34_p1 = scmp.ge.s32.totalorder %s32_s15, 2  ;;  %p191_p2 = scmp.lt.s32.totalorder %s2612_s14, 3 }
   0x5   : > { %s3065_s15 = smov (%p34_p1, %s32_s15), 0  ;;  %p192_p3 = pnand %p1973_p0, %p191_p2 }
   0x6   : > { %v2438_v0 = vld [vmem:[%s3059_s1 + $0x40] sm:$0xff] (!%p192_p3)   ;;  %s1974_s18 = sshll.u32 (!%p192_p3), %s2604_s12, 5  ;;  %v2440_v2 = vld [vmem:[%s3059_s1 + $0x48] sm:$0xff] (!%p192_p3)   ;;  %v2442_v4 = vld [vmem:[%s3059_s1 + $0x50] sm:$0xff] (!%p192_p3)  }
   0x7   : > { %195 = sbr.rel (%p192_p3) target bundleno = 417 (0x1a1), region = 32  ;;  %v2439_v1 = vld [vmem:[%s3059_s1] sm:$0xff] (!%p192_p3)   ;;  %2101 = vmatprep.subr.bf16.mxu0 (!%p192_p3), %v2438_v0  ;;  %2397 = vmatprep.subr.bf16.mxu1 (!%p192_p3), %v2438_v0  ;;  %p236_p4 = scmp.lt.s32.totalorder (!%p192_p3), %s1974_s18, 63  ;;  %v2441_v3 = vld [vmem:[%s3059_s1 + $0x8] sm:$0xff] (!%p192_p3)   ;;  %v2443_v5 = vld [vmem:[%s3059_s1 + $0x10] sm:$0xff] (!%p192_p3)  }
   0x8   : > { %2102 = vmatpush3.bf16.msra.mxu0 (!%p192_p3), %v2439_v1  ;;  %2405 = vmatpush3.bf16.msra.mxu1 (!%p192_p3), %v2439_v1  ;;  %v2444_v6 = vld [vmem:[%s3059_s1 + $0x58] sm:$0xff] (!%p192_p3)   ;;  %v2446_v8 = vld [vmem:[%s3059_s1 + $0x60] sm:$0xff] (!%p192_p3)   ;;  %v2448_v10 = vld [vmem:[%s3059_s1 + $0x68] sm:$0xff] (!%p192_p3)  }
   0x9   : > { %2103 = vmatprep.subr.bf16.mxu0 (!%p192_p3), %v2440_v2  ;;  %2398 = vmatprep.subr.bf16.mxu1 (!%p192_p3), %v2440_v2  ;;  %v2445_v7 = vld [vmem:[%s3059_s1 + $0x18] sm:$0xff] (!%p192_p3)   ;;  %v2447_v9 = vld [vmem:[%s3059_s1 + $0x20] sm:$0xff] (!%p192_p3)   ;;  %v2449_v13 = vld [vmem:[%s3059_s1 + $0x28] sm:$0xff] (!%p192_p3)  }
   0xa   : > { %v2450_v14 = vld [vmem:[%s3059_s1 + $0x70] sm:$0xff] (!%p192_p3)   ;;  %v2452_v16 = vld [vmem:[%s3059_s1 + $0x78] sm:$0xff] (!%p192_p3)   ;;  %v2460_v18 = vld [vmem:[%s3059_s1 + $0xc0] sm:$0xff] (!%p192_p3)  }
   0xb   : > { %v2451_v15 = vld [vmem:[%s3059_s1 + $0x30] sm:$0xff] (!%p192_p3)   ;;  %v2453_v17 = vld [vmem:[%s3059_s1 + $0x38] sm:$0xff] (!%p192_p3)   ;;  %v2463_v19 = vld [vmem:[%s3059_s1 + $0x100] sm:$0xff] (!%p192_p3)  }
   0xc   : > { %2104 = vmatpush3.bf16.msra.mxu0 (!%p192_p3), %v2441_v3  ;;  %2406 = vmatpush3.bf16.msra.mxu1 (!%p192_p3), %v2441_v3  ;;  %v2461_v22 = vld [vmem:[%s3059_s1 + $0x80] sm:$0xff] (!%p192_p3)   ;;  %v2462_v23 = vld [vmem:[%s3059_s1 + $0xc8] sm:$0xff] (!%p192_p3)   ;;  %v2471_v29 = vld [vmem:[%s3059_s1 + $0xd0] sm:$0xff] (!%p192_p3)  }
   0xd   : > { %2105 = vmatprep.subr.bf16.mxu0 (!%p192_p3), %v2442_v4  ;;  %2399 = vmatprep.subr.bf16.mxu1 (!%p192_p3), %v2442_v4  ;;  %v2482_v26 = vld [vmem:[%s3059_s1 + $0x108] sm:$0xff] (!%p192_p3)   ;;  %v2472_v31 = vld [vmem:[%s3059_s1 + $0x90] sm:$0xff] (!%p192_p3)   ;;  %v2473_v33 = vld [vmem:[%s3059_s1 + $0xd8] sm:$0xff] (!%p192_p3)  }
   0xe   : > { %s3067_s18 = smov (!%p236_p4, %s1974_s18), 63  ;;  %v2464_v27 = vld [vmem:[%s3059_s1 + $0x88] sm:$0xff]   ;;  %v2474_v35 = vld [vmem:[%s3059_s1 + $0x98] sm:$0xff]   ;;  %v2481_v36 = vld [vmem:[%s3059_s1 + $0xe0] sm:$0xff]  }
   0xf   : > { %s2413_s4 = smul.u32 20, %s3067_s18  ;;  %v2495_v38 = vld [vmem:[%s3059_s1 + $0x110] sm:$0xff]   ;;  %v2483_v40 = vld [vmem:[%s3059_s1 + $0xa0] sm:$0xff]   ;;  %v2484_v41 = vld [vmem:[%s3059_s1 + $0xe8] sm:$0xff]   ;;  %s1977_s8 = sshll.u32 %s3067_s18, 3 }
  0x10   : > { %2106 = vmatpush3.bf16.msra.mxu0 %v2443_v5  ;;  %2407 = vmatpush3.bf16.msra.mxu1 %v2443_v5  ;;  %v2485_v44 = vld [vmem:[%s3059_s1 + $0xa8] sm:$0xff]   ;;  %v2509_v45 = vld [vmem:[%s3059_s1 + $0x118] sm:$0xff]   ;;  %v2492_v48 = vld [vmem:[%s3059_s1 + $0xf0] sm:$0xff]   ;;  %s2937_s12 = scalar_lea.vmem %s3061_s3, %s1977_s8 }
  0x11   : > { %2107 = vmatprep.subr.bf16.mxu0 %v2444_v6  ;;  %2400 = vmatprep.subr.bf16.mxu1 %v2444_v6  ;;  %s2685_s11 = scalar_lea.vmem %s3058_s0, %s2413_s4  ;;  %v2493_v49 = vld [vmem:[%s3059_s1 + $0xb0] sm:$0xff]   ;;  %v2494_v50 = vld [vmem:[%s3059_s1 + $0xf8] sm:$0xff]   ;;  %v2516_v52 = vld [vmem:[%s3059_s1 + $0x120] sm:$0xff]  }
  0x12   : > { %v2456_v11 = vld [vmem:[%s2685_s11 + $0x4] ss:$20 sps:$4 sm:$0xff]   ;;  %v2454_v20 = vld [vmem:[%s2685_s11] ss:$20 sps:$4 sm:$0xff]   ;;  %v2469_v28 = vld [vmem:[%s2685_s11 + $0x28] ss:$20 sps:$4 sm:$0xff]  }
  0x13   : > { %v2459_v12 = vld [vmem:[%s2685_s11 + $0x1e4] ss:$20 sps:$4 sm:$0xff]   ;;  %1200 = vmatprep.mubr.bf16.mxu0 %v2456_v11  ;;  %v2457_v21 = vld [vmem:[%s2685_s11 + $0x1e0] ss:$20 sps:$4 sm:$0xff]   ;;  %v2470_v30 = vld [vmem:[%s2685_s11 + $0x208] ss:$20 sps:$4 sm:$0xff]  }
  0x14   : > { %2108 = vmatpush3.bf16.msra.mxu0 %v2445_v7  ;;  %2408 = vmatpush3.bf16.msra.mxu1 %v2445_v7  ;;  %v2465_v24 = vld [vmem:[%s2685_s11 + $0x2c] ss:$20 sps:$4 sm:$0xff]   ;;  %v2475_v32 = vld [vmem:[%s2685_s11 + $0x54] ss:$20 sps:$4 sm:$0xff]   ;;  %v2479_v37 = vld [vmem:[%s2685_s11 + $0x50] ss:$20 sps:$4 sm:$0xff]  }
  0x15   : > { %2109 = vmatprep.subr.bf16.mxu0 %v2446_v8  ;;  %2401 = vmatprep.subr.bf16.mxu1 %v2446_v8  ;;  %v2467_v25 = vld [vmem:[%s2685_s11 + $0x20c] ss:$20 sps:$4 sm:$0xff]   ;;  %v2477_v34 = vld [vmem:[%s2685_s11 + $0x234] ss:$20 sps:$4 sm:$0xff]   ;;  %v2480_v39 = vld [vmem:[%s2685_s11 + $0x230] ss:$20 sps:$4 sm:$0xff]  }
  0x16   : > { %1296 = vmatprep.mubr.bf16.mxu1 %v2459_v12  ;;  %v2486_v42 = vld [vmem:[%s2685_s11 + $0x7c] ss:$20 sps:$4 sm:$0xff]   ;;  %v2490_v46 = vld [vmem:[%s2685_s11 + $0x78] ss:$20 sps:$4 sm:$0xff]   ;;  %v2502_v56 = vld [vmem:[%s2685_s11 + $0xa0] ss:$20 sps:$4 sm:$0xff]  }
  0x17   : > { %v2488_v43 = vld [vmem:[%s2685_s11 + $0x25c] ss:$20 sps:$4 sm:$0xff]   ;;  %v2491_v47 = vld [vmem:[%s2685_s11 + $0x258] ss:$20 sps:$4 sm:$0xff]   ;;  %v2505_v59 = vld [vmem:[%s2685_s11 + $0x34] ss:$20 sps:$4 sm:$0xff]  }
  0x18   : > { %2110 = vmatpush3.bf16.msra.mxu0 %v2447_v9  ;;  %2409 = vmatpush3.bf16.msra.mxu1 %v2447_v9  ;;  %v2497_v51 = vld [vmem:[%s2685_s11 + $0xa4] ss:$20 sps:$4 sm:$0xff]   ;;  %v2501_v53 = vld [vmem:[%s2685_s11 + $0xc] ss:$20 sps:$4 sm:$0xff]   ;;  %v2499_v55 = vld [vmem:[%s2685_s11 + $0x8] ss:$20 sps:$4 sm:$0xff]  }
  0x19   : > { %2111 = vmatprep.subr.bf16.mxu0 %v2448_v10  ;;  %2402 = vmatprep.subr.bf16.mxu1 %v2448_v10  ;;  %v2496_v54 = vld [vmem:[%s3059_s1 + $0xb8] sm:$0xff]   ;;  %v2529_v57 = vld [vmem:[%s3059_s1 + $0x128] sm:$0xff]   ;;  %v2536_v60 = vld [vmem:[%s3059_s1 + $0x130] sm:$0xff]  }
  0x1a   : > { %v2503_v58 = vld [vmem:[%s2685_s11 + $0xcc] ss:$20 sps:$4 sm:$0xff]   ;;  %v2507_v61 = vld [vmem:[%s2685_s11 + $0xc8] ss:$20 sps:$4 sm:$0xff]   ;;  %v2508_v62 = vld [vmem:[%s2685_s11 + $0x30] ss:$20 sps:$4 sm:$0xff]  }
  0x1b   : > { %v2510_v63 = vld [vmem:[%s2685_s11 + $0xf4] ss:$20 sps:$4 sm:$0xff]   ;;  %v2512_v0 = vld [vmem:[%s2685_s11 + $0x5c] ss:$20 sps:$4 sm:$0xff]   ;;  %v2515_v3 = vld [vmem:[%s2685_s11 + $0x58] ss:$20 sps:$4 sm:$0xff]  }
  0x1c   : > { %2112 = vmatpush3.bf16.msra.mxu0 %v2449_v13  ;;  %2410 = vmatpush3.bf16.msra.mxu1 %v2449_v13  ;;  %v2549_v1 = vld [vmem:[%s3059_s1 + $0x138] sm:$0xff]   ;;  %v2514_v2 = vld [vmem:[%s2685_s11 + $0xf0] ss:$20 sps:$4 sm:$0xff]   ;;  %v2522_v7 = vld [vmem:[%s2685_s11 + $0x80] ss:$20 sps:$4 sm:$0xff]  }
  0x1d   : > { %2113 = vmatprep.subr.bf16.mxu0 %v2450_v14  ;;  %2403 = vmatprep.subr.bf16.mxu1 %v2450_v14  ;;  %v2517_v4 = vld [vmem:[%s2685_s11 + $0x11c] ss:$20 sps:$4 sm:$0xff]   ;;  %v2519_v5 = vld [vmem:[%s2685_s11 + $0x84] ss:$20 sps:$4 sm:$0xff]   ;;  %v2525_v9 = vld [vmem:[%s2685_s11 + $0xac] ss:$20 sps:$4 sm:$0xff]  }
  0x1e   : > { %v2521_v6 = vld [vmem:[%s2685_s11 + $0x118] ss:$20 sps:$4 sm:$0xff]   ;;  %v2527_v10 = vld [vmem:[%s2685_s11 + $0x140] ss:$20 sps:$4 sm:$0xff]   ;;  %v2528_v11 = vld [vmem:[%s2685_s11 + $0xa8] ss:$20 sps:$4 sm:$0xff]  }
  0x1f   : > { %v2523_v8 = vld [vmem:[%s2685_s11 + $0x144] ss:$20 sps:$4 sm:$0xff]   ;;  %v2530_v12 = vld [vmem:[%s2685_s11 + $0x16c] ss:$20 sps:$4 sm:$0xff]   ;;  %v2532_v13 = vld [vmem:[%s2685_s11 + $0xd4] ss:$20 sps:$4 sm:$0xff]  }
  0x20   : > { %2114 = vmatpush3.bf16.msra.mxu0 %v2451_v15  ;;  %2411 = vmatpush3.bf16.msra.mxu1 %v2451_v15  ;;  %v2534_v14 = vld [vmem:[%s2685_s11 + $0x168] ss:$20 sps:$4 sm:$0xff]   ;;  %v2535_v15 = vld [vmem:[%s2685_s11 + $0xd0] ss:$20 sps:$4 sm:$0xff]  }
  0x21   : > { %2115 = vmatprep.subr.bf16.mxu0 %v2452_v16  ;;  %2404 = vmatprep.subr.bf16.mxu1 %v2452_v16  ;;  %v2537_v16 = vld [vmem:[%s2685_s11 + $0x194] ss:$20 sps:$4 sm:$0xff]  }
  0x24   : > { %2116 = vmatpush3.bf16.msra.mxu0 %v2453_v17  ;;  %2412 = vmatpush3.bf16.msra.mxu1 %v2453_v17  ;;  %v2539_v17 = vld [vmem:[%s2685_s11 + $0xfc] ss:$20 sps:$4 sm:$0xff]  }
  0x25   : > { %2213 = vmatprep.subr.bf16.mxu1 %v2460_v18  ;;  %2349 = vmatprep.subr.bf16.mxu0 %v2463_v19  ;;  %v2541_v18 = vld [vmem:[%s2685_s11 + $0x190] ss:$20 sps:$4 sm:$0xff]  }
  0x27   : > { %1201 = vmatmul.mubr.bf16.vlgmr.msra.gmra.mrb[0].mxu0 %v2454_v20  ;;  %1297 = vmatmul.mubr.bf16.vlgmr.msra.gmra.mrb[0].mxu1 %v2457_v21  ;;  %v2543_v20 = vld [vmem:[%s2685_s11 + $0x1bc] ss:$20 sps:$4 sm:$0xff]   ;;  %v2545_v21 = vld [vmem:[%s2685_s11 + $0x124] ss:$20 sps:$4 sm:$0xff]  }
  0x28   : > { %2214 = vmatpush3.bf16.msra.mxu1 %v2461_v22  ;;  %2350 = vmatpush3.bf16.msra.mxu0 %v2463_v19  ;;  %v2542_v19 = vld [vmem:[%s2685_s11 + $0xf8] ss:$20 sps:$4 sm:$0xff]  }
  0x29   : > { %2215 = vmatprep.subr.bf16.mxu1 %v2462_v23  ;;  %1208 = vmatprep.mubr.bf16.mxu0 %v2465_v24  ;;  %v2547_v22 = vld [vmem:[%s2685_s11 + $0x1b8] ss:$20 sps:$4 sm:$0xff]   ;;  %v2548_v23 = vld [vmem:[%s2685_s11 + $0x120] ss:$20 sps:$4 sm:$0xff]  }
  0x2a   : > { %1304 = vmatprep.mubr.bf16.mxu1 %v2467_v25  ;;  %2351 = vmatprep.subr.bf16.mxu0 %v2482_v26  ;;  %v2550_v24 = vld [vmem:[%s2685_s11 + $0x14c] ss:$20 sps:$4 sm:$0xff]   ;;  %v2552_v25 = vld [vmem:[%s2685_s11 + $0x10] ss:$20 sps:$4 sm:$0xff]  }
  0x2c   : > { %2216 = vmatpush3.bf16.msra.mxu1 %v2464_v27  ;;  %2352 = vmatpush3.bf16.msra.mxu0 %v2482_v26  ;;  %v2553_v26 = vld [vmem:[%s2685_s11 + $0x148] ss:$20 sps:$4 sm:$0xff]   ;;  %v2554_v27 = vld [vmem:[%s2685_s11 + $0x38] ss:$20 sps:$4 sm:$0xff]  }
  0x2d   : > { %2217 = vmatprep.subr.bf16.mxu1 %v2471_v29  ;;  %2353 = vmatprep.subr.bf16.mxu0 %v2495_v38  ;;  %v2557_v29 = vld [vmem:[%s2685_s11 + $0x60] ss:$20 sps:$4 sm:$0xff]  }
  0x2f   : > { %1209 = vmatmul.mubr.bf16.gmra.mrb[4].mxu0 %v2469_v28  ;;  %1305 = vmatmul.mubr.bf16.gmra.mrb[4].mxu1 %v2470_v30  ;;  %v2555_v28 = vld [vmem:[%s2685_s11 + $0x174] ss:$20 sps:$4 sm:$0xff]   ;;  %v2558_v30 = vld [vmem:[%s2685_s11 + $0x170] ss:$20 sps:$4 sm:$0xff]  }
  0x30   : > { %2218 = vmatpush3.bf16.msra.mxu1 %v2472_v31  ;;  %1216 = vmatprep.mubr.bf16.mxu0 %v2475_v32  ;;  %v2559_v31 = vld [vmem:[%s2685_s11 + $0x88] ss:$20 sps:$4 sm:$0xff]  }
  0x31   : > { %2219 = vmatprep.subr.bf16.mxu1 %v2473_v33  ;;  %1312 = vmatprep.mubr.bf16.mxu1 %v2477_v34  ;;  %v2560_v32 = vld [vmem:[%s2685_s11 + $0x19c] ss:$20 sps:$4 sm:$0xff]   ;;  %v2563_v34 = vld [vmem:[%s2685_s11 + $0x198] ss:$20 sps:$4 sm:$0xff]  }
  0x32   : > { %2354 = vmatpush3.bf16.msra.mxu0 %v2495_v38  ;;  %v2562_v33 = vld [vmem:[%s2685_s11 + $0xb0] ss:$20 sps:$4 sm:$0xff]   ;;  %v2568_v38 = vld [vmem:[%s2685_s11 + $0x1c0] ss:$20 sps:$4 sm:$0xff]  }
  0x33   : > { %2355 = vmatprep.subr.bf16.mxu0 %v2509_v45 }
  0x34   : > { %2220 = vmatpush3.bf16.msra.mxu1 %v2474_v35  ;;  %v2564_v35 = vld [vmem:[%s2685_s11 + $0xd8] ss:$20 sps:$4 sm:$0xff]  }
  0x35   : > { %2221 = vmatprep.subr.bf16.mxu1 %v2481_v36  ;;  %v2565_v36 = vld [vmem:[%s2685_s11 + $0x1c4] ss:$20 sps:$4 sm:$0xff]  }
  0x36   : > { %2356 = vmatpush3.bf16.msra.mxu0 %v2509_v45  ;;  %v2577_v45 = vld [vmem:[%s2685_s11 + $0x1a0] ss:$20 sps:$4 sm:$0xff]  }
  0x37   : > { %1217 = vmatmul.mubr.bf16.gmra.mrb[8].mxu0 %v2479_v37  ;;  %1313 = vmatmul.mubr.bf16.gmra.mrb[8].mxu1 %v2480_v39  ;;  %v2567_v37 = vld [vmem:[%s2685_s11 + $0x100] ss:$20 sps:$4 sm:$0xff]   ;;  %v2569_v39 = vld [vmem:[%s2685_s11 + $0x128] ss:$20 sps:$4 sm:$0xff]  }
  0x38   : > { %2222 = vmatpush3.bf16.msra.mxu1 %v2483_v40  ;;  %1224 = vmatprep.mubr.bf16.mxu0 %v2486_v42  ;;  %v2570_v40 = vld [vmem:[%s2685_s11 + $0x1ec] ss:$20 sps:$4 sm:$0xff]   ;;  %v2573_v42 = vld [vmem:[%s2685_s11 + $0x1e8] ss:$20 sps:$4 sm:$0xff]  }
  0x39   : > { %2223 = vmatprep.subr.bf16.mxu1 %v2484_v41  ;;  %1320 = vmatprep.mubr.bf16.mxu1 %v2488_v43  ;;  %v2572_v41 = vld [vmem:[%s2685_s11 + $0x150] ss:$20 sps:$4 sm:$0xff]   ;;  %v2574_v43 = vld [vmem:[%s2685_s11 + $0x178] ss:$20 sps:$4 sm:$0xff]  }
  0x3a   : > { %2357 = vmatprep.subr.bf16.mxu0 %v2516_v52 }
  0x3b   : > { %2358 = vmatpush3.bf16.msra.mxu0 %v2516_v52  ;;  %v2585_v52 = vld [vmem:[%s2685_s11 + $0x264] ss:$20 sps:$4 sm:$0xff]  }
  0x3c   : > { %2224 = vmatpush3.bf16.msra.mxu1 %v2485_v44  ;;  %2359 = vmatprep.subr.bf16.mxu0 %v2529_v57  ;;  %v2575_v44 = vld [vmem:[%s2685_s11 + $0x214] ss:$20 sps:$4 sm:$0xff]  }
  0x3d   : > { %2225 = vmatprep.subr.bf16.mxu1 %v2492_v48  ;;  %v2580_v48 = vld [vmem:[%s2685_s11 + $0x23c] ss:$20 sps:$4 sm:$0xff]  }
  0x3f   : > { %1225 = vmatmul.mubr.bf16.gmra.mrb[12].mxu0 %v2490_v46  ;;  %1321 = vmatmul.mubr.bf16.gmra.mrb[12].mxu1 %v2491_v47  ;;  %v2578_v46 = vld [vmem:[%s2685_s11 + $0x210] ss:$20 sps:$4 sm:$0xff]   ;;  %v2579_v47 = vld [vmem:[%s2685_s11 + $0x1c8] ss:$20 sps:$4 sm:$0xff]  }
  0x40   : > { %2226 = vmatpush3.bf16.msra.mxu1 %v2493_v49  ;;  %1232 = vmatprep.mubr.bf16.mxu0 %v2497_v51  ;;  %v2582_v49 = vld [vmem:[%s2685_s11 + $0x1f0] ss:$20 sps:$4 sm:$0xff]   ;;  %v2584_v51 = vld [vmem:[%s2685_s11 + $0x218] ss:$20 sps:$4 sm:$0xff]  }
  0x41   : > { %2227 = vmatprep.subr.bf16.mxu1 %v2494_v50  ;;  %1361 = vmatprep.mubr.bf16.mxu1 %v2501_v53  ;;  %v2583_v50 = vld [vmem:[%s2685_s11 + $0x238] ss:$20 sps:$4 sm:$0xff]   ;;  %v2587_v53 = vld [vmem:[%s2685_s11 + $0x240] ss:$20 sps:$4 sm:$0xff]  }
  0x42   : > { %2360 = vmatpush3.bf16.msra.mxu0 %v2529_v57 }
  0x43   : > { %2361 = vmatprep.subr.bf16.mxu0 %v2536_v60 }
  0x44   : > { %2228 = vmatpush3.bf16.msra.mxu1 %v2496_v54  ;;  %v2588_v54 = vld [vmem:[%s2685_s11 + $0x260] ss:$20 sps:$4 sm:$0xff]  }
  0x46   : > { %2362 = vmatpush3.bf16.msra.mxu0 %v2536_v60 }
  0x47   : > { %1233 = vmatmul.mubr.bf16.gmra.mrb[16].mxu0 %v2502_v56  ;;  %1362 = vmatmul.mubr.bf16.vlgmr.msra.gmra.mrb[16].mxu1 %v2499_v55  ;;  %v2589_v55 = vld [vmem:[%s2685_s11 + $0x268] ss:$20 sps:$4 sm:$0xff]  }
  0x48   : > { %1240 = vmatprep.mubr.bf16.mxu0 %v2503_v58  ;;  %1369 = vmatprep.mubr.bf16.mxu1 %v2505_v59 }
  0x49   : > { %2363 = vmatprep.subr.bf16.mxu0 %v2549_v1 }
  0x4a   : > { %2364 = vmatpush3.bf16.msra.mxu0 %v2549_v1 }
  0x4f   : > { %1241 = vmatmul.mubr.bf16.gmra.mrb[20].mxu0 %v2507_v61  ;;  %1370 = vmatmul.mubr.bf16.gmra.mrb[20].mxu1 %v2508_v62 }
  0x50   : > { %1248 = vmatprep.mubr.bf16.mxu0 %v2510_v63  ;;  %1377 = vmatprep.mubr.bf16.mxu1 %v2512_v0 }
  0x57   : > { %1249 = vmatmul.mubr.bf16.gmra.mrb[24].mxu0 %v2514_v2  ;;  %1378 = vmatmul.mubr.bf16.gmra.mrb[24].mxu1 %v2515_v3 }
  0x58   : > { %1256 = vmatprep.mubr.bf16.mxu0 %v2517_v4  ;;  %1385 = vmatprep.mubr.bf16.mxu1 %v2519_v5 }
  0x5f   : > { %1257 = vmatmul.mubr.bf16.gmra.mrb[28].mxu0 %v2521_v6  ;;  %1386 = vmatmul.mubr.bf16.gmra.mrb[28].mxu1 %v2522_v7 }
  0x60   : > { %1264 = vmatprep.mubr.bf16.mxu0 %v2523_v8  ;;  %1393 = vmatprep.mubr.bf16.mxu1 %v2525_v9 }
  0x67   : > { %1265 = vmatmul.mubr.bf16.gmra.mrb[32].mxu0 %v2527_v10  ;;  %1394 = vmatmul.mubr.bf16.gmra.mrb[32].mxu1 %v2528_v11 }
  0x68   : > { %1272 = vmatprep.mubr.bf16.mxu0 %v2530_v12  ;;  %1401 = vmatprep.mubr.bf16.mxu1 %v2532_v13 }
  0x6f   : > { %1273 = vmatmul.mubr.bf16.gmra.mrb[36].mxu0 %v2534_v14  ;;  %1402 = vmatmul.mubr.bf16.gmra.mrb[36].mxu1 %v2535_v15 }
  0x70   : > { %1280 = vmatprep.mubr.bf16.mxu0 %v2537_v16  ;;  %1409 = vmatprep.mubr.bf16.mxu1 %v2539_v17 }
  0x77   : > { %1281 = vmatmul.mubr.bf16.gmra.mrb[40].mxu0 %v2541_v18  ;;  %1410 = vmatmul.mubr.bf16.gmra.mrb[40].mxu1 %v2542_v19 }
  0x78   : > { %1288 = vmatprep.mubr.bf16.mxu0 %v2543_v20  ;;  %1417 = vmatprep.mubr.bf16.mxu1 %v2545_v21 }
  0x7f   : > { %1289 = vmatmul.mubr.bf16.gmra.mrb[44].mxu0 %v2547_v22  ;;  %1418 = vmatmul.mubr.bf16.gmra.mrb[44].mxu1 %v2548_v23 }
  0x80   : > { %1425 = vmatprep.mubr.bf16.mxu1 %v2550_v24  ;;  %2365 = vmatprep.mubr.bf16.mxu0 %v2552_v25 }
  0x87   : > { %1426 = vmatmul.mubr.bf16.gmra.mrb[48].mxu1 %v2553_v26  ;;  %2366 = vmatmul.mubr.bf16.vlgmr.msra.gmra.mrb[48].mxu0 %v2554_v27 }
  0x88   : > { %1433 = vmatprep.mubr.bf16.mxu1 %v2555_v28  ;;  %2369 = vmatprep.mubr.bf16.mxu0 %v2557_v29 }
  0x8f   : > { %1434 = vmatmul.mubr.bf16.gmra.mrb[52].mxu1 %v2558_v30  ;;  %2370 = vmatmul.mubr.bf16.gmra.mrb[52].mxu0 %v2559_v31 }
  0x90   : > { %1441 = vmatprep.mubr.bf16.mxu1 %v2560_v32  ;;  %2373 = vmatprep.mubr.bf16.mxu0 %v2562_v33 }
  0x97   : > { %1442 = vmatmul.mubr.bf16.gmra.mrb[56].mxu1 %v2563_v34  ;;  %2374 = vmatmul.mubr.bf16.gmra.mrb[56].mxu0 %v2564_v35 }
  0x98   : > { %1449 = vmatprep.mubr.bf16.mxu1 %v2565_v36  ;;  %2377 = vmatprep.mubr.bf16.mxu0 %v2567_v37 }
  0x9f   : > { %1450 = vmatmul.mubr.bf16.gmra.mrb[60].mxu1 %v2568_v38  ;;  %2378 = vmatmul.mubr.bf16.gmra.mrb[60].mxu0 %v2569_v39 }
  0xa0   : > { %1457 = vmatprep.mubr.bf16.mxu1 %v2570_v40  ;;  %2381 = vmatprep.mubr.bf16.mxu0 %v2572_v41 }
  0xa7   : > { %1458 = vmatmul.mubr.bf16.gmra.mrb[64].mxu1 %v2573_v42  ;;  %2382 = vmatmul.mubr.bf16.gmra.mrb[64].mxu0 %v2574_v43 }
  0xa8   : > { %1465 = vmatprep.mubr.bf16.mxu1 %v2575_v44  ;;  %2385 = vmatprep.mubr.bf16.mxu0 %v2577_v45 }
  0xaf   : > { %1466 = vmatmul.mubr.bf16.gmra.mrb[68].mxu1 %v2578_v46  ;;  %2386 = vmatmul.mubr.bf16.gmra.mrb[68].mxu0 %v2579_v47 }
  0xb0   : > { %1473 = vmatprep.mubr.bf16.mxu1 %v2580_v48  ;;  %2389 = vmatprep.mubr.bf16.mxu0 %v2582_v49 }
  0xb7   : > { %1474 = vmatmul.mubr.bf16.gmra.mrb[72].mxu1 %v2583_v50  ;;  %2390 = vmatmul.mubr.bf16.gmra.mrb[72].mxu0 %v2584_v51 }
  0xb8   : > { %1481 = vmatprep.mubr.bf16.mxu1 %v2585_v52  ;;  %2393 = vmatprep.mubr.bf16.mxu0 %v2587_v53 }
  0xbf   : > { %1482 = vmatmul.mubr.bf16.gmra.mrb[76].mxu1 %v2588_v54  ;;  %2394 = vmatmul.mubr.bf16.gmra.mrb[76].mxu0 %v2589_v55 }
  0xfa   : > { %v2189_v56 = vpop.f32.mrb[0].mxu1  ;;  %v2117_v57 = vpop.f32.mrb[0].mxu0 }
  0xfb   : > { %v2190_v58 = vpop.f32.mrb[1].mxu1  ;;  %v2118_v59 = vpop.f32.mrb[1].mxu0 }
  0xfc   : > { %v2860_v60 = vadd.f32 %v2190_v58, %v2189_v56  ;;  %v2192_v61 = vpop.f32.mrb[2].mxu1  ;;  %v2119_v62 = vadd.f32 %v2118_v59, %v2117_v57  ;;  %v2120_v63 = vpop.f32.mrb[2].mxu0 }
  0xfd   : > { %v2193_v0 = vpop.f32.mrb[3].mxu1  ;;  %v2121_v1 = vpop.f32.mrb[3].mxu0 }
  0xfe   : > { %v2862_v2 = vadd.f32 %v2193_v0, %v2192_v61  ;;  %v2122_v3 = vadd.f32 %v2121_v1, %v2120_v63 }
 0x102   : > { %v2195_v4 = vpop.f32.mrb[4].mxu1  ;;  %v2123_v5 = vpop.f32.mrb[4].mxu0 }
 0x103   : > { %v2196_v6 = vpop.f32.mrb[5].mxu1  ;;  %v2124_v7 = vpop.f32.mrb[5].mxu0 }
 0x104   : > { %v2864_v8 = vadd.f32 %v2196_v6, %v2195_v4  ;;  %v2198_v9 = vpop.f32.mrb[6].mxu1  ;;  %v2125_v10 = vadd.f32 %v2124_v7, %v2123_v5  ;;  %v2126_v11 = vpop.f32.mrb[6].mxu0 }
 0x105   : > { %v2199_v12 = vpop.f32.mrb[7].mxu1  ;;  %v2127_v13 = vpop.f32.mrb[7].mxu0 }
 0x106   : > { %v2866_v14 = vadd.f32 %v2199_v12, %v2198_v9  ;;  %v2128_v15 = vadd.f32 %v2127_v13, %v2126_v11 }
 0x10a   : > { %v2201_v16 = vpop.f32.mrb[8].mxu1  ;;  %v2129_v17 = vpop.f32.mrb[8].mxu0 }
 0x10b   : > { %v2202_v18 = vpop.f32.mrb[9].mxu1  ;;  %v2130_v19 = vpop.f32.mrb[9].mxu0 }
 0x10c   : > { %v2868_v20 = vadd.f32 %v2202_v18, %v2201_v16  ;;  %v2204_v21 = vpop.f32.mrb[10].mxu1  ;;  %v2131_v22 = vadd.f32 %v2130_v19, %v2129_v17  ;;  %v2132_v23 = vpop.f32.mrb[10].mxu0 }
 0x10d   : > { %v2205_v24 = vpop.f32.mrb[11].mxu1  ;;  %v2133_v25 = vpop.f32.mrb[11].mxu0 }
 0x10e   : > { %v2870_v26 = vadd.f32 %v2205_v24, %v2204_v21  ;;  %v2134_v27 = vadd.f32 %v2133_v25, %v2132_v23 }
 0x112   : > { %v2207_v28 = vpop.f32.mrb[12].mxu1  ;;  %v2135_v29 = vpop.f32.mrb[12].mxu0 }
 0x113   : > { %v2208_v30 = vpop.f32.mrb[13].mxu1  ;;  %v2136_v31 = vpop.f32.mrb[13].mxu0 }
 0x114   : > { %v2872_v32 = vadd.f32 %v2208_v30, %v2207_v28  ;;  %v2210_v33 = vpop.f32.mrb[14].mxu1  ;;  %v2137_v34 = vadd.f32 %v2136_v31, %v2135_v29  ;;  %v2138_v35 = vpop.f32.mrb[14].mxu0 }
 0x115   : > { %v2211_v36 = vpop.f32.mrb[15].mxu1  ;;  %v2139_v37 = vpop.f32.mrb[15].mxu0 }
 0x116   : > { %v2874_v38 = vadd.f32 %v2211_v36, %v2210_v33  ;;  %v2140_v39 = vadd.f32 %v2139_v37, %v2138_v35 }
 0x11a   : > { %v2229_v40 = vpop.f32.mrb[16].mxu1  ;;  %v2141_v41 = vpop.f32.mrb[16].mxu0 }
 0x11b   : > { %v2230_v42 = vpop.f32.mrb[17].mxu1  ;;  %v2142_v43 = vpop.f32.mrb[17].mxu0 }
 0x11c   : > { %v2231_v44 = vadd.f32 %v2230_v42, %v2229_v40  ;;  %v2232_v45 = vpop.f32.mrb[18].mxu1  ;;  %v2143_v46 = vadd.f32 %v2142_v43, %v2141_v41  ;;  %v2144_v47 = vpop.f32.mrb[18].mxu0 }
 0x11d   : > { %v2233_v48 = vpop.f32.mrb[19].mxu1  ;;  %v2145_v49 = vpop.f32.mrb[19].mxu0 }
 0x11e   : > { %v2234_v50 = vadd.f32 %v2233_v48, %v2232_v45  ;;  %v2146_v51 = vadd.f32 %v2145_v49, %v2144_v47  ;;  %v2876_v52 = vadd.f32 %v2231_v44, %v2119_v62 }
 0x120   : > { %v2878_v53 = vadd.f32 %v2234_v50, %v2122_v3 }
 0x122   : > { %v2235_v54 = vpop.f32.mrb[20].mxu1  ;;  %v2147_v55 = vpop.f32.mrb[20].mxu0 }
 0x123   : > { %v2236_v56 = vpop.f32.mrb[21].mxu1  ;;  %v2148_v57 = vpop.f32.mrb[21].mxu0 }
 0x124   : > { %v2237_v58 = vadd.f32 %v2236_v56, %v2235_v54  ;;  %v2238_v59 = vpop.f32.mrb[22].mxu1  ;;  %v2149_v61 = vadd.f32 %v2148_v57, %v2147_v55  ;;  %v2150_v63 = vpop.f32.mrb[22].mxu0 }
 0x125   : > { %v2239_v0 = vpop.f32.mrb[23].mxu1  ;;  %v2151_v1 = vpop.f32.mrb[23].mxu0 }
 0x126   : > { %v2240_v4 = vadd.f32 %v2239_v0, %v2238_v59  ;;  %v2152_v5 = vadd.f32 %v2151_v1, %v2150_v63  ;;  %v2880_v6 = vadd.f32 %v2237_v58, %v2125_v10 }
 0x128   : > { %v2882_v7 = vadd.f32 %v2240_v4, %v2128_v15 }
 0x12a   : > { %v2241_v62 = vpop.f32.mrb[24].mxu1  ;;  %v2153_v9 = vpop.f32.mrb[24].mxu0 }
 0x12b   : > { %v2242_v3 = vpop.f32.mrb[25].mxu1  ;;  %v2154_v11 = vpop.f32.mrb[25].mxu0 }
 0x12c   : > { %v2243_v12 = vadd.f32 %v2242_v3, %v2241_v62  ;;  %v2244_v13 = vpop.f32.mrb[26].mxu1  ;;  %v2155_v16 = vadd.f32 %v2154_v11, %v2153_v9  ;;  %v2156_v17 = vpop.f32.mrb[26].mxu0 }
 0x12d   : > { %v2245_v18 = vpop.f32.mrb[27].mxu1  ;;  %v2157_v19 = vpop.f32.mrb[27].mxu0 }
 0x12e   : > { %v2246_v21 = vadd.f32 %v2245_v18, %v2244_v13  ;;  %v2158_v23 = vadd.f32 %v2157_v19, %v2156_v17  ;;  %v2884_v24 = vadd.f32 %v2243_v12, %v2131_v22 }
 0x130   : > { %v2886_v25 = vadd.f32 %v2246_v21, %v2134_v27 }
 0x132   : > { %v2247_v10 = vpop.f32.mrb[28].mxu1  ;;  %v2159_v28 = vpop.f32.mrb[28].mxu0 }
 0x133   : > { %v2248_v15 = vpop.f32.mrb[29].mxu1  ;;  %v2160_v29 = vpop.f32.mrb[29].mxu0 }
 0x134   : > { %v2249_v30 = vadd.f32 %v2248_v15, %v2247_v10  ;;  %v2250_v31 = vpop.f32.mrb[30].mxu1  ;;  %v2161_v33 = vadd.f32 %v2160_v29, %v2159_v28  ;;  %v2162_v35 = vpop.f32.mrb[30].mxu0 }
 0x135   : > { %v2251_v36 = vpop.f32.mrb[31].mxu1  ;;  %v2163_v37 = vpop.f32.mrb[31].mxu0 }
 0x136   : > { %v2252_v40 = vadd.f32 %v2251_v36, %v2250_v31  ;;  %v2164_v41 = vadd.f32 %v2163_v37, %v2162_v35  ;;  %v2888_v42 = vadd.f32 %v2249_v30, %v2137_v34 }
 0x138   : > { %v2890_v43 = vadd.f32 %v2252_v40, %v2140_v39 }
 0x13a   : > { %v2253_v22 = vpop.f32.mrb[32].mxu1  ;;  %v2165_v44 = vpop.f32.mrb[32].mxu0 }
 0x13b   : > { %v2254_v27 = vpop.f32.mrb[33].mxu1  ;;  %v2166_v45 = vpop.f32.mrb[33].mxu0 }
 0x13c   : > { %v2255_v47 = vadd.f32 %v2254_v27, %v2253_v22  ;;  %v2256_v48 = vpop.f32.mrb[34].mxu1  ;;  %v2892_v49 = vadd.f32 %v2166_v45, %v2165_v44  ;;  %v2168_v50 = vpop.f32.mrb[34].mxu0 }
 0x13d   : > { %v2257_v54 = vpop.f32.mrb[35].mxu1  ;;  %v2169_v55 = vpop.f32.mrb[35].mxu0 }
 0x13e   : > { %v2258_v56 = vadd.f32 %v2257_v54, %v2256_v48  ;;  %v2894_v57 = vadd.f32 %v2169_v55, %v2168_v50  ;;  %v2896_v58 = vadd.f32 %v2255_v47, %v2143_v46 }
 0x140   : > { %v2898_v34 = vadd.f32 %v2258_v56, %v2146_v51 }
 0x142   : > { %v2259_v39 = vpop.f32.mrb[36].mxu1  ;;  %v2171_v59 = vpop.f32.mrb[36].mxu0 }
 0x143   : > { %v2260_v63 = vpop.f32.mrb[37].mxu1  ;;  %v2172_v0 = vpop.f32.mrb[37].mxu0 }
 0x144   : > { %v2261_v1 = vadd.f32 %v2260_v63, %v2259_v39  ;;  %v2262_v4 = vpop.f32.mrb[38].mxu1  ;;  %v2900_v62 = vadd.f32 %v2172_v0, %v2171_v59  ;;  %v2174_v9 = vpop.f32.mrb[38].mxu0  ;;  %v2927_v63 = vld [vmem:[%s3060_s2] ss:$0 sm:$0xff] }
 0x145   : > { %v2263_v3 = vpop.f32.mrb[39].mxu1  ;;  %v2175_v11 = vpop.f32.mrb[39].mxu0 }
 0x146   : > { %v2264_v12 = vadd.f32 %v2263_v3, %v2262_v4  ;;  %v2902_v13 = vadd.f32 %v2175_v11, %v2174_v9  ;;  %v2904_v17 = vadd.f32 %v2261_v1, %v2149_v61 }
 0x148   : > { %v2906_v46 = vadd.f32 %v2264_v12, %v2152_v5 }
 0x14a   : > { %v2265_v51 = vpop.f32.mrb[40].mxu1  ;;  %v2177_v18 = vpop.f32.mrb[40].mxu0 }
 0x14b   : > { %v2266_v19 = vpop.f32.mrb[41].mxu1  ;;  %v2178_v21 = vpop.f32.mrb[41].mxu0 }
 0x14c   : > { %v2267_v10 = vadd.f32 %v2266_v19, %v2265_v51  ;;  %v2268_v28 = vpop.f32.mrb[42].mxu1  ;;  %v2908_v15 = vadd.f32 %v2178_v21, %v2177_v18  ;;  %v2180_v29 = vpop.f32.mrb[42].mxu0 }
 0x14d   : > { %v2269_v30 = vpop.f32.mrb[43].mxu1  ;;  %v2181_v31 = vpop.f32.mrb[43].mxu0 }
 0x14e   : > { %v2270_v35 = vadd.f32 %v2269_v30, %v2268_v28  ;;  %v2910_v36 = vadd.f32 %v2181_v31, %v2180_v29  ;;  %v2912_v37 = vadd.f32 %v2267_v10, %v2155_v16 }
 0x150   : > { %v2914_v61 = vadd.f32 %v2270_v35, %v2158_v23 }
 0x152   : > { %v2271_v5 = vpop.f32.mrb[44].mxu1  ;;  %v2183_v40 = vpop.f32.mrb[44].mxu0 }
 0x153   : > { %v2272_v22 = vpop.f32.mrb[45].mxu1  ;;  %v2184_v44 = vpop.f32.mrb[45].mxu0 }
 0x154   : > { %v2273_v27 = vadd.f32 %v2272_v22, %v2271_v5  ;;  %v2274_v45 = vpop.f32.mrb[46].mxu1  ;;  %v2916_v47 = vadd.f32 %v2184_v44, %v2183_v40  ;;  %v2186_v48 = vpop.f32.mrb[46].mxu0 }
 0x155   : > { %v2275_v50 = vpop.f32.mrb[47].mxu1  ;;  %v2187_v54 = vpop.f32.mrb[47].mxu0 }
 0x156   : > { %v2276_v55 = vadd.f32 %v2275_v50, %v2274_v45  ;;  %v2918_v56 = vadd.f32 %v2187_v54, %v2186_v48  ;;  %v2920_v39 = vadd.f32 %v2273_v27, %v2161_v33 }
 0x158   : > { %v2922_v16 = vadd.f32 %v2276_v55, %v2164_v41 }
 0x15a   : > { %v2277_v23 = vpop.f32.mrb[48].mxu1  ;;  %v2367_v59 = vpop.f32.mrb[48].mxu0 }
 0x15b   : > { %v1533_v0 = vadd.f32 %v2367_v59, %v2880_v6  ;;  %v2278_v1 = vpop.f32.mrb[49].mxu1  ;;  %v1524_v4 = vpop.f32.mrb[49].mxu0 }
 0x15c   : > { %v2279_v9 = vadd.f32 %v2278_v1, %v2277_v23  ;;  %v1525_v3 = vadd.f32 %v1524_v4, %v2876_v52  ;;  %v2280_v11 = vpop.f32.mrb[50].mxu1  ;;  %v2368_v33 = vpop.f32.mrb[50].mxu0 }
 0x15d   : > { %v1759_v41 = vadd.f32 %v2927_v63, %v1533_v0  ;;  %v1536_v12 = vadd.f32 %v2368_v33, %v2882_v7  ;;  %v2281_v51 = vpop.f32.mrb[51].mxu1  ;;  %v1527_v18 = vpop.f32.mrb[51].mxu0 }
 0x15e   : > { %v1757_v6 = vadd.f32 %v2927_v63, %v1525_v3  ;;  %v2282_v19 = vadd.f32 %v2281_v51, %v2280_v11  ;;  %v1528_v52 = vadd.f32 %v1527_v18, %v2878_v53  ;;  %v2942_v21 = vadd.f32 %v2279_v9, %v2892_v49 }
 0x15f   : > { %v1791_v7 = vmax.f32 %v1759_v41, 0.0  ;;  %v1760_v10 = vadd.f32 %v2927_v63, %v1536_v12 }
 0x160   : > { %v1789_v28 = vmax.f32 %v1757_v6, 0.0  ;;  %v1758_v29 = vadd.f32 %v2927_v63, %v1528_v52  ;;  %v2947_v30 = vadd.f32 %v2282_v19, %v2894_v57 }
 0x161   : > { %1823 = vst [vmem:[%s2937_s12 + $0x10] sm:$0xff] %v1791_v7  ;;  %v1792_v31 = vmax.f32 %v1760_v10, 0.0 }
 0x162   : > { %1821 = vst [vmem:[%s2937_s12] sm:$0xff] %v1789_v28  ;;  %v1790_v35 = vmax.f32 %v1758_v29, 0.0  ;;  %v2283_v5 = vpop.f32.mrb[52].mxu1  ;;  %v2371_v40 = vpop.f32.mrb[52].mxu0 }
 0x163   : > { %1824 = vst [vmem:[%s2937_s12 + $0x18] sm:$0xff] %v1792_v31  ;;  %v1549_v53 = vadd.f32 %v2371_v40, %v2888_v42  ;;  %v2284_v49 = vpop.f32.mrb[53].mxu1  ;;  %v1540_v22 = vpop.f32.mrb[53].mxu0 }
 0x164   : > { %1822 = vst [vmem:[%s2937_s12 + $0x8] sm:$0xff] %v1790_v35  ;;  %v2285_v44 = vadd.f32 %v2284_v49, %v2283_v5  ;;  %v1541_v27 = vadd.f32 %v1540_v22, %v2884_v24  ;;  %v2286_v45 = vpop.f32.mrb[54].mxu1  ;;  %v2372_v48 = vpop.f32.mrb[54].mxu0 }
 0x165   : > { %v1763_v57 = vadd.f32 %v2927_v63, %v1549_v53  ;;  %v1552_v50 = vadd.f32 %v2372_v48, %v2890_v43  ;;  %v2287_v54 = vpop.f32.mrb[55].mxu1  ;;  %v1543_v55 = vpop.f32.mrb[55].mxu0 }
 0x166   : > { %v1761_v23 = vadd.f32 %v2927_v63, %v1541_v27  ;;  %v2288_v42 = vadd.f32 %v2287_v54, %v2286_v45  ;;  %v1544_v59 = vadd.f32 %v1543_v55, %v2886_v25  ;;  %v2960_v0 = vadd.f32 %v2285_v44, %v2900_v62 }
 0x167   : > { %v1795_v24 = vmax.f32 %v1763_v57, 0.0  ;;  %v1764_v1 = vadd.f32 %v2927_v63, %v1552_v50 }
 0x168   : > { %v1793_v4 = vmax.f32 %v1761_v23, 0.0  ;;  %v1762_v9 = vadd.f32 %v2927_v63, %v1544_v59  ;;  %v2965_v43 = vadd.f32 %v2288_v42, %v2902_v13 }
 0x169   : > { %1827 = vst [vmem:[%s2937_s12 + $0x30] sm:$0xff] %v1795_v24  ;;  %v1796_v3 = vmax.f32 %v1764_v1, 0.0 }
 0x16a   : > { %1825 = vst [vmem:[%s2937_s12 + $0x20] sm:$0xff] %v1793_v4  ;;  %v1794_v11 = vmax.f32 %v1762_v9, 0.0  ;;  %v2289_v33 = vpop.f32.mrb[56].mxu1  ;;  %v2375_v41 = vpop.f32.mrb[56].mxu0 }
 0x16b   : > { %1828 = vst [vmem:[%s2937_s12 + $0x38] sm:$0xff] %v1796_v3  ;;  %v1565_v25 = vadd.f32 %v2375_v41, %v2904_v17  ;;  %v2290_v62 = vpop.f32.mrb[57].mxu1  ;;  %v1556_v12 = vpop.f32.mrb[57].mxu0 }
 0x16c   : > { %1826 = vst [vmem:[%s2937_s12 + $0x28] sm:$0xff] %v1794_v11  ;;  %v2291_v51 = vadd.f32 %v2290_v62, %v2289_v33  ;;  %v1557_v18 = vadd.f32 %v1556_v12, %v2896_v58  ;;  %v2292_v6 = vpop.f32.mrb[58].mxu1  ;;  %v2376_v19 = vpop.f32.mrb[58].mxu0 }
 0x16d   : > { %v1767_v13 = vadd.f32 %v2927_v63, %v1565_v25  ;;  %v1568_v52 = vadd.f32 %v2376_v19, %v2906_v46  ;;  %v2293_v7 = vpop.f32.mrb[59].mxu1  ;;  %v1559_v10 = vpop.f32.mrb[59].mxu0 }
 0x16e   : > { %v1765_v28 = vadd.f32 %v2927_v63, %v1557_v18  ;;  %v2294_v17 = vadd.f32 %v2293_v7, %v2292_v6  ;;  %v1560_v29 = vadd.f32 %v1559_v10, %v2898_v34  ;;  %v2978_v31 = vadd.f32 %v2291_v51, %v2908_v15 }
 0x16f   : > { %v1799_v58 = vmax.f32 %v1767_v13, 0.0  ;;  %v1768_v35 = vadd.f32 %v2927_v63, %v1568_v52 }
 0x170   : > { %v1797_v5 = vmax.f32 %v1765_v28, 0.0  ;;  %v1766_v40 = vadd.f32 %v2927_v63, %v1560_v29  ;;  %v2983_v46 = vadd.f32 %v2294_v17, %v2910_v36 }
 0x171   : > { %1831 = vst [vmem:[%s2937_s12 + $0x50] sm:$0xff] %v1799_v58  ;;  %v1800_v53 = vmax.f32 %v1768_v35, 0.0 }
 0x172   : > { %1829 = vst [vmem:[%s2937_s12 + $0x40] sm:$0xff] %v1797_v5  ;;  %v1798_v49 = vmax.f32 %v1766_v40, 0.0  ;;  %v2295_v22 = vpop.f32.mrb[60].mxu1  ;;  %v2379_v44 = vpop.f32.mrb[60].mxu0 }
 0x173   : > { %1832 = vst [vmem:[%s2937_s12 + $0x58] sm:$0xff] %v1800_v53  ;;  %v1581_v34 = vadd.f32 %v2379_v44, %v2920_v39  ;;  %v2296_v15 = vpop.f32.mrb[61].mxu1  ;;  %v1572_v27 = vpop.f32.mrb[61].mxu0 }
 0x174   : > { %1830 = vst [vmem:[%s2937_s12 + $0x48] sm:$0xff] %v1798_v49  ;;  %v2297_v45 = vadd.f32 %v2296_v15, %v2295_v22  ;;  %v1573_v48 = vadd.f32 %v1572_v27, %v2912_v37  ;;  %v2298_v57 = vpop.f32.mrb[62].mxu1  ;;  %v2380_v50 = vpop.f32.mrb[62].mxu0 }
 0x175   : > { %v1771_v36 = vadd.f32 %v2927_v63, %v1581_v34  ;;  %v1584_v54 = vadd.f32 %v2380_v50, %v2922_v16  ;;  %v2299_v55 = vpop.f32.mrb[63].mxu1  ;;  %v1575_v23 = vpop.f32.mrb[63].mxu0 }
 0x176   : > { %v1769_v42 = vadd.f32 %v2927_v63, %v1573_v48  ;;  %v2300_v39 = vadd.f32 %v2299_v55, %v2298_v57  ;;  %v1576_v59 = vadd.f32 %v1575_v23, %v2914_v61  ;;  %v1452_v24 = vadd.f32 %v2297_v45, %v2916_v47 }
 0x177   : > { %v1803_v37 = vmax.f32 %v1771_v36, 0.0  ;;  %v1772_v1 = vadd.f32 %v2927_v63, %v1584_v54 }
 0x178   : > { %v1801_v4 = vmax.f32 %v1769_v42, 0.0  ;;  %v1770_v9 = vadd.f32 %v2927_v63, %v1576_v59  ;;  %v1455_v3 = vadd.f32 %v2300_v39, %v2918_v56 }
 0x179   : > { %1835 = vst [vmem:[%s2937_s12 + $0x70] sm:$0xff] %v1803_v37  ;;  %v1804_v16 = vmax.f32 %v1772_v1, 0.0 }
 0x17a   : > { %1833 = vst [vmem:[%s2937_s12 + $0x60] sm:$0xff] %v1801_v4  ;;  %v1802_v11 = vmax.f32 %v1770_v9, 0.0  ;;  %v2301_v33 = vpop.f32.mrb[64].mxu1  ;;  %v2383_v41 = vpop.f32.mrb[64].mxu0 }
 0x17b   : > { %1836 = vst [vmem:[%s2937_s12 + $0x78] sm:$0xff] %v1804_v16  ;;  %v1597_v61 = vadd.f32 %v2383_v41, %v2960_v0  ;;  %v2302_v25 = vpop.f32.mrb[65].mxu1  ;;  %v1588_v47 = vpop.f32.mrb[65].mxu0 }
 0x17c   : > { %1834 = vst [vmem:[%s2937_s12 + $0x68] sm:$0xff] %v1802_v11  ;;  %v2303_v62 = vadd.f32 %v2302_v25, %v2301_v33  ;;  %v1589_v12 = vadd.f32 %v1588_v47, %v2942_v21  ;;  %v2304_v51 = vpop.f32.mrb[66].mxu1  ;;  %v2384_v18 = vpop.f32.mrb[66].mxu0 }
 0x17d   : > { %v1775_v56 = vadd.f32 %v2927_v63, %v1597_v61  ;;  %v1600_v6 = vadd.f32 %v2384_v18, %v2965_v43  ;;  %v2305_v19 = vpop.f32.mrb[67].mxu1  ;;  %v1591_v13 = vpop.f32.mrb[67].mxu0 }
 0x17e   : > { %v1773_v52 = vadd.f32 %v2927_v63, %v1589_v12  ;;  %v2306_v0 = vadd.f32 %v2305_v19, %v2304_v51  ;;  %v1592_v7 = vadd.f32 %v1591_v13, %v2947_v30  ;;  %v1460_v10 = vadd.f32 %v2303_v62, %v2860_v60 }
 0x17f   : > { %v1807_v21 = vmax.f32 %v1775_v56, 0.0  ;;  %v1776_v28 = vadd.f32 %v2927_v63, %v1600_v6 }
 0x180   : > { %v1805_v17 = vmax.f32 %v1773_v52, 0.0  ;;  %v1774_v29 = vadd.f32 %v2927_v63, %v1592_v7  ;;  %v1463_v58 = vadd.f32 %v2306_v0, %v2862_v2 }
 0x181   : > { %1839 = vst [vmem:[%s2937_s12 + $0x90] sm:$0xff] %v1807_v21  ;;  %v1808_v43 = vmax.f32 %v1776_v28, 0.0 }
 0x182   : > { %1837 = vst [vmem:[%s2937_s12 + $0x80] sm:$0xff] %v1805_v17  ;;  %v1806_v35 = vmax.f32 %v1774_v29, 0.0  ;;  %v2307_v5 = vpop.f32.mrb[68].mxu1  ;;  %v2387_v40 = vpop.f32.mrb[68].mxu0 }
 0x183   : > { %1840 = vst [vmem:[%s2937_s12 + $0x98] sm:$0xff] %v1808_v43  ;;  %v1613_v53 = vadd.f32 %v2387_v40, %v1452_v24  ;;  %v2308_v30 = vpop.f32.mrb[69].mxu1  ;;  %v1604_v49 = vpop.f32.mrb[69].mxu0 }
 0x184   : > { %1838 = vst [vmem:[%s2937_s12 + $0x88] sm:$0xff] %v1806_v35  ;;  %v2309_v60 = vadd.f32 %v2308_v30, %v2307_v5  ;;  %v1605_v22 = vadd.f32 %v1604_v49, %v2978_v31  ;;  %v2310_v44 = vpop.f32.mrb[70].mxu1  ;;  %v2388_v34 = vpop.f32.mrb[70].mxu0 }
 0x185   : > { %v1779_v2 = vadd.f32 %v2927_v63, %v1613_v53  ;;  %v1616_v15 = vadd.f32 %v2388_v34, %v1455_v3  ;;  %v2311_v27 = vpop.f32.mrb[71].mxu1  ;;  %v1607_v45 = vpop.f32.mrb[71].mxu0 }
 0x186   : > { %v1777_v48 = vadd.f32 %v2927_v63, %v1605_v22  ;;  %v2312_v57 = vadd.f32 %v2311_v27, %v2310_v44  ;;  %v1608_v50 = vadd.f32 %v1607_v45, %v2983_v46  ;;  %v1468_v36 = vadd.f32 %v2309_v60, %v2864_v8 }
 0x187   : > { %v1811_v54 = vmax.f32 %v1779_v2, 0.0  ;;  %v1780_v31 = vadd.f32 %v2927_v63, %v1616_v15 }
 0x188   : > { %v1809_v55 = vmax.f32 %v1777_v48, 0.0  ;;  %v1778_v23 = vadd.f32 %v2927_v63, %v1608_v50  ;;  %v1471_v42 = vadd.f32 %v2312_v57, %v2866_v14 }
 0x189   : > { %1843 = vst [vmem:[%s2937_s12 + $0xb0] sm:$0xff] %v1811_v54  ;;  %v1812_v39 = vmax.f32 %v1780_v31, 0.0 }
 0x18a   : > { %1841 = vst [vmem:[%s2937_s12 + $0xa0] sm:$0xff] %v1809_v55  ;;  %v1810_v59 = vmax.f32 %v1778_v23, 0.0  ;;  %v2313_v24 = vpop.f32.mrb[72].mxu1  ;;  %v2391_v37 = vpop.f32.mrb[72].mxu0 }
 0x18b   : > { %1844 = vst [vmem:[%s2937_s12 + $0xb8] sm:$0xff] %v1812_v39  ;;  %v1629_v1 = vadd.f32 %v2391_v37, %v1468_v36  ;;  %v2314_v46 = vpop.f32.mrb[73].mxu1  ;;  %v1620_v4 = vpop.f32.mrb[73].mxu0 }
 0x18c   : > { %1842 = vst [vmem:[%s2937_s12 + $0xa8] sm:$0xff] %v1810_v59  ;;  %v2315_v8 = vadd.f32 %v2314_v46, %v2313_v24  ;;  %v1621_v9 = vadd.f32 %v1620_v4, %v1460_v10  ;;  %v2316_v3 = vpop.f32.mrb[74].mxu1  ;;  %v2392_v16 = vpop.f32.mrb[74].mxu0 }
 0x18d   : > { %v1783_v11 = vadd.f32 %v2927_v63, %v1629_v1  ;;  %v1632_v14 = vadd.f32 %v2392_v16, %v1471_v42  ;;  %v2317_v33 = vpop.f32.mrb[75].mxu1  ;;  %v1623_v41 = vpop.f32.mrb[75].mxu0 }
 0x18e   : > { %v1781_v61 = vadd.f32 %v2927_v63, %v1621_v9  ;;  %v2318_v25 = vadd.f32 %v2317_v33, %v2316_v3  ;;  %v1624_v47 = vadd.f32 %v1623_v41, %v1463_v58  ;;  %v1476_v62 = vadd.f32 %v2315_v8, %v2868_v20 }
 0x18f   : > { %v1815_v12 = vmax.f32 %v1783_v11, 0.0  ;;  %v1784_v51 = vadd.f32 %v2927_v63, %v1632_v14 }
 0x190   : > { %v1813_v18 = vmax.f32 %v1781_v61, 0.0  ;;  %v1782_v56 = vadd.f32 %v2927_v63, %v1624_v47  ;;  %v1479_v6 = vadd.f32 %v2318_v25, %v2870_v26 }
 0x191   : > { %1847 = vst [vmem:[%s2937_s12 + $0xd0] sm:$0xff] %v1815_v12  ;;  %v1816_v19 = vmax.f32 %v1784_v51, 0.0 }
 0x192   : > { %1845 = vst [vmem:[%s2937_s12 + $0xc0] sm:$0xff] %v1813_v18  ;;  %v1814_v13 = vmax.f32 %v1782_v56, 0.0  ;;  %v2319_v52 = vpop.f32.mrb[76].mxu1  ;;  %v2395_v0 = vpop.f32.mrb[76].mxu0 }
 0x193   : > { %1848 = vst [vmem:[%s2937_s12 + $0xd8] sm:$0xff] %v1816_v19  ;;  %v2320_v7 = vpop.f32.mrb[77].mxu1  ;;  %v1636_v10 = vpop.f32.mrb[77].mxu0 }
 0x194   : > { %1846 = vst [vmem:[%s2937_s12 + $0xc8] sm:$0xff] %v1814_v13  ;;  %v2321_v20 = vadd.f32 %v2320_v7, %v2319_v52  ;;  %v1637_v21 = vadd.f32 %v1636_v10, %v1476_v62  ;;  %v2322_v28 = vpop.f32.mrb[78].mxu1  ;;  %v2396_v17 = vpop.f32.mrb[78].mxu0 }
 0x195   : > { %v2323_v29 = vpop.f32.mrb[79].mxu1  ;;  %v1639_v58 = vpop.f32.mrb[79].mxu0 }
 0x196   : > { %v1484_v26 = vadd.f32 %v2321_v20, %v2872_v32  ;;  %v1785_v43 = vadd.f32 %v2927_v63, %v1637_v21  ;;  %v2324_v35 = vadd.f32 %v2323_v29, %v2322_v28  ;;  %v1640_v5 = vadd.f32 %v1639_v58, %v1479_v6 }
 0x198   : > { %v1645_v40 = vadd.f32 %v2395_v0, %v1484_v26  ;;  %v1817_v53 = vmax.f32 %v1785_v43, 0.0  ;;  %v1487_v30 = vadd.f32 %v2324_v35, %v2874_v38  ;;  %v1786_v49 = vadd.f32 %v2927_v63, %v1640_v5 }
 0x19a   : > { %v1787_v60 = vadd.f32 %v2927_v63, %v1645_v40  ;;  %1849 = vst [vmem:[%s2937_s12 + $0xe0] sm:$0xff] %v1817_v53  ;;  %v1648_v22 = vadd.f32 %v2396_v17, %v1487_v30  ;;  %v1818_v44 = vmax.f32 %v1786_v49, 0.0 }
 0x19c   : > { %v1819_v34 = vmax.f32 %v1787_v60, 0.0  ;;  %v1788_v2 = vadd.f32 %v2927_v63, %v1648_v22  ;;  %1850 = vst [vmem:[%s2937_s12 + $0xe8] sm:$0xff] %v1818_v44 }
 0x19e   : > { %1851 = vst [vmem:[%s2937_s12 + $0xf0] sm:$0xff] %v1819_v34  ;;  %v1820_v32 = vmax.f32 %v1788_v2, 0.0 }
 0x1a0   : > { %1852 = vst [vmem:[%s2937_s12 + $0xf8] sm:$0xff] %v1820_v32 }
 0x1a1 PF: > { %s13_s14 = sadd.s32 1, %s2612_s14   ;;  %s3062_s12 = smov %s2608_s13 }
 0x1a2   : > { %p10_p5 = scmp.ge.s32.totalorder %s13_s14, 4   ;;  %s3063_s13 = smov %s3065_s15 }
 0x1a4   :  { %12 = sbr.rel (!%p10_p5) target bundleno = 2 (0x2), region = 76 }

// kernel: reseg_forward.23
= control target key start
LH: loop header
LB: loop body
LE: loop exit
PB: predicated region body
PF: predicated region fallthrough
CT: control target
= control target key end

     0   :  { %s1759_s1 = inlined_call_operand.vmem [shape: bf16[640,128], index: 1, kind: input, shape index: {}]   ;;  %s1760_s0 = inlined_call_operand.vmem [shape: bf16[128,640], index: 0, kind: input, shape index: {}]   ;;  %s1761_s2 = inlined_call_operand.vmem [shape: f32[1,128], index: 2, kind: input, shape index: {}]   ;;  %s1762_s3 = inlined_call_operand.vmem [shape: f32[128,128], index: 3, kind: output, shape index: {}]  }
   0x1   :  { %v1301_v0 = vld [vmem:[%s1759_s1 + $0x40] sm:$0xff]   ;;  %v1305_v4 = vld [vmem:[%s1759_s1 + $0x48] sm:$0xff]   ;;  %v1309_v8 = vld [vmem:[%s1759_s1 + $0x50] sm:$0xff]  }
   0x2   :  { %v1302_v1 = vld [vmem:[%s1759_s1 + $0xc0] sm:$0xff]   ;;  %1109 = vmatprep.subr.bf16.mxu0 %v1301_v0  ;;  %v1306_v5 = vld [vmem:[%s1759_s1 + $0xc8] sm:$0xff]   ;;  %v1310_v9 = vld [vmem:[%s1759_s1 + $0xd0] sm:$0xff]  }
   0x3   :  { %v1303_v2 = vld [vmem:[%s1759_s1] sm:$0xff]   ;;  %1173 = vmatprep.subr.bf16.mxu1 %v1302_v1  ;;  %v1307_v6 = vld [vmem:[%s1759_s1 + $0x8] sm:$0xff]   ;;  %v1311_v10 = vld [vmem:[%s1759_s1 + $0x10] sm:$0xff]  }
   0x4   :  { %v1304_v3 = vld [vmem:[%s1759_s1 + $0x80] sm:$0xff]   ;;  %1110 = vmatpush3.bf16.msra.mxu0 %v1303_v2  ;;  %v1308_v7 = vld [vmem:[%s1759_s1 + $0x88] sm:$0xff]   ;;  %v1312_v11 = vld [vmem:[%s1759_s1 + $0x90] sm:$0xff]  }
   0x5   :  { %1174 = vmatpush3.bf16.msra.mxu1 %v1304_v3  ;;  %1111 = vmatprep.subr.bf16.mxu0 %v1305_v4  ;;  %v1313_v12 = vld [vmem:[%s1759_s1 + $0x58] sm:$0xff]   ;;  %v1317_v16 = vld [vmem:[%s1759_s1 + $0x60] sm:$0xff]   ;;  %v1321_v20 = vld [vmem:[%s1759_s1 + $0x68] sm:$0xff]  }
   0x6   :  { %1175 = vmatprep.subr.bf16.mxu1 %v1306_v5  ;;  %v1314_v13 = vld [vmem:[%s1759_s1 + $0xd8] sm:$0xff]   ;;  %v1318_v17 = vld [vmem:[%s1759_s1 + $0xe0] sm:$0xff]   ;;  %v1322_v21 = vld [vmem:[%s1759_s1 + $0xe8] sm:$0xff]  }
   0x7   :  { %v1315_v14 = vld [vmem:[%s1759_s1 + $0x18] sm:$0xff]   ;;  %v1319_v18 = vld [vmem:[%s1759_s1 + $0x20] sm:$0xff]   ;;  %v1323_v22 = vld [vmem:[%s1759_s1 + $0x28] sm:$0xff]  }
   0x8   :  { %1112 = vmatpush3.bf16.msra.mxu0 %v1307_v6  ;;  %v1316_v15 = vld [vmem:[%s1759_s1 + $0x98] sm:$0xff]   ;;  %v1320_v19 = vld [vmem:[%s1759_s1 + $0xa0] sm:$0xff]   ;;  %v1324_v23 = vld [vmem:[%s1759_s1 + $0xa8] sm:$0xff]  }
   0x9   :  { %1176 = vmatpush3.bf16.msra.mxu1 %v1308_v7  ;;  %1113 = vmatprep.subr.bf16.mxu0 %v1309_v8  ;;  %v1325_v24 = vld [vmem:[%s1759_s1 + $0x70] sm:$0xff]   ;;  %v1329_v28 = vld [vmem:[%s1759_s1 + $0x78] sm:$0xff]   ;;  %v1338_v35 = vld [vmem:[%s1760_s0 + $0xc] ss:$20 sps:$4 sm:$0xff]  }
   0xa   :  { %1177 = vmatprep.subr.bf16.mxu1 %v1310_v9  ;;  %v1326_v25 = vld [vmem:[%s1759_s1 + $0xf0] sm:$0xff]   ;;  %v1330_v29 = vld [vmem:[%s1759_s1 + $0xf8] sm:$0xff]   ;;  %v1339_v36 = vld [vmem:[%s1759_s1 + $0x100] sm:$0xff]   ;;  %756 = vmatprep.mubr.bf16.mxu1 %v1338_v35 }
   0xb   :  { %v1327_v26 = vld [vmem:[%s1759_s1 + $0x30] sm:$0xff]   ;;  %v1331_v30 = vld [vmem:[%s1759_s1 + $0x38] sm:$0xff]   ;;  %v1340_v37 = vld [vmem:[%s1760_s0 + $0x2c] ss:$20 sps:$4 sm:$0xff]  }
   0xc   :  { %1114 = vmatpush3.bf16.msra.mxu0 %v1311_v10  ;;  %v1328_v27 = vld [vmem:[%s1759_s1 + $0xb0] sm:$0xff]   ;;  %v1332_v31 = vld [vmem:[%s1759_s1 + $0xb8] sm:$0xff]   ;;  %v1346_v39 = vld [vmem:[%s1759_s1 + $0x108] sm:$0xff]  }
   0xd   :  { %1178 = vmatpush3.bf16.msra.mxu1 %v1312_v11  ;;  %1115 = vmatprep.subr.bf16.mxu0 %v1313_v12  ;;  %v1333_v32 = vld [vmem:[%s1760_s0] ss:$20 sps:$4 sm:$0xff]   ;;  %v1335_v33 = vld [vmem:[%s1760_s0 + $0x4] ss:$20 sps:$4 sm:$0xff]   ;;  %v1336_v34 = vld [vmem:[%s1760_s0 + $0x8] ss:$20 sps:$4 sm:$0xff]  }
   0xe   :  { %1179 = vmatprep.subr.bf16.mxu1 %v1314_v13  ;;  %659 = vmatprep.mubr.bf16.mxu0 %v1335_v33  ;;  %v1342_v38 = vld [vmem:[%s1760_s0 + $0x34] ss:$20 sps:$4 sm:$0xff]   ;;  %v1345_v41 = vld [vmem:[%s1760_s0 + $0x30] ss:$20 sps:$4 sm:$0xff]   ;;  %v1360_v45 = vld [vmem:[%s1759_s1 + $0x118] sm:$0xff]  }
   0xf   :  { %v1344_v40 = vld [vmem:[%s1760_s0 + $0x28] ss:$20 sps:$4 sm:$0xff]   ;;  %v1353_v44 = vld [vmem:[%s1759_s1 + $0x110] sm:$0xff]   ;;  %v1352_v47 = vld [vmem:[%s1760_s0 + $0x58] ss:$20 sps:$4 sm:$0xff]  }
  0x10   :  { %1116 = vmatpush3.bf16.msra.mxu0 %v1315_v14  ;;  %v1347_v42 = vld [vmem:[%s1760_s0 + $0x54] ss:$20 sps:$4 sm:$0xff]   ;;  %v1349_v43 = vld [vmem:[%s1760_s0 + $0x5c] ss:$20 sps:$4 sm:$0xff]   ;;  %v1356_v49 = vld [vmem:[%s1760_s0 + $0x84] ss:$20 sps:$4 sm:$0xff]  }
  0x11   :  { %1180 = vmatpush3.bf16.msra.mxu1 %v1316_v15  ;;  %1117 = vmatprep.subr.bf16.mxu0 %v1317_v16  ;;  %v1351_v46 = vld [vmem:[%s1760_s0 + $0x50] ss:$20 sps:$4 sm:$0xff]   ;;  %v1374_v51 = vld [vmem:[%s1759_s1 + $0x128] sm:$0xff]   ;;  %v1359_v53 = vld [vmem:[%s1760_s0 + $0x80] ss:$20 sps:$4 sm:$0xff]  }
  0x12   :  { %1181 = vmatprep.subr.bf16.mxu1 %v1318_v17  ;;  %v1354_v48 = vld [vmem:[%s1760_s0 + $0x7c] ss:$20 sps:$4 sm:$0xff]   ;;  %v1367_v50 = vld [vmem:[%s1759_s1 + $0x120] sm:$0xff]   ;;  %v1358_v52 = vld [vmem:[%s1760_s0 + $0x78] ss:$20 sps:$4 sm:$0xff]  }
  0x13   :  { %v1361_v54 = vld [vmem:[%s1760_s0 + $0xa4] ss:$20 sps:$4 sm:$0xff]   ;;  %v1381_v55 = vld [vmem:[%s1759_s1 + $0x130] sm:$0xff]   ;;  %v1363_v56 = vld [vmem:[%s1760_s0 + $0xac] ss:$20 sps:$4 sm:$0xff]  }
  0x14   :  { %1118 = vmatpush3.bf16.msra.mxu0 %v1319_v18  ;;  %v1388_v57 = vld [vmem:[%s1759_s1 + $0x138] sm:$0xff]   ;;  %v1365_v58 = vld [vmem:[%s1760_s0 + $0xa0] ss:$20 sps:$4 sm:$0xff]   ;;  %v1373_v63 = vld [vmem:[%s1760_s0 + $0xd0] ss:$20 sps:$4 sm:$0xff]  }
  0x15   :  { %1182 = vmatpush3.bf16.msra.mxu1 %v1320_v19  ;;  %1119 = vmatprep.subr.bf16.mxu0 %v1321_v20  ;;  %v1366_v59 = vld [vmem:[%s1760_s0 + $0xa8] ss:$20 sps:$4 sm:$0xff]   ;;  %v1368_v60 = vld [vmem:[%s1760_s0 + $0xcc] ss:$20 sps:$4 sm:$0xff]   ;;  %v1379_v2 = vld [vmem:[%s1760_s0 + $0xf0] ss:$20 sps:$4 sm:$0xff]  }
  0x16   :  { %1183 = vmatprep.subr.bf16.mxu1 %v1322_v21  ;;  %v1370_v61 = vld [vmem:[%s1760_s0 + $0xd4] ss:$20 sps:$4 sm:$0xff]   ;;  %v1377_v1 = vld [vmem:[%s1760_s0 + $0xfc] ss:$20 sps:$4 sm:$0xff]   ;;  %v1380_v3 = vld [vmem:[%s1760_s0 + $0xf8] ss:$20 sps:$4 sm:$0xff]  }
  0x17   :  { %v1372_v62 = vld [vmem:[%s1760_s0 + $0xc8] ss:$20 sps:$4 sm:$0xff]   ;;  %v1384_v5 = vld [vmem:[%s1760_s0 + $0x124] ss:$20 sps:$4 sm:$0xff]   ;;  %v1387_v7 = vld [vmem:[%s1760_s0 + $0x120] ss:$20 sps:$4 sm:$0xff]  }
  0x18   :  { %1120 = vmatpush3.bf16.msra.mxu0 %v1323_v22  ;;  %v1375_v0 = vld [vmem:[%s1760_s0 + $0xf4] ss:$20 sps:$4 sm:$0xff]   ;;  %v1382_v4 = vld [vmem:[%s1760_s0 + $0x11c] ss:$20 sps:$4 sm:$0xff]   ;;  %v1386_v6 = vld [vmem:[%s1760_s0 + $0x118] ss:$20 sps:$4 sm:$0xff]  }
  0x19   :  { %1184 = vmatpush3.bf16.msra.mxu1 %v1324_v23  ;;  %1121 = vmatprep.subr.bf16.mxu0 %v1325_v24  ;;  %v1389_v8 = vld [vmem:[%s1760_s0 + $0x10] ss:$20 sps:$4 sm:$0xff]   ;;  %v1391_v10 = vld [vmem:[%s1760_s0 + $0x38] ss:$20 sps:$4 sm:$0xff]   ;;  %v1393_v12 = vld [vmem:[%s1760_s0 + $0x60] ss:$20 sps:$4 sm:$0xff]  }
  0x1a   :  { %1185 = vmatprep.subr.bf16.mxu1 %v1326_v25  ;;  %v1390_v9 = vld [vmem:[%s1760_s0 + $0xb0] ss:$20 sps:$4 sm:$0xff]   ;;  %v1392_v11 = vld [vmem:[%s1760_s0 + $0xd8] ss:$20 sps:$4 sm:$0xff]   ;;  %v1394_v13 = vld [vmem:[%s1760_s0 + $0x100] ss:$20 sps:$4 sm:$0xff]  }
  0x1b   :  { %v1395_v14 = vld [vmem:[%s1760_s0 + $0x88] ss:$20 sps:$4 sm:$0xff]  }
  0x1c   :  { %1122 = vmatpush3.bf16.msra.mxu0 %v1327_v26  ;;  %v1396_v15 = vld [vmem:[%s1760_s0 + $0x128] ss:$20 sps:$4 sm:$0xff]  }
  0x1d   :  { %1186 = vmatpush3.bf16.msra.mxu1 %v1328_v27  ;;  %1123 = vmatprep.subr.bf16.mxu0 %v1329_v28 }
  0x1e   :  { %1187 = vmatprep.subr.bf16.mxu1 %v1330_v29 }
  0x20   :  { %1124 = vmatpush3.bf16.msra.mxu0 %v1331_v30 }
  0x21   :  { %1188 = vmatpush3.bf16.msra.mxu1 %v1332_v31  ;;  %1253 = vmatprep.subr.bf16.mxu0 %v1339_v36 }
  0x22   :  { %1285 = vmatprep.subr.bf16.mxu1 %v1339_v36 }
  0x23   :  { %660 = vmatmul.mubr.bf16.vlgmr.msra.gmra.mrb[0].mxu0 %v1333_v32 }
  0x24   :  { %757 = vmatmul.mubr.bf16.vlgmr.msra.gmra.mrb[0].mxu1 %v1336_v34  ;;  %1254 = vmatpush3.bf16.msra.mxu0 %v1339_v36 }
  0x25   :  { %1293 = vmatpush3.bf16.msra.mxu1 %v1339_v36  ;;  %667 = vmatprep.mubr.bf16.mxu0 %v1340_v37 }
  0x26   :  { %764 = vmatprep.mubr.bf16.mxu1 %v1342_v38  ;;  %1255 = vmatprep.subr.bf16.mxu0 %v1346_v39 }
  0x27   :  { %1286 = vmatprep.subr.bf16.mxu1 %v1346_v39 }
  0x28   :  { %1256 = vmatpush3.bf16.msra.mxu0 %v1346_v39 }
  0x29   :  { %1294 = vmatpush3.bf16.msra.mxu1 %v1346_v39  ;;  %1257 = vmatprep.subr.bf16.mxu0 %v1353_v44 }
  0x2a   :  { %1287 = vmatprep.subr.bf16.mxu1 %v1353_v44 }
  0x2b   :  { %668 = vmatmul.mubr.bf16.gmra.mrb[4].mxu0 %v1344_v40 }
  0x2c   :  { %765 = vmatmul.mubr.bf16.gmra.mrb[4].mxu1 %v1345_v41  ;;  %675 = vmatprep.mubr.bf16.mxu0 %v1347_v42 }
  0x2d   :  { %772 = vmatprep.mubr.bf16.mxu1 %v1349_v43  ;;  %1258 = vmatpush3.bf16.msra.mxu0 %v1353_v44 }
  0x2e   :  { %1295 = vmatpush3.bf16.msra.mxu1 %v1353_v44  ;;  %1259 = vmatprep.subr.bf16.mxu0 %v1360_v45 }
  0x2f   :  { %1288 = vmatprep.subr.bf16.mxu1 %v1360_v45 }
  0x31   :  { %1260 = vmatpush3.bf16.msra.mxu0 %v1360_v45 }
  0x32   :  { %1296 = vmatpush3.bf16.msra.mxu1 %v1360_v45  ;;  %1261 = vmatprep.subr.bf16.mxu0 %v1367_v50 }
  0x33   :  { %676 = vmatmul.mubr.bf16.gmra.mrb[8].mxu0 %v1351_v46  ;;  %1289 = vmatprep.subr.bf16.mxu1 %v1367_v50 }
  0x34   :  { %773 = vmatmul.mubr.bf16.gmra.mrb[8].mxu1 %v1352_v47  ;;  %683 = vmatprep.mubr.bf16.mxu0 %v1354_v48 }
  0x35   :  { %780 = vmatprep.mubr.bf16.mxu1 %v1356_v49  ;;  %1262 = vmatpush3.bf16.msra.mxu0 %v1367_v50 }
  0x36   :  { %1297 = vmatpush3.bf16.msra.mxu1 %v1367_v50  ;;  %1263 = vmatprep.subr.bf16.mxu0 %v1374_v51 }
  0x37   :  { %1290 = vmatprep.subr.bf16.mxu1 %v1374_v51 }
  0x39   :  { %1264 = vmatpush3.bf16.msra.mxu0 %v1374_v51 }
  0x3a   :  { %1298 = vmatpush3.bf16.msra.mxu1 %v1374_v51  ;;  %1265 = vmatprep.subr.bf16.mxu0 %v1381_v55 }
  0x3b   :  { %684 = vmatmul.mubr.bf16.gmra.mrb[12].mxu0 %v1358_v52  ;;  %1291 = vmatprep.subr.bf16.mxu1 %v1381_v55 }
  0x3c   :  { %781 = vmatmul.mubr.bf16.gmra.mrb[12].mxu1 %v1359_v53  ;;  %691 = vmatprep.mubr.bf16.mxu0 %v1361_v54 }
  0x3d   :  { %788 = vmatprep.mubr.bf16.mxu1 %v1363_v56  ;;  %1266 = vmatpush3.bf16.msra.mxu0 %v1381_v55 }
  0x3e   :  { %1299 = vmatpush3.bf16.msra.mxu1 %v1381_v55  ;;  %1267 = vmatprep.subr.bf16.mxu0 %v1388_v57 }
  0x3f   :  { %1292 = vmatprep.subr.bf16.mxu1 %v1388_v57 }
  0x41   :  { %1268 = vmatpush3.bf16.msra.mxu0 %v1388_v57 }
  0x42   :  { %1300 = vmatpush3.bf16.msra.mxu1 %v1388_v57 }
  0x43   :  { %692 = vmatmul.mubr.bf16.gmra.mrb[16].mxu0 %v1365_v58 }
  0x44   :  { %789 = vmatmul.mubr.bf16.gmra.mrb[16].mxu1 %v1366_v59  ;;  %699 = vmatprep.mubr.bf16.mxu0 %v1368_v60 }
  0x45   :  { %796 = vmatprep.mubr.bf16.mxu1 %v1370_v61 }
  0x4b   :  { %700 = vmatmul.mubr.bf16.gmra.mrb[20].mxu0 %v1372_v62 }
  0x4c   :  { %797 = vmatmul.mubr.bf16.gmra.mrb[20].mxu1 %v1373_v63  ;;  %707 = vmatprep.mubr.bf16.mxu0 %v1375_v0 }
  0x4d   :  { %804 = vmatprep.mubr.bf16.mxu1 %v1377_v1 }
  0x53   :  { %708 = vmatmul.mubr.bf16.gmra.mrb[24].mxu0 %v1379_v2 }
  0x54   :  { %805 = vmatmul.mubr.bf16.gmra.mrb[24].mxu1 %v1380_v3  ;;  %715 = vmatprep.mubr.bf16.mxu0 %v1382_v4 }
  0x55   :  { %812 = vmatprep.mubr.bf16.mxu1 %v1384_v5 }
  0x5b   :  { %716 = vmatmul.mubr.bf16.gmra.mrb[28].mxu0 %v1386_v6 }
  0x5c   :  { %813 = vmatmul.mubr.bf16.gmra.mrb[28].mxu1 %v1387_v7  ;;  %1269 = vmatprep.mubr.bf16.mxu0 %v1389_v8 }
  0x5d   :  { %1277 = vmatprep.mubr.bf16.mxu1 %v1390_v9 }
  0x63   :  { %1270 = vmatmul.mubr.bf16.vlgmr.msra.gmra.mrb[32].mxu0 %v1391_v10 }
  0x64   :  { %1278 = vmatmul.mubr.bf16.vlgmr.msra.gmra.mrb[32].mxu1 %v1392_v11  ;;  %1273 = vmatprep.mubr.bf16.mxu0 %v1393_v12 }
  0x65   :  { %1281 = vmatprep.mubr.bf16.mxu1 %v1394_v13 }
  0x6b   :  { %1274 = vmatmul.mubr.bf16.gmra.mrb[36].mxu0 %v1395_v14 }
  0x6c   :  { %1282 = vmatmul.mubr.bf16.gmra.mrb[36].mxu1 %v1396_v15 }
  0xf6   :  { %v1125_v16 = vpop.f32.mrb[0].mxu0 }
  0xf7   :  { %v1189_v17 = vpop.f32.mrb[0].mxu1  ;;  %v1126_v18 = vpop.f32.mrb[1].mxu0 }
  0xf8   :  { %v1127_v19 = vadd.f32 %v1126_v18, %v1125_v16  ;;  %v1190_v20 = vpop.f32.mrb[1].mxu1  ;;  %v1128_v21 = vpop.f32.mrb[2].mxu0 }
  0xf9   :  { %v1191_v22 = vadd.f32 %v1190_v20, %v1189_v17  ;;  %v1192_v23 = vpop.f32.mrb[2].mxu1  ;;  %v1129_v24 = vpop.f32.mrb[3].mxu0 }
  0xfa   :  { %v1130_v25 = vadd.f32 %v1129_v24, %v1128_v21  ;;  %v1193_v26 = vpop.f32.mrb[3].mxu1 }
  0xfb   :  { %v1194_v27 = vadd.f32 %v1193_v26, %v1192_v23  ;;  %v1657_v28 = vadd.f32 %v1191_v22, %v1127_v19 }
  0xfd   :  { %v1659_v29 = vadd.f32 %v1194_v27, %v1130_v25 }
  0xfe   :  { %v1131_v30 = vpop.f32.mrb[4].mxu0 }
  0xff   :  { %v1195_v31 = vpop.f32.mrb[4].mxu1  ;;  %v1132_v32 = vpop.f32.mrb[5].mxu0 }
 0x100   :  { %v1133_v33 = vadd.f32 %v1132_v32, %v1131_v30  ;;  %v1196_v34 = vpop.f32.mrb[5].mxu1  ;;  %v1134_v35 = vpop.f32.mrb[6].mxu0 }
 0x101   :  { %v1197_v36 = vadd.f32 %v1196_v34, %v1195_v31  ;;  %v1198_v37 = vpop.f32.mrb[6].mxu1  ;;  %v1135_v38 = vpop.f32.mrb[7].mxu0 }
 0x102   :  { %v1136_v39 = vadd.f32 %v1135_v38, %v1134_v35  ;;  %v1199_v40 = vpop.f32.mrb[7].mxu1 }
 0x103   :  { %v1200_v41 = vadd.f32 %v1199_v40, %v1198_v37  ;;  %v1661_v42 = vadd.f32 %v1197_v36, %v1133_v33 }
 0x105   :  { %v1663_v43 = vadd.f32 %v1200_v41, %v1136_v39 }
 0x106   :  { %v1137_v44 = vpop.f32.mrb[8].mxu0 }
 0x107   :  { %v1201_v45 = vpop.f32.mrb[8].mxu1  ;;  %v1138_v46 = vpop.f32.mrb[9].mxu0 }
 0x108   :  { %v1139_v47 = vadd.f32 %v1138_v46, %v1137_v44  ;;  %v1202_v48 = vpop.f32.mrb[9].mxu1  ;;  %v1140_v49 = vpop.f32.mrb[10].mxu0 }
 0x109   :  { %v1203_v50 = vadd.f32 %v1202_v48, %v1201_v45  ;;  %v1204_v51 = vpop.f32.mrb[10].mxu1  ;;  %v1141_v52 = vpop.f32.mrb[11].mxu0 }
 0x10a   :  { %v1142_v53 = vadd.f32 %v1141_v52, %v1140_v49  ;;  %v1205_v54 = vpop.f32.mrb[11].mxu1 }
 0x10b   :  { %v1206_v55 = vadd.f32 %v1205_v54, %v1204_v51  ;;  %v1665_v56 = vadd.f32 %v1203_v50, %v1139_v47 }
 0x10d   :  { %v1667_v57 = vadd.f32 %v1206_v55, %v1142_v53 }
 0x10e   :  { %v1143_v58 = vpop.f32.mrb[12].mxu0 }
 0x10f   :  { %v1207_v59 = vpop.f32.mrb[12].mxu1  ;;  %v1144_v60 = vpop.f32.mrb[13].mxu0 }
 0x110   :  { %v1145_v61 = vadd.f32 %v1144_v60, %v1143_v58  ;;  %v1208_v62 = vpop.f32.mrb[13].mxu1  ;;  %v1146_v63 = vpop.f32.mrb[14].mxu0 }
 0x111   :  { %v1209_v0 = vadd.f32 %v1208_v62, %v1207_v59  ;;  %v1210_v1 = vpop.f32.mrb[14].mxu1  ;;  %v1147_v2 = vpop.f32.mrb[15].mxu0 }
 0x112   :  { %v1148_v3 = vadd.f32 %v1147_v2, %v1146_v63  ;;  %v1211_v4 = vpop.f32.mrb[15].mxu1 }
 0x113   :  { %v1212_v5 = vadd.f32 %v1211_v4, %v1210_v1  ;;  %v1669_v6 = vadd.f32 %v1209_v0, %v1145_v61 }
 0x115   :  { %v1671_v7 = vadd.f32 %v1212_v5, %v1148_v3 }
 0x116   :  { %v1149_v8 = vpop.f32.mrb[16].mxu0 }
 0x117   :  { %v1213_v9 = vpop.f32.mrb[16].mxu1  ;;  %v1150_v10 = vpop.f32.mrb[17].mxu0 }
 0x118   :  { %v1151_v11 = vadd.f32 %v1150_v10, %v1149_v8  ;;  %v1214_v12 = vpop.f32.mrb[17].mxu1  ;;  %v1152_v13 = vpop.f32.mrb[18].mxu0 }
 0x119   :  { %v1215_v14 = vadd.f32 %v1214_v12, %v1213_v9  ;;  %v1216_v15 = vpop.f32.mrb[18].mxu1  ;;  %v1153_v16 = vpop.f32.mrb[19].mxu0  ;;  %v1682_v9 = vld [vmem:[%s1761_s2] ss:$0 sm:$0xff] }
 0x11a   :  { %v1154_v17 = vadd.f32 %v1153_v16, %v1152_v13  ;;  %v1217_v18 = vpop.f32.mrb[19].mxu1 }
 0x11b   :  { %v1218_v19 = vadd.f32 %v1217_v18, %v1216_v15  ;;  %v791_v20 = vadd.f32 %v1215_v14, %v1151_v11 }
 0x11d   :  { %v1673_v21 = vadd.f32 %v1218_v19, %v1154_v17 }
 0x11e   :  { %v1155_v22 = vpop.f32.mrb[20].mxu0 }
 0x11f   :  { %v1219_v23 = vpop.f32.mrb[20].mxu1  ;;  %v1156_v24 = vpop.f32.mrb[21].mxu0 }
 0x120   :  { %v1157_v25 = vadd.f32 %v1156_v24, %v1155_v22  ;;  %v1220_v26 = vpop.f32.mrb[21].mxu1  ;;  %v1158_v27 = vpop.f32.mrb[22].mxu0 }
 0x121   :  { %v1221_v30 = vadd.f32 %v1220_v26, %v1219_v23  ;;  %v1222_v31 = vpop.f32.mrb[22].mxu1  ;;  %v1159_v32 = vpop.f32.mrb[23].mxu0 }
 0x122   :  { %v1160_v33 = vadd.f32 %v1159_v32, %v1158_v27  ;;  %v1223_v34 = vpop.f32.mrb[23].mxu1 }
 0x123   :  { %v1224_v35 = vadd.f32 %v1223_v34, %v1222_v31  ;;  %v799_v36 = vadd.f32 %v1221_v30, %v1157_v25 }
 0x125   :  { %v802_v37 = vadd.f32 %v1224_v35, %v1160_v33 }
 0x126   :  { %v1161_v38 = vpop.f32.mrb[24].mxu0 }
 0x127   :  { %v1225_v39 = vpop.f32.mrb[24].mxu1  ;;  %v1162_v40 = vpop.f32.mrb[25].mxu0 }
 0x128   :  { %v1163_v41 = vadd.f32 %v1162_v40, %v1161_v38  ;;  %v1226_v44 = vpop.f32.mrb[25].mxu1  ;;  %v1164_v45 = vpop.f32.mrb[26].mxu0 }
 0x129   :  { %v1227_v46 = vadd.f32 %v1226_v44, %v1225_v39  ;;  %v1228_v47 = vpop.f32.mrb[26].mxu1  ;;  %v1165_v48 = vpop.f32.mrb[27].mxu0 }
 0x12a   :  { %v1166_v49 = vadd.f32 %v1165_v48, %v1164_v45  ;;  %v1229_v50 = vpop.f32.mrb[27].mxu1 }
 0x12b   :  { %v1230_v51 = vadd.f32 %v1229_v50, %v1228_v47  ;;  %v1675_v52 = vadd.f32 %v1227_v46, %v1163_v41 }
 0x12d   :  { %v1677_v53 = vadd.f32 %v1230_v51, %v1166_v49 }
 0x12e   :  { %v1167_v54 = vpop.f32.mrb[28].mxu0 }
 0x12f   :  { %v1231_v55 = vpop.f32.mrb[28].mxu1  ;;  %v1168_v58 = vpop.f32.mrb[29].mxu0 }
 0x130   :  { %v1169_v59 = vadd.f32 %v1168_v58, %v1167_v54  ;;  %v1232_v60 = vpop.f32.mrb[29].mxu1  ;;  %v1170_v61 = vpop.f32.mrb[30].mxu0 }
 0x131   :  { %v1233_v62 = vadd.f32 %v1232_v60, %v1231_v55  ;;  %v1234_v63 = vpop.f32.mrb[30].mxu1  ;;  %v1171_v0 = vpop.f32.mrb[31].mxu0 }
 0x132   :  { %v1172_v1 = vadd.f32 %v1171_v0, %v1170_v61  ;;  %v1235_v2 = vpop.f32.mrb[31].mxu1 }
 0x133   :  { %v1236_v3 = vadd.f32 %v1235_v2, %v1234_v63  ;;  %v815_v4 = vadd.f32 %v1233_v62, %v1169_v59 }
 0x135   :  { %v818_v5 = vadd.f32 %v1236_v3, %v1172_v1 }
 0x136   :  { %v1271_v8 = vpop.f32.mrb[32].mxu0 }
 0x137   :  { %v864_v10 = vadd.f32 %v1271_v8, %v1661_v42  ;;  %v1279_v11 = vpop.f32.mrb[32].mxu1  ;;  %v855_v12 = vpop.f32.mrb[33].mxu0 }
 0x138   :  { %v896_v13 = vadd.f32 %v1279_v11, %v799_v36  ;;  %v856_v14 = vadd.f32 %v855_v12, %v1657_v28  ;;  %v887_v15 = vpop.f32.mrb[33].mxu1  ;;  %v1272_v16 = vpop.f32.mrb[34].mxu0 }
 0x139   :  { %v978_v17 = vadd.f32 %v1682_v9, %v864_v10  ;;  %v888_v18 = vadd.f32 %v887_v15, %v791_v20  ;;  %v867_v19 = vadd.f32 %v1272_v16, %v1663_v43  ;;  %v1280_v22 = vpop.f32.mrb[34].mxu1  ;;  %v858_v23 = vpop.f32.mrb[35].mxu0 }
 0x13a   :  { %v986_v24 = vadd.f32 %v1682_v9, %v896_v13  ;;  %v976_v25 = vadd.f32 %v1682_v9, %v856_v14  ;;  %v899_v26 = vadd.f32 %v1280_v22, %v802_v37  ;;  %v859_v42 = vadd.f32 %v858_v23, %v1659_v29  ;;  %v890_v27 = vpop.f32.mrb[35].mxu1 }
 0x13b   :  { %v994_v30 = vmax.f32 %v978_v17, 0.0  ;;  %v984_v28 = vadd.f32 %v1682_v9, %v888_v18  ;;  %v979_v31 = vadd.f32 %v1682_v9, %v867_v19  ;;  %v891_v32 = vadd.f32 %v890_v27, %v1673_v21 }
 0x13c   :  { %v1002_v20 = vmax.f32 %v986_v24, 0.0  ;;  %v992_v33 = vmax.f32 %v976_v25, 0.0  ;;  %v987_v43 = vadd.f32 %v1682_v9, %v899_v26  ;;  %v977_v34 = vadd.f32 %v1682_v9, %v859_v42 }
 0x13d   :  { %1010 = vst [vmem:[%s1762_s3 + $0x10] sm:$0xff] %v994_v30  ;;  %v1000_v35 = vmax.f32 %v984_v28, 0.0  ;;  %v995_v29 = vmax.f32 %v979_v31, 0.0  ;;  %v985_v36 = vadd.f32 %v1682_v9, %v891_v32 }
 0x13e   :  { %1018 = vst [vmem:[%s1762_s3 + $0x50] sm:$0xff] %v1002_v20  ;;  %1008 = vst [vmem:[%s1762_s3] sm:$0xff] %v992_v33  ;;  %v1003_v21 = vmax.f32 %v987_v43, 0.0  ;;  %v993_v37 = vmax.f32 %v977_v34, 0.0  ;;  %v1275_v38 = vpop.f32.mrb[36].mxu0 }
 0x13f   :  { %1016 = vst [vmem:[%s1762_s3 + $0x40] sm:$0xff] %v1000_v35  ;;  %1011 = vst [vmem:[%s1762_s3 + $0x18] sm:$0xff] %v995_v29  ;;  %v1001_v39 = vmax.f32 %v985_v36, 0.0  ;;  %v880_v40 = vadd.f32 %v1275_v38, %v1669_v6  ;;  %v1283_v41 = vpop.f32.mrb[36].mxu1  ;;  %v871_v44 = vpop.f32.mrb[37].mxu0 }
 0x140   :  { %1019 = vst [vmem:[%s1762_s3 + $0x58] sm:$0xff] %v1003_v21  ;;  %1009 = vst [vmem:[%s1762_s3 + $0x8] sm:$0xff] %v993_v37  ;;  %v912_v45 = vadd.f32 %v1283_v41, %v815_v4  ;;  %v872_v46 = vadd.f32 %v871_v44, %v1665_v56  ;;  %v903_v47 = vpop.f32.mrb[37].mxu1  ;;  %v1276_v48 = vpop.f32.mrb[38].mxu0 }
 0x141   :  { %1017 = vst [vmem:[%s1762_s3 + $0x48] sm:$0xff] %v1001_v39  ;;  %v982_v6 = vadd.f32 %v1682_v9, %v880_v40  ;;  %v904_v49 = vadd.f32 %v903_v47, %v1675_v52  ;;  %v883_v50 = vadd.f32 %v1276_v48, %v1671_v7  ;;  %v1284_v51 = vpop.f32.mrb[38].mxu1  ;;  %v874_v54 = vpop.f32.mrb[39].mxu0 }
 0x142   :  { %v990_v55 = vadd.f32 %v1682_v9, %v912_v45  ;;  %v980_v58 = vadd.f32 %v1682_v9, %v872_v46  ;;  %v915_v59 = vadd.f32 %v1284_v51, %v818_v5  ;;  %v875_v56 = vadd.f32 %v874_v54, %v1667_v57  ;;  %v906_v60 = vpop.f32.mrb[39].mxu1 }
 0x143   :  { %v998_v61 = vmax.f32 %v982_v6, 0.0  ;;  %v988_v62 = vadd.f32 %v1682_v9, %v904_v49  ;;  %v983_v63 = vadd.f32 %v1682_v9, %v883_v50  ;;  %v907_v0 = vadd.f32 %v906_v60, %v1677_v53 }
 0x144   :  { %v1006_v52 = vmax.f32 %v990_v55, 0.0  ;;  %v996_v1 = vmax.f32 %v980_v58, 0.0  ;;  %v991_v7 = vadd.f32 %v1682_v9, %v915_v59  ;;  %v981_v2 = vadd.f32 %v1682_v9, %v875_v56 }
 0x145   :  { %1014 = vst [vmem:[%s1762_s3 + $0x30] sm:$0xff] %v998_v61  ;;  %v1004_v3 = vmax.f32 %v988_v62, 0.0  ;;  %v999_v57 = vmax.f32 %v983_v63, 0.0  ;;  %v989_v4 = vadd.f32 %v1682_v9, %v907_v0 }
 0x146   :  { %1022 = vst [vmem:[%s1762_s3 + $0x70] sm:$0xff] %v1006_v52  ;;  %1012 = vst [vmem:[%s1762_s3 + $0x20] sm:$0xff] %v996_v1  ;;  %v1007_v53 = vmax.f32 %v991_v7, 0.0  ;;  %v997_v5 = vmax.f32 %v981_v2, 0.0 }
 0x147   :  { %1020 = vst [vmem:[%s1762_s3 + $0x60] sm:$0xff] %v1004_v3  ;;  %1015 = vst [vmem:[%s1762_s3 + $0x38] sm:$0xff] %v999_v57  ;;  %v1005_v8 = vmax.f32 %v989_v4, 0.0 }
 0x148   :  { %1023 = vst [vmem:[%s1762_s3 + $0x78] sm:$0xff] %v1007_v53  ;;  %1013 = vst [vmem:[%s1762_s3 + $0x28] sm:$0xff] %v997_v5 }
 0x149   :  { %1021 = vst [vmem:[%s1762_s3 + $0x68] sm:$0xff] %v1005_v8 }

// kernel: reseg_forward.25
= control target key start
LH: loop header
LB: loop body
LE: loop exit
PB: predicated region body
PF: predicated region fallthrough
CT: control target
= control target key end

     0   :  { %vm72_vm0 = vcmask 1041408   ;;  %vm393_vm1 = vcmask 1041409   ;;  %vm395_vm2 = vcmask 1042434   ;;  %vm397_vm3 = vcmask 1043459   ;;  %s754_s0 = inlined_call_operand.vmem [shape: f32[16,4,2,128], index: 0, kind: input, shape index: {}]   ;;  %s755_s1 = inlined_call_operand.vmem [shape: f32[8,4,128], index: 1, kind: output, shape index: {}]  }
   0x1   :  { %v8_v0 = vld [vmem:[%s754_s0] sm:$0x3]  ;;  %v9_v1 = vld [vmem:[%s754_s0 + $0x2] sm:$0x3]  ;;  %v10_v2 = vld [vmem:[%s754_s0 + $0x4] sm:$0x3] }
   0x2   :  { %v11_v3 = vld [vmem:[%s754_s0 + $0x6] sm:$0x3]  ;;  %v12_v4 = vld [vmem:[%s754_s0 + $0x8] sm:$0x3]  ;;  %v13_v5 = vld [vmem:[%s754_s0 + $0xa] sm:$0x3] }
   0x3   :  { %v14_v6 = vld [vmem:[%s754_s0 + $0xc] sm:$0x3]  ;;  %v15_v7 = vld [vmem:[%s754_s0 + $0xe] sm:$0x3]  ;;  %v73_v8 = vsel %vm72_vm0, %v8_v0, -inf  ;;  %v74_v9 = vsel %vm72_vm0, %v12_v4, -inf }
   0x4   :  { %v75_v10 = vmax.f32 %v73_v8, %v74_v9  ;;  %v82_v11 = vsel %vm72_vm0, %v9_v1, -inf  ;;  %v83_v12 = vsel %vm72_vm0, %v13_v5, -inf  ;;  %v91_v13 = vsel %vm72_vm0, %v10_v2, -inf  ;;  %v16_v14 = vld [vmem:[%s754_s0 + $0x10] sm:$0x3] }
   0x5   :  { %v84_v15 = vmax.f32 %v82_v11, %v83_v12  ;;  %v92_v16 = vsel %vm72_vm0, %v14_v6, -inf  ;;  %v100_v17 = vsel %vm72_vm0, %v11_v3, -inf  ;;  %v101_v18 = vsel %vm72_vm0, %v15_v7, -inf  ;;  %v17_v19 = vld [vmem:[%s754_s0 + $0x12] sm:$0x3] }
   0x6   :  { %v76_v20 = vrot.slane %v75_v10, 4  ;;  %v93_v21 = vmax.f32 %v91_v13, %v92_v16  ;;  %v102_v22 = vmax.f32 %v100_v17, %v101_v18  ;;  %v18_v23 = vld [vmem:[%s754_s0 + $0x14] sm:$0x3]  ;;  %v19_v24 = vld [vmem:[%s754_s0 + $0x16] sm:$0x3]  ;;  %v109_v28 = vsel %vm72_vm0, %v16_v14, -inf }
   0x7   :  { %v85_v25 = vrot.slane %v84_v15, 4  ;;  %v20_v26 = vld [vmem:[%s754_s0 + $0x18] sm:$0x3]  ;;  %v21_v27 = vld [vmem:[%s754_s0 + $0x1a] sm:$0x3]  ;;  %v118_v33 = vsel %vm72_vm0, %v17_v19, -inf }
   0x8   :  { %v77_v29 = vmax.f32 %v75_v10, %v76_v20  ;;  %v94_v30 = vrot.slane %v93_v21, 4  ;;  %v103_v31 = vrot.slane %v102_v22, 4  ;;  %v22_v32 = vld [vmem:[%s754_s0 + $0x1c] sm:$0x3]  ;;  %v110_v35 = vsel %vm72_vm0, %v20_v26, -inf }
   0x9   :  { %v86_v34 = vmax.f32 %v84_v15, %v85_v25  ;;  %v119_v36 = vsel %vm72_vm0, %v21_v27, -inf  ;;  %v127_v37 = vsel %vm72_vm0, %v18_v23, -inf  ;;  %v23_v41 = vld [vmem:[%s754_s0 + $0x1e] sm:$0x3]  ;;  %v111_v42 = vmax.f32 %v109_v28, %v110_v35  ;;  %v24_v63 = vld [vmem:[%s754_s0 + $0x20] sm:$0x3] }
   0xa   :  { %v78_v38 = vrot.slane %v77_v29, 2  ;;  %v95_v39 = vmax.f32 %v93_v21, %v94_v30  ;;  %v104_v40 = vmax.f32 %v102_v22, %v103_v31  ;;  %v120_v44 = vmax.f32 %v118_v33, %v119_v36  ;;  %v25_v8 = vld [vmem:[%s754_s0 + $0x22] sm:$0x3]  ;;  %v28_v9 = vld [vmem:[%s754_s0 + $0x28] sm:$0x3] }
   0xb   :  { %v87_v43 = vrot.slane %v86_v34, 2  ;;  %v128_v45 = vsel %vm72_vm0, %v22_v32, -inf  ;;  %v136_v46 = vsel %vm72_vm0, %v19_v24, -inf  ;;  %v112_v50 = vrot.slane %v111_v42, 4  ;;  %v26_v18 = vld [vmem:[%s754_s0 + $0x24] sm:$0x3] }
   0xc   :  { %v79_v47 = vmax.f32 %v77_v29, %v78_v38  ;;  %v96_v48 = vrot.slane %v95_v39, 2  ;;  %v105_v49 = vrot.slane %v104_v40, 2  ;;  %v121_v52 = vrot.slane %v120_v44, 4  ;;  %v29_v19 = vld [vmem:[%s754_s0 + $0x2a] sm:$0x3] }
   0xd   :  { %v88_v51 = vmax.f32 %v86_v34, %v87_v43  ;;  %v129_v53 = vmax.f32 %v127_v37, %v128_v45  ;;  %v137_v54 = vsel %vm72_vm0, %v23_v41, -inf  ;;  %v113_v58 = vmax.f32 %v111_v42, %v112_v50  ;;  %v27_v22 = vld [vmem:[%s754_s0 + $0x26] sm:$0x3]  ;;  %v30_v29 = vld [vmem:[%s754_s0 + $0x2c] sm:$0x3] }
   0xe   :  { %v80_v55 = vrot.slane %v79_v47, 1  ;;  %v97_v56 = vmax.f32 %v95_v39, %v96_v48  ;;  %v106_v57 = vmax.f32 %v104_v40, %v105_v49  ;;  %v122_v60 = vmax.f32 %v120_v44, %v121_v52  ;;  %v31_v30 = vld [vmem:[%s754_s0 + $0x2e] sm:$0x3]  ;;  %v32_v39 = vld [vmem:[%s754_s0 + $0x30] sm:$0x3] }
   0xf   :  { %v89_v59 = vrot.slane %v88_v51, 1  ;;  %v130_v61 = vrot.slane %v129_v53, 4  ;;  %v138_v62 = vmax.f32 %v136_v46, %v137_v54  ;;  %v114_v3 = vrot.slane %v113_v58, 2  ;;  %v36_v44 = vld [vmem:[%s754_s0 + $0x38] sm:$0x3] }
  0x10   :  { %v81_v0 = vmax.f32 %v79_v47, %v80_v55  ;;  %v98_v1 = vrot.slane %v97_v56, 1  ;;  %v107_v2 = vrot.slane %v106_v57, 1  ;;  %v123_v5 = vrot.slane %v122_v60, 2  ;;  %v33_v52 = vld [vmem:[%s754_s0 + $0x32] sm:$0x3] }
  0x11   :  { %v90_v4 = vmax.f32 %v88_v51, %v89_v59  ;;  %v131_v6 = vmax.f32 %v129_v53, %v130_v61  ;;  %v139_v7 = vrot.slane %v138_v62, 4  ;;  %v115_v12 = vmax.f32 %v113_v58, %v114_v3  ;;  %v37_v53 = vld [vmem:[%s754_s0 + $0x3a] sm:$0x3]  ;;  %v34_v58 = vld [vmem:[%s754_s0 + $0x34] sm:$0x3] }
  0x12   :  { %v99_v10 = vmax.f32 %v97_v56, %v98_v1  ;;  %v108_v11 = vmax.f32 %v106_v57, %v107_v2  ;;  %v145_v13 = vsel %vm72_vm0, %v24_v63, -inf  ;;  %v124_v15 = vmax.f32 %v122_v60, %v123_v5  ;;  %v38_v63 = vld [vmem:[%s754_s0 + $0x3c] sm:$0x3] }
  0x13   :  { %v394_v14 = vsel %vm393_vm1, %v90_v4, %v81_v0  ;;  %v132_v16 = vrot.slane %v131_v6, 2  ;;  %v140_v17 = vmax.f32 %v138_v62, %v139_v7  ;;  %v116_v21 = vrot.slane %v115_v12, 1 }
  0x14   :  { %v396_v20 = vsel %vm395_vm2, %v99_v10, %v394_v14  ;;  %v146_v23 = vsel %vm72_vm0, %v28_v9, -inf  ;;  %v154_v24 = vsel %vm72_vm0, %v25_v8, -inf  ;;  %v125_v26 = vrot.slane %v124_v15, 1  ;;  %v35_v8 = vld [vmem:[%s754_s0 + $0x36] sm:$0x3] }
  0x15   :  { %v398_v25 = vsel %vm397_vm3, %v108_v11, %v396_v20  ;;  %v133_v27 = vmax.f32 %v131_v6, %v132_v16  ;;  %v141_v28 = vrot.slane %v140_v17, 2  ;;  %v117_v31 = vmax.f32 %v115_v12, %v116_v21 }
  0x16   :  { %428 = vst [vmem:[%s755_s1] sm:$0xf] %v398_v25  ;;  %v147_v32 = vmax.f32 %v145_v13, %v146_v23  ;;  %v155_v33 = vsel %vm72_vm0, %v29_v19, -inf  ;;  %v163_v34 = vsel %vm72_vm0, %v26_v18, -inf  ;;  %v126_v35 = vmax.f32 %v124_v15, %v125_v26 }
  0x17   :  { %v134_v36 = vrot.slane %v133_v27, 1  ;;  %v142_v37 = vmax.f32 %v140_v17, %v141_v28  ;;  %v156_v38 = vmax.f32 %v154_v24, %v155_v33  ;;  %v164_v41 = vsel %vm72_vm0, %v30_v29, -inf  ;;  %v39_v17 = vld [vmem:[%s754_s0 + $0x3e] sm:$0x3] }
  0x18   :  { %v148_v40 = vrot.slane %v147_v32, 4  ;;  %v172_v42 = vsel %vm72_vm0, %v27_v22, -inf  ;;  %v173_v43 = vsel %vm72_vm0, %v31_v30, -inf  ;;  %v399_v47 = vsel %vm393_vm1, %v126_v35, %v117_v31 }
  0x19   :  { %v135_v45 = vmax.f32 %v133_v27, %v134_v36  ;;  %v143_v46 = vrot.slane %v142_v37, 1  ;;  %v157_v48 = vrot.slane %v156_v38, 4  ;;  %v165_v50 = vmax.f32 %v163_v34, %v164_v41  ;;  %v40_v27 = vld [vmem:[%s754_s0 + $0x40] sm:$0x3]  ;;  %v41_v36 = vld [vmem:[%s754_s0 + $0x42] sm:$0x3] }
  0x1a   :  { %v149_v49 = vmax.f32 %v147_v32, %v148_v40  ;;  %v174_v51 = vmax.f32 %v172_v42, %v173_v43  ;;  %v181_v54 = vsel %vm72_vm0, %v32_v39, -inf  ;;  %v182_v59 = vsel %vm72_vm0, %v36_v44, -inf }
  0x1b   :  { %v144_v55 = vmax.f32 %v142_v37, %v143_v46  ;;  %v400_v56 = vsel %vm395_vm2, %v135_v45, %v399_v47  ;;  %v158_v57 = vmax.f32 %v156_v38, %v157_v48  ;;  %v166_v61 = vrot.slane %v165_v50, 4  ;;  %v44_v37 = vld [vmem:[%s754_s0 + $0x48] sm:$0x3]  ;;  %v45_v46 = vld [vmem:[%s754_s0 + $0x4a] sm:$0x3] }
  0x1c   :  { %v150_v60 = vrot.slane %v149_v49, 2  ;;  %v175_v62 = vrot.slane %v174_v51, 4  ;;  %v183_v0 = vmax.f32 %v181_v54, %v182_v59  ;;  %v190_v3 = vsel %vm72_vm0, %v33_v52, -inf }
  0x1d   :  { %v401_v1 = vsel %vm397_vm3, %v144_v55, %v400_v56  ;;  %v159_v2 = vrot.slane %v158_v57, 2  ;;  %v191_v4 = vsel %vm72_vm0, %v37_v53, -inf  ;;  %v167_v6 = vmax.f32 %v165_v50, %v166_v61  ;;  %v43_v55 = vld [vmem:[%s754_s0 + $0x46] sm:$0x3]  ;;  %v46_v56 = vld [vmem:[%s754_s0 + $0x4c] sm:$0x3] }
  0x1e   :  { %429 = vst [vmem:[%s755_s1 + $0x4] sm:$0xf] %v401_v1  ;;  %v151_v5 = vmax.f32 %v149_v49, %v150_v60  ;;  %v176_v7 = vmax.f32 %v174_v51, %v175_v62  ;;  %v184_v9 = vrot.slane %v183_v0, 4  ;;  %v192_v11 = vmax.f32 %v190_v3, %v191_v4  ;;  %v42_v49 = vld [vmem:[%s754_s0 + $0x44] sm:$0x3] }
  0x1f   :  { %v160_v10 = vmax.f32 %v158_v57, %v159_v2  ;;  %v199_v12 = vsel %vm72_vm0, %v34_v58, -inf  ;;  %v200_v13 = vsel %vm72_vm0, %v38_v63, -inf  ;;  %v168_v15 = vrot.slane %v167_v6, 2  ;;  %v47_v61 = vld [vmem:[%s754_s0 + $0x4e] sm:$0x3] }
  0x20   :  { %v152_v14 = vrot.slane %v151_v5, 1  ;;  %v177_v16 = vrot.slane %v176_v7, 2  ;;  %v185_v18 = vmax.f32 %v183_v0, %v184_v9  ;;  %v193_v20 = vrot.slane %v192_v11, 4  ;;  %v48_v3 = vld [vmem:[%s754_s0 + $0x50] sm:$0x3] }
  0x21   :  { %v161_v19 = vrot.slane %v160_v10, 1  ;;  %v201_v21 = vmax.f32 %v199_v12, %v200_v13  ;;  %v208_v22 = vsel %vm72_vm0, %v35_v8, -inf  ;;  %v169_v24 = vmax.f32 %v167_v6, %v168_v15  ;;  %v49_v12 = vld [vmem:[%s754_s0 + $0x52] sm:$0x3]  ;;  %v52_v13 = vld [vmem:[%s754_s0 + $0x58] sm:$0x3] }
  0x22   :  { %v153_v23 = vmax.f32 %v151_v5, %v152_v14  ;;  %v178_v25 = vmax.f32 %v176_v7, %v177_v16  ;;  %v186_v26 = vrot.slane %v185_v18, 2  ;;  %v194_v29 = vmax.f32 %v192_v11, %v193_v20 }
  0x23   :  { %v162_v28 = vmax.f32 %v160_v10, %v161_v19  ;;  %v202_v30 = vrot.slane %v201_v21, 4  ;;  %v209_v31 = vsel %vm72_vm0, %v39_v17, -inf  ;;  %v170_v32 = vrot.slane %v169_v24, 1  ;;  %v50_v17 = vld [vmem:[%s754_s0 + $0x54] sm:$0x3] }
  0x24   :  { %v179_v33 = vrot.slane %v178_v25, 1  ;;  %v187_v34 = vmax.f32 %v185_v18, %v186_v26  ;;  %v210_v35 = vmax.f32 %v208_v22, %v209_v31  ;;  %v195_v39 = vrot.slane %v194_v29, 2 }
  0x25   :  { %v402_v38 = vsel %vm393_vm1, %v162_v28, %v153_v23  ;;  %v203_v40 = vmax.f32 %v201_v21, %v202_v30  ;;  %v217_v41 = vsel %vm72_vm0, %v40_v27, -inf  ;;  %v171_v42 = vmax.f32 %v169_v24, %v170_v32  ;;  %v53_v23 = vld [vmem:[%s754_s0 + $0x5a] sm:$0x3]  ;;  %v54_v32 = vld [vmem:[%s754_s0 + $0x5c] sm:$0x3] }
  0x26   :  { %v180_v43 = vmax.f32 %v178_v25, %v179_v33  ;;  %v188_v44 = vrot.slane %v187_v34, 1  ;;  %v211_v45 = vrot.slane %v210_v35, 4  ;;  %v196_v47 = vmax.f32 %v194_v29, %v195_v39 }
  0x27   :  { %v204_v48 = vrot.slane %v203_v40, 2  ;;  %v218_v50 = vsel %vm72_vm0, %v44_v37, -inf  ;;  %v226_v51 = vsel %vm72_vm0, %v41_v36, -inf  ;;  %v403_v52 = vsel %vm395_vm2, %v171_v42, %v402_v38 }
  0x28   :  { %v189_v53 = vmax.f32 %v187_v34, %v188_v44  ;;  %v212_v54 = vmax.f32 %v210_v35, %v211_v45  ;;  %v219_v57 = vmax.f32 %v217_v41, %v218_v50  ;;  %v404_v58 = vsel %vm397_vm3, %v180_v43, %v403_v52  ;;  %v51_v41 = vld [vmem:[%s754_s0 + $0x56] sm:$0x3]  ;;  %v55_v43 = vld [vmem:[%s754_s0 + $0x5e] sm:$0x3] }
  0x29   :  { %v197_v59 = vrot.slane %v196_v47, 1  ;;  %v205_v60 = vmax.f32 %v203_v40, %v204_v48  ;;  %v227_v62 = vsel %vm72_vm0, %v45_v46, -inf  ;;  %430 = vst [vmem:[%s755_s1 + $0x8] sm:$0xf] %v404_v58  ;;  %v235_v2 = vsel %vm72_vm0, %v42_v49, -inf }
  0x2a   :  { %v213_v63 = vrot.slane %v212_v54, 2  ;;  %v220_v0 = vrot.slane %v219_v57, 4  ;;  %v228_v1 = vmax.f32 %v226_v51, %v227_v62  ;;  %v236_v6 = vsel %vm72_vm0, %v46_v56, -inf }
  0x2b   :  { %v198_v4 = vmax.f32 %v196_v47, %v197_v59  ;;  %v206_v5 = vrot.slane %v205_v60, 1  ;;  %v244_v7 = vsel %vm72_vm0, %v43_v55, -inf  ;;  %v237_v11 = vmax.f32 %v235_v2, %v236_v6  ;;  %v56_v55 = vld [vmem:[%s754_s0 + $0x60] sm:$0x3] }
  0x2c   :  { %v214_v8 = vmax.f32 %v212_v54, %v213_v63  ;;  %v221_v9 = vmax.f32 %v219_v57, %v220_v0  ;;  %v229_v10 = vrot.slane %v228_v1, 4  ;;  %v245_v16 = vsel %vm72_vm0, %v47_v61, -inf  ;;  %v57_v0 = vld [vmem:[%s754_s0 + $0x62] sm:$0x3] }
  0x2d   :  { %v207_v14 = vmax.f32 %v205_v60, %v206_v5  ;;  %v405_v15 = vsel %vm393_vm1, %v198_v4, %v189_v53  ;;  %v253_v18 = vsel %vm72_vm0, %v48_v3, -inf  ;;  %v238_v22 = vrot.slane %v237_v11, 4  ;;  %v58_v5 = vld [vmem:[%s754_s0 + $0x64] sm:$0x3] }
  0x2e   :  { %v215_v19 = vrot.slane %v214_v8, 1  ;;  %v222_v20 = vrot.slane %v221_v9, 2  ;;  %v230_v21 = vmax.f32 %v228_v1, %v229_v10  ;;  %v246_v25 = vmax.f32 %v244_v7, %v245_v16  ;;  %v60_v1 = vld [vmem:[%s754_s0 + $0x68] sm:$0x3] }
  0x2f   :  { %v406_v24 = vsel %vm395_vm2, %v207_v14, %v405_v15  ;;  %v254_v26 = vsel %vm72_vm0, %v52_v13, -inf  ;;  %v262_v27 = vsel %vm72_vm0, %v49_v12, -inf  ;;  %v239_v31 = vmax.f32 %v237_v11, %v238_v22  ;;  %v61_v11 = vld [vmem:[%s754_s0 + $0x6a] sm:$0x3]  ;;  %v59_v22 = vld [vmem:[%s754_s0 + $0x66] sm:$0x3] }
  0x30   :  { %v216_v28 = vmax.f32 %v214_v8, %v215_v19  ;;  %v223_v29 = vmax.f32 %v221_v9, %v222_v20  ;;  %v231_v30 = vrot.slane %v230_v21, 2  ;;  %v247_v33 = vrot.slane %v246_v25, 4  ;;  %v62_v20 = vld [vmem:[%s754_s0 + $0x6c] sm:$0x3] }
  0x31   :  { %v255_v34 = vmax.f32 %v253_v18, %v254_v26  ;;  %v263_v35 = vsel %vm72_vm0, %v53_v23, -inf  ;;  %v271_v36 = vsel %vm72_vm0, %v50_v17, -inf  ;;  %v240_v40 = vrot.slane %v239_v31, 2 }
  0x32   :  { %v407_v37 = vsel %vm397_vm3, %v216_v28, %v406_v24  ;;  %v224_v38 = vrot.slane %v223_v29, 1  ;;  %v232_v39 = vmax.f32 %v230_v21, %v231_v30  ;;  %v248_v42 = vmax.f32 %v246_v25, %v247_v33  ;;  %v63_v30 = vld [vmem:[%s754_s0 + $0x6e] sm:$0x3] }
  0x33   :  { %431 = vst [vmem:[%s755_s1 + $0xc] sm:$0xf] %v407_v37  ;;  %v256_v44 = vrot.slane %v255_v34, 4  ;;  %v264_v45 = vmax.f32 %v262_v27, %v263_v35  ;;  %v272_v46 = vsel %vm72_vm0, %v54_v32, -inf  ;;  %v241_v49 = vmax.f32 %v239_v31, %v240_v40 }
  0x34   :  { %v225_v47 = vmax.f32 %v223_v29, %v224_v38  ;;  %v233_v48 = vrot.slane %v232_v39, 1  ;;  %v273_v50 = vmax.f32 %v271_v36, %v272_v46  ;;  %v249_v51 = vrot.slane %v248_v42, 2 }
  0x35   :  { %v257_v52 = vmax.f32 %v255_v34, %v256_v44  ;;  %v265_v53 = vrot.slane %v264_v45, 4  ;;  %v280_v54 = vsel %vm72_vm0, %v51_v41, -inf  ;;  %v242_v57 = vrot.slane %v241_v49, 1  ;;  %v68_v44 = vld [vmem:[%s754_s0 + $0x78] sm:$0x3] }
  0x36   :  { %v234_v56 = vmax.f32 %v232_v39, %v233_v48  ;;  %v274_v58 = vrot.slane %v273_v50, 4  ;;  %v281_v59 = vsel %vm72_vm0, %v55_v43, -inf  ;;  %v250_v60 = vmax.f32 %v248_v42, %v249_v51  ;;  %v64_v39 = vld [vmem:[%s754_s0 + $0x70] sm:$0x3] }
  0x37   :  { %v258_v61 = vrot.slane %v257_v52, 2  ;;  %v266_v62 = vmax.f32 %v264_v45, %v265_v53  ;;  %v282_v63 = vmax.f32 %v280_v54, %v281_v59  ;;  %v243_v2 = vmax.f32 %v241_v49, %v242_v57  ;;  %v65_v49 = vld [vmem:[%s754_s0 + $0x72] sm:$0x3]  ;;  %v69_v53 = vld [vmem:[%s754_s0 + $0x7a] sm:$0x3] }
  0x38   :  { %v408_v3 = vsel %vm393_vm1, %v234_v56, %v225_v47  ;;  %v275_v4 = vmax.f32 %v273_v50, %v274_v58  ;;  %v289_v6 = vsel %vm72_vm0, %v56_v55, -inf  ;;  %v251_v7 = vrot.slane %v250_v60, 1 }
  0x39   :  { %v259_v8 = vmax.f32 %v257_v52, %v258_v61  ;;  %v267_v9 = vrot.slane %v266_v62, 2  ;;  %v283_v10 = vrot.slane %v282_v63, 4  ;;  %v409_v12 = vsel %vm395_vm2, %v243_v2, %v408_v3  ;;  %v66_v61 = vld [vmem:[%s754_s0 + $0x74] sm:$0x3] }
  0x3a   :  { %v276_v13 = vrot.slane %v275_v4, 2  ;;  %v290_v14 = vsel %vm72_vm0, %v60_v1, -inf  ;;  %v298_v15 = vsel %vm72_vm0, %v57_v0, -inf  ;;  %v252_v16 = vmax.f32 %v250_v60, %v251_v7  ;;  %v67_v7 = vld [vmem:[%s754_s0 + $0x76] sm:$0x3] }
  0x3b   :  { %v260_v17 = vrot.slane %v259_v8, 1  ;;  %v268_v18 = vmax.f32 %v266_v62, %v267_v9  ;;  %v284_v19 = vmax.f32 %v282_v63, %v283_v10  ;;  %v291_v23 = vmax.f32 %v289_v6, %v290_v14  ;;  %v70_v62 = vld [vmem:[%s754_s0 + $0x7c] sm:$0x3] }
  0x3c   :  { %v277_v21 = vmax.f32 %v275_v4, %v276_v13  ;;  %v299_v24 = vsel %vm72_vm0, %v61_v11, -inf  ;;  %v307_v25 = vsel %vm72_vm0, %v58_v5, -inf  ;;  %v410_v26 = vsel %vm397_vm3, %v252_v16, %v409_v12  ;;  %v71_v12 = vld [vmem:[%s754_s0 + $0x7e] sm:$0x3] }
  0x3d   :  { %v261_v27 = vmax.f32 %v259_v8, %v260_v17  ;;  %v269_v28 = vrot.slane %v268_v18, 1  ;;  %v285_v29 = vrot.slane %v284_v19, 2  ;;  %432 = vst [vmem:[%s755_s1 + $0x10] sm:$0xf] %v410_v26  ;;  %v292_v32 = vrot.slane %v291_v23, 4 }
  0x3e   :  { %v278_v31 = vrot.slane %v277_v21, 1  ;;  %v300_v33 = vmax.f32 %v298_v15, %v299_v24  ;;  %v308_v34 = vsel %vm72_vm0, %v62_v20, -inf  ;;  %v316_v38 = vsel %vm72_vm0, %v59_v22, -inf }
  0x3f   :  { %v270_v35 = vmax.f32 %v268_v18, %v269_v28  ;;  %v286_v36 = vmax.f32 %v284_v19, %v285_v29  ;;  %v309_v37 = vmax.f32 %v307_v25, %v308_v34  ;;  %v293_v41 = vmax.f32 %v291_v23, %v292_v32 }
  0x40   :  { %v279_v40 = vmax.f32 %v277_v21, %v278_v31  ;;  %v301_v42 = vrot.slane %v300_v33, 4  ;;  %v317_v43 = vsel %vm72_vm0, %v63_v30, -inf  ;;  %v325_v54 = vsel %vm72_vm0, %v64_v39, -inf }
  0x41   :  { %v287_v45 = vrot.slane %v286_v36, 1  ;;  %v411_v46 = vsel %vm393_vm1, %v270_v35, %v261_v27  ;;  %v310_v47 = vrot.slane %v309_v37, 4  ;;  %v318_v48 = vmax.f32 %v316_v38, %v317_v43 }
  0x42   :  { %v412_v50 = vsel %vm395_vm2, %v279_v40, %v411_v46  ;;  %v294_v51 = vrot.slane %v293_v41, 2  ;;  %v302_v52 = vmax.f32 %v300_v33, %v301_v42  ;;  %v326_v58 = vsel %vm72_vm0, %v68_v44, -inf }
  0x43   :  { %v288_v55 = vmax.f32 %v286_v36, %v287_v45  ;;  %v311_v56 = vmax.f32 %v309_v37, %v310_v47  ;;  %v319_v57 = vrot.slane %v318_v48, 4  ;;  %v327_v63 = vmax.f32 %v325_v54, %v326_v58 }
  0x44   :  { %v295_v59 = vmax.f32 %v293_v41, %v294_v51  ;;  %v303_v60 = vrot.slane %v302_v52, 2  ;;  %v334_v0 = vsel %vm72_vm0, %v65_v49, -inf  ;;  %v335_v4 = vsel %vm72_vm0, %v69_v53, -inf }
  0x45   :  { %v413_v1 = vsel %vm397_vm3, %v288_v55, %v412_v50  ;;  %v312_v2 = vrot.slane %v311_v56, 2  ;;  %v320_v3 = vmax.f32 %v318_v48, %v319_v57  ;;  %v328_v8 = vrot.slane %v327_v63, 4 }
  0x46   :  { %433 = vst [vmem:[%s755_s1 + $0x14] sm:$0xf] %v413_v1  ;;  %v296_v5 = vrot.slane %v295_v59, 1  ;;  %v304_v6 = vmax.f32 %v302_v52, %v303_v60  ;;  %v336_v9 = vmax.f32 %v334_v0, %v335_v4  ;;  %v343_v13 = vsel %vm72_vm0, %v66_v61, -inf }
  0x47   :  { %v313_v10 = vmax.f32 %v311_v56, %v312_v2  ;;  %v321_v11 = vrot.slane %v320_v3, 2  ;;  %v344_v14 = vsel %vm72_vm0, %v70_v62, -inf  ;;  %v329_v17 = vmax.f32 %v327_v63, %v328_v8 }
  0x48   :  { %v297_v15 = vmax.f32 %v295_v59, %v296_v5  ;;  %v305_v16 = vrot.slane %v304_v6, 1  ;;  %v337_v18 = vrot.slane %v336_v9, 4  ;;  %v345_v21 = vmax.f32 %v343_v13, %v344_v14 }
  0x49   :  { %v314_v19 = vrot.slane %v313_v10, 1  ;;  %v322_v20 = vmax.f32 %v320_v3, %v321_v11  ;;  %v352_v22 = vsel %vm72_vm0, %v67_v7, -inf  ;;  %v330_v24 = vrot.slane %v329_v17, 2 }
  0x4a   :  { %v306_v23 = vmax.f32 %v304_v6, %v305_v16  ;;  %v338_v25 = vmax.f32 %v336_v9, %v337_v18  ;;  %v353_v26 = vsel %vm72_vm0, %v71_v12, -inf  ;;  %v346_v29 = vrot.slane %v345_v21, 4 }
  0x4b   :  { %v315_v27 = vmax.f32 %v313_v10, %v314_v19  ;;  %v323_v28 = vrot.slane %v322_v20, 1  ;;  %v354_v30 = vmax.f32 %v352_v22, %v353_v26  ;;  %v331_v32 = vmax.f32 %v329_v17, %v330_v24 }
  0x4c   :  { %v414_v31 = vsel %vm393_vm1, %v306_v23, %v297_v15  ;;  %v339_v33 = vrot.slane %v338_v25, 2  ;;  %v347_v36 = vmax.f32 %v345_v21, %v346_v29 }
  0x4d   :  { %v324_v34 = vmax.f32 %v322_v20, %v323_v28  ;;  %v415_v35 = vsel %vm395_vm2, %v315_v27, %v414_v31  ;;  %v355_v37 = vrot.slane %v354_v30, 4  ;;  %v332_v38 = vrot.slane %v331_v32, 1 }
  0x4e   :  { %v340_v39 = vmax.f32 %v338_v25, %v339_v33  ;;  %v348_v41 = vrot.slane %v347_v36, 2 }
  0x4f   :  { %v416_v40 = vsel %vm397_vm3, %v324_v34, %v415_v35  ;;  %v356_v42 = vmax.f32 %v354_v30, %v355_v37  ;;  %v333_v43 = vmax.f32 %v331_v32, %v332_v38 }
  0x50   :  { %434 = vst [vmem:[%s755_s1 + $0x18] sm:$0xf] %v416_v40  ;;  %v341_v44 = vrot.slane %v340_v39, 1  ;;  %v349_v45 = vmax.f32 %v347_v36, %v348_v41 }
  0x51   :  { %v357_v46 = vrot.slane %v356_v42, 2 }
  0x52   :  { %v342_v47 = vmax.f32 %v340_v39, %v341_v44  ;;  %v350_v48 = vrot.slane %v349_v45, 1 }
  0x53   :  { %v358_v49 = vmax.f32 %v356_v42, %v357_v46 }
  0x54   :  { %v417_v50 = vsel %vm393_vm1, %v342_v47, %v333_v43  ;;  %v351_v51 = vmax.f32 %v349_v45, %v350_v48 }
  0x55   :  { %v359_v52 = vrot.slane %v358_v49, 1 }
  0x56   :  { %v418_v54 = vsel %vm395_vm2, %v351_v51, %v417_v50 }
  0x57   :  { %v360_v53 = vmax.f32 %v358_v49, %v359_v52 }
  0x59   :  { %v419_v55 = vsel %vm397_vm3, %v360_v53, %v418_v54 }
  0x5a   :  { %435 = vst [vmem:[%s755_s1 + $0x1c] sm:$0xf] %v419_v55 }

// kernel: reseg_forward.24
= control target key start
LH: loop header
LB: loop body
LE: loop exit
PB: predicated region body
PF: predicated region fallthrough
CT: control target
= control target key end

     0   :  { %s1516_s12 = smov 0   ;;  %s1518_s13 = smov 0   ;;  %s1754_s0 = inlined_call_operand.vmem [shape: bf16[128,1152], index: 0, kind: input, shape index: {}]   ;;  %s1755_s1 = inlined_call_operand.vmem [shape: bf16[1152,128], index: 1, kind: input, shape index: {}]   ;;  %s1756_s2 = inlined_call_operand.vmem [shape: f32[1,128], index: 2, kind: input, shape index: {}]   ;;  %s1757_s3 = inlined_call_operand.vmem [shape: f32[128,128], index: 3, kind: output, shape index: {}]  }
   0x1   :  { %s1520_s14 = smov 0   ;;  %s1522_s15 = smov 0  }
   0x2   :  { %s1524_s16 = smov 0  }
   0x3 LB: > { %s25_s17 = sadd.s32 1, %s1489_s15  ;;  %p48_p1 = scmp.ne.s32.totalorder %s1481_s13, %s1477_s12  ;;  %s1493_s16 = sphi %s1524_s16, %s13_s16   ;;  %s1489_s15 = sphi %s1522_s15, %s1761_s15   ;;  %s1485_s14 = sphi %s1520_s14, %s1760_s14   ;;  %s1481_s13 = sphi %s1518_s13, %s1759_s13   ;;  %s1477_s12 = sphi %s1516_s12, %s1758_s12  }
   0x4   : > { %p26_p0 = scmp.ge.s32.totalorder %s25_s17, 3  ;;  %p49_p2 = scmp.eq.s32.totalorder %s1493_s16, 0 }
   0x5   : > { %s41_s19 = sadd.s32 1, %s1481_s13  ;;  %p1152_p5 = scmp.ge.s32.totalorder %s1493_s16, 3 }
   0x6   : > { %s1763_s17 = smov (%p26_p0, %s25_s17), 0  ;;  %p50_p3 = por %p49_p2, %p48_p1 }
   0x7   : > { %s37_s18 = ssub.s32 %s1489_s15, %s1763_s17  ;;  %162 = sbr.rel (%p1152_p5) target bundleno = 37 (0x25), region = 20 }
   0x8   : > { %p39_p4 = scmp.eq.s32.totalorder %s37_s18, 0 }
   0xa   : > { %s1551_s20 = scalar_select %p39_p4, %s1481_s13, %s41_s19  }
   0xe   : > { %165 = sbr.rel (!%p50_p3) target bundleno = 37 (0x25), region = 24  ;;  %s167_s21 = sand.u32 (%p50_p3), 1, %s1481_s13  }
   0xf   : > { %s1243_s22 = smul.u32 (%p50_p3), 12, %s1489_s15 }
  0x10   : > { %s1356_s23 = smul.u32 (%p50_p3), 192, %s167_s21 }
  0x11   : > { %s1559_s26 = scalar_lea.vmem (%p50_p3), %s1754_s0, %s1243_s22 }
  0x12   : > { %v190_v0 = vld [vmem:[%s1559_s26] sm:$0xff] (%p50_p3)  ;;  %v194_v2 = vld [vmem:[%s1559_s26 + $0x48] sm:$0xff] (%p50_p3)  ;;  %s1564_s27 = scalar_lea.vmem (%p50_p3), [#allocation3], %s1356_s23  ;;  %v198_v4 = vld [vmem:[%s1559_s26 + $0x90] sm:$0xff] (%p50_p3) }
  0x13   : > { %v192_v1 = vld [vmem:[%s1559_s26 + $0x24] sm:$0xff] (%p50_p3)  ;;  %191 = vst [vmem:[%s1564_s27] sm:$0xff] (%p50_p3), %v190_v0  ;;  %195 = vst [vmem:[%s1564_s27 + $0x18] sm:$0xff] (%p50_p3), %v194_v2  ;;  %v196_v3 = vld [vmem:[%s1559_s26 + $0x6c] sm:$0xff] (%p50_p3) }
  0x14   : > { %193 = vst [vmem:[%s1564_s27 + $0xc] sm:$0xff] (%p50_p3), %v192_v1  ;;  %v200_v5 = vld [vmem:[%s1559_s26 + $0xb4] sm:$0xff] (%p50_p3)  ;;  %197 = vst [vmem:[%s1564_s27 + $0x24] sm:$0xff] (%p50_p3), %v196_v3  ;;  %v204_v7 = vld [vmem:[%s1559_s26 + $0xfc] sm:$0xff] (%p50_p3) }
  0x15   : > { %199 = vst [vmem:[%s1564_s27 + $0x30] sm:$0xff] %v198_v4  ;;  %201 = vst [vmem:[%s1564_s27 + $0x3c] sm:$0xff] %v200_v5  ;;  %v202_v6 = vld [vmem:[%s1559_s26 + $0xd8] sm:$0xff]  ;;  %v206_v8 = vld [vmem:[%s1559_s26 + $0x120] sm:$0xff] }
  0x16   : > { %203 = vst [vmem:[%s1564_s27 + $0x48] sm:$0xff] %v202_v6  ;;  %205 = vst [vmem:[%s1564_s27 + $0x54] sm:$0xff] %v204_v7  ;;  %v208_v9 = vld [vmem:[%s1559_s26 + $0x144] sm:$0xff]  ;;  %v212_v11 = vld [vmem:[%s1559_s26 + $0x18c] sm:$0xff] }
  0x17   : > { %207 = vst [vmem:[%s1564_s27 + $0x60] sm:$0xff] %v206_v8  ;;  %v210_v10 = vld [vmem:[%s1559_s26 + $0x168] sm:$0xff]  ;;  %209 = vst [vmem:[%s1564_s27 + $0x6c] sm:$0xff] %v208_v9  ;;  %v214_v12 = vld [vmem:[%s1559_s26 + $0x1b0] sm:$0xff] }
  0x18   : > { %211 = vst [vmem:[%s1564_s27 + $0x78] sm:$0xff] %v210_v10  ;;  %213 = vst [vmem:[%s1564_s27 + $0x84] sm:$0xff] %v212_v11  ;;  %v216_v13 = vld [vmem:[%s1559_s26 + $0x1d4] sm:$0xff]  ;;  %v220_v15 = vld [vmem:[%s1559_s26 + $0x21c] sm:$0xff] }
  0x19   : > { %v218_v14 = vld [vmem:[%s1559_s26 + $0x1f8] sm:$0xff]  ;;  %215 = vst [vmem:[%s1564_s27 + $0x90] sm:$0xff] %v214_v12  ;;  %217 = vst [vmem:[%s1564_s27 + $0x9c] sm:$0xff] %v216_v13  ;;  %v1154_v16 = vld [vmem:[%s1559_s26 + $0x8] sm:$0xf] }
  0x1a   : > { %219 = vst [vmem:[%s1564_s27 + $0xa8] sm:$0xff] %v218_v14  ;;  %v1156_v17 = vld [vmem:[%s1559_s26 + $0x2c] sm:$0xf]  ;;  %221 = vst [vmem:[%s1564_s27 + $0xb4] sm:$0xff] %v220_v15  ;;  %v1158_v18 = vld [vmem:[%s1559_s26 + $0x50] sm:$0xf] }
  0x1b   : > { %1155 = vst [vmem:[%s1564_s27 + $0x8] sm:$0xf] %v1154_v16  ;;  %1157 = vst [vmem:[%s1564_s27 + $0x14] sm:$0xf] %v1156_v17  ;;  %v1160_v19 = vld [vmem:[%s1559_s26 + $0x74] sm:$0xf] }
  0x1c   : > { %v1162_v20 = vld [vmem:[%s1559_s26 + $0x98] sm:$0xf]  ;;  %1159 = vst [vmem:[%s1564_s27 + $0x20] sm:$0xf] %v1158_v18  ;;  %1161 = vst [vmem:[%s1564_s27 + $0x2c] sm:$0xf] %v1160_v19 }
  0x1d   : > { %1163 = vst [vmem:[%s1564_s27 + $0x38] sm:$0xf] %v1162_v20  ;;  %v1164_v21 = vld [vmem:[%s1559_s26 + $0xbc] sm:$0xf]  ;;  %v1166_v22 = vld [vmem:[%s1559_s26 + $0xe0] sm:$0xf] }
  0x1e   : > { %v1168_v23 = vld [vmem:[%s1559_s26 + $0x104] sm:$0xf]  ;;  %1165 = vst [vmem:[%s1564_s27 + $0x44] sm:$0xf] %v1164_v21  ;;  %1167 = vst [vmem:[%s1564_s27 + $0x50] sm:$0xf] %v1166_v22 }
  0x1f   : > { %1169 = vst [vmem:[%s1564_s27 + $0x5c] sm:$0xf] %v1168_v23  ;;  %v1170_v24 = vld [vmem:[%s1559_s26 + $0x128] sm:$0xf]  ;;  %v1172_v25 = vld [vmem:[%s1559_s26 + $0x14c] sm:$0xf] }
  0x20   : > { %v1174_v26 = vld [vmem:[%s1559_s26 + $0x170] sm:$0xf]  ;;  %1171 = vst [vmem:[%s1564_s27 + $0x68] sm:$0xf] %v1170_v24  ;;  %1173 = vst [vmem:[%s1564_s27 + $0x74] sm:$0xf] %v1172_v25 }
  0x21   : > { %1175 = vst [vmem:[%s1564_s27 + $0x80] sm:$0xf] %v1174_v26  ;;  %v1176_v27 = vld [vmem:[%s1559_s26 + $0x194] sm:$0xf]  ;;  %v1178_v28 = vld [vmem:[%s1559_s26 + $0x1b8] sm:$0xf] }
  0x22   : > { %v1180_v29 = vld [vmem:[%s1559_s26 + $0x1dc] sm:$0xf]  ;;  %1177 = vst [vmem:[%s1564_s27 + $0x8c] sm:$0xf] %v1176_v27  ;;  %1179 = vst [vmem:[%s1564_s27 + $0x98] sm:$0xf] %v1178_v28 }
  0x23   : > { %1181 = vst [vmem:[%s1564_s27 + $0xa4] sm:$0xf] %v1180_v29  ;;  %v1182_v30 = vld [vmem:[%s1559_s26 + $0x200] sm:$0xf]  ;;  %v1184_v31 = vld [vmem:[%s1559_s26 + $0x224] sm:$0xf] }
  0x24   : > { %1183 = vst [vmem:[%s1564_s27 + $0xb0] sm:$0xf] %v1182_v30  ;;  %1185 = vst [vmem:[%s1564_s27 + $0xbc] sm:$0xf] %v1184_v31 }
  0x25 PF: > { %p1186_p6 = scmp.ge.s32.totalorder %s1493_s16, 1  ;;  %p277_p7 = scmp.lt.s32.totalorder %s1493_s16, 4 }
  0x27   : > { %p278_p8 = pnand %p1186_p6, %p277_p7 }
  0x28   : > { %s284_s28 = sand.u32 (!%p278_p8), 1, %s1477_s12   ;;  %s323_s29 = smul.u32 (!%p278_p8), 48, %s1485_s14 }
  0x29   : > { %281 = sbr.rel (%p278_p8) target bundleno = 381 (0x17d), region = 54  ;;  %p1188_p10 = scmp.ne.s32.totalorder (!%p278_p8), %s1485_s14, 0 }
  0x2a   : > { %s1357_s30 = smul.u32 (!%p278_p8), 192, %s284_s28  ;;  %p324_p9 = scmp.lt.s32.totalorder (!%p278_p8), %s323_s29, 143 }
  0x2c   : > { %s1636_s8 = scalar_lea.vmem (!%p278_p8), [#allocation3], %s1357_s30 }
  0x30   : > { %s1765_s29 = smov (!%p324_p9, %s323_s29), 143  ;;  %348 = sbr.rel (%p1188_p10) target bundleno = 58 (0x3a), region = 62 }
  0x31   : > { %s1187_s4 = sshll.u32 %s1765_s29, 2  ;;  %v1495_v32 = vmov (!%p1188_p10), 0.0  }
  0x32   : > { %s1634_s7 = scalar_lea.vmem %s1755_s1, %s1187_s4  ;;  %349 = vst [vmem:[#allocation2] sm:$0xff] (!%p1188_p10), %v1495_v32  ;;  %350 = vst [vmem:[#allocation2 + $0x8] sm:$0xff] (!%p1188_p10), %v1495_v32 }
  0x33   : > { %351 = vst [vmem:[#allocation2 + $0x10] sm:$0xff] (!%p1188_p10), %v1495_v32  ;;  %352 = vst [vmem:[#allocation2 + $0x18] sm:$0xff] (!%p1188_p10), %v1495_v32 }
  0x34   : > { %353 = vst [vmem:[#allocation2 + $0x20] sm:$0xff] (!%p1188_p10), %v1495_v32  ;;  %354 = vst [vmem:[#allocation2 + $0x28] sm:$0xff] (!%p1188_p10), %v1495_v32 }
  0x35   : > { %355 = vst [vmem:[#allocation2 + $0x30] sm:$0xff] (!%p1188_p10), %v1495_v32  ;;  %356 = vst [vmem:[#allocation2 + $0x38] sm:$0xff] (!%p1188_p10), %v1495_v32 }
  0x36   : > { %357 = vst [vmem:[#allocation2 + $0x40] sm:$0xff] (!%p1188_p10), %v1495_v32  ;;  %358 = vst [vmem:[#allocation2 + $0x48] sm:$0xff] (!%p1188_p10), %v1495_v32 }
  0x37   : > { %359 = vst [vmem:[#allocation2 + $0x50] sm:$0xff] %v1495_v32  ;;  %360 = vst [vmem:[#allocation2 + $0x58] sm:$0xff] %v1495_v32 }
  0x38   : > { %361 = vst [vmem:[#allocation2 + $0x60] sm:$0xff] %v1495_v32  ;;  %362 = vst [vmem:[#allocation2 + $0x68] sm:$0xff] %v1495_v32 }
  0x39   : > { %363 = vst [vmem:[#allocation2 + $0x70] sm:$0xff] %v1495_v32  ;;  %364 = vst [vmem:[#allocation2 + $0x78] sm:$0xff] %v1495_v32 }
  0x3a PF: > { %v1399_v33 = vld [vmem:[%s1634_s7 + $0x40] sm:$0xff]   ;;  %v1402_v36 = vld [vmem:[%s1634_s7 + $0x48] sm:$0xff]   ;;  %v1405_v39 = vld [vmem:[%s1634_s7 + $0x50] sm:$0xff]   ;;  %p1237_p11 = scmp.ne.s32.totalorder %s1485_s14, 2 }
  0x3b   : > { %v1400_v34 = vld [vmem:[%s1634_s7] sm:$0xff]   ;;  %1244 = vmatprep.subr.bf16.mxu0 %v1399_v33  ;;  %v1403_v37 = vld [vmem:[%s1634_s7 + $0x8] sm:$0xff]   ;;  %v1406_v40 = vld [vmem:[%s1634_s7 + $0x10] sm:$0xff]  }
  0x3c   : > { %v1401_v35 = vld [vmem:[%s1634_s7 + $0x80] sm:$0xff]   ;;  %1245 = vmatpush3.bf16.msra.mxu0 %v1400_v34  ;;  %v1404_v38 = vld [vmem:[%s1634_s7 + $0x88] sm:$0xff]   ;;  %v1407_v41 = vld [vmem:[%s1634_s7 + $0x90] sm:$0xff]  }
  0x3d   : > { %1324 = vmatprep.subr.bf16.mxu1 %v1401_v35  ;;  %1246 = vmatprep.subr.bf16.mxu0 %v1402_v36  ;;  %v1408_v42 = vld [vmem:[%s1634_s7 + $0x58] sm:$0xff]   ;;  %v1411_v45 = vld [vmem:[%s1634_s7 + $0x60] sm:$0xff]   ;;  %v1414_v48 = vld [vmem:[%s1634_s7 + $0x68] sm:$0xff]  }
  0x3e   : > { %1325 = vmatpush3.bf16.msra.mxu1 %v1401_v35  ;;  %v1409_v43 = vld [vmem:[%s1634_s7 + $0x18] sm:$0xff]   ;;  %v1413_v46 = vld [vmem:[%s1634_s7 + $0xa0] sm:$0xff]   ;;  %v1416_v49 = vld [vmem:[%s1634_s7 + $0xa8] sm:$0xff]  }
  0x3f   : > { %1326 = vmatprep.subr.bf16.mxu1 %v1404_v38  ;;  %v1410_v44 = vld [vmem:[%s1634_s7 + $0x98] sm:$0xff]   ;;  %v1412_v47 = vld [vmem:[%s1634_s7 + $0x20] sm:$0xff]   ;;  %v1415_v50 = vld [vmem:[%s1634_s7 + $0x28] sm:$0xff]  }
  0x40   : > { %1247 = vmatpush3.bf16.msra.mxu0 %v1403_v37  ;;  %v1417_v51 = vld [vmem:[%s1634_s7 + $0x70] sm:$0xff]   ;;  %v1420_v54 = vld [vmem:[%s1634_s7 + $0x78] sm:$0xff]   ;;  %v1423_v59 = vld [vmem:[%s1636_s8] ss:$12 sps:$4 sm:$0xff]  }
  0x41   : > { %1248 = vmatprep.subr.bf16.mxu0 %v1405_v39  ;;  %v1418_v52 = vld [vmem:[%s1634_s7 + $0x30] sm:$0xff]   ;;  %v1422_v55 = vld [vmem:[%s1634_s7 + $0xb8] sm:$0xff]   ;;  %v1427_v61 = vld [vmem:[%s1636_s8 + $0x20] ss:$12 sps:$4 sm:$0xff]  }
  0x42   : > { %1327 = vmatpush3.bf16.msra.mxu1 %v1404_v38  ;;  %v1419_v53 = vld [vmem:[%s1634_s7 + $0xb0] sm:$0xff]   ;;  %v1421_v58 = vld [vmem:[%s1634_s7 + $0x38] sm:$0xff]   ;;  %v1443_v5 = vld [vmem:[%s1636_s8 + $0x80] ss:$12 sps:$4 sm:$0xff]  }
  0x43   : > { %1328 = vmatprep.subr.bf16.mxu1 %v1407_v41  ;;  %v1425_v56 = vld [vmem:[%s1636_s8 + $0x4] ss:$12 sps:$4 sm:$0xff]   ;;  %v1426_v57 = vld [vmem:[%s1636_s8 + $0x8] ss:$12 sps:$4 sm:$0xff]   ;;  %v1436_v4 = vld [vmem:[%s1636_s8 + $0x4c] ss:$12 sps:$4 sm:$0xff]  }
  0x44   : > { %1249 = vmatpush3.bf16.msra.mxu0 %v1406_v40  ;;  %765 = vmatprep.mubr.bf16.mxu0 %v1425_v56  ;;  %v1428_v60 = vld [vmem:[%s1636_s8 + $0x1c] ss:$12 sps:$4 sm:$0xff]   ;;  %v1434_v62 = vld [vmem:[%s1636_s8 + $0x38] ss:$12 sps:$4 sm:$0xff]   ;;  %v1431_v0 = vld [vmem:[%s1636_s8 + $0x34] ss:$12 sps:$4 sm:$0xff]  }
  0x45   : > { %1250 = vmatprep.subr.bf16.mxu0 %v1408_v42  ;;  %1340 = vmatprep.mubr.bf16.mxu1 %v1426_v57  ;;  %v1430_v63 = vld [vmem:[%s1636_s8 + $0x18] ss:$12 sps:$4 sm:$0xff]   ;;  %v1435_v1 = vld [vmem:[%s1636_s8 + $0x50] ss:$12 sps:$4 sm:$0xff]   ;;  %v1442_v2 = vld [vmem:[%s1636_s8 + $0x68] ss:$12 sps:$4 sm:$0xff]  }
  0x46   : > { %1329 = vmatpush3.bf16.msra.mxu1 %v1407_v41  ;;  %v1433_v3 = vld [vmem:[%s1636_s8 + $0x30] ss:$12 sps:$4 sm:$0xff]   ;;  %v1450_v6 = vld [vmem:[%s1636_s8 + $0x98] ss:$12 sps:$4 sm:$0xff]   ;;  %v1438_v7 = vld [vmem:[%s1636_s8 + $0x48] ss:$12 sps:$4 sm:$0xff]  }
  0x47   : > { %1330 = vmatprep.subr.bf16.mxu1 %v1410_v44  ;;  %v1439_v8 = vld [vmem:[%s1636_s8 + $0x64] ss:$12 sps:$4 sm:$0xff]   ;;  %v1441_v10 = vld [vmem:[%s1636_s8 + $0x60] ss:$12 sps:$4 sm:$0xff]   ;;  %v1444_v11 = vld [vmem:[%s1636_s8 + $0x7c] ss:$12 sps:$4 sm:$0xff]  }
  0x48   : > { %1251 = vmatpush3.bf16.msra.mxu0 %v1409_v43  ;;  %v1451_v9 = vld [vmem:[%s1636_s8 + $0xb0] ss:$12 sps:$4 sm:$0xff]   ;;  %v1446_v12 = vld [vmem:[%s1636_s8 + $0x78] ss:$12 sps:$4 sm:$0xff]   ;;  %v1447_v13 = vld [vmem:[%s1636_s8 + $0x94] ss:$12 sps:$4 sm:$0xff]  }
  0x49   : > { %1252 = vmatprep.subr.bf16.mxu0 %v1411_v45  ;;  %v1449_v14 = vld [vmem:[%s1636_s8 + $0x90] ss:$12 sps:$4 sm:$0xff]   ;;  %v1452_v15 = vld [vmem:[%s1636_s8 + $0xac] ss:$12 sps:$4 sm:$0xff]   ;;  %v1454_v16 = vld [vmem:[%s1636_s8 + $0xa8] ss:$12 sps:$4 sm:$0xff]  }
  0x4a   : > { %1331 = vmatpush3.bf16.msra.mxu1 %v1410_v44  ;;  %v365_v23 = vld [vmem:[#allocation2] sm:$0xff]  ;;  %v366_v28 = vld [vmem:[#allocation2 + $0x8] sm:$0xff]  ;;  %v367_v38 = vld [vmem:[#allocation2 + $0x10] sm:$0xff] }
  0x4b   : > { %1332 = vmatprep.subr.bf16.mxu1 %v1413_v46  ;;  %v368_v44 = vld [vmem:[#allocation2 + $0x18] sm:$0xff] }
  0x4c   : > { %1253 = vmatpush3.bf16.msra.mxu0 %v1412_v47 }
  0x4d   : > { %1254 = vmatprep.subr.bf16.mxu0 %v1414_v48 }
  0x4e   : > { %1333 = vmatpush3.bf16.msra.mxu1 %v1413_v46 }
  0x4f   : > { %1334 = vmatprep.subr.bf16.mxu1 %v1416_v49 }
  0x50   : > { %1255 = vmatpush3.bf16.msra.mxu0 %v1415_v50 }
  0x51   : > { %1256 = vmatprep.subr.bf16.mxu0 %v1417_v51 }
  0x52   : > { %1335 = vmatpush3.bf16.msra.mxu1 %v1416_v49 }
  0x53   : > { %1336 = vmatprep.subr.bf16.mxu1 %v1419_v53 }
  0x54   : > { %1257 = vmatpush3.bf16.msra.mxu0 %v1418_v52 }
  0x55   : > { %1258 = vmatprep.subr.bf16.mxu0 %v1420_v54 }
  0x56   : > { %1337 = vmatpush3.bf16.msra.mxu1 %v1419_v53 }
  0x57   : > { %1338 = vmatprep.subr.bf16.mxu1 %v1422_v55 }
  0x58   : > { %1259 = vmatpush3.bf16.msra.mxu0 %v1421_v58 }
  0x5a   : > { %1339 = vmatpush3.bf16.msra.mxu1 %v1422_v55  ;;  %v369_v55 = vld [vmem:[#allocation2 + $0x20] sm:$0xff] }
  0x5b   : > { %766 = vmatmul.mubr.bf16.vlgmr.msra.gmra.mrb[0].mxu0 %v1423_v59 }
  0x5c   : > { %773 = vmatprep.mubr.bf16.mxu0 %v1428_v60  ;;  %v370_v60 = vld [vmem:[#allocation2 + $0x28] sm:$0xff] }
  0x5d   : > { %1341 = vmatmul.mubr.bf16.vlgmr.msra.gmra.mrb[0].mxu1 %v1427_v61 }
  0x5e   : > { %1344 = vmatprep.mubr.bf16.mxu1 %v1434_v62 }
  0x63   : > { %774 = vmatmul.mubr.bf16.gmra.mrb[4].mxu0 %v1430_v63 }
  0x64   : > { %781 = vmatprep.mubr.bf16.mxu0 %v1431_v0 }
  0x65   : > { %1345 = vmatmul.mubr.bf16.gmra.mrb[4].mxu1 %v1435_v1 }
  0x66   : > { %1348 = vmatprep.mubr.bf16.mxu1 %v1442_v2 }
  0x6b   : > { %782 = vmatmul.mubr.bf16.gmra.mrb[8].mxu0 %v1433_v3 }
  0x6c   : > { %789 = vmatprep.mubr.bf16.mxu0 %v1436_v4 }
  0x6d   : > { %1349 = vmatmul.mubr.bf16.gmra.mrb[8].mxu1 %v1443_v5 }
  0x6e   : > { %1352 = vmatprep.mubr.bf16.mxu1 %v1450_v6  ;;  %v371_v6 = vld [vmem:[#allocation2 + $0x30] sm:$0xff] }
  0x73   : > { %790 = vmatmul.mubr.bf16.gmra.mrb[12].mxu0 %v1438_v7 }
  0x74   : > { %797 = vmatprep.mubr.bf16.mxu0 %v1439_v8 }
  0x75   : > { %1353 = vmatmul.mubr.bf16.gmra.mrb[12].mxu1 %v1451_v9 }
  0x7b   : > { %798 = vmatmul.mubr.bf16.gmra.mrb[16].mxu0 %v1441_v10 }
  0x7c   : > { %805 = vmatprep.mubr.bf16.mxu0 %v1444_v11 }
  0x83   : > { %806 = vmatmul.mubr.bf16.gmra.mrb[20].mxu0 %v1446_v12  ;;  %v372_v12 = vld [vmem:[#allocation2 + $0x38] sm:$0xff] }
  0x84   : > { %813 = vmatprep.mubr.bf16.mxu0 %v1447_v13 }
  0x8b   : > { %814 = vmatmul.mubr.bf16.gmra.mrb[24].mxu0 %v1449_v14 }
  0x8c   : > { %821 = vmatprep.mubr.bf16.mxu0 %v1452_v15 }
  0x93   : > { %822 = vmatmul.mubr.bf16.gmra.mrb[28].mxu0 %v1454_v16 }
 0x12e   : > { %v1260_v17 = vpop.f32.mrb[0].mxu0 }
 0x12f   : > { %v1261_v18 = vpop.f32.mrb[1].mxu0 }
 0x130   : > { %v1262_v19 = vadd.f32 %v1261_v18, %v1260_v17  ;;  %v1263_v20 = vpop.f32.mrb[2].mxu0  ;;  %v1342_v21 = vpop.f32.mrb[0].mxu1 }
 0x131   : > { %v1264_v22 = vpop.f32.mrb[3].mxu0  ;;  %v864_v24 = vpop.f32.mrb[1].mxu1 }
 0x132   : > { %v1265_v25 = vadd.f32 %v1264_v22, %v1263_v20  ;;  %v865_v26 = vadd.f32 %v1262_v19, %v864_v24  ;;  %v1343_v27 = vpop.f32.mrb[2].mxu1  ;;  %v373_v22 = vld [vmem:[#allocation2 + $0x40] sm:$0xff] }
 0x133   : > { %v867_v29 = vpop.f32.mrb[3].mxu1 }
 0x134   : > { %v927_v30 = vadd.f32 %v865_v26, %v365_v23  ;;  %v868_v31 = vadd.f32 %v1265_v25, %v867_v29  ;;  %v374_v25 = vld [vmem:[#allocation2 + $0x48] sm:$0xff] }
 0x136   : > { %943 = vst [vmem:[#allocation2] sm:$0xff] %v927_v30  ;;  %v928_v32 = vadd.f32 %v868_v31, %v366_v28  ;;  %v1266_v33 = vpop.f32.mrb[4].mxu0 }
 0x137   : > { %v1267_v34 = vpop.f32.mrb[5].mxu0 }
 0x138   : > { %944 = vst [vmem:[#allocation2 + $0x8] sm:$0xff] %v928_v32  ;;  %v1268_v35 = vadd.f32 %v1267_v34, %v1266_v33  ;;  %v1269_v36 = vpop.f32.mrb[6].mxu0  ;;  %v1346_v37 = vpop.f32.mrb[4].mxu1  ;;  %v375_v33 = vld [vmem:[#allocation2 + $0x50] sm:$0xff] }
 0x139   : > { %v1270_v39 = vpop.f32.mrb[7].mxu0  ;;  %v880_v40 = vpop.f32.mrb[5].mxu1 }
 0x13a   : > { %v873_v41 = vadd.f32 %v1342_v21, %v1268_v35  ;;  %v1271_v42 = vadd.f32 %v1270_v39, %v1269_v36  ;;  %v1347_v43 = vpop.f32.mrb[6].mxu1 }
 0x13b   : > { %v883_v45 = vpop.f32.mrb[7].mxu1 }
 0x13c   : > { %v929_v46 = vadd.f32 %v873_v41, %v367_v38  ;;  %v876_v47 = vadd.f32 %v1343_v27, %v1271_v42 }
 0x13e   : > { %945 = vst [vmem:[#allocation2 + $0x10] sm:$0xff] %v929_v46  ;;  %v930_v48 = vadd.f32 %v876_v47, %v368_v44  ;;  %v1272_v49 = vpop.f32.mrb[8].mxu0  ;;  %v377_v46 = vld [vmem:[#allocation2 + $0x60] sm:$0xff] }
 0x13f   : > { %v1273_v50 = vpop.f32.mrb[9].mxu0 }
 0x140   : > { %946 = vst [vmem:[#allocation2 + $0x18] sm:$0xff] %v930_v48  ;;  %v1274_v51 = vadd.f32 %v1273_v50, %v1272_v49  ;;  %v1275_v52 = vpop.f32.mrb[10].mxu0  ;;  %v1350_v53 = vpop.f32.mrb[8].mxu1  ;;  %v378_v49 = vld [vmem:[#allocation2 + $0x68] sm:$0xff] }
 0x141   : > { %v1276_v54 = vpop.f32.mrb[11].mxu0  ;;  %v896_v56 = vpop.f32.mrb[9].mxu1 }
 0x142   : > { %v1277_v57 = vadd.f32 %v1276_v54, %v1275_v52  ;;  %v881_v58 = vadd.f32 %v1274_v51, %v880_v40  ;;  %v1351_v59 = vpop.f32.mrb[10].mxu1 }
 0x143   : > { %v899_v61 = vpop.f32.mrb[11].mxu1 }
 0x144   : > { %v931_v62 = vadd.f32 %v881_v58, %v369_v55  ;;  %v884_v63 = vadd.f32 %v1277_v57, %v883_v45  ;;  %v379_v57 = vld [vmem:[#allocation2 + $0x70] sm:$0xff] }
 0x146   : > { %947 = vst [vmem:[#allocation2 + $0x20] sm:$0xff] %v931_v62  ;;  %v932_v0 = vadd.f32 %v884_v63, %v370_v60  ;;  %v1278_v1 = vpop.f32.mrb[12].mxu0 }
 0x147   : > { %v1279_v2 = vpop.f32.mrb[13].mxu0 }
 0x148   : > { %948 = vst [vmem:[#allocation2 + $0x28] sm:$0xff] %v932_v0  ;;  %v1280_v3 = vadd.f32 %v1279_v2, %v1278_v1  ;;  %v1281_v4 = vpop.f32.mrb[14].mxu0  ;;  %v1354_v5 = vpop.f32.mrb[12].mxu1  ;;  %v963_v1 = vld [vmem:[#allocation2] sm:$0xff] (!%p1237_p11) }
 0x149   : > { %v1282_v7 = vpop.f32.mrb[15].mxu0  ;;  %v912_v8 = vpop.f32.mrb[13].mxu1  ;;  %v1238_v2 = vld [vmem:[%s1756_s2] ss:$0 sm:$0xff] (!%p1237_p11) }
 0x14a   : > { %v889_v9 = vadd.f32 %v1346_v37, %v1280_v3  ;;  %v1283_v10 = vadd.f32 %v1282_v7, %v1281_v4  ;;  %v1355_v11 = vpop.f32.mrb[14].mxu1  ;;  %v376_v37 = vld [vmem:[#allocation2 + $0x58] sm:$0xff]  ;;  %v964_v3 = vld [vmem:[#allocation2 + $0x8] sm:$0xff] (!%p1237_p11)  ;;  %v986_v4 = vadd.f32 (!%p1237_p11), %v1238_v2, %v963_v1  ;;  %v965_v7 = vld [vmem:[#allocation2 + $0x10] sm:$0xff] (!%p1237_p11) }
 0x14b   : > { %v915_v13 = vpop.f32.mrb[15].mxu1 }
 0x14c   : > { %v933_v14 = vadd.f32 %v889_v9, %v371_v6  ;;  %v892_v15 = vadd.f32 %v1347_v43, %v1283_v10  ;;  %v987_v6 = vadd.f32 (!%p1237_p11), %v1238_v2, %v964_v3  ;;  %v988_v9 = vadd.f32 (!%p1237_p11), %v1238_v2, %v965_v7 }
 0x14e   : > { %949 = vst [vmem:[#allocation2 + $0x30] sm:$0xff] %v933_v14  ;;  %v934_v16 = vadd.f32 %v892_v15, %v372_v12  ;;  %v1284_v17 = vpop.f32.mrb[16].mxu0  ;;  %v1002_v15 = vmax.f32 (!%p1237_p11), %v986_v4, 0.0 }
 0x14f   : > { %v1285_v18 = vpop.f32.mrb[17].mxu0  ;;  %v968_v12 = vld [vmem:[#allocation2 + $0x28] sm:$0xff] (!%p1237_p11) }
 0x150   : > { %950 = vst [vmem:[#allocation2 + $0x38] sm:$0xff] %v934_v16  ;;  %v1286_v19 = vadd.f32 %v1285_v18, %v1284_v17  ;;  %v1287_v20 = vpop.f32.mrb[18].mxu0  ;;  %v1003_v16 = vmax.f32 (!%p1237_p11), %v987_v6, 0.0  ;;  %v991_v17 = vadd.f32 (!%p1237_p11), %v1238_v2, %v968_v12  ;;  %1018 = vst [vmem:[%s1757_s3] sm:$0xff] (!%p1237_p11), %v1002_v15 }
 0x151   : > { %v1288_v21 = vpop.f32.mrb[19].mxu0 }
 0x152   : > { %v1289_v23 = vadd.f32 %v1288_v21, %v1287_v20  ;;  %v897_v24 = vadd.f32 %v1286_v19, %v896_v56  ;;  %1019 = vst [vmem:[%s1757_s3 + $0x8] sm:$0xff] (!%p1237_p11), %v1003_v16 }
 0x154   : > { %v935_v26 = vadd.f32 %v897_v24, %v373_v22  ;;  %v900_v27 = vadd.f32 %v1289_v23, %v899_v61  ;;  %v380_v61 = vld [vmem:[#allocation2 + $0x78] sm:$0xff]  ;;  %v1004_v22 = vmax.f32 (!%p1237_p11), %v988_v9, 0.0 }
 0x156   : > { %951 = vst [vmem:[#allocation2 + $0x40] sm:$0xff] %v935_v26  ;;  %v936_v28 = vadd.f32 %v900_v27, %v374_v25  ;;  %v1290_v29 = vpop.f32.mrb[20].mxu0  ;;  %1020 = vst [vmem:[%s1757_s3 + $0x10] sm:$0xff] (!%p1237_p11), %v1004_v22 }
 0x157   : > { %v1291_v30 = vpop.f32.mrb[21].mxu0  ;;  %v970_v14 = vld [vmem:[#allocation2 + $0x38] sm:$0xff] (!%p1237_p11) }
 0x158   : > { %952 = vst [vmem:[#allocation2 + $0x48] sm:$0xff] %v936_v28  ;;  %v1292_v31 = vadd.f32 %v1291_v30, %v1290_v29  ;;  %v1293_v32 = vpop.f32.mrb[22].mxu0  ;;  %v993_v25 = vadd.f32 (!%p1237_p11), %v1238_v2, %v970_v14  ;;  %v1007_v29 = vmax.f32 (!%p1237_p11), %v991_v17, 0.0 }
 0x159   : > { %v1294_v34 = vpop.f32.mrb[23].mxu0 }
 0x15a   : > { %v905_v35 = vadd.f32 %v1350_v53, %v1292_v31  ;;  %v1295_v36 = vadd.f32 %v1294_v34, %v1293_v32  ;;  %1023 = vst [vmem:[%s1757_s3 + $0x28] sm:$0xff] (!%p1237_p11), %v1007_v29 }
 0x15c   : > { %v937_v38 = vadd.f32 %v905_v35, %v375_v33  ;;  %v908_v39 = vadd.f32 %v1351_v59, %v1295_v36  ;;  %v1009_v35 = vmax.f32 (!%p1237_p11), %v993_v25, 0.0 }
 0x15d   : > { %v971_v19 = vld [vmem:[#allocation2 + $0x40] sm:$0xff] (!%p1237_p11) }
 0x15e   : > { %953 = vst [vmem:[#allocation2 + $0x50] sm:$0xff] %v937_v38  ;;  %v938_v40 = vadd.f32 %v908_v39, %v376_v37  ;;  %v1296_v41 = vpop.f32.mrb[24].mxu0  ;;  %v994_v31 = vadd.f32 (!%p1237_p11), %v1238_v2, %v971_v19  ;;  %1025 = vst [vmem:[%s1757_s3 + $0x38] sm:$0xff] (!%p1237_p11), %v1009_v35 }
 0x15f   : > { %v1297_v42 = vpop.f32.mrb[25].mxu0  ;;  %v972_v20 = vld [vmem:[#allocation2 + $0x48] sm:$0xff] (!%p1237_p11) }
 0x160   : > { %954 = vst [vmem:[#allocation2 + $0x58] sm:$0xff] %v938_v40  ;;  %v1298_v43 = vadd.f32 %v1297_v42, %v1296_v41  ;;  %v1299_v44 = vpop.f32.mrb[26].mxu0  ;;  %v995_v32 = vadd.f32 (!%p1237_p11), %v1238_v2, %v972_v20  ;;  %v1010_v39 = vmax.f32 (!%p1237_p11), %v994_v31, 0.0 }
 0x161   : > { %v1300_v45 = vpop.f32.mrb[27].mxu0 }
 0x162   : > { %v1301_v47 = vadd.f32 %v1300_v45, %v1299_v44  ;;  %v913_v48 = vadd.f32 %v1298_v43, %v912_v8  ;;  %v967_v8 = vld [vmem:[#allocation2 + $0x20] sm:$0xff] (!%p1237_p11)  ;;  %v1011_v40 = vmax.f32 (!%p1237_p11), %v995_v32, 0.0  ;;  %1026 = vst [vmem:[%s1757_s3 + $0x40] sm:$0xff] (!%p1237_p11), %v1010_v39 }
 0x164   : > { %v939_v50 = vadd.f32 %v913_v48, %v377_v46  ;;  %v916_v51 = vadd.f32 %v1301_v47, %v915_v13  ;;  %v969_v13 = vld [vmem:[#allocation2 + $0x30] sm:$0xff] (!%p1237_p11)  ;;  %1027 = vst [vmem:[%s1757_s3 + $0x48] sm:$0xff] (!%p1237_p11), %v1011_v40 }
 0x165   : > { %v992_v18 = vadd.f32 (!%p1237_p11), %v1238_v2, %v969_v13  ;;  %v973_v21 = vld [vmem:[#allocation2 + $0x50] sm:$0xff] (!%p1237_p11) }
 0x166   : > { %955 = vst [vmem:[#allocation2 + $0x60] sm:$0xff] %v939_v50  ;;  %v940_v52 = vadd.f32 %v916_v51, %v378_v49  ;;  %v1302_v53 = vpop.f32.mrb[28].mxu0  ;;  %v996_v36 = vadd.f32 (!%p1237_p11), %v1238_v2, %v973_v21 }
 0x167   : > { %v1303_v54 = vpop.f32.mrb[29].mxu0  ;;  %v974_v26 = vld [vmem:[#allocation2 + $0x58] sm:$0xff] (!%p1237_p11)  ;;  %v1008_v30 = vmax.f32 (!%p1237_p11), %v992_v18, 0.0 }
 0x168   : > { %956 = vst [vmem:[#allocation2 + $0x68] sm:$0xff] %v940_v52  ;;  %v1304_v55 = vadd.f32 %v1303_v54, %v1302_v53  ;;  %v1305_v56 = vpop.f32.mrb[30].mxu0  ;;  %v997_v37 = vadd.f32 (!%p1237_p11), %v1238_v2, %v974_v26  ;;  %v1012_v43 = vmax.f32 (!%p1237_p11), %v996_v36, 0.0 }
 0x169   : > { %v1306_v58 = vpop.f32.mrb[31].mxu0  ;;  %1024 = vst [vmem:[%s1757_s3 + $0x30] sm:$0xff] (!%p1237_p11), %v1008_v30 }
 0x16a   : > { %v921_v59 = vadd.f32 %v1354_v5, %v1304_v55  ;;  %v1307_v60 = vadd.f32 %v1306_v58, %v1305_v56  ;;  %962 = sbr.rel (%p1237_p11) target bundleno = 381 (0x17d), region = 66  ;;  %v966_v5 = vld [vmem:[#allocation2 + $0x18] sm:$0xff] (!%p1237_p11)  ;;  %v1013_v44 = vmax.f32 (!%p1237_p11), %v997_v37, 0.0  ;;  %1028 = vst [vmem:[%s1757_s3 + $0x50] sm:$0xff] (!%p1237_p11), %v1012_v43 }
 0x16b   : > { %v989_v10 = vadd.f32 (!%p1237_p11), %v1238_v2, %v966_v5 }
 0x16c   : > { %v941_v62 = vadd.f32 %v921_v59, %v379_v57  ;;  %v924_v63 = vadd.f32 %v1355_v11, %v1307_v60  ;;  %v990_v11 = vadd.f32 (!%p1237_p11), %v1238_v2, %v967_v8  ;;  %1029 = vst [vmem:[%s1757_s3 + $0x58] sm:$0xff] (!%p1237_p11), %v1013_v44 }
 0x16d   : > { %v1005_v23 = vmax.f32 (!%p1237_p11), %v989_v10, 0.0  ;;  %v975_v27 = vld [vmem:[#allocation2 + $0x60] sm:$0xff] (!%p1237_p11) }
 0x16e   : > { %957 = vst [vmem:[#allocation2 + $0x70] sm:$0xff] %v941_v62  ;;  %v942_v0 = vadd.f32 %v924_v63, %v380_v61  ;;  %v1006_v24 = vmax.f32 (!%p1237_p11), %v990_v11, 0.0  ;;  %v998_v38 = vadd.f32 (!%p1237_p11), %v1238_v2, %v975_v27 }
 0x16f   : > { %v976_v28 = vld [vmem:[#allocation2 + $0x68] sm:$0xff] (!%p1237_p11)  ;;  %1021 = vst [vmem:[%s1757_s3 + $0x18] sm:$0xff] (!%p1237_p11), %v1005_v23 }
 0x170   : > { %958 = vst [vmem:[#allocation2 + $0x78] sm:$0xff] %v942_v0  ;;  %1022 = vst [vmem:[%s1757_s3 + $0x20] sm:$0xff] (!%p1237_p11), %v1006_v24  ;;  %v999_v41 = vadd.f32 (!%p1237_p11), %v1238_v2, %v976_v28  ;;  %v1014_v45 = vmax.f32 (!%p1237_p11), %v998_v38, 0.0 }
 0x172   : > { %v1015_v47 = vmax.f32 %v999_v41, 0.0  ;;  %1030 = vst [vmem:[%s1757_s3 + $0x60] sm:$0xff] %v1014_v45 }
 0x174   : > { %1031 = vst [vmem:[%s1757_s3 + $0x68] sm:$0xff] %v1015_v47 }
 0x175   : > { %v977_v33 = vld [vmem:[#allocation2 + $0x70] sm:$0xff] }
 0x176   : > { %v1000_v42 = vadd.f32 %v1238_v2, %v977_v33 }
 0x177   : > { %v978_v34 = vld [vmem:[#allocation2 + $0x78] sm:$0xff] }
 0x178   : > { %v1001_v46 = vadd.f32 %v1238_v2, %v978_v34  ;;  %v1016_v48 = vmax.f32 %v1000_v42, 0.0 }
 0x17a   : > { %v1017_v49 = vmax.f32 %v1001_v46, 0.0  ;;  %1032 = vst [vmem:[%s1757_s3 + $0x70] sm:$0xff] %v1016_v48 }
 0x17c   : > { %1033 = vst [vmem:[%s1757_s3 + $0x78] sm:$0xff] %v1017_v49 }
 0x17d PF: > { %s13_s16 = sadd.s32 1, %s1493_s16   ;;  %s1758_s12 = smov %s1481_s13 }
 0x17e   : > { %p10_p12 = scmp.ge.s32.totalorder %s13_s16, 5   ;;  %s1759_s13 = smov %s1551_s20 }
 0x17f   : > { %s1760_s14 = smov %s1489_s15  ;;  %s1761_s15 = smov %s1763_s17 }
 0x180   :  { %12 = sbr.rel (!%p10_p12) target bundleno = 3 (0x3), region = 113 }

// kernel: reseg_forward.26
= control target key start
LH: loop header
LB: loop body
LE: loop exit
PB: predicated region body
PF: predicated region fallthrough
CT: control target
= control target key end

     0   :  { %s1232_s12 = smov 0   ;;  %s1234_s13 = smov 0   ;;  %s1386_s0 = inlined_call_operand.vmem [shape: bf16[32,1152], index: 0, kind: input, shape index: {}]   ;;  %s1387_s1 = inlined_call_operand.vmem [shape: bf16[1152,256], index: 1, kind: input, shape index: {}]   ;;  %s1388_s2 = inlined_call_operand.vmem [shape: f32[1,256], index: 2, kind: input, shape index: {}]   ;;  %s1389_s3 = inlined_call_operand.vmem [shape: f32[32,256], index: 3, kind: output, shape index: {}]  }
   0x1   :  { %s1236_s14 = smov 0   ;;  %s1238_s15 = smov 0  }
   0x2   :  { %s1240_s16 = smov 0  }
   0x3 LB: > { %s25_s17 = sadd.s32 1, %s1204_s15  ;;  %p48_p1 = scmp.ne.s32.totalorder %s1196_s13, %s1192_s12  ;;  %s1208_s16 = sphi %s1240_s16, %s13_s16   ;;  %s1204_s15 = sphi %s1238_s15, %s1393_s15   ;;  %s1200_s14 = sphi %s1236_s14, %s1392_s14   ;;  %s1196_s13 = sphi %s1234_s13, %s1391_s13   ;;  %s1192_s12 = sphi %s1232_s12, %s1390_s12  }
   0x4   : > { %p26_p0 = scmp.ge.s32.totalorder %s25_s17, 3  ;;  %p49_p2 = scmp.eq.s32.totalorder %s1208_s16, 0 }
   0x5   : > { %s41_s19 = sadd.s32 1, %s1196_s13  ;;  %p963_p5 = scmp.ge.s32.totalorder %s1208_s16, 3 }
   0x6   : > { %s1395_s17 = smov (%p26_p0, %s25_s17), 0  ;;  %p50_p3 = por %p49_p2, %p48_p1 }
   0x7   : > { %s37_s18 = ssub.s32 %s1204_s15, %s1395_s17  ;;  %164 = sbr.rel (%p963_p5) target bundleno = 23 (0x17), region = 20 }
   0x8   : > { %p39_p4 = scmp.eq.s32.totalorder %s37_s18, 0 }
   0xa   : > { %s1267_s20 = scalar_select %p39_p4, %s1196_s13, %s41_s19  }
   0xe   : > { %167 = sbr.rel (!%p50_p3) target bundleno = 23 (0x17), region = 24  ;;  %s169_s21 = sand.u32 (%p50_p3), 1, %s1196_s13  }
   0xf   : > { %s1036_s22 = smul.u32 (%p50_p3), 12, %s1204_s15 }
  0x10   : > { %s1046_s23 = smul.u32 (%p50_p3), 48, %s169_s21 }
  0x11   : > { %s177_s26 = scalar_lea.vmem (%p50_p3), %s1386_s0, %s1036_s22 }
  0x12   : > { %v192_v0 = vld [vmem:[%s177_s26] sm:$0xff] (%p50_p3)  ;;  %v196_v2 = vld [vmem:[%s177_s26 + $0x48] sm:$0xff] (%p50_p3)  ;;  %s171_s27 = scalar_lea.vmem (%p50_p3), [#allocation3], %s1046_s23  ;;  %v969_v6 = vld [vmem:[%s177_s26 + $0x50] sm:$0xf] (%p50_p3) }
  0x13   : > { %v194_v1 = vld [vmem:[%s177_s26 + $0x24] sm:$0xff] (%p50_p3)  ;;  %193 = vst [vmem:[%s171_s27] sm:$0xff] (%p50_p3), %v192_v0  ;;  %197 = vst [vmem:[%s171_s27 + $0x18] sm:$0xff] (%p50_p3), %v196_v2  ;;  %v198_v3 = vld [vmem:[%s177_s26 + $0x6c] sm:$0xff] (%p50_p3) }
  0x14   : > { %195 = vst [vmem:[%s171_s27 + $0xc] sm:$0xff] (%p50_p3), %v194_v1  ;;  %v965_v4 = vld [vmem:[%s177_s26 + $0x8] sm:$0xf] (%p50_p3)  ;;  %v967_v5 = vld [vmem:[%s177_s26 + $0x2c] sm:$0xf] (%p50_p3)  ;;  %199 = vst [vmem:[%s171_s27 + $0x24] sm:$0xff] (%p50_p3), %v198_v3 }
  0x15   : > { %966 = vst [vmem:[%s171_s27 + $0x8] sm:$0xf] %v965_v4  ;;  %968 = vst [vmem:[%s171_s27 + $0x14] sm:$0xf] %v967_v5  ;;  %v971_v7 = vld [vmem:[%s177_s26 + $0x74] sm:$0xf] }
  0x16   : > { %970 = vst [vmem:[%s171_s27 + $0x20] sm:$0xf] %v969_v6  ;;  %972 = vst [vmem:[%s171_s27 + $0x2c] sm:$0xf] %v971_v7 }
  0x17 PF: > { %p973_p6 = scmp.ge.s32.totalorder %s1208_s16, 1  ;;  %p234_p7 = scmp.lt.s32.totalorder %s1208_s16, 4 }
  0x19   : > { %p235_p8 = pnand %p973_p6, %p234_p7 }
  0x1a   : > { %s241_s28 = sand.u32 (!%p235_p8), 1, %s1192_s12   ;;  %s285_s29 = smul.u32 (!%p235_p8), 48, %s1200_s14 }
  0x1b   : > { %238 = sbr.rel (%p235_p8) target bundleno = 346 (0x15a), region = 54  ;;  %p976_p10 = scmp.ne.s32.totalorder (!%p235_p8), %s1200_s14, 0 }
  0x1c   : > { %s1047_s30 = smul.u32 (!%p235_p8), 48, %s241_s28  ;;  %p287_p9 = scmp.lt.s32.totalorder (!%p235_p8), %s285_s29, 143 }
  0x1e   : > { %s1284_s8 = scalar_lea.vmem (!%p235_p8), [#allocation3], %s1047_s30 }
  0x22   : > { %s1397_s29 = smov (!%p287_p9, %s285_s29), 143  ;;  %318 = sbr.rel (%p976_p10) target bundleno = 41 (0x29), region = 62 }
  0x23   : > { %s1037_s4 = sshll.u32 %s1397_s29, 3  ;;  %v1210_v8 = vmov (!%p976_p10), 0.0  }
  0x24   : > { %s1282_s7 = scalar_lea.vmem %s1387_s1, %s1037_s4  ;;  %319 = vst [vmem:[#allocation2] sm:$0xff] (!%p976_p10), %v1210_v8  ;;  %320 = vst [vmem:[#allocation2 + $0x8] sm:$0xff] (!%p976_p10), %v1210_v8 }
  0x25   : > { %321 = vst [vmem:[#allocation2 + $0x10] sm:$0xff] (!%p976_p10), %v1210_v8  ;;  %322 = vst [vmem:[#allocation2 + $0x18] sm:$0xff] (!%p976_p10), %v1210_v8 }
  0x26   : > { %323 = vst [vmem:[#allocation2 + $0x20] sm:$0xff] (!%p976_p10), %v1210_v8  ;;  %324 = vst [vmem:[#allocation2 + $0x28] sm:$0xff] (!%p976_p10), %v1210_v8 }
  0x27   : > { %325 = vst [vmem:[#allocation2 + $0x30] sm:$0xff] (!%p976_p10), %v1210_v8  ;;  %326 = vst [vmem:[#allocation2 + $0x38] sm:$0xff] (!%p976_p10), %v1210_v8 }
  0x29 PF: > { %v1090_v9 = vld [vmem:[%s1282_s7 + $0x4] ss:$8 sps:$4 sm:$0xff]   ;;  %v1092_v10 = vld [vmem:[%s1282_s7] ss:$8 sps:$4 sm:$0xff]   ;;  %v1211_v11 = vmov 0   ;;  %p1031_p11 = scmp.ne.s32.totalorder %s1200_s14, 2 }
  0x2a   : > { %748 = vmatprep.mubr.bf16.mxu0 %v1211_v11  ;;  %663 = vmatprep.subr.bf16.mxu1 %v1090_v9  ;;  %v1093_v12 = vld [vmem:[%s1282_s7 + $0x14] ss:$8 sps:$4 sm:$0xff]   ;;  %v1095_v13 = vld [vmem:[%s1282_s7 + $0x10] ss:$8 sps:$4 sm:$0xff]   ;;  %v1096_v14 = vld [vmem:[%s1282_s7 + $0x24] ss:$8 sps:$4 sm:$0xff]  }
  0x2b   : > { %664 = vmatpush1.bf16.msra.mxu1 %v1092_v10  ;;  %v1098_v15 = vld [vmem:[%s1282_s7 + $0x20] ss:$8 sps:$4 sm:$0xff]   ;;  %v1099_v16 = vld [vmem:[%s1282_s7 + $0x34] ss:$8 sps:$4 sm:$0xff]   ;;  %v1101_v17 = vld [vmem:[%s1282_s7 + $0x30] ss:$8 sps:$4 sm:$0xff]  }
  0x2c   : > { %665 = vmatprep.subr.bf16.mxu1 %v1093_v12  ;;  %v1114_v18 = vld [vmem:[%s1282_s7 + $0x104] ss:$8 sps:$4 sm:$0xff]   ;;  %v1116_v19 = vld [vmem:[%s1282_s7 + $0x100] ss:$8 sps:$4 sm:$0xff]   ;;  %v1120_v21 = vld [vmem:[%s1282_s7 + $0x114] ss:$8 sps:$4 sm:$0xff]  }
  0x2d   : > { %v1102_v20 = vld [vmem:[%s1282_s7 + $0x44] ss:$8 sps:$4 sm:$0xff]   ;;  %716 = vmatprep.subr.bf16.mxu0 %v1114_v18  ;;  %v1122_v22 = vld [vmem:[%s1282_s7 + $0x110] ss:$8 sps:$4 sm:$0xff]   ;;  %v1104_v23 = vld [vmem:[%s1282_s7 + $0x40] ss:$8 sps:$4 sm:$0xff]  }
  0x2e   : > { %717 = vmatpush1.bf16.msra.mxu0 %v1116_v19  ;;  %v1105_v24 = vld [vmem:[%s1282_s7 + $0x54] ss:$8 sps:$4 sm:$0xff]   ;;  %v1126_v25 = vld [vmem:[%s1282_s7 + $0x124] ss:$8 sps:$4 sm:$0xff]   ;;  %v1128_v26 = vld [vmem:[%s1282_s7 + $0x120] ss:$8 sps:$4 sm:$0xff]  }
  0x2f   : > { %666 = vmatpush1.bf16.msra.mxu1 %v1095_v13  ;;  %718 = vmatprep.subr.bf16.mxu0 %v1120_v21  ;;  %v1107_v27 = vld [vmem:[%s1282_s7 + $0x50] ss:$8 sps:$4 sm:$0xff]   ;;  %v1132_v28 = vld [vmem:[%s1282_s7 + $0x134] ss:$8 sps:$4 sm:$0xff]   ;;  %v1108_v29 = vld [vmem:[%s1282_s7 + $0x64] ss:$8 sps:$4 sm:$0xff]  }
  0x30   : > { %667 = vmatprep.subr.bf16.mxu1 %v1096_v14  ;;  %v1134_v30 = vld [vmem:[%s1282_s7 + $0x130] ss:$8 sps:$4 sm:$0xff]   ;;  %v1110_v31 = vld [vmem:[%s1282_s7 + $0x60] ss:$8 sps:$4 sm:$0xff]   ;;  %v1138_v32 = vld [vmem:[%s1282_s7 + $0x144] ss:$8 sps:$4 sm:$0xff]  }
  0x31   : > { %v1111_v33 = vld [vmem:[%s1282_s7 + $0x74] ss:$8 sps:$4 sm:$0xff]   ;;  %v1140_v34 = vld [vmem:[%s1282_s7 + $0x140] ss:$8 sps:$4 sm:$0xff]   ;;  %v1113_v35 = vld [vmem:[%s1282_s7 + $0x70] ss:$8 sps:$4 sm:$0xff]  }
  0x32   : > { %719 = vmatpush1.bf16.msra.mxu0 %v1122_v22  ;;  %v1144_v36 = vld [vmem:[%s1282_s7 + $0x154] ss:$8 sps:$4 sm:$0xff]   ;;  %v1117_v37 = vld [vmem:[%s1282_s7 + $0x84] ss:$8 sps:$4 sm:$0xff]   ;;  %v1146_v38 = vld [vmem:[%s1282_s7 + $0x150] ss:$8 sps:$4 sm:$0xff]  }
  0x33   : > { %668 = vmatpush1.bf16.msra.mxu1 %v1098_v15  ;;  %720 = vmatprep.subr.bf16.mxu0 %v1126_v25  ;;  %v1119_v39 = vld [vmem:[%s1282_s7 + $0x80] ss:$8 sps:$4 sm:$0xff]   ;;  %v1150_v40 = vld [vmem:[%s1282_s7 + $0x164] ss:$8 sps:$4 sm:$0xff]   ;;  %v1123_v41 = vld [vmem:[%s1282_s7 + $0x94] ss:$8 sps:$4 sm:$0xff]  }
  0x34   : > { %669 = vmatprep.subr.bf16.mxu1 %v1099_v16  ;;  %v1125_v42 = vld [vmem:[%s1282_s7 + $0x90] ss:$8 sps:$4 sm:$0xff]   ;;  %v1152_v43 = vld [vmem:[%s1282_s7 + $0x160] ss:$8 sps:$4 sm:$0xff]   ;;  %v1156_v45 = vld [vmem:[%s1282_s7 + $0x174] ss:$8 sps:$4 sm:$0xff]  }
  0x35   : > { %v1165_v44 = vld [vmem:[%s1284_s8 + $0x4] ss:$12 sps:$4 sm:$0xff]   ;;  %v1162_v50 = vld [vmem:[%s1284_s8 + $0x8] ss:$12 sps:$4 sm:$0xff]   ;;  %v1166_v55 = vld [vmem:[%s1284_s8 + $0x20] ss:$12 sps:$4 sm:$0xff]  }
  0x36   : > { %721 = vmatpush1.bf16.msra.mxu0 %v1128_v26  ;;  %v1129_v46 = vld [vmem:[%s1282_s7 + $0xa4] ss:$8 sps:$4 sm:$0xff]   ;;  %695 = vmatprep.mubr.bf16.mxu1 %v1165_v44  ;;  %v1158_v47 = vld [vmem:[%s1282_s7 + $0x170] ss:$8 sps:$4 sm:$0xff]   ;;  %v1131_v48 = vld [vmem:[%s1282_s7 + $0xa0] ss:$8 sps:$4 sm:$0xff]  }
  0x37   : > { %670 = vmatpush1.bf16.msra.mxu1 %v1101_v17  ;;  %722 = vmatprep.subr.bf16.mxu0 %v1132_v28  ;;  %v1135_v49 = vld [vmem:[%s1282_s7 + $0xb4] ss:$8 sps:$4 sm:$0xff]   ;;  %v1137_v51 = vld [vmem:[%s1282_s7 + $0xb0] ss:$8 sps:$4 sm:$0xff]   ;;  %v1141_v52 = vld [vmem:[%s1282_s7 + $0xc4] ss:$8 sps:$4 sm:$0xff]  }
  0x38   : > { %671 = vmatprep.subr.bf16.mxu1 %v1102_v20  ;;  %v1143_v53 = vld [vmem:[%s1282_s7 + $0xc0] ss:$8 sps:$4 sm:$0xff]   ;;  %v1147_v54 = vld [vmem:[%s1282_s7 + $0xd4] ss:$8 sps:$4 sm:$0xff]   ;;  %v1149_v56 = vld [vmem:[%s1282_s7 + $0xd0] ss:$8 sps:$4 sm:$0xff]  }
  0x39   : > { %v1153_v57 = vld [vmem:[%s1282_s7 + $0xe4] ss:$8 sps:$4 sm:$0xff]   ;;  %v1155_v58 = vld [vmem:[%s1282_s7 + $0xe0] ss:$8 sps:$4 sm:$0xff]   ;;  %v1159_v59 = vld [vmem:[%s1282_s7 + $0xf4] ss:$8 sps:$4 sm:$0xff]  }
  0x3a   : > { %723 = vmatpush1.bf16.msra.mxu0 %v1134_v30  ;;  %v1161_v60 = vld [vmem:[%s1282_s7 + $0xf0] ss:$8 sps:$4 sm:$0xff]   ;;  %v327_v8 = vld [vmem:[#allocation2] sm:$0xff] }
  0x3b   : > { %672 = vmatpush1.bf16.msra.mxu1 %v1104_v23  ;;  %724 = vmatprep.subr.bf16.mxu0 %v1138_v32  ;;  %v1163_v61 = vld [vmem:[%s1284_s8] ss:$12 sps:$4 sm:$0xff]   ;;  %v1167_v62 = vld [vmem:[%s1284_s8 + $0x1c] ss:$12 sps:$4 sm:$0xff]   ;;  %v1169_v63 = vld [vmem:[%s1284_s8 + $0x18] ss:$12 sps:$4 sm:$0xff]  }
  0x3c   : > { %673 = vmatprep.subr.bf16.mxu1 %v1105_v24  ;;  %v329_v14 = vld [vmem:[#allocation2 + $0x10] sm:$0xff]  ;;  %v330_v18 = vld [vmem:[#allocation2 + $0x18] sm:$0xff]  ;;  %v331_v24 = vld [vmem:[#allocation2 + $0x20] sm:$0xff] }
  0x3d   : > { %v333_v30 = vld [vmem:[#allocation2 + $0x30] sm:$0xff] }
  0x3e   : > { %725 = vmatpush1.bf16.msra.mxu0 %v1140_v34  ;;  %v334_v34 = vld [vmem:[#allocation2 + $0x38] sm:$0xff] }
  0x3f   : > { %674 = vmatpush1.bf16.msra.mxu1 %v1107_v27  ;;  %726 = vmatprep.subr.bf16.mxu0 %v1144_v36  ;;  %v332_v27 = vld [vmem:[#allocation2 + $0x28] sm:$0xff] }
  0x40   : > { %675 = vmatprep.subr.bf16.mxu1 %v1108_v29 }
  0x42   : > { %727 = vmatpush1.bf16.msra.mxu0 %v1146_v38 }
  0x43   : > { %676 = vmatpush1.bf16.msra.mxu1 %v1110_v31  ;;  %728 = vmatprep.subr.bf16.mxu0 %v1150_v40  ;;  %v799_v40 = vlaneseq (!%p1031_p11) }
  0x44   : > { %677 = vmatprep.subr.bf16.mxu1 %v1111_v33 }
  0x46   : > { %729 = vmatpush1.bf16.msra.mxu0 %v1152_v43 }
  0x47   : > { %678 = vmatpush1.bf16.msra.mxu1 %v1113_v35  ;;  %730 = vmatprep.subr.bf16.mxu0 %v1156_v45 }
  0x48   : > { %679 = vmatprep.subr.bf16.mxu1 %v1117_v37 }
  0x4a   : > { %731 = vmatpush1.bf16.msra.mxu0 %v1158_v47 }
  0x4b   : > { %680 = vmatpush1.bf16.msra.mxu1 %v1119_v39 }
  0x4c   : > { %681 = vmatprep.subr.bf16.mxu1 %v1123_v41  ;;  %v800_v41 = vshrl.u32 (!%p1031_p11), %v799_v40, 7 }
  0x4d   : > { %749 = vmatmul.mubr.bf16.vlgmr.msra.gmra.mrb[0].mxu0 %v1162_v50 }
  0x4e   : > { %758 = vmatprep.mubr.bf16.mxu0 %v1211_v11  ;;  %v328_v11 = vld [vmem:[#allocation2 + $0x8] sm:$0xff]  ;;  %v801_v44 = vsub.s32 (!%p1031_p11), 0, %v800_v41 }
  0x4f   : > { %682 = vmatpush1.bf16.msra.mxu1 %v1125_v42  ;;  %v797_v42 = vld [vmem:[%s1388_s2] sm:$0x3] (!%p1031_p11) }
  0x50   : > { %683 = vmatprep.subr.bf16.mxu1 %v1129_v46  ;;  %v805_v46 = vsub.s32 (!%p1031_p11), 1, %v800_v41  ;;  %v802_v50 = vrot.slane (!%p1031_p11), %v797_v42, %v801_v44 }
  0x53   : > { %684 = vmatpush1.bf16.msra.mxu1 %v1131_v48 }
  0x54   : > { %685 = vmatprep.subr.bf16.mxu1 %v1135_v49 }
  0x55   : > { %759 = vmatmul.mubr.bf16.gmra.mrb[4].mxu0 %v1166_v55 }
  0x57   : > { %686 = vmatpush1.bf16.msra.mxu1 %v1137_v51  ;;  %v806_v51 = vrot.slane (!%p1031_p11), %v797_v42, %v805_v46 }
  0x58   : > { %687 = vmatprep.subr.bf16.mxu1 %v1141_v52 }
  0x5b   : > { %688 = vmatpush1.bf16.msra.mxu1 %v1143_v53 }
  0x5c   : > { %689 = vmatprep.subr.bf16.mxu1 %v1147_v54 }
  0x5f   : > { %690 = vmatpush1.bf16.msra.mxu1 %v1149_v56 }
  0x60   : > { %691 = vmatprep.subr.bf16.mxu1 %v1153_v57 }
  0x63   : > { %692 = vmatpush1.bf16.msra.mxu1 %v1155_v58 }
  0x64   : > { %693 = vmatprep.subr.bf16.mxu1 %v1159_v59 }
  0x67   : > { %694 = vmatpush1.bf16.msra.mxu1 %v1161_v60 }
  0x6a   : > { %696 = vmatmul.mubr.bf16.vlgmr.msra.gmra.mrb[0].mxu1 %v1163_v61 }
  0x6b   : > { %705 = vmatprep.mubr.bf16.mxu1 %v1167_v62 }
  0x72   : > { %706 = vmatmul.mubr.bf16.gmra.mrb[4].mxu1 %v1169_v63 }
 0x120   : > { %v750_v0 = vpop.f32.mrb[0].mxu0 }
 0x121   : > { %v752_v1 = vpop.f32.mrb[1].mxu0 }
 0x122   : > { %v754_v2 = vpop.f32.mrb[2].mxu0 }
 0x123   : > { %v756_v3 = vpop.f32.mrb[3].mxu0 }
 0x128   : > { %v760_v4 = vpop.f32.mrb[4].mxu0 }
 0x129   : > { %v762_v5 = vpop.f32.mrb[5].mxu0 }
 0x12a   : > { %v764_v6 = vpop.f32.mrb[6].mxu0 }
 0x12b   : > { %v766_v7 = vpop.f32.mrb[7].mxu0 }
 0x13d   : > { %v697_v9 = vpop.f32.mrb[0].mxu1 }
 0x13e   : > { %v751_v10 = vadd.f32 %v750_v0, %v697_v9  ;;  %v699_v12 = vpop.f32.mrb[1].mxu1 }
 0x13f   : > { %v753_v13 = vadd.f32 %v752_v1, %v699_v12  ;;  %v701_v15 = vpop.f32.mrb[2].mxu1 }
 0x140   : > { %v769_v16 = vadd.f32 %v751_v10, %v327_v8  ;;  %v755_v17 = vadd.f32 %v754_v2, %v701_v15  ;;  %v703_v19 = vpop.f32.mrb[3].mxu1 }
 0x141   : > { %v770_v20 = vadd.f32 %v753_v13, %v328_v11  ;;  %v757_v21 = vadd.f32 %v756_v3, %v703_v19 }
 0x142   : > { %777 = vst [vmem:[#allocation2] sm:$0xff] %v769_v16  ;;  %v771_v22 = vadd.f32 %v755_v17, %v329_v14 }
 0x143   : > { %778 = vst [vmem:[#allocation2 + $0x8] sm:$0xff] %v770_v20  ;;  %v772_v23 = vadd.f32 %v757_v21, %v330_v18 }
 0x144   : > { %779 = vst [vmem:[#allocation2 + $0x10] sm:$0xff] %v771_v22 }
 0x145   : > { %780 = vst [vmem:[#allocation2 + $0x18] sm:$0xff] %v772_v23  ;;  %v707_v25 = vpop.f32.mrb[4].mxu1 }
 0x146   : > { %v761_v26 = vadd.f32 %v760_v4, %v707_v25  ;;  %v709_v28 = vpop.f32.mrb[5].mxu1 }
 0x147   : > { %v763_v29 = vadd.f32 %v762_v5, %v709_v28  ;;  %v711_v31 = vpop.f32.mrb[6].mxu1  ;;  %788 = sbr.rel (%p1031_p11) target bundleno = 346 (0x15a), region = 66 }
 0x148   : > { %v773_v32 = vadd.f32 %v761_v26, %v331_v24  ;;  %v765_v33 = vadd.f32 %v764_v6, %v711_v31  ;;  %v713_v35 = vpop.f32.mrb[7].mxu1 }
 0x149   : > { %v774_v36 = vadd.f32 %v763_v29, %v332_v27  ;;  %v767_v37 = vadd.f32 %v766_v7, %v713_v35  ;;  %v789_v43 = vld [vmem:[#allocation2] sm:$0xff] (!%p1031_p11) }
 0x14a   : > { %781 = vst [vmem:[#allocation2 + $0x20] sm:$0xff] %v773_v32  ;;  %v775_v38 = vadd.f32 %v765_v33, %v333_v30  ;;  %v790_v45 = vld [vmem:[#allocation2 + $0x8] sm:$0xff] (!%p1031_p11)  ;;  %v809_v55 = vadd.f32 (!%p1031_p11), %v802_v50, %v789_v43 }
 0x14b   : > { %782 = vst [vmem:[#allocation2 + $0x28] sm:$0xff] %v774_v36  ;;  %v776_v39 = vadd.f32 %v767_v37, %v334_v34  ;;  %v791_v47 = vld [vmem:[#allocation2 + $0x10] sm:$0xff] (!%p1031_p11)  ;;  %v810_v56 = vadd.f32 (!%p1031_p11), %v806_v51, %v790_v45 }
 0x14c   : > { %783 = vst [vmem:[#allocation2 + $0x30] sm:$0xff] %v775_v38  ;;  %v792_v48 = vld [vmem:[#allocation2 + $0x18] sm:$0xff] (!%p1031_p11)  ;;  %v811_v57 = vadd.f32 (!%p1031_p11), %v802_v50, %v791_v47  ;;  %v817_v63 = vmax.f32 (!%p1031_p11), %v809_v55, 0.0 }
 0x14d   : > { %784 = vst [vmem:[#allocation2 + $0x38] sm:$0xff] %v776_v39  ;;  %v812_v58 = vadd.f32 (!%p1031_p11), %v806_v51, %v792_v48  ;;  %v818_v0 = vmax.f32 (!%p1031_p11), %v810_v56, 0.0 }
 0x14e   : > { %v819_v1 = vmax.f32 %v811_v57, 0.0  ;;  %825 = vst [vmem:[%s1389_s3] sm:$0xff] %v817_v63 }
 0x14f   : > { %v820_v2 = vmax.f32 %v812_v58, 0.0  ;;  %826 = vst [vmem:[%s1389_s3 + $0x8] sm:$0xff] %v818_v0 }
 0x150   : > { %827 = vst [vmem:[%s1389_s3 + $0x10] sm:$0xff] %v819_v1 }
 0x151   : > { %v793_v49 = vld [vmem:[#allocation2 + $0x20] sm:$0xff]  ;;  %828 = vst [vmem:[%s1389_s3 + $0x18] sm:$0xff] %v820_v2 }
 0x152   : > { %v794_v52 = vld [vmem:[#allocation2 + $0x28] sm:$0xff]  ;;  %v813_v59 = vadd.f32 %v802_v50, %v793_v49 }
 0x153   : > { %v795_v53 = vld [vmem:[#allocation2 + $0x30] sm:$0xff]  ;;  %v814_v60 = vadd.f32 %v806_v51, %v794_v52 }
 0x154   : > { %v796_v54 = vld [vmem:[#allocation2 + $0x38] sm:$0xff]  ;;  %v815_v61 = vadd.f32 %v802_v50, %v795_v53  ;;  %v821_v3 = vmax.f32 %v813_v59, 0.0 }
 0x155   : > { %v816_v62 = vadd.f32 %v806_v51, %v796_v54  ;;  %v822_v4 = vmax.f32 %v814_v60, 0.0 }
 0x156   : > { %v823_v5 = vmax.f32 %v815_v61, 0.0  ;;  %829 = vst [vmem:[%s1389_s3 + $0x20] sm:$0xff] %v821_v3 }
 0x157   : > { %v824_v6 = vmax.f32 %v816_v62, 0.0  ;;  %830 = vst [vmem:[%s1389_s3 + $0x28] sm:$0xff] %v822_v4 }
 0x158   : > { %831 = vst [vmem:[%s1389_s3 + $0x30] sm:$0xff] %v823_v5 }
 0x159   : > { %832 = vst [vmem:[%s1389_s3 + $0x38] sm:$0xff] %v824_v6 }
 0x15a PF: > { %s13_s16 = sadd.s32 1, %s1208_s16   ;;  %s1390_s12 = smov %s1196_s13 }
 0x15b   : > { %p10_p12 = scmp.ge.s32.totalorder %s13_s16, 5   ;;  %s1391_s13 = smov %s1267_s20 }
 0x15c   : > { %s1392_s14 = smov %s1204_s15  ;;  %s1393_s15 = smov %s1395_s17 }
 0x15d   :  { %12 = sbr.rel (!%p10_p12) target bundleno = 3 (0x3), region = 113 }

// kernel: reseg_forward.27
= control target key start
LH: loop header
LB: loop body
LE: loop exit
PB: predicated region body
PF: predicated region fallthrough
CT: control target
= control target key end

     0   :  { %s1765_s12 = smov 0   ;;  %s1767_s13 = smov 0   ;;  %s1971_s0 = inlined_call_operand.vmem [shape: bf16[32,2304], index: 0, kind: input, shape index: {}]   ;;  %s1972_s1 = inlined_call_operand.vmem [shape: bf16[2304,256], index: 1, kind: input, shape index: {}]   ;;  %s1973_s2 = inlined_call_operand.vmem [shape: f32[1,256], index: 2, kind: input, shape index: {}]   ;;  %s1974_s3 = inlined_call_operand.vmem [shape: f32[32,256], index: 3, kind: output, shape index: {}]  }
   0x1   :  { %s1769_s14 = smov 0   ;;  %s1771_s15 = smov 0  }
   0x2   :  { %s1773_s16 = smov 0  }
   0x3 LB: > { %s25_s17 = sadd.s32 1, %s1738_s15  ;;  %p48_p1 = scmp.ne.s32.totalorder %s1730_s13, %s1726_s12  ;;  %s1742_s16 = sphi %s1773_s16, %s13_s16   ;;  %s1738_s15 = sphi %s1771_s15, %s1978_s15   ;;  %s1734_s14 = sphi %s1769_s14, %s1977_s14   ;;  %s1730_s13 = sphi %s1767_s13, %s1976_s13   ;;  %s1726_s12 = sphi %s1765_s12, %s1975_s12  }
   0x4   : > { %p26_p0 = scmp.ge.s32.totalorder %s25_s17, 3  ;;  %p49_p2 = scmp.eq.s32.totalorder %s1742_s16, 0 }
   0x5   : > { %s41_s19 = sadd.s32 1, %s1730_s13  ;;  %p1330_p5 = scmp.ge.s32.totalorder %s1742_s16, 3 }
   0x6   : > { %s1980_s17 = smov (%p26_p0, %s25_s17), 0  ;;  %p50_p3 = por %p49_p2, %p48_p1 }
   0x7   : > { %s37_s18 = ssub.s32 %s1738_s15, %s1980_s17  ;;  %164 = sbr.rel (%p1330_p5) target bundleno = 25 (0x19), region = 20 }
   0x8   : > { %p39_p4 = scmp.eq.s32.totalorder %s37_s18, 0 }
   0xa   : > { %s1800_s20 = scalar_select %p39_p4, %s1730_s13, %s41_s19  }
   0xe   : > { %167 = sbr.rel (!%p50_p3) target bundleno = 25 (0x19), region = 24  ;;  %s169_s21 = sand.u32 (%p50_p3), 1, %s1730_s13  }
   0xf   : > { %s1449_s22 = smul.u32 (%p50_p3), 24, %s1738_s15 }
  0x10   : > { %s1499_s23 = smul.u32 (%p50_p3), 96, %s169_s21 }
  0x11   : > { %s177_s26 = scalar_lea.vmem (%p50_p3), %s1971_s0, %s1449_s22 }
  0x12   : > { %v190_v0 = vld [vmem:[%s177_s26] sm:$0xff] (%p50_p3)  ;;  %v192_v1 = vld [vmem:[%s177_s26 + $0x8] sm:$0xff] (%p50_p3)  ;;  %v194_v2 = vld [vmem:[%s177_s26 + $0x10] sm:$0xff] (%p50_p3)  ;;  %s171_s27 = scalar_lea.vmem (%p50_p3), [#allocation3], %s1499_s23 }
  0x13   : > { %191 = vst [vmem:[%s171_s27] sm:$0xff] (%p50_p3), %v190_v0  ;;  %193 = vst [vmem:[%s171_s27 + $0x8] sm:$0xff] (%p50_p3), %v192_v1  ;;  %v196_v3 = vld [vmem:[%s177_s26 + $0x48] sm:$0xff] (%p50_p3)  ;;  %v198_v4 = vld [vmem:[%s177_s26 + $0x50] sm:$0xff] (%p50_p3) }
  0x14   : > { %195 = vst [vmem:[%s171_s27 + $0x10] sm:$0xff] (%p50_p3), %v194_v2  ;;  %v200_v5 = vld [vmem:[%s177_s26 + $0x58] sm:$0xff] (%p50_p3)  ;;  %197 = vst [vmem:[%s171_s27 + $0x18] sm:$0xff] (%p50_p3), %v196_v3  ;;  %v202_v6 = vld [vmem:[%s177_s26 + $0x90] sm:$0xff] (%p50_p3) }
  0x15   : > { %199 = vst [vmem:[%s171_s27 + $0x20] sm:$0xff] %v198_v4  ;;  %201 = vst [vmem:[%s171_s27 + $0x28] sm:$0xff] %v200_v5  ;;  %v204_v7 = vld [vmem:[%s177_s26 + $0x98] sm:$0xff]  ;;  %v206_v8 = vld [vmem:[%s177_s26 + $0xa0] sm:$0xff] }
  0x16   : > { %203 = vst [vmem:[%s171_s27 + $0x30] sm:$0xff] %v202_v6  ;;  %205 = vst [vmem:[%s171_s27 + $0x38] sm:$0xff] %v204_v7  ;;  %v208_v9 = vld [vmem:[%s177_s26 + $0xd8] sm:$0xff]  ;;  %v210_v10 = vld [vmem:[%s177_s26 + $0xe0] sm:$0xff] }
  0x17   : > { %207 = vst [vmem:[%s171_s27 + $0x40] sm:$0xff] %v206_v8  ;;  %v212_v11 = vld [vmem:[%s177_s26 + $0xe8] sm:$0xff]  ;;  %209 = vst [vmem:[%s171_s27 + $0x48] sm:$0xff] %v208_v9 }
  0x18   : > { %211 = vst [vmem:[%s171_s27 + $0x50] sm:$0xff] %v210_v10  ;;  %213 = vst [vmem:[%s171_s27 + $0x58] sm:$0xff] %v212_v11 }
  0x19 PF: > { %p1332_p6 = scmp.ge.s32.totalorder %s1742_s16, 1  ;;  %p233_p7 = scmp.lt.s32.totalorder %s1742_s16, 4 }
  0x1b   : > { %p234_p8 = pnand %p1332_p6, %p233_p7 }
  0x1c   : > { %s240_s28 = sand.u32 (!%p234_p8), 1, %s1726_s12   ;;  %s284_s29 = smul.u32 (!%p234_p8), 96, %s1734_s14 }
  0x1d   : > { %237 = sbr.rel (%p234_p8) target bundleno = 405 (0x195), region = 51  ;;  %p1335_p10 = scmp.ne.s32.totalorder (!%p234_p8), %s1734_s14, 0 }
  0x1e   : > { %s1500_s30 = smul.u32 (!%p234_p8), 96, %s240_s28  ;;  %p286_p9 = scmp.lt.s32.totalorder (!%p234_p8), %s284_s29, 287 }
  0x20   : > { %s1817_s8 = scalar_lea.vmem (!%p234_p8), [#allocation3], %s1500_s30 }
  0x24   : > { %s1982_s29 = smov (!%p286_p9, %s284_s29), 287  ;;  %316 = sbr.rel (%p1335_p10) target bundleno = 43 (0x2b), region = 59 }
  0x25   : > { %s1450_s4 = sshll.u32 %s1982_s29, 3  ;;  %v1744_v12 = vmov (!%p1335_p10), 0.0  }
  0x26   : > { %s1815_s7 = scalar_lea.vmem %s1972_s1, %s1450_s4  ;;  %317 = vst [vmem:[#allocation2] sm:$0xff] (!%p1335_p10), %v1744_v12  ;;  %318 = vst [vmem:[#allocation2 + $0x8] sm:$0xff] (!%p1335_p10), %v1744_v12 }
  0x27   : > { %319 = vst [vmem:[#allocation2 + $0x10] sm:$0xff] (!%p1335_p10), %v1744_v12  ;;  %320 = vst [vmem:[#allocation2 + $0x18] sm:$0xff] (!%p1335_p10), %v1744_v12 }
  0x28   : > { %321 = vst [vmem:[#allocation2 + $0x20] sm:$0xff] (!%p1335_p10), %v1744_v12  ;;  %322 = vst [vmem:[#allocation2 + $0x28] sm:$0xff] (!%p1335_p10), %v1744_v12 }
  0x29   : > { %323 = vst [vmem:[#allocation2 + $0x30] sm:$0xff] (!%p1335_p10), %v1744_v12  ;;  %324 = vst [vmem:[#allocation2 + $0x38] sm:$0xff] (!%p1335_p10), %v1744_v12 }
  0x2b PF: > { %v1542_v13 = vld [vmem:[%s1815_s7 + $0x4] ss:$8 sps:$4 sm:$0xff]   ;;  %v1546_v15 = vld [vmem:[%s1815_s7] ss:$8 sps:$4 sm:$0xff]   ;;  %v1548_v17 = vld [vmem:[%s1815_s7 + $0x14] ss:$8 sps:$4 sm:$0xff]  }
  0x2c   : > { %v1544_v14 = vld [vmem:[%s1815_s7 + $0x104] ss:$8 sps:$4 sm:$0xff]   ;;  %981 = vmatprep.subr.bf16.mxu1 %v1542_v13  ;;  %v1547_v16 = vld [vmem:[%s1815_s7 + $0x100] ss:$8 sps:$4 sm:$0xff]   ;;  %v1550_v18 = vld [vmem:[%s1815_s7 + $0x114] ss:$8 sps:$4 sm:$0xff]  }
  0x2d   : > { %1034 = vmatprep.subr.bf16.mxu0 %v1544_v14  ;;  %982 = vmatpush1.bf16.msra.mxu1 %v1546_v15  ;;  %v1552_v19 = vld [vmem:[%s1815_s7 + $0x10] ss:$8 sps:$4 sm:$0xff]   ;;  %v1554_v21 = vld [vmem:[%s1815_s7 + $0x24] ss:$8 sps:$4 sm:$0xff]   ;;  %v1558_v23 = vld [vmem:[%s1815_s7 + $0x20] ss:$8 sps:$4 sm:$0xff]  }
  0x2e   : > { %1035 = vmatpush1.bf16.msra.mxu0 %v1547_v16  ;;  %983 = vmatprep.subr.bf16.mxu1 %v1548_v17  ;;  %v1553_v20 = vld [vmem:[%s1815_s7 + $0x110] ss:$8 sps:$4 sm:$0xff]   ;;  %v1556_v22 = vld [vmem:[%s1815_s7 + $0x124] ss:$8 sps:$4 sm:$0xff]   ;;  %v1559_v24 = vld [vmem:[%s1815_s7 + $0x120] ss:$8 sps:$4 sm:$0xff]  }
  0x2f   : > { %1036 = vmatprep.subr.bf16.mxu0 %v1550_v18  ;;  %v1560_v25 = vld [vmem:[%s1815_s7 + $0x34] ss:$8 sps:$4 sm:$0xff]   ;;  %v1564_v27 = vld [vmem:[%s1815_s7 + $0x30] ss:$8 sps:$4 sm:$0xff]   ;;  %v1566_v29 = vld [vmem:[%s1815_s7 + $0x44] ss:$8 sps:$4 sm:$0xff]  }
  0x30   : > { %v1562_v26 = vld [vmem:[%s1815_s7 + $0x134] ss:$8 sps:$4 sm:$0xff]   ;;  %v1565_v28 = vld [vmem:[%s1815_s7 + $0x130] ss:$8 sps:$4 sm:$0xff]   ;;  %v1568_v30 = vld [vmem:[%s1815_s7 + $0x144] ss:$8 sps:$4 sm:$0xff]  }
  0x31   : > { %984 = vmatpush1.bf16.msra.mxu1 %v1552_v19  ;;  %v1570_v31 = vld [vmem:[%s1815_s7 + $0x40] ss:$8 sps:$4 sm:$0xff]   ;;  %v1572_v33 = vld [vmem:[%s1815_s7 + $0x54] ss:$8 sps:$4 sm:$0xff]   ;;  %v1576_v35 = vld [vmem:[%s1815_s7 + $0x50] ss:$8 sps:$4 sm:$0xff]  }
  0x32   : > { %1037 = vmatpush1.bf16.msra.mxu0 %v1553_v20  ;;  %985 = vmatprep.subr.bf16.mxu1 %v1554_v21  ;;  %v1571_v32 = vld [vmem:[%s1815_s7 + $0x140] ss:$8 sps:$4 sm:$0xff]   ;;  %v1574_v34 = vld [vmem:[%s1815_s7 + $0x154] ss:$8 sps:$4 sm:$0xff]   ;;  %v1577_v36 = vld [vmem:[%s1815_s7 + $0x150] ss:$8 sps:$4 sm:$0xff]  }
  0x33   : > { %1038 = vmatprep.subr.bf16.mxu0 %v1556_v22  ;;  %v1578_v37 = vld [vmem:[%s1815_s7 + $0x64] ss:$8 sps:$4 sm:$0xff]   ;;  %v1582_v39 = vld [vmem:[%s1815_s7 + $0x60] ss:$8 sps:$4 sm:$0xff]   ;;  %v1584_v41 = vld [vmem:[%s1815_s7 + $0x74] ss:$8 sps:$4 sm:$0xff]  }
  0x34   : > { %v1580_v38 = vld [vmem:[%s1815_s7 + $0x164] ss:$8 sps:$4 sm:$0xff]   ;;  %v1583_v40 = vld [vmem:[%s1815_s7 + $0x160] ss:$8 sps:$4 sm:$0xff]   ;;  %v1586_v42 = vld [vmem:[%s1815_s7 + $0x174] ss:$8 sps:$4 sm:$0xff]  }
  0x35   : > { %986 = vmatpush1.bf16.msra.mxu1 %v1558_v23  ;;  %v1588_v43 = vld [vmem:[%s1815_s7 + $0x70] ss:$8 sps:$4 sm:$0xff]   ;;  %v1590_v45 = vld [vmem:[%s1815_s7 + $0x84] ss:$8 sps:$4 sm:$0xff]   ;;  %v1594_v47 = vld [vmem:[%s1815_s7 + $0x80] ss:$8 sps:$4 sm:$0xff]  }
  0x36   : > { %1039 = vmatpush1.bf16.msra.mxu0 %v1559_v24  ;;  %987 = vmatprep.subr.bf16.mxu1 %v1560_v25  ;;  %v1589_v44 = vld [vmem:[%s1815_s7 + $0x170] ss:$8 sps:$4 sm:$0xff]   ;;  %v1592_v46 = vld [vmem:[%s1815_s7 + $0x184] ss:$8 sps:$4 sm:$0xff]   ;;  %v1595_v48 = vld [vmem:[%s1815_s7 + $0x180] ss:$8 sps:$4 sm:$0xff]  }
  0x37   : > { %1040 = vmatprep.subr.bf16.mxu0 %v1562_v26  ;;  %v1596_v49 = vld [vmem:[%s1815_s7 + $0x94] ss:$8 sps:$4 sm:$0xff]   ;;  %v1600_v51 = vld [vmem:[%s1815_s7 + $0x90] ss:$8 sps:$4 sm:$0xff]   ;;  %v1602_v53 = vld [vmem:[%s1815_s7 + $0xa4] ss:$8 sps:$4 sm:$0xff]  }
  0x38   : > { %v1598_v50 = vld [vmem:[%s1815_s7 + $0x194] ss:$8 sps:$4 sm:$0xff]   ;;  %v1601_v52 = vld [vmem:[%s1815_s7 + $0x190] ss:$8 sps:$4 sm:$0xff]   ;;  %v1604_v54 = vld [vmem:[%s1815_s7 + $0x1a4] ss:$8 sps:$4 sm:$0xff]  }
  0x39   : > { %988 = vmatpush1.bf16.msra.mxu1 %v1564_v27  ;;  %v1606_v55 = vld [vmem:[%s1815_s7 + $0xa0] ss:$8 sps:$4 sm:$0xff]   ;;  %v1608_v57 = vld [vmem:[%s1815_s7 + $0xb4] ss:$8 sps:$4 sm:$0xff]   ;;  %v1612_v59 = vld [vmem:[%s1815_s7 + $0xb0] ss:$8 sps:$4 sm:$0xff]  }
  0x3a   : > { %1041 = vmatpush1.bf16.msra.mxu0 %v1565_v28  ;;  %989 = vmatprep.subr.bf16.mxu1 %v1566_v29  ;;  %v1607_v56 = vld [vmem:[%s1815_s7 + $0x1a0] ss:$8 sps:$4 sm:$0xff]   ;;  %v1610_v58 = vld [vmem:[%s1815_s7 + $0x1b4] ss:$8 sps:$4 sm:$0xff]   ;;  %v1613_v60 = vld [vmem:[%s1815_s7 + $0x1b0] ss:$8 sps:$4 sm:$0xff]  }
  0x3b   : > { %1042 = vmatprep.subr.bf16.mxu0 %v1568_v30  ;;  %v1614_v61 = vld [vmem:[%s1815_s7 + $0xc4] ss:$8 sps:$4 sm:$0xff]   ;;  %v1618_v1 = vld [vmem:[%s1815_s7 + $0xc0] ss:$8 sps:$4 sm:$0xff]   ;;  %v1620_v3 = vld [vmem:[%s1815_s7 + $0xd4] ss:$8 sps:$4 sm:$0xff]  }
  0x3c   : > { %v1640_v62 = vld [vmem:[%s1817_s8 + $0x4] ss:$24 sps:$4 sm:$0xff]   ;;  %v1619_v2 = vld [vmem:[%s1815_s7 + $0x1c0] ss:$8 sps:$4 sm:$0xff]   ;;  %v1624_v5 = vld [vmem:[%s1815_s7 + $0xd0] ss:$8 sps:$4 sm:$0xff]  }
  0x3d   : > { %990 = vmatpush1.bf16.msra.mxu1 %v1570_v31  ;;  %v1616_v63 = vld [vmem:[%s1815_s7 + $0x1c4] ss:$8 sps:$4 sm:$0xff]   ;;  %1013 = vmatprep.mubr.bf16.mxu1 %v1640_v62  ;;  %v1622_v4 = vld [vmem:[%s1815_s7 + $0x1d4] ss:$8 sps:$4 sm:$0xff]   ;;  %v1625_v6 = vld [vmem:[%s1815_s7 + $0x1d0] ss:$8 sps:$4 sm:$0xff]  }
  0x3e   : > { %1043 = vmatpush1.bf16.msra.mxu0 %v1571_v32  ;;  %991 = vmatprep.subr.bf16.mxu1 %v1572_v33  ;;  %v1643_v0 = vld [vmem:[%s1817_s8 + $0xc] ss:$24 sps:$4 sm:$0xff]   ;;  %v1630_v9 = vld [vmem:[%s1815_s7 + $0xe0] ss:$8 sps:$4 sm:$0xff]   ;;  %v1632_v11 = vld [vmem:[%s1815_s7 + $0xf4] ss:$8 sps:$4 sm:$0xff]  }
  0x3f   : > { %1044 = vmatprep.subr.bf16.mxu0 %v1574_v34  ;;  %1066 = vmatprep.mubr.bf16.mxu0 %v1643_v0  ;;  %v1626_v7 = vld [vmem:[%s1815_s7 + $0xe4] ss:$8 sps:$4 sm:$0xff]   ;;  %v1631_v10 = vld [vmem:[%s1815_s7 + $0x1e0] ss:$8 sps:$4 sm:$0xff]   ;;  %v1634_v12 = vld [vmem:[%s1815_s7 + $0x1f4] ss:$8 sps:$4 sm:$0xff]  }
  0x40   : > { %v1628_v8 = vld [vmem:[%s1815_s7 + $0x1e4] ss:$8 sps:$4 sm:$0xff]   ;;  %v1636_v13 = vld [vmem:[%s1815_s7 + $0xf0] ss:$8 sps:$4 sm:$0xff]   ;;  %v1641_v17 = vld [vmem:[%s1817_s8 + $0x8] ss:$24 sps:$4 sm:$0xff]  }
  0x41   : > { %992 = vmatpush1.bf16.msra.mxu1 %v1576_v35  ;;  %v1637_v14 = vld [vmem:[%s1815_s7 + $0x1f0] ss:$8 sps:$4 sm:$0xff]   ;;  %v1646_v15 = vld [vmem:[%s1815_s7 + $0x204] ss:$8 sps:$4 sm:$0xff]   ;;  %v1644_v18 = vld [vmem:[%s1815_s7 + $0x200] ss:$8 sps:$4 sm:$0xff]  }
  0x42   : > { %1045 = vmatpush1.bf16.msra.mxu0 %v1577_v36  ;;  %993 = vmatprep.subr.bf16.mxu1 %v1578_v37  ;;  %v1638_v16 = vld [vmem:[%s1817_s8] ss:$24 sps:$4 sm:$0xff]   ;;  %v1649_v19 = vld [vmem:[%s1815_s7 + $0x214] ss:$8 sps:$4 sm:$0xff]   ;;  %v1652_v23 = vld [vmem:[%s1815_s7 + $0x224] ss:$8 sps:$4 sm:$0xff]  }
  0x43   : > { %1046 = vmatprep.subr.bf16.mxu0 %v1580_v38  ;;  %v1683_v20 = vld [vmem:[%s1817_s8 + $0x34] ss:$24 sps:$4 sm:$0xff]   ;;  %v1647_v22 = vld [vmem:[%s1815_s7 + $0x210] ss:$8 sps:$4 sm:$0xff]   ;;  %v1650_v26 = vld [vmem:[%s1815_s7 + $0x220] ss:$8 sps:$4 sm:$0xff]  }
  0x44   : > { %v1685_v21 = vld [vmem:[%s1817_s8 + $0x3c] ss:$24 sps:$4 sm:$0xff]   ;;  %v1690_v24 = vld [vmem:[%s1817_s8 + $0x30] ss:$24 sps:$4 sm:$0xff]   ;;  %v1658_v31 = vld [vmem:[%s1815_s7 + $0x244] ss:$8 sps:$4 sm:$0xff]  }
  0x45   : > { %994 = vmatpush1.bf16.msra.mxu1 %v1582_v39  ;;  %v1691_v25 = vld [vmem:[%s1817_s8 + $0x38] ss:$24 sps:$4 sm:$0xff]   ;;  %v1655_v27 = vld [vmem:[%s1815_s7 + $0x234] ss:$8 sps:$4 sm:$0xff]   ;;  %v1656_v32 = vld [vmem:[%s1815_s7 + $0x240] ss:$8 sps:$4 sm:$0xff]  }
  0x46   : > { %1047 = vmatpush1.bf16.msra.mxu0 %v1583_v40  ;;  %995 = vmatprep.subr.bf16.mxu1 %v1584_v41  ;;  %v1700_v28 = vld [vmem:[%s1817_s8 + $0x14] ss:$24 sps:$4 sm:$0xff]   ;;  %v1703_v29 = vld [vmem:[%s1817_s8 + $0x44] ss:$24 sps:$4 sm:$0xff]   ;;  %v1653_v30 = vld [vmem:[%s1815_s7 + $0x230] ss:$8 sps:$4 sm:$0xff]  }
  0x47   : > { %1048 = vmatprep.subr.bf16.mxu0 %v1586_v42  ;;  %v1661_v33 = vld [vmem:[%s1815_s7 + $0x254] ss:$8 sps:$4 sm:$0xff]   ;;  %v1659_v34 = vld [vmem:[%s1815_s7 + $0x250] ss:$8 sps:$4 sm:$0xff]   ;;  %v1664_v35 = vld [vmem:[%s1815_s7 + $0x264] ss:$8 sps:$4 sm:$0xff]  }
  0x48   : > { %v1662_v36 = vld [vmem:[%s1815_s7 + $0x260] ss:$8 sps:$4 sm:$0xff]   ;;  %v1667_v37 = vld [vmem:[%s1815_s7 + $0x274] ss:$8 sps:$4 sm:$0xff]   ;;  %v1665_v38 = vld [vmem:[%s1815_s7 + $0x270] ss:$8 sps:$4 sm:$0xff]  }
  0x49   : > { %996 = vmatpush1.bf16.msra.mxu1 %v1588_v43  ;;  %v1670_v39 = vld [vmem:[%s1815_s7 + $0x284] ss:$8 sps:$4 sm:$0xff]   ;;  %v1668_v40 = vld [vmem:[%s1815_s7 + $0x280] ss:$8 sps:$4 sm:$0xff]   ;;  %v1673_v41 = vld [vmem:[%s1815_s7 + $0x294] ss:$8 sps:$4 sm:$0xff]  }
  0x4a   : > { %1049 = vmatpush1.bf16.msra.mxu0 %v1589_v44  ;;  %997 = vmatprep.subr.bf16.mxu1 %v1590_v45  ;;  %v1671_v42 = vld [vmem:[%s1815_s7 + $0x290] ss:$8 sps:$4 sm:$0xff]   ;;  %v1676_v43 = vld [vmem:[%s1815_s7 + $0x2a4] ss:$8 sps:$4 sm:$0xff]   ;;  %v1674_v44 = vld [vmem:[%s1815_s7 + $0x2a0] ss:$8 sps:$4 sm:$0xff]  }
  0x4b   : > { %1050 = vmatprep.subr.bf16.mxu0 %v1592_v46  ;;  %v1679_v45 = vld [vmem:[%s1815_s7 + $0x2b4] ss:$8 sps:$4 sm:$0xff]   ;;  %v1677_v46 = vld [vmem:[%s1815_s7 + $0x2b0] ss:$8 sps:$4 sm:$0xff]   ;;  %p1444_p11 = scmp.ne.s32.totalorder %s1734_s14, 2 }
  0x4d   : > { %998 = vmatpush1.bf16.msra.mxu1 %v1594_v47  ;;  %v1682_v47 = vld [vmem:[%s1815_s7 + $0x2c4] ss:$8 sps:$4 sm:$0xff]  }
  0x4e   : > { %1051 = vmatpush1.bf16.msra.mxu0 %v1595_v48  ;;  %999 = vmatprep.subr.bf16.mxu1 %v1596_v49  ;;  %v1680_v48 = vld [vmem:[%s1815_s7 + $0x2c0] ss:$8 sps:$4 sm:$0xff]   ;;  %v1689_v49 = vld [vmem:[%s1815_s7 + $0x2d4] ss:$8 sps:$4 sm:$0xff]  }
  0x4f   : > { %1052 = vmatprep.subr.bf16.mxu0 %v1598_v50  ;;  %v1687_v50 = vld [vmem:[%s1815_s7 + $0x2d0] ss:$8 sps:$4 sm:$0xff]  }
  0x51   : > { %1000 = vmatpush1.bf16.msra.mxu1 %v1600_v51  ;;  %v1694_v51 = vld [vmem:[%s1815_s7 + $0x2e4] ss:$8 sps:$4 sm:$0xff]  }
  0x52   : > { %1053 = vmatpush1.bf16.msra.mxu0 %v1601_v52  ;;  %1001 = vmatprep.subr.bf16.mxu1 %v1602_v53  ;;  %v1692_v52 = vld [vmem:[%s1815_s7 + $0x2e0] ss:$8 sps:$4 sm:$0xff]   ;;  %v1697_v53 = vld [vmem:[%s1815_s7 + $0x2f4] ss:$8 sps:$4 sm:$0xff]  }
  0x53   : > { %1054 = vmatprep.subr.bf16.mxu0 %v1604_v54  ;;  %v1695_v54 = vld [vmem:[%s1815_s7 + $0x2f0] ss:$8 sps:$4 sm:$0xff]  }
  0x55   : > { %1002 = vmatpush1.bf16.msra.mxu1 %v1606_v55  ;;  %v1698_v55 = vld [vmem:[%s1817_s8 + $0x10] ss:$24 sps:$4 sm:$0xff]  }
  0x56   : > { %1055 = vmatpush1.bf16.msra.mxu0 %v1607_v56  ;;  %1003 = vmatprep.subr.bf16.mxu1 %v1608_v57  ;;  %v1701_v56 = vld [vmem:[%s1817_s8 + $0x40] ss:$24 sps:$4 sm:$0xff]  }
  0x57   : > { %1056 = vmatprep.subr.bf16.mxu0 %v1610_v58 }
  0x59   : > { %1004 = vmatpush1.bf16.msra.mxu1 %v1612_v59 }
  0x5a   : > { %1057 = vmatpush1.bf16.msra.mxu0 %v1613_v60  ;;  %1005 = vmatprep.subr.bf16.mxu1 %v1614_v61 }
  0x5b   : > { %1058 = vmatprep.subr.bf16.mxu0 %v1616_v63 }
  0x5d   : > { %1006 = vmatpush1.bf16.msra.mxu1 %v1618_v1 }
  0x5e   : > { %1059 = vmatpush1.bf16.msra.mxu0 %v1619_v2  ;;  %1007 = vmatprep.subr.bf16.mxu1 %v1620_v3 }
  0x5f   : > { %1060 = vmatprep.subr.bf16.mxu0 %v1622_v4 }
  0x61   : > { %1008 = vmatpush1.bf16.msra.mxu1 %v1624_v5 }
  0x62   : > { %1061 = vmatpush1.bf16.msra.mxu0 %v1625_v6  ;;  %1009 = vmatprep.subr.bf16.mxu1 %v1626_v7 }
  0x63   : > { %1062 = vmatprep.subr.bf16.mxu0 %v1628_v8 }
  0x65   : > { %1010 = vmatpush1.bf16.msra.mxu1 %v1630_v9  ;;  %v325_v9 = vld [vmem:[#allocation2] sm:$0xff] }
  0x66   : > { %1063 = vmatpush1.bf16.msra.mxu0 %v1631_v10  ;;  %1011 = vmatprep.subr.bf16.mxu1 %v1632_v11  ;;  %v329_v11 = vld [vmem:[#allocation2 + $0x20] sm:$0xff] }
  0x67   : > { %1064 = vmatprep.subr.bf16.mxu0 %v1634_v12 }
  0x69   : > { %1012 = vmatpush1.bf16.msra.mxu1 %v1636_v13 }
  0x6a   : > { %1065 = vmatpush1.bf16.msra.mxu0 %v1637_v14  ;;  %1451 = vmatprep.subr.bf16.mxu1 %v1646_v15 }
  0x6b   : > { %1087 = vmatprep.subr.bf16.mxu0 %v1646_v15  ;;  %v326_v15 = vld [vmem:[#allocation2 + $0x8] sm:$0xff] }
  0x6c   : > { %1014 = vmatmul.mubr.bf16.vlgmr.msra.gmra.mrb[0].mxu1 %v1638_v16 }
  0x6d   : > { %1067 = vmatmul.mubr.bf16.vlgmr.msra.gmra.mrb[0].mxu0 %v1641_v17  ;;  %1467 = vmatpush1.bf16.msra.mxu1 %v1644_v18  ;;  %v330_v17 = vld [vmem:[#allocation2 + $0x28] sm:$0xff] }
  0x6e   : > { %1088 = vmatpush1.bf16.msra.mxu0 %v1644_v18  ;;  %1452 = vmatprep.subr.bf16.mxu1 %v1649_v19 }
  0x6f   : > { %1089 = vmatprep.subr.bf16.mxu0 %v1649_v19  ;;  %1023 = vmatprep.mubr.bf16.mxu1 %v1683_v20 }
  0x70   : > { %1076 = vmatprep.mubr.bf16.mxu0 %v1685_v21  ;;  %v327_v21 = vld [vmem:[#allocation2 + $0x10] sm:$0xff] }
  0x71   : > { %1468 = vmatpush1.bf16.msra.mxu1 %v1647_v22 }
  0x72   : > { %1090 = vmatpush1.bf16.msra.mxu0 %v1647_v22  ;;  %1453 = vmatprep.subr.bf16.mxu1 %v1652_v23 }
  0x73   : > { %1091 = vmatprep.subr.bf16.mxu0 %v1652_v23  ;;  %v331_v23 = vld [vmem:[#allocation2 + $0x30] sm:$0xff] }
  0x74   : > { %1024 = vmatmul.mubr.bf16.gmra.mrb[4].mxu1 %v1690_v24 }
  0x75   : > { %1077 = vmatmul.mubr.bf16.gmra.mrb[4].mxu0 %v1691_v25  ;;  %1469 = vmatpush1.bf16.msra.mxu1 %v1650_v26 }
  0x76   : > { %1092 = vmatpush1.bf16.msra.mxu0 %v1650_v26  ;;  %1454 = vmatprep.subr.bf16.mxu1 %v1655_v27 }
  0x77   : > { %1093 = vmatprep.subr.bf16.mxu0 %v1655_v27  ;;  %1119 = vmatprep.mubr.bf16.mxu0 %v1700_v28 }
  0x78   : > { %1129 = vmatprep.mubr.bf16.mxu1 %v1703_v29  ;;  %v328_v29 = vld [vmem:[#allocation2 + $0x18] sm:$0xff] }
  0x79   : > { %1470 = vmatpush1.bf16.msra.mxu1 %v1653_v30 }
  0x7a   : > { %1094 = vmatpush1.bf16.msra.mxu0 %v1653_v30  ;;  %1455 = vmatprep.subr.bf16.mxu1 %v1658_v31 }
  0x7b   : > { %1095 = vmatprep.subr.bf16.mxu0 %v1658_v31  ;;  %v332_v31 = vld [vmem:[#allocation2 + $0x38] sm:$0xff] }
  0x7d   : > { %1471 = vmatpush1.bf16.msra.mxu1 %v1656_v32 }
  0x7e   : > { %1096 = vmatpush1.bf16.msra.mxu0 %v1656_v32  ;;  %1456 = vmatprep.subr.bf16.mxu1 %v1661_v33 }
  0x7f   : > { %1097 = vmatprep.subr.bf16.mxu0 %v1661_v33 }
  0x81   : > { %1472 = vmatpush1.bf16.msra.mxu1 %v1659_v34 }
  0x82   : > { %1098 = vmatpush1.bf16.msra.mxu0 %v1659_v34  ;;  %1457 = vmatprep.subr.bf16.mxu1 %v1664_v35 }
  0x83   : > { %1099 = vmatprep.subr.bf16.mxu0 %v1664_v35 }
  0x85   : > { %1473 = vmatpush1.bf16.msra.mxu1 %v1662_v36 }
  0x86   : > { %1100 = vmatpush1.bf16.msra.mxu0 %v1662_v36  ;;  %1458 = vmatprep.subr.bf16.mxu1 %v1667_v37 }
  0x87   : > { %1101 = vmatprep.subr.bf16.mxu0 %v1667_v37 }
  0x89   : > { %1474 = vmatpush1.bf16.msra.mxu1 %v1665_v38 }
  0x8a   : > { %1102 = vmatpush1.bf16.msra.mxu0 %v1665_v38  ;;  %1459 = vmatprep.subr.bf16.mxu1 %v1670_v39 }
  0x8b   : > { %1103 = vmatprep.subr.bf16.mxu0 %v1670_v39 }
  0x8d   : > { %1475 = vmatpush1.bf16.msra.mxu1 %v1668_v40 }
  0x8e   : > { %1104 = vmatpush1.bf16.msra.mxu0 %v1668_v40  ;;  %1460 = vmatprep.subr.bf16.mxu1 %v1673_v41 }
  0x8f   : > { %1105 = vmatprep.subr.bf16.mxu0 %v1673_v41  ;;  %v1170_v41 = vlaneseq (!%p1444_p11) }
  0x91   : > { %1476 = vmatpush1.bf16.msra.mxu1 %v1671_v42 }
  0x92   : > { %1106 = vmatpush1.bf16.msra.mxu0 %v1671_v42  ;;  %1461 = vmatprep.subr.bf16.mxu1 %v1676_v43  ;;  %v1171_v42 = vshrl.u32 (!%p1444_p11), %v1170_v41, 7 }
  0x93   : > { %1107 = vmatprep.subr.bf16.mxu0 %v1676_v43  ;;  %v1168_v43 = vld [vmem:[%s1973_s2] sm:$0x3] (!%p1444_p11) }
  0x95   : > { %1477 = vmatpush1.bf16.msra.mxu1 %v1674_v44 }
  0x96   : > { %1108 = vmatpush1.bf16.msra.mxu0 %v1674_v44  ;;  %1462 = vmatprep.subr.bf16.mxu1 %v1679_v45 }
  0x97   : > { %1109 = vmatprep.subr.bf16.mxu0 %v1679_v45  ;;  %v1172_v45 = vsub.s32 (!%p1444_p11), 0, %v1171_v42 }
  0x99   : > { %1478 = vmatpush1.bf16.msra.mxu1 %v1677_v46 }
  0x9a   : > { %1110 = vmatpush1.bf16.msra.mxu0 %v1677_v46  ;;  %1463 = vmatprep.subr.bf16.mxu1 %v1682_v47 }
  0x9b   : > { %1111 = vmatprep.subr.bf16.mxu0 %v1682_v47  ;;  %v1176_v47 = vsub.s32 (!%p1444_p11), 1, %v1171_v42 }
  0x9d   : > { %1479 = vmatpush1.bf16.msra.mxu1 %v1680_v48 }
  0x9e   : > { %1112 = vmatpush1.bf16.msra.mxu0 %v1680_v48  ;;  %1464 = vmatprep.subr.bf16.mxu1 %v1689_v49 }
  0x9f   : > { %1113 = vmatprep.subr.bf16.mxu0 %v1689_v49 }
  0xa1   : > { %1480 = vmatpush1.bf16.msra.mxu1 %v1687_v50 }
  0xa2   : > { %1114 = vmatpush1.bf16.msra.mxu0 %v1687_v50  ;;  %1465 = vmatprep.subr.bf16.mxu1 %v1694_v51 }
  0xa3   : > { %1115 = vmatprep.subr.bf16.mxu0 %v1694_v51  ;;  %v1173_v51 = vrot.slane (!%p1444_p11), %v1168_v43, %v1172_v45 }
  0xa5   : > { %1481 = vmatpush1.bf16.msra.mxu1 %v1692_v52 }
  0xa6   : > { %1116 = vmatpush1.bf16.msra.mxu0 %v1692_v52  ;;  %1466 = vmatprep.subr.bf16.mxu1 %v1697_v53  ;;  %v1177_v52 = vrot.slane (!%p1444_p11), %v1168_v43, %v1176_v47 }
  0xa7   : > { %1117 = vmatprep.subr.bf16.mxu0 %v1697_v53 }
  0xa9   : > { %1482 = vmatpush1.bf16.msra.mxu1 %v1695_v54 }
  0xaa   : > { %1118 = vmatpush1.bf16.msra.mxu0 %v1695_v54 }
  0xac   : > { %1130 = vmatmul.mubr.bf16.vlgmr.msra.gmra.mrb[8].mxu1 %v1701_v56 }
  0xad   : > { %1120 = vmatmul.mubr.bf16.vlgmr.msra.gmra.mrb[0].mxu0 %v1698_v55 }
 0x13f   : > { %v1015_v57 = vpop.f32.mrb[0].mxu1 }
 0x140   : > { %v1017_v58 = vpop.f32.mrb[1].mxu1 }
 0x141   : > { %v1019_v59 = vpop.f32.mrb[2].mxu1 }
 0x142   : > { %v1021_v60 = vpop.f32.mrb[3].mxu1 }
 0x147   : > { %v1025_v61 = vpop.f32.mrb[4].mxu1 }
 0x148   : > { %v1078_v62 = vpop.f32.mrb[4].mxu0  ;;  %v1027_v0 = vpop.f32.mrb[5].mxu1 }
 0x149   : > { %v1079_v63 = vadd.f32 %v1078_v62, %v1025_v61  ;;  %v1080_v1 = vpop.f32.mrb[5].mxu0  ;;  %v1029_v3 = vpop.f32.mrb[6].mxu1 }
 0x14a   : > { %v1081_v2 = vadd.f32 %v1080_v1, %v1027_v0  ;;  %v1082_v4 = vpop.f32.mrb[6].mxu0  ;;  %v1031_v6 = vpop.f32.mrb[7].mxu1 }
 0x14b   : > { %v1083_v5 = vadd.f32 %v1082_v4, %v1029_v3  ;;  %v1084_v7 = vpop.f32.mrb[7].mxu0 }
 0x14c   : > { %v1085_v8 = vadd.f32 %v1084_v7, %v1031_v6 }
 0x17f   : > { %v1131_v12 = vpop.f32.mrb[8].mxu1 }
 0x180   : > { %v1121_v10 = vpop.f32.mrb[0].mxu0  ;;  %v1132_v14 = vadd.f32 %v1131_v12, %v1079_v63  ;;  %v1133_v18 = vpop.f32.mrb[9].mxu1 }
 0x181   : > { %v1483_v13 = vadd.f32 %v1121_v10, %v1015_v57  ;;  %v1123_v16 = vpop.f32.mrb[1].mxu0  ;;  %v1134_v20 = vadd.f32 %v1133_v18, %v1081_v2  ;;  %v1135_v24 = vpop.f32.mrb[10].mxu1 }
 0x182   : > { %v1484_v19 = vadd.f32 %v1123_v16, %v1017_v58  ;;  %v1125_v22 = vpop.f32.mrb[2].mxu0  ;;  %v1144_v26 = vadd.f32 %v1132_v14, %v329_v11  ;;  %v1136_v28 = vadd.f32 %v1135_v24, %v1083_v5  ;;  %v1137_v32 = vpop.f32.mrb[11].mxu1  ;;  %1159 = sbr.rel (%p1444_p11) target bundleno = 405 (0x195), region = 63 }
 0x183   : > { %v1140_v25 = vadd.f32 %v1483_v13, %v325_v9  ;;  %v1485_v27 = vadd.f32 %v1125_v22, %v1019_v59  ;;  %v1127_v30 = vpop.f32.mrb[3].mxu0  ;;  %v1145_v34 = vadd.f32 %v1134_v20, %v330_v17  ;;  %v1138_v36 = vadd.f32 %v1137_v32, %v1085_v8 }
 0x184   : > { %v1141_v33 = vadd.f32 %v1484_v19, %v326_v15  ;;  %v1486_v35 = vadd.f32 %v1127_v30, %v1021_v60  ;;  %1152 = vst [vmem:[#allocation2 + $0x20] sm:$0xff] %v1144_v26  ;;  %v1146_v38 = vadd.f32 %v1136_v28, %v331_v23 }
 0x185   : > { %1148 = vst [vmem:[#allocation2] sm:$0xff] %v1140_v25  ;;  %v1142_v37 = vadd.f32 %v1485_v27, %v327_v21  ;;  %1153 = vst [vmem:[#allocation2 + $0x28] sm:$0xff] %v1145_v34  ;;  %v1147_v40 = vadd.f32 %v1138_v36, %v332_v31 }
 0x186   : > { %1149 = vst [vmem:[#allocation2 + $0x8] sm:$0xff] %v1141_v33  ;;  %v1143_v39 = vadd.f32 %v1486_v35, %v328_v29  ;;  %1154 = vst [vmem:[#allocation2 + $0x30] sm:$0xff] %v1146_v38 }
 0x187   : > { %1150 = vst [vmem:[#allocation2 + $0x10] sm:$0xff] %v1142_v37  ;;  %1155 = vst [vmem:[#allocation2 + $0x38] sm:$0xff] %v1147_v40 }
 0x188   : > { %1151 = vst [vmem:[#allocation2 + $0x18] sm:$0xff] %v1143_v39 }
 0x18b   : > { %v1164_v50 = vld [vmem:[#allocation2 + $0x20] sm:$0xff] }
 0x18c   : > { %v1160_v44 = vld [vmem:[#allocation2] sm:$0xff]  ;;  %v1165_v53 = vld [vmem:[#allocation2 + $0x28] sm:$0xff]  ;;  %v1184_v60 = vadd.f32 %v1173_v51, %v1164_v50 }
 0x18d   : > { %v1161_v46 = vld [vmem:[#allocation2 + $0x8] sm:$0xff]  ;;  %v1166_v54 = vld [vmem:[#allocation2 + $0x30] sm:$0xff]  ;;  %v1180_v56 = vadd.f32 %v1173_v51, %v1160_v44  ;;  %v1185_v61 = vadd.f32 %v1177_v52, %v1165_v53 }
 0x18e   : > { %v1162_v48 = vld [vmem:[#allocation2 + $0x10] sm:$0xff]  ;;  %v1167_v55 = vld [vmem:[#allocation2 + $0x38] sm:$0xff]  ;;  %v1181_v57 = vadd.f32 %v1177_v52, %v1161_v46  ;;  %v1186_v62 = vadd.f32 %v1173_v51, %v1166_v54  ;;  %v1192_v4 = vmax.f32 %v1184_v60, 0.0 }
 0x18f   : > { %v1163_v49 = vld [vmem:[#allocation2 + $0x18] sm:$0xff]  ;;  %v1182_v58 = vadd.f32 %v1173_v51, %v1162_v48  ;;  %v1187_v63 = vadd.f32 %v1177_v52, %v1167_v55  ;;  %v1188_v0 = vmax.f32 %v1180_v56, 0.0  ;;  %v1193_v5 = vmax.f32 %v1185_v61, 0.0 }
 0x190   : > { %v1183_v59 = vadd.f32 %v1177_v52, %v1163_v49  ;;  %v1189_v1 = vmax.f32 %v1181_v57, 0.0  ;;  %v1194_v6 = vmax.f32 %v1186_v62, 0.0  ;;  %1200 = vst [vmem:[%s1974_s3 + $0x20] sm:$0xff] %v1192_v4 }
 0x191   : > { %v1190_v2 = vmax.f32 %v1182_v58, 0.0  ;;  %v1195_v7 = vmax.f32 %v1187_v63, 0.0  ;;  %1196 = vst [vmem:[%s1974_s3] sm:$0xff] %v1188_v0  ;;  %1201 = vst [vmem:[%s1974_s3 + $0x28] sm:$0xff] %v1193_v5 }
 0x192   : > { %v1191_v3 = vmax.f32 %v1183_v59, 0.0  ;;  %1197 = vst [vmem:[%s1974_s3 + $0x8] sm:$0xff] %v1189_v1  ;;  %1202 = vst [vmem:[%s1974_s3 + $0x30] sm:$0xff] %v1194_v6 }
 0x193   : > { %1198 = vst [vmem:[%s1974_s3 + $0x10] sm:$0xff] %v1190_v2  ;;  %1203 = vst [vmem:[%s1974_s3 + $0x38] sm:$0xff] %v1195_v7 }
 0x194   : > { %1199 = vst [vmem:[%s1974_s3 + $0x18] sm:$0xff] %v1191_v3 }
 0x195 PF: > { %s13_s16 = sadd.s32 1, %s1742_s16   ;;  %s1975_s12 = smov %s1730_s13 }
 0x196   : > { %p10_p12 = scmp.ge.s32.totalorder %s13_s16, 5   ;;  %s1976_s13 = smov %s1800_s20 }
 0x197   : > { %s1977_s14 = smov %s1738_s15  ;;  %s1978_s15 = smov %s1980_s17 }
 0x198   :  { %12 = sbr.rel (!%p10_p12) target bundleno = 3 (0x3), region = 104 }

// kernel: reseg_forward.29
= control target key start
LH: loop header
LB: loop body
LE: loop exit
PB: predicated region body
PF: predicated region fallthrough
CT: control target
= control target key end

     0   :  { %s1147_s12 = smov 0   ;;  %s1149_s13 = smov 0   ;;  %s1359_s0 = inlined_call_operand.vmem [shape: bf16[32,256], index: 0, kind: input, shape index: {}]   ;;  %s1360_s1 = inlined_call_operand.vmem [shape: bf16[256,768], index: 1, kind: input, shape index: {}]   ;;  %s1361_s2 = inlined_call_operand.vmem [shape: f32[1,768], index: 2, kind: input, shape index: {}]   ;;  %s1362_s3 = inlined_call_operand.vmem [shape: f32[32,768], index: 3, kind: output, shape index: {}]  }
   0x1   :  { %s1151_s14 = smov 0   ;;  %s1153_s15 = smov 0  }
   0x2   :  { %s1155_s16 = smov 0  }
   0x3 LB: > { %s28_s17 = sadd.s32 1, %s1121_s15  ;;  %s906_s18 = sadd.s32 4294967295, %s1125_s16   ;;  %s1125_s16 = sphi %s1155_s16, %s13_s16   ;;  %s1121_s15 = sphi %s1153_s15, %s1367_s15   ;;  %s1117_s14 = sphi %s1151_s14, %s1366_s14   ;;  %s1113_s13 = sphi %s1149_s13, %s1365_s13   ;;  %s1109_s12 = sphi %s1147_s12, %s1364_s12  }
   0x4   : > { %p30_p0 = scmp.ge.s32.totalorder %s28_s17, 3  ;;  %p76_p1 = scmp.ne.s32.totalorder %s1113_s13, %s1109_s12 }
   0x5   : > { %p77_p2 = scmp.eq.s32.totalorder %s1125_s16, 0  ;;  %p134_p4 = scmp.eq.s32.totalorder %s906_s18, 2 }
   0x6   : > { %s1369_s17 = smov (%p30_p0, %s28_s17), 0  ;;  %s69_s20 = sadd.s32 1, %s1113_s13 }
   0x7   : > { %p78_p3 = por %p77_p2, %p76_p1  ;;  %s65_s19 = ssub.s32 %s1121_s15, %s1369_s17 }
   0x8   : > { %p67_p5 = scmp.eq.s32.totalorder %s65_s19, 0  ;;  %p1182_p6 = por %p134_p4, %p76_p1 }
   0x9   : > { %p910_p7 = scmp.ge.s32.totalorder %s1125_s16, 3 }
   0xa   : > { %s1187_s22 = scalar_select %p67_p5, %s1113_s13, %s69_s20  }
   0xb   : > { %171 = sbr.rel (%p910_p7) target bundleno = 38 (0x26), region = 20 }
  0x12   : > { %174 = sbr.rel (!%p78_p3) target bundleno = 38 (0x26), region = 24  ;;  %s176_s23 = sand.u32 (%p78_p3), 1, %s1113_s13  }
  0x13   : > { %s959_s24 = sshll.u32 (%p78_p3), %s1121_s15, 3  ;;  %s911_s25 = sshll.u32 (%p78_p3), %s176_s23, 8 }
  0x14   : > { %s1195_s28 = scalar_lea.vmem (%p78_p3), %s1360_s1, %s959_s24  ;;  %s1200_s29 = scalar_lea.vmem (%p78_p3), [#allocation3], %s911_s25 }
  0x15   : > { %v274_v0 = vld [vmem:[%s1195_s28] sm:$0xff] (%p78_p3)  ;;  %v276_v1 = vld [vmem:[%s1195_s28 + $0x18] sm:$0xff] (%p78_p3)  ;;  %v278_v2 = vld [vmem:[%s1195_s28 + $0x30] sm:$0xff] (%p78_p3) }
  0x16   : > { %275 = vst [vmem:[%s1200_s29] sm:$0xff] (%p78_p3), %v274_v0  ;;  %277 = vst [vmem:[%s1200_s29 + $0x8] sm:$0xff] (%p78_p3), %v276_v1  ;;  %v280_v3 = vld [vmem:[%s1195_s28 + $0x48] sm:$0xff] (%p78_p3)  ;;  %v282_v4 = vld [vmem:[%s1195_s28 + $0x60] sm:$0xff] (%p78_p3) }
  0x17   : > { %279 = vst [vmem:[%s1200_s29 + $0x10] sm:$0xff] (%p78_p3), %v278_v2  ;;  %v284_v5 = vld [vmem:[%s1195_s28 + $0x78] sm:$0xff] (%p78_p3)  ;;  %281 = vst [vmem:[%s1200_s29 + $0x18] sm:$0xff] (%p78_p3), %v280_v3  ;;  %v286_v6 = vld [vmem:[%s1195_s28 + $0x90] sm:$0xff] (%p78_p3) }
  0x18   : > { %283 = vst [vmem:[%s1200_s29 + $0x20] sm:$0xff] (%p78_p3), %v282_v4  ;;  %285 = vst [vmem:[%s1200_s29 + $0x28] sm:$0xff] (%p78_p3), %v284_v5  ;;  %v288_v7 = vld [vmem:[%s1195_s28 + $0xa8] sm:$0xff] (%p78_p3)  ;;  %v290_v8 = vld [vmem:[%s1195_s28 + $0xc0] sm:$0xff] (%p78_p3) }
  0x19   : > { %287 = vst [vmem:[%s1200_s29 + $0x30] sm:$0xff] %v286_v6  ;;  %289 = vst [vmem:[%s1200_s29 + $0x38] sm:$0xff] %v288_v7  ;;  %v292_v9 = vld [vmem:[%s1195_s28 + $0xd8] sm:$0xff]  ;;  %v294_v10 = vld [vmem:[%s1195_s28 + $0xf0] sm:$0xff] }
  0x1a   : > { %291 = vst [vmem:[%s1200_s29 + $0x40] sm:$0xff] %v290_v8  ;;  %v296_v11 = vld [vmem:[%s1195_s28 + $0x108] sm:$0xff]  ;;  %293 = vst [vmem:[%s1200_s29 + $0x48] sm:$0xff] %v292_v9  ;;  %v298_v12 = vld [vmem:[%s1195_s28 + $0x120] sm:$0xff] }
  0x1b   : > { %295 = vst [vmem:[%s1200_s29 + $0x50] sm:$0xff] %v294_v10  ;;  %297 = vst [vmem:[%s1200_s29 + $0x58] sm:$0xff] %v296_v11  ;;  %v300_v13 = vld [vmem:[%s1195_s28 + $0x138] sm:$0xff]  ;;  %v302_v14 = vld [vmem:[%s1195_s28 + $0x150] sm:$0xff] }
  0x1c   : > { %299 = vst [vmem:[%s1200_s29 + $0x60] sm:$0xff] %v298_v12  ;;  %301 = vst [vmem:[%s1200_s29 + $0x68] sm:$0xff] %v300_v13  ;;  %v304_v15 = vld [vmem:[%s1195_s28 + $0x168] sm:$0xff]  ;;  %v306_v16 = vld [vmem:[%s1195_s28 + $0x180] sm:$0xff] }
  0x1d   : > { %303 = vst [vmem:[%s1200_s29 + $0x70] sm:$0xff] %v302_v14  ;;  %v308_v17 = vld [vmem:[%s1195_s28 + $0x198] sm:$0xff]  ;;  %305 = vst [vmem:[%s1200_s29 + $0x78] sm:$0xff] %v304_v15  ;;  %v310_v18 = vld [vmem:[%s1195_s28 + $0x1b0] sm:$0xff] }
  0x1e   : > { %307 = vst [vmem:[%s1200_s29 + $0x80] sm:$0xff] %v306_v16  ;;  %309 = vst [vmem:[%s1200_s29 + $0x88] sm:$0xff] %v308_v17  ;;  %v312_v19 = vld [vmem:[%s1195_s28 + $0x1c8] sm:$0xff]  ;;  %v314_v20 = vld [vmem:[%s1195_s28 + $0x1e0] sm:$0xff] }
  0x1f   : > { %311 = vst [vmem:[%s1200_s29 + $0x90] sm:$0xff] %v310_v18  ;;  %313 = vst [vmem:[%s1200_s29 + $0x98] sm:$0xff] %v312_v19  ;;  %v316_v21 = vld [vmem:[%s1195_s28 + $0x1f8] sm:$0xff]  ;;  %v318_v22 = vld [vmem:[%s1195_s28 + $0x210] sm:$0xff] }
  0x20   : > { %315 = vst [vmem:[%s1200_s29 + $0xa0] sm:$0xff] %v314_v20  ;;  %v320_v23 = vld [vmem:[%s1195_s28 + $0x228] sm:$0xff]  ;;  %317 = vst [vmem:[%s1200_s29 + $0xa8] sm:$0xff] %v316_v21  ;;  %v322_v24 = vld [vmem:[%s1195_s28 + $0x240] sm:$0xff] }
  0x21   : > { %319 = vst [vmem:[%s1200_s29 + $0xb0] sm:$0xff] %v318_v22  ;;  %321 = vst [vmem:[%s1200_s29 + $0xb8] sm:$0xff] %v320_v23  ;;  %v324_v25 = vld [vmem:[%s1195_s28 + $0x258] sm:$0xff]  ;;  %v326_v26 = vld [vmem:[%s1195_s28 + $0x270] sm:$0xff] }
  0x22   : > { %323 = vst [vmem:[%s1200_s29 + $0xc0] sm:$0xff] %v322_v24  ;;  %325 = vst [vmem:[%s1200_s29 + $0xc8] sm:$0xff] %v324_v25  ;;  %v328_v27 = vld [vmem:[%s1195_s28 + $0x288] sm:$0xff]  ;;  %v330_v28 = vld [vmem:[%s1195_s28 + $0x2a0] sm:$0xff] }
  0x23   : > { %327 = vst [vmem:[%s1200_s29 + $0xd0] sm:$0xff] %v326_v26  ;;  %v332_v29 = vld [vmem:[%s1195_s28 + $0x2b8] sm:$0xff]  ;;  %329 = vst [vmem:[%s1200_s29 + $0xd8] sm:$0xff] %v328_v27  ;;  %v334_v30 = vld [vmem:[%s1195_s28 + $0x2d0] sm:$0xff] }
  0x24   : > { %331 = vst [vmem:[%s1200_s29 + $0xe0] sm:$0xff] %v330_v28  ;;  %333 = vst [vmem:[%s1200_s29 + $0xe8] sm:$0xff] %v332_v29  ;;  %v336_v31 = vld [vmem:[%s1195_s28 + $0x2e8] sm:$0xff] }
  0x25   : > { %335 = vst [vmem:[%s1200_s29 + $0xf0] sm:$0xff] %v334_v30  ;;  %337 = vst [vmem:[%s1200_s29 + $0xf8] sm:$0xff] %v336_v31 }
  0x26 PF: > { %p914_p8 = scmp.ge.s32.totalorder %s1125_s16, 1  ;;  %p350_p9 = scmp.lt.s32.totalorder %s1125_s16, 4 }
  0x28   : > { %p351_p10 = pnand %p914_p8, %p350_p9 }
  0x29   : > { %s357_s30 = sand.u32 (!%p351_p10), 1, %s1109_s12   ;;  %v1083_v32 = vld [vmem:[%s1359_s0 + $0x4] ss:$8 sps:$4 sm:$0xff] (!%p351_p10)   ;;  %v1086_v33 = vld [vmem:[%s1359_s0 + $0x14] ss:$8 sps:$4 sm:$0xff] (!%p351_p10)   ;;  %s917_s20 = sshll.u32 (!%p351_p10), %s1117_s14, 1  ;;  %v732_v4 = vlaneseq (!%p351_p10) }
  0x2a   : > { %354 = sbr.rel (%p351_p10) target bundleno = 336 (0x150), region = 66  ;;  %s915_s4 = sshll.u32 (!%p351_p10), %s357_s30, 8  ;;  %682 = vmatprep.mubr.bf16.mxu0 (!%p351_p10), %v1083_v32  ;;  %692 = vmatprep.mubr.bf16.mxu1 (!%p351_p10), %v1086_v33  ;;  %v1081_v2 = vld [vmem:[%s1359_s0] ss:$8 sps:$4 sm:$0xff] (!%p351_p10)   ;;  %v1084_v3 = vld [vmem:[%s1359_s0 + $0x10] ss:$8 sps:$4 sm:$0xff] (!%p351_p10)  }
  0x2b   : > { %s1274_s9 = scalar_lea.vmem (!%p351_p10), [#allocation3], %s915_s4  ;;  %p408_p11 = scmp.lt.s32.totalorder (!%p351_p10), %s917_s20, 5  ;;  %v733_v5 = vshrl.u32 (!%p351_p10), %v732_v4, 7 }
  0x2c   : > { %v1033_v34 = vld [vmem:[%s1274_s9 + $0x4] ss:$8 sps:$4 sm:$0xff] (!%p351_p10)   ;;  %v1035_v35 = vld [vmem:[%s1274_s9] ss:$8 sps:$4 sm:$0xff] (!%p351_p10)   ;;  %v1036_v36 = vld [vmem:[%s1274_s9 + $0x14] ss:$8 sps:$4 sm:$0xff] (!%p351_p10)  }
  0x2d   : > { %650 = vmatprep.subr.bf16.mxu0 (!%p351_p10), %v1033_v34  ;;  %961 = vmatprep.subr.bf16.mxu1 (!%p351_p10), %v1033_v34  ;;  %v1038_v37 = vld [vmem:[%s1274_s9 + $0x10] ss:$8 sps:$4 sm:$0xff] (!%p351_p10)   ;;  %v1039_v38 = vld [vmem:[%s1274_s9 + $0x24] ss:$8 sps:$4 sm:$0xff] (!%p351_p10)   ;;  %v1041_v39 = vld [vmem:[%s1274_s9 + $0x20] ss:$8 sps:$4 sm:$0xff] (!%p351_p10)  }
  0x2e   : > { %651 = vmatpush1.bf16.msra.mxu0 (!%p351_p10), %v1035_v35  ;;  %977 = vmatpush1.bf16.msra.mxu1 (!%p351_p10), %v1035_v35  ;;  %v1042_v40 = vld [vmem:[%s1274_s9 + $0x34] ss:$8 sps:$4 sm:$0xff] (!%p351_p10)   ;;  %v1044_v41 = vld [vmem:[%s1274_s9 + $0x30] ss:$8 sps:$4 sm:$0xff] (!%p351_p10)   ;;  %v1045_v42 = vld [vmem:[%s1274_s9 + $0x44] ss:$8 sps:$4 sm:$0xff] (!%p351_p10)  }
  0x2f   : > { %652 = vmatprep.subr.bf16.mxu0 (!%p351_p10), %v1036_v36  ;;  %962 = vmatprep.subr.bf16.mxu1 (!%p351_p10), %v1036_v36  ;;  %v1047_v43 = vld [vmem:[%s1274_s9 + $0x40] ss:$8 sps:$4 sm:$0xff] (!%p351_p10)   ;;  %v1048_v44 = vld [vmem:[%s1274_s9 + $0x54] ss:$8 sps:$4 sm:$0xff] (!%p351_p10)   ;;  %v1050_v45 = vld [vmem:[%s1274_s9 + $0x50] ss:$8 sps:$4 sm:$0xff] (!%p351_p10)  }
  0x30   : > { %v1051_v46 = vld [vmem:[%s1274_s9 + $0x64] ss:$8 sps:$4 sm:$0xff] (!%p351_p10)   ;;  %v1053_v47 = vld [vmem:[%s1274_s9 + $0x60] ss:$8 sps:$4 sm:$0xff] (!%p351_p10)   ;;  %v1054_v48 = vld [vmem:[%s1274_s9 + $0x74] ss:$8 sps:$4 sm:$0xff] (!%p351_p10)  }
  0x31   : > { %v1056_v49 = vld [vmem:[%s1274_s9 + $0x70] ss:$8 sps:$4 sm:$0xff]   ;;  %v1057_v50 = vld [vmem:[%s1274_s9 + $0x84] ss:$8 sps:$4 sm:$0xff]   ;;  %v1059_v51 = vld [vmem:[%s1274_s9 + $0x80] ss:$8 sps:$4 sm:$0xff]  }
  0x32   : > { %653 = vmatpush1.bf16.msra.mxu0 %v1038_v37  ;;  %978 = vmatpush1.bf16.msra.mxu1 %v1038_v37  ;;  %v1060_v52 = vld [vmem:[%s1274_s9 + $0x94] ss:$8 sps:$4 sm:$0xff]   ;;  %v1062_v53 = vld [vmem:[%s1274_s9 + $0x90] ss:$8 sps:$4 sm:$0xff]   ;;  %v1063_v54 = vld [vmem:[%s1274_s9 + $0xa4] ss:$8 sps:$4 sm:$0xff]  }
  0x33   : > { %654 = vmatprep.subr.bf16.mxu0 %v1039_v38  ;;  %963 = vmatprep.subr.bf16.mxu1 %v1039_v38  ;;  %v1065_v55 = vld [vmem:[%s1274_s9 + $0xa0] ss:$8 sps:$4 sm:$0xff]   ;;  %v1066_v56 = vld [vmem:[%s1274_s9 + $0xb4] ss:$8 sps:$4 sm:$0xff]   ;;  %v1068_v57 = vld [vmem:[%s1274_s9 + $0xb0] ss:$8 sps:$4 sm:$0xff]  }
  0x34   : > { %v1069_v58 = vld [vmem:[%s1274_s9 + $0xc4] ss:$8 sps:$4 sm:$0xff]   ;;  %v1071_v59 = vld [vmem:[%s1274_s9 + $0xc0] ss:$8 sps:$4 sm:$0xff]   ;;  %v1072_v60 = vld [vmem:[%s1274_s9 + $0xd4] ss:$8 sps:$4 sm:$0xff]  }
  0x35   : > { %v1074_v61 = vld [vmem:[%s1274_s9 + $0xd0] ss:$8 sps:$4 sm:$0xff]   ;;  %v1075_v62 = vld [vmem:[%s1274_s9 + $0xe4] ss:$8 sps:$4 sm:$0xff]   ;;  %v1077_v63 = vld [vmem:[%s1274_s9 + $0xe0] ss:$8 sps:$4 sm:$0xff]  }
  0x36   : > { %655 = vmatpush1.bf16.msra.mxu0 %v1041_v39  ;;  %979 = vmatpush1.bf16.msra.mxu1 %v1041_v39  ;;  %v1078_v0 = vld [vmem:[%s1274_s9 + $0xf4] ss:$8 sps:$4 sm:$0xff]   ;;  %v1080_v1 = vld [vmem:[%s1274_s9 + $0xf0] ss:$8 sps:$4 sm:$0xff]   ;;  %s1371_s20 = smov (!%p408_p11, %s917_s20), 5  ;;  %v734_v6 = vsub.s32 0, %v733_v5 }
  0x37   : > { %656 = vmatprep.subr.bf16.mxu0 %v1042_v40  ;;  %964 = vmatprep.subr.bf16.mxu1 %v1042_v40  ;;  %s410_s25 = scalar_lea.vmem %s1361_s2, %s1371_s20  ;;  %v738_v8 = vsub.s32 1, %v733_v5  ;;  %s916_s26 = sshll.u32 %s357_s30, 6 }
  0x38   : > { %v730_v7 = vld [vmem:[%s410_s25] sm:$0x3]  ;;  %s1320_s27 = scalar_lea.vmem [#allocation4], %s916_s26  ;;  %s960_s12 = sshll.u32 (%p1182_p6), %s1117_s14, 4 }
  0x39   : > { %v735_v9 = vrot.slane %v730_v7, %v734_v6  ;;  %v739_v10 = vrot.slane %v730_v7, %v738_v8  ;;  %s770_s30 = scalar_lea.vmem (%p1182_p6), %s1362_s3, %s960_s12 }
  0x3a   : > { %657 = vmatpush1.bf16.msra.mxu0 %v1044_v41  ;;  %980 = vmatpush1.bf16.msra.mxu1 %v1044_v41 }
  0x3b   : > { %658 = vmatprep.subr.bf16.mxu0 %v1045_v42  ;;  %965 = vmatprep.subr.bf16.mxu1 %v1045_v42 }
  0x3e   : > { %659 = vmatpush1.bf16.msra.mxu0 %v1047_v43  ;;  %981 = vmatpush1.bf16.msra.mxu1 %v1047_v43 }
  0x3f   : > { %660 = vmatprep.subr.bf16.mxu0 %v1048_v44  ;;  %966 = vmatprep.subr.bf16.mxu1 %v1048_v44 }
  0x42   : > { %661 = vmatpush1.bf16.msra.mxu0 %v1050_v45  ;;  %982 = vmatpush1.bf16.msra.mxu1 %v1050_v45 }
  0x43   : > { %662 = vmatprep.subr.bf16.mxu0 %v1051_v46  ;;  %967 = vmatprep.subr.bf16.mxu1 %v1051_v46 }
  0x46   : > { %663 = vmatpush1.bf16.msra.mxu0 %v1053_v47  ;;  %983 = vmatpush1.bf16.msra.mxu1 %v1053_v47 }
  0x47   : > { %664 = vmatprep.subr.bf16.mxu0 %v1054_v48  ;;  %968 = vmatprep.subr.bf16.mxu1 %v1054_v48 }
  0x4a   : > { %665 = vmatpush1.bf16.msra.mxu0 %v1056_v49  ;;  %984 = vmatpush1.bf16.msra.mxu1 %v1056_v49 }
  0x4b   : > { %666 = vmatprep.subr.bf16.mxu0 %v1057_v50  ;;  %969 = vmatprep.subr.bf16.mxu1 %v1057_v50 }
  0x4e   : > { %667 = vmatpush1.bf16.msra.mxu0 %v1059_v51  ;;  %985 = vmatpush1.bf16.msra.mxu1 %v1059_v51 }
  0x4f   : > { %668 = vmatprep.subr.bf16.mxu0 %v1060_v52  ;;  %970 = vmatprep.subr.bf16.mxu1 %v1060_v52 }
  0x52   : > { %669 = vmatpush1.bf16.msra.mxu0 %v1062_v53  ;;  %986 = vmatpush1.bf16.msra.mxu1 %v1062_v53 }
  0x53   : > { %670 = vmatprep.subr.bf16.mxu0 %v1063_v54  ;;  %971 = vmatprep.subr.bf16.mxu1 %v1063_v54 }
  0x56   : > { %671 = vmatpush1.bf16.msra.mxu0 %v1065_v55  ;;  %987 = vmatpush1.bf16.msra.mxu1 %v1065_v55 }
  0x57   : > { %672 = vmatprep.subr.bf16.mxu0 %v1066_v56  ;;  %972 = vmatprep.subr.bf16.mxu1 %v1066_v56 }
  0x5a   : > { %673 = vmatpush1.bf16.msra.mxu0 %v1068_v57  ;;  %988 = vmatpush1.bf16.msra.mxu1 %v1068_v57 }
  0x5b   : > { %674 = vmatprep.subr.bf16.mxu0 %v1069_v58  ;;  %973 = vmatprep.subr.bf16.mxu1 %v1069_v58 }
  0x5e   : > { %675 = vmatpush1.bf16.msra.mxu0 %v1071_v59  ;;  %989 = vmatpush1.bf16.msra.mxu1 %v1071_v59 }
  0x5f   : > { %676 = vmatprep.subr.bf16.mxu0 %v1072_v60  ;;  %974 = vmatprep.subr.bf16.mxu1 %v1072_v60 }
  0x62   : > { %677 = vmatpush1.bf16.msra.mxu0 %v1074_v61  ;;  %990 = vmatpush1.bf16.msra.mxu1 %v1074_v61 }
  0x63   : > { %678 = vmatprep.subr.bf16.mxu0 %v1075_v62  ;;  %975 = vmatprep.subr.bf16.mxu1 %v1075_v62 }
  0x66   : > { %679 = vmatpush1.bf16.msra.mxu0 %v1077_v63  ;;  %991 = vmatpush1.bf16.msra.mxu1 %v1077_v63 }
  0x67   : > { %680 = vmatprep.subr.bf16.mxu0 %v1078_v0  ;;  %976 = vmatprep.subr.bf16.mxu1 %v1078_v0 }
  0x6a   : > { %681 = vmatpush1.bf16.msra.mxu0 %v1080_v1  ;;  %992 = vmatpush1.bf16.msra.mxu1 %v1080_v1 }
  0x6d   : > { %683 = vmatmul.mubr.bf16.vlgmr.msra.gmra.mrb[0].mxu0 %v1081_v2  ;;  %693 = vmatmul.mubr.bf16.vlgmr.msra.gmra.mrb[0].mxu1 %v1084_v3 }
 0x140   : > { %v684_v11 = vpop.f32.mrb[0].mxu0  ;;  %v694_v12 = vpop.f32.mrb[0].mxu1  ;;  %764 = sbr.rel (!%p1182_p6) target bundleno = 336 (0x150), region = 82 }
 0x141   : > { %v742_v13 = vadd.f32 %v735_v9, %v684_v11  ;;  %v746_v14 = vadd.f32 %v735_v9, %v694_v12  ;;  %v686_v15 = vpop.f32.mrb[1].mxu0  ;;  %v696_v16 = vpop.f32.mrb[1].mxu1 }
 0x142   : > { %v743_v17 = vadd.f32 %v739_v10, %v686_v15  ;;  %v747_v18 = vadd.f32 %v739_v10, %v696_v16  ;;  %v688_v19 = vpop.f32.mrb[2].mxu0  ;;  %v698_v20 = vpop.f32.mrb[2].mxu1 }
 0x143   : > { %750 = vst [vmem:[%s1320_s27] sm:$0xff] %v742_v13  ;;  %754 = vst [vmem:[%s1320_s27 + $0x20] sm:$0xff] %v746_v14  ;;  %v744_v21 = vadd.f32 %v735_v9, %v688_v19  ;;  %v748_v22 = vadd.f32 %v735_v9, %v698_v20  ;;  %v690_v23 = vpop.f32.mrb[3].mxu0  ;;  %v700_v24 = vpop.f32.mrb[3].mxu1 }
 0x144   : > { %751 = vst [vmem:[%s1320_s27 + $0x8] sm:$0xff] %v743_v17  ;;  %755 = vst [vmem:[%s1320_s27 + $0x28] sm:$0xff] %v747_v18  ;;  %v745_v25 = vadd.f32 %v739_v10, %v690_v23  ;;  %v749_v26 = vadd.f32 %v739_v10, %v700_v24 }
 0x145   : > { %752 = vst [vmem:[%s1320_s27 + $0x10] sm:$0xff] %v744_v21  ;;  %756 = vst [vmem:[%s1320_s27 + $0x30] sm:$0xff] %v748_v22 }
 0x146   : > { %753 = vst [vmem:[%s1320_s27 + $0x18] sm:$0xff] %v745_v25  ;;  %757 = vst [vmem:[%s1320_s27 + $0x38] sm:$0xff] %v749_v26 }
 0x14a   : > { %v783_v27 = vld [vmem:[%s1320_s27] sm:$0xff] }
 0x14b   : > { %v785_v28 = vld [vmem:[%s1320_s27 + $0x8] sm:$0xff]  ;;  %v791_v31 = vld [vmem:[%s1320_s27 + $0x20] sm:$0xff]  ;;  %784 = vst [vmem:[%s770_s30] sm:$0xff] %v783_v27 }
 0x14c   : > { %v787_v29 = vld [vmem:[%s1320_s27 + $0x10] sm:$0xff]  ;;  %v793_v32 = vld [vmem:[%s1320_s27 + $0x28] sm:$0xff]  ;;  %786 = vst [vmem:[%s770_s30 + $0x8] sm:$0xff] %v785_v28  ;;  %792 = vst [vmem:[%s770_s30 + $0x60] sm:$0xff] %v791_v31 }
 0x14d   : > { %v789_v30 = vld [vmem:[%s1320_s27 + $0x18] sm:$0xff]  ;;  %788 = vst [vmem:[%s770_s30 + $0x30] sm:$0xff] %v787_v29  ;;  %794 = vst [vmem:[%s770_s30 + $0x68] sm:$0xff] %v793_v32  ;;  %v795_v33 = vld [vmem:[%s1320_s27 + $0x30] sm:$0xff] }
 0x14e   : > { %790 = vst [vmem:[%s770_s30 + $0x38] sm:$0xff] %v789_v30  ;;  %v797_v34 = vld [vmem:[%s1320_s27 + $0x38] sm:$0xff]  ;;  %796 = vst [vmem:[%s770_s30 + $0x90] sm:$0xff] %v795_v33 }
 0x14f   : > { %798 = vst [vmem:[%s770_s30 + $0x98] sm:$0xff] %v797_v34 }
 0x150 PF: > { %s13_s16 = sadd.s32 1, %s1125_s16   ;;  %s1364_s12 = smov %s1113_s13 }
 0x151   : > { %p10_p12 = scmp.ge.s32.totalorder %s13_s16, 5   ;;  %s1365_s13 = smov %s1187_s22 }
 0x152   : > { %s1366_s14 = smov %s1121_s15  ;;  %s1367_s15 = smov %s1369_s17 }
 0x153   :  { %12 = sbr.rel (!%p10_p12) target bundleno = 3 (0x3), region = 142 }

// kernel: reseg_forward.30
= control target key start
LH: loop header
LB: loop body
LE: loop exit
PB: predicated region body
PF: predicated region fallthrough
CT: control target
= control target key end

     0   :  { %v787_v0 = vmov 0.0   ;;  %s818_s17 = smov 0   ;;  %s1449_s0 = inlined_call_operand.vmem [shape: f32[4,8,768], index: 0, kind: input, shape index: {}]   ;;  %s1450_s1 = inlined_call_operand.vmem [shape: f32[256,768], index: 1, kind: input, shape index: {}]   ;;  %s1451_s2 = inlined_call_operand.vmem [shape: f32[1,768], index: 2, kind: input, shape index: {}]   ;;  %s1452_s3 = inlined_call_operand.vmem [shape: f32[4,8,128], index: 3, kind: output, shape index: {0}]   ;;  %s1453_s4 = inlined_call_operand.vmem [shape: f32[4,8,128], index: 4, kind: output, shape index: {1}]  }
   0x1   :  { %16 = vst [vmem:[#allocation2] sm:$0xff] %v787_v0  ;;  %17 = vst [vmem:[#allocation2 + $0x8] sm:$0xff] %v787_v0  ;;  %v816_v1 = vld [vmem:[%s1451_s2] sm:$0x3f] }
   0x2 LB: > { %v29_v2 = vld [vmem:[%s1450_s1 + $0x8] sm:$0xff]  ;;  %v35_v3 = vld [vmem:[%s1450_s1 + $0x38] sm:$0xff]  ;;  %v28_v4 = vld [vmem:[%s1450_s1] sm:$0xff]  ;;  %s556_s11 = smul.u32 48, %s785_s17  ;;  %s25_s15 = ssub.s32 3, %s785_s17  ;;  %s785_s17 = sphi %s818_s17, %s24_s17  }
   0x3   : > { %v558_v5 = vpack.c.bf16 %v35_v3, %v29_v2  ;;  %v34_v6 = vld [vmem:[%s1450_s1 + $0x30] sm:$0xff]  ;;  %v41_v7 = vld [vmem:[%s1450_s1 + $0x68] sm:$0xff]  ;;  %v47_v8 = vld [vmem:[%s1450_s1 + $0x98] sm:$0xff]  ;;  %s557_s16 = smul.u32 48, %s25_s15  ;;  %s554_s21 = sshll.u32 %s785_s17, 3 }
   0x4   : > { %v560_v9 = vpack.c.bf16 %v34_v6, %v28_v4  ;;  %v562_v10 = vpack.c.bf16 %v47_v8, %v41_v7  ;;  %v40_v11 = vld [vmem:[%s1450_s1 + $0x60] sm:$0xff]  ;;  %v46_v12 = vld [vmem:[%s1450_s1 + $0x90] sm:$0xff]  ;;  %v53_v13 = vld [vmem:[%s1450_s1 + $0xc8] sm:$0xff]  ;;  %s1414_s14 = scalar_lea.vmem %s1449_s0, %s556_s11  ;;  %s522_s2 = scalar_lea.vmem %s1452_s3, %s554_s21 }
   0x5   : > { %559 = vmatprep.subr.bf16.mxu0 %v558_v5  ;;  %v59_v14 = vld [vmem:[%s1450_s1 + $0xf8] sm:$0xff]  ;;  %v564_v15 = vpack.c.bf16 %v46_v12, %v40_v11  ;;  %v52_v17 = vld [vmem:[%s1450_s1 + $0xc0] sm:$0xff]  ;;  %v58_v18 = vld [vmem:[%s1450_s1 + $0xf0] sm:$0xff]  ;;  %s1427_s20 = scalar_lea.vmem %s1449_s0, %s557_s16  ;;  %s555_s24 = sshll.u32 %s25_s15, 3 }
   0x6   : > { %561 = vmatpush1.bf16.msra.mxu0 %v560_v9  ;;  %v566_v16 = vpack.c.bf16 %v59_v14, %v53_v13  ;;  %v65_v19 = vld [vmem:[%s1450_s1 + $0x128] sm:$0xff]  ;;  %v71_v20 = vld [vmem:[%s1450_s1 + $0x158] sm:$0xff]  ;;  %v568_v21 = vpack.c.bf16 %v58_v18, %v52_v17  ;;  %v64_v23 = vld [vmem:[%s1450_s1 + $0x120] sm:$0xff]  ;;  %s525_s27 = scalar_lea.vmem %s1453_s4, %s555_s24  ;;  %s24_s17 = sadd.s32 1, %s785_s17  }
   0x7   : > { %563 = vmatprep.subr.bf16.mxu0 %v562_v10  ;;  %v570_v22 = vpack.c.bf16 %v71_v20, %v65_v19  ;;  %v70_v24 = vld [vmem:[%s1450_s1 + $0x150] sm:$0xff]  ;;  %v77_v25 = vld [vmem:[%s1450_s1 + $0x188] sm:$0xff]  ;;  %v83_v26 = vld [vmem:[%s1450_s1 + $0x1b8] sm:$0xff]  ;;  %p21_p0 = scmp.ge.s32.totalorder %s24_s17, 4  }
   0x8   : > { %v31_v27 = vld [vmem:[%s1450_s1 + $0x18] sm:$0xff]  ;;  %v37_v28 = vld [vmem:[%s1450_s1 + $0x48] sm:$0xff]  ;;  %v30_v30 = vld [vmem:[%s1450_s1 + $0x10] sm:$0xff]  ;;  %v572_v32 = vpack.c.bf16 %v70_v24, %v64_v23  ;;  %v574_v36 = vpack.c.bf16 %v83_v26, %v77_v25 }
   0x9   : > { %v622_v29 = vpack.c.bf16 %v37_v28, %v31_v27  ;;  %v36_v31 = vld [vmem:[%s1450_s1 + $0x40] sm:$0xff]  ;;  %v43_v35 = vld [vmem:[%s1450_s1 + $0x78] sm:$0xff]  ;;  %v82_v37 = vld [vmem:[%s1450_s1 + $0x1b0] sm:$0xff] }
   0xa   : > { %565 = vmatpush1.bf16.msra.mxu0 %v564_v15  ;;  %v76_v33 = vld [vmem:[%s1450_s1 + $0x180] sm:$0xff]  ;;  %v624_v34 = vpack.c.bf16 %v36_v31, %v30_v30  ;;  %v89_v38 = vld [vmem:[%s1450_s1 + $0x1e8] sm:$0xff]  ;;  %v95_v40 = vld [vmem:[%s1450_s1 + $0x218] sm:$0xff] }
   0xb   : > { %567 = vmatprep.subr.bf16.mxu0 %v566_v16  ;;  %623 = vmatprep.subr.bf16.mxu1 %v622_v29  ;;  %v49_v39 = vld [vmem:[%s1450_s1 + $0xa8] sm:$0xff]  ;;  %v42_v42 = vld [vmem:[%s1450_s1 + $0x70] sm:$0xff]  ;;  %v48_v43 = vld [vmem:[%s1450_s1 + $0xa0] sm:$0xff]  ;;  %v576_v47 = vpack.c.bf16 %v82_v37, %v76_v33  ;;  %v578_v51 = vpack.c.bf16 %v95_v40, %v89_v38 }
   0xc   : > { %625 = vmatpush1.bf16.msra.mxu1 %v624_v34  ;;  %v626_v41 = vpack.c.bf16 %v49_v39, %v43_v35  ;;  %v628_v44 = vpack.c.bf16 %v48_v43, %v42_v42  ;;  %v55_v45 = vld [vmem:[%s1450_s1 + $0xd8] sm:$0xff]  ;;  %v61_v46 = vld [vmem:[%s1450_s1 + $0x108] sm:$0xff]  ;;  %v88_v48 = vld [vmem:[%s1450_s1 + $0x1e0] sm:$0xff] }
   0xd   : > { %v630_v49 = vpack.c.bf16 %v61_v46, %v55_v45  ;;  %v54_v50 = vld [vmem:[%s1450_s1 + $0xd0] sm:$0xff]  ;;  %v101_v53 = vld [vmem:[%s1450_s1 + $0x248] sm:$0xff]  ;;  %v60_v54 = vld [vmem:[%s1450_s1 + $0x100] sm:$0xff] }
   0xe   : > { %569 = vmatpush1.bf16.msra.mxu0 %v568_v21  ;;  %627 = vmatprep.subr.bf16.mxu1 %v626_v41  ;;  %v94_v52 = vld [vmem:[%s1450_s1 + $0x210] sm:$0xff]  ;;  %v107_v55 = vld [vmem:[%s1450_s1 + $0x278] sm:$0xff]  ;;  %v632_v56 = vpack.c.bf16 %v60_v54, %v54_v50  ;;  %v73_v58 = vld [vmem:[%s1450_s1 + $0x168] sm:$0xff] }
   0xf   : > { %571 = vmatprep.subr.bf16.mxu0 %v570_v22  ;;  %v67_v57 = vld [vmem:[%s1450_s1 + $0x138] sm:$0xff]  ;;  %v66_v60 = vld [vmem:[%s1450_s1 + $0x130] sm:$0xff]  ;;  %v72_v61 = vld [vmem:[%s1450_s1 + $0x160] sm:$0xff]  ;;  %v580_v62 = vpack.c.bf16 %v94_v52, %v88_v48  ;;  %v582_v0 = vpack.c.bf16 %v107_v55, %v101_v53 }
  0x10   : > { %629 = vmatpush1.bf16.msra.mxu1 %v628_v44  ;;  %v634_v59 = vpack.c.bf16 %v73_v58, %v67_v57  ;;  %v79_v63 = vld [vmem:[%s1450_s1 + $0x198] sm:$0xff]  ;;  %v100_v2 = vld [vmem:[%s1450_s1 + $0x240] sm:$0xff]  ;;  %v106_v3 = vld [vmem:[%s1450_s1 + $0x270] sm:$0xff]  ;;  %v636_v7 = vpack.c.bf16 %v72_v61, %v66_v60 }
  0x11   : > { %631 = vmatprep.subr.bf16.mxu1 %v630_v49  ;;  %v85_v4 = vld [vmem:[%s1450_s1 + $0x1c8] sm:$0xff]  ;;  %v119_v6 = vld [vmem:[%s1450_s1 + $0x2d8] sm:$0xff]  ;;  %v78_v9 = vld [vmem:[%s1450_s1 + $0x190] sm:$0xff]  ;;  %v584_v11 = vpack.c.bf16 %v106_v3, %v100_v2 }
  0x12   : > { %573 = vmatpush1.bf16.msra.mxu0 %v572_v32  ;;  %v113_v5 = vld [vmem:[%s1450_s1 + $0x2a8] sm:$0xff]  ;;  %v638_v8 = vpack.c.bf16 %v85_v4, %v79_v63  ;;  %v84_v10 = vld [vmem:[%s1450_s1 + $0x1c0] sm:$0xff]  ;;  %v91_v12 = vld [vmem:[%s1450_s1 + $0x1f8] sm:$0xff] }
  0x13   : > { %575 = vmatprep.subr.bf16.mxu0 %v574_v36  ;;  %v97_v13 = vld [vmem:[%s1450_s1 + $0x228] sm:$0xff]  ;;  %v586_v14 = vpack.c.bf16 %v119_v6, %v113_v5  ;;  %v112_v15 = vld [vmem:[%s1450_s1 + $0x2a0] sm:$0xff]  ;;  %v118_v16 = vld [vmem:[%s1450_s1 + $0x2d0] sm:$0xff]  ;;  %v640_v19 = vpack.c.bf16 %v84_v10, %v78_v9 }
  0x14   : > { %633 = vmatpush1.bf16.msra.mxu1 %v632_v56  ;;  %v125_v17 = vld [vmem:[%s1450_s1 + $0x308] sm:$0xff]  ;;  %v131_v18 = vld [vmem:[%s1450_s1 + $0x338] sm:$0xff]  ;;  %v642_v20 = vpack.c.bf16 %v97_v13, %v91_v12  ;;  %v90_v21 = vld [vmem:[%s1450_s1 + $0x1f0] sm:$0xff]  ;;  %v588_v23 = vpack.c.bf16 %v118_v16, %v112_v15 }
  0x15   : > { %635 = vmatprep.subr.bf16.mxu1 %v634_v59  ;;  %v96_v22 = vld [vmem:[%s1450_s1 + $0x220] sm:$0xff]  ;;  %v103_v24 = vld [vmem:[%s1450_s1 + $0x258] sm:$0xff]  ;;  %v109_v25 = vld [vmem:[%s1450_s1 + $0x288] sm:$0xff]  ;;  %v590_v26 = vpack.c.bf16 %v131_v18, %v125_v17 }
  0x16   : > { %577 = vmatpush1.bf16.msra.mxu0 %v576_v47  ;;  %v124_v27 = vld [vmem:[%s1450_s1 + $0x300] sm:$0xff]  ;;  %v130_v28 = vld [vmem:[%s1450_s1 + $0x330] sm:$0xff]  ;;  %v137_v29 = vld [vmem:[%s1450_s1 + $0x368] sm:$0xff]  ;;  %v644_v31 = vpack.c.bf16 %v96_v22, %v90_v21  ;;  %v646_v32 = vpack.c.bf16 %v109_v25, %v103_v24 }
  0x17   : > { %579 = vmatprep.subr.bf16.mxu0 %v578_v51  ;;  %v143_v30 = vld [vmem:[%s1450_s1 + $0x398] sm:$0xff]  ;;  %v102_v33 = vld [vmem:[%s1450_s1 + $0x250] sm:$0xff]  ;;  %v108_v34 = vld [vmem:[%s1450_s1 + $0x280] sm:$0xff]  ;;  %v592_v35 = vpack.c.bf16 %v130_v28, %v124_v27 }
  0x18   : > { %637 = vmatpush1.bf16.msra.mxu1 %v636_v7  ;;  %v115_v36 = vld [vmem:[%s1450_s1 + $0x2b8] sm:$0xff]  ;;  %v121_v37 = vld [vmem:[%s1450_s1 + $0x2e8] sm:$0xff]  ;;  %v594_v38 = vpack.c.bf16 %v143_v30, %v137_v29  ;;  %v136_v39 = vld [vmem:[%s1450_s1 + $0x360] sm:$0xff]  ;;  %v648_v44 = vpack.c.bf16 %v108_v34, %v102_v33 }
  0x19   : > { %639 = vmatprep.subr.bf16.mxu1 %v638_v8  ;;  %v142_v40 = vld [vmem:[%s1450_s1 + $0x390] sm:$0xff]  ;;  %v1033_v41 = vld [vmem:[#allocation2 + $0x8] sm:$0xff]  ;;  %v155_v43 = vld [vmem:[%s1450_s1 + $0x3f8] sm:$0xff]  ;;  %v650_v45 = vpack.c.bf16 %v121_v37, %v115_v36 }
  0x1a   : > { %581 = vmatpush1.bf16.msra.mxu0 %v580_v62  ;;  %v149_v42 = vld [vmem:[%s1450_s1 + $0x3c8] sm:$0xff]  ;;  %315 = vmatprep.mubr.f32.mxu0 %v1033_v41  ;;  %v114_v46 = vld [vmem:[%s1450_s1 + $0x2b0] sm:$0xff]  ;;  %v120_v47 = vld [vmem:[%s1450_s1 + $0x2e0] sm:$0xff]  ;;  %v596_v48 = vpack.c.bf16 %v142_v40, %v136_v39 }
  0x1b   : > { %583 = vmatprep.subr.bf16.mxu0 %v582_v0  ;;  %386 = vmatprep.mubr.f32.mxu1 %v1033_v41  ;;  %v127_v49 = vld [vmem:[%s1450_s1 + $0x318] sm:$0xff]  ;;  %v133_v50 = vld [vmem:[%s1450_s1 + $0x348] sm:$0xff]  ;;  %v598_v51 = vpack.c.bf16 %v155_v43, %v149_v42  ;;  %v148_v52 = vld [vmem:[%s1450_s1 + $0x3c0] sm:$0xff]  ;;  %v652_v56 = vpack.c.bf16 %v120_v47, %v114_v46 }
  0x1c   : > { %641 = vmatpush1.bf16.msra.mxu1 %v640_v19  ;;  %v154_v53 = vld [vmem:[%s1450_s1 + $0x3f0] sm:$0xff]  ;;  %v161_v54 = vld [vmem:[%s1450_s1 + $0x428] sm:$0xff]  ;;  %v167_v55 = vld [vmem:[%s1450_s1 + $0x458] sm:$0xff]  ;;  %v654_v57 = vpack.c.bf16 %v133_v50, %v127_v49 }
  0x1d   : > { %643 = vmatprep.subr.bf16.mxu1 %v642_v20  ;;  %v126_v58 = vld [vmem:[%s1450_s1 + $0x310] sm:$0xff]  ;;  %v132_v59 = vld [vmem:[%s1450_s1 + $0x340] sm:$0xff]  ;;  %v600_v60 = vpack.c.bf16 %v154_v53, %v148_v52  ;;  %v139_v61 = vld [vmem:[%s1450_s1 + $0x378] sm:$0xff]  ;;  %v602_v63 = vpack.c.bf16 %v167_v55, %v161_v54 }
  0x1e   : > { %585 = vmatpush1.bf16.msra.mxu0 %v584_v11  ;;  %v145_v62 = vld [vmem:[%s1450_s1 + $0x3a8] sm:$0xff]  ;;  %v160_v0 = vld [vmem:[%s1450_s1 + $0x420] sm:$0xff]  ;;  %v166_v2 = vld [vmem:[%s1450_s1 + $0x450] sm:$0xff]  ;;  %v656_v5 = vpack.c.bf16 %v132_v59, %v126_v58 }
  0x1f   : > { %587 = vmatprep.subr.bf16.mxu0 %v586_v14  ;;  %v173_v3 = vld [vmem:[%s1450_s1 + $0x488] sm:$0xff]  ;;  %v179_v4 = vld [vmem:[%s1450_s1 + $0x4b8] sm:$0xff]  ;;  %v658_v6 = vpack.c.bf16 %v145_v62, %v139_v61  ;;  %v138_v7 = vld [vmem:[%s1450_s1 + $0x370] sm:$0xff]  ;;  %v604_v9 = vpack.c.bf16 %v166_v2, %v160_v0 }
  0x20   : > { %645 = vmatpush1.bf16.msra.mxu1 %v644_v31  ;;  %v144_v8 = vld [vmem:[%s1450_s1 + $0x3a0] sm:$0xff]  ;;  %v151_v10 = vld [vmem:[%s1450_s1 + $0x3d8] sm:$0xff]  ;;  %v157_v11 = vld [vmem:[%s1450_s1 + $0x408] sm:$0xff]  ;;  %v606_v12 = vpack.c.bf16 %v179_v4, %v173_v3 }
  0x21   : > { %647 = vmatprep.subr.bf16.mxu1 %v646_v32  ;;  %v172_v13 = vld [vmem:[%s1450_s1 + $0x480] sm:$0xff]  ;;  %v178_v14 = vld [vmem:[%s1450_s1 + $0x4b0] sm:$0xff]  ;;  %v185_v15 = vld [vmem:[%s1450_s1 + $0x4e8] sm:$0xff]  ;;  %v660_v17 = vpack.c.bf16 %v144_v8, %v138_v7  ;;  %v662_v18 = vpack.c.bf16 %v157_v11, %v151_v10 }
  0x22   : > { %589 = vmatpush1.bf16.msra.mxu0 %v588_v23  ;;  %v191_v16 = vld [vmem:[%s1450_s1 + $0x518] sm:$0xff]  ;;  %v150_v19 = vld [vmem:[%s1450_s1 + $0x3d0] sm:$0xff]  ;;  %v156_v20 = vld [vmem:[%s1450_s1 + $0x400] sm:$0xff]  ;;  %v608_v21 = vpack.c.bf16 %v178_v14, %v172_v13 }
  0x23   : > { %591 = vmatprep.subr.bf16.mxu0 %v590_v26  ;;  %v163_v22 = vld [vmem:[%s1450_s1 + $0x438] sm:$0xff]  ;;  %v169_v23 = vld [vmem:[%s1450_s1 + $0x468] sm:$0xff]  ;;  %v610_v24 = vpack.c.bf16 %v191_v16, %v185_v15  ;;  %v184_v25 = vld [vmem:[%s1450_s1 + $0x4e0] sm:$0xff]  ;;  %v664_v29 = vpack.c.bf16 %v156_v20, %v150_v19 }
  0x24   : > { %649 = vmatpush1.bf16.msra.mxu1 %v648_v44  ;;  %v190_v26 = vld [vmem:[%s1450_s1 + $0x510] sm:$0xff]  ;;  %v197_v27 = vld [vmem:[%s1450_s1 + $0x548] sm:$0xff]  ;;  %v203_v28 = vld [vmem:[%s1450_s1 + $0x578] sm:$0xff]  ;;  %v666_v30 = vpack.c.bf16 %v169_v23, %v163_v22 }
  0x25   : > { %651 = vmatprep.subr.bf16.mxu1 %v650_v45  ;;  %v162_v31 = vld [vmem:[%s1450_s1 + $0x430] sm:$0xff]  ;;  %v168_v32 = vld [vmem:[%s1450_s1 + $0x460] sm:$0xff]  ;;  %v612_v33 = vpack.c.bf16 %v190_v26, %v184_v25  ;;  %v175_v34 = vld [vmem:[%s1450_s1 + $0x498] sm:$0xff]  ;;  %v614_v36 = vpack.c.bf16 %v203_v28, %v197_v27 }
  0x26   : > { %593 = vmatpush1.bf16.msra.mxu0 %v592_v35  ;;  %v181_v35 = vld [vmem:[%s1450_s1 + $0x4c8] sm:$0xff]  ;;  %v196_v37 = vld [vmem:[%s1450_s1 + $0x540] sm:$0xff]  ;;  %v215_v40 = vld [vmem:[%s1450_s1 + $0x5d8] sm:$0xff]  ;;  %v668_v42 = vpack.c.bf16 %v168_v32, %v162_v31 }
  0x27   : > { %595 = vmatprep.subr.bf16.mxu0 %v594_v38  ;;  %v202_v38 = vld [vmem:[%s1450_s1 + $0x570] sm:$0xff]  ;;  %v209_v39 = vld [vmem:[%s1450_s1 + $0x5a8] sm:$0xff]  ;;  %v670_v43 = vpack.c.bf16 %v181_v35, %v175_v34  ;;  %v180_v45 = vld [vmem:[%s1450_s1 + $0x4c0] sm:$0xff] }
  0x28   : > { %653 = vmatpush1.bf16.msra.mxu1 %v652_v56  ;;  %v174_v44 = vld [vmem:[%s1450_s1 + $0x490] sm:$0xff]  ;;  %v616_v46 = vpack.c.bf16 %v202_v38, %v196_v37  ;;  %v187_v47 = vld [vmem:[%s1450_s1 + $0x4f8] sm:$0xff]  ;;  %v618_v49 = vpack.c.bf16 %v215_v40, %v209_v39  ;;  %v208_v50 = vld [vmem:[%s1450_s1 + $0x5a0] sm:$0xff] }
  0x29   : > { %655 = vmatprep.subr.bf16.mxu1 %v654_v57  ;;  %v33_v52 = vld [vmem:[%s1450_s1 + $0x28] sm:$0xff]  ;;  %v39_v53 = vld [vmem:[%s1450_s1 + $0x58] sm:$0xff]  ;;  %v672_v54 = vpack.c.bf16 %v180_v45, %v174_v44  ;;  %v186_v56 = vld [vmem:[%s1450_s1 + $0x4f0] sm:$0xff] }
  0x2a   : > { %597 = vmatpush1.bf16.msra.mxu0 %v596_v48  ;;  %v193_v48 = vld [vmem:[%s1450_s1 + $0x528] sm:$0xff]  ;;  %v192_v57 = vld [vmem:[%s1450_s1 + $0x520] sm:$0xff]  ;;  %v199_v59 = vld [vmem:[%s1450_s1 + $0x558] sm:$0xff]  ;;  %v686_v61 = vpack.c.bf16 %v39_v53, %v33_v52 }
  0x2b   : > { %599 = vmatprep.subr.bf16.mxu0 %v598_v51  ;;  %v214_v51 = vld [vmem:[%s1450_s1 + $0x5d0] sm:$0xff]  ;;  %v674_v55 = vpack.c.bf16 %v193_v48, %v187_v47  ;;  %v32_v62 = vld [vmem:[%s1450_s1 + $0x20] sm:$0xff]  ;;  %v45_v0 = vld [vmem:[%s1450_s1 + $0x88] sm:$0xff]  ;;  %v676_v3 = vpack.c.bf16 %v192_v57, %v186_v56 }
  0x2c   : > { %657 = vmatpush1.bf16.msra.mxu1 %v656_v5  ;;  %v620_v58 = vpack.c.bf16 %v214_v51, %v208_v50  ;;  %v51_v2 = vld [vmem:[%s1450_s1 + $0xb8] sm:$0xff]  ;;  %v198_v5 = vld [vmem:[%s1450_s1 + $0x550] sm:$0xff]  ;;  %v1217_v7 = vld [vmem:[#allocation2] sm:$0xff] }
  0x2d   : > { %659 = vmatprep.subr.bf16.mxu1 %v658_v6  ;;  %v204_v6 = vld [vmem:[%s1450_s1 + $0x580] sm:$0xff]  ;;  %v217_v10 = vld [vmem:[%s1450_s1 + $0x5e8] sm:$0xff]  ;;  %v690_v11 = vpack.c.bf16 %v51_v2, %v45_v0  ;;  %v50_v13 = vld [vmem:[%s1450_s1 + $0xb0] sm:$0xff] }
  0x2e   : > { %601 = vmatpush1.bf16.msra.mxu0 %v600_v60  ;;  %v205_v60 = vld [vmem:[%s1450_s1 + $0x588] sm:$0xff]  ;;  %v63_v15 = vld [vmem:[%s1450_s1 + $0x118] sm:$0xff]  ;;  %v680_v16 = vpack.c.bf16 %v204_v6, %v198_v5  ;;  %v216_v19 = vld [vmem:[%s1450_s1 + $0x5e0] sm:$0xff] }
  0x2f   : > { %603 = vmatprep.subr.bf16.mxu0 %v602_v63  ;;  %v38_v63 = vld [vmem:[%s1450_s1 + $0x50] sm:$0xff]  ;;  %v678_v4 = vpack.c.bf16 %v205_v60, %v199_v59  ;;  %v57_v14 = vld [vmem:[%s1450_s1 + $0xe8] sm:$0xff]  ;;  %v56_v22 = vld [vmem:[%s1450_s1 + $0xe0] sm:$0xff] }
  0x30   : > { %661 = vmatpush1.bf16.msra.mxu1 %v660_v17  ;;  %v688_v8 = vpack.c.bf16 %v38_v63, %v32_v62  ;;  %v62_v23 = vld [vmem:[%s1450_s1 + $0x110] sm:$0xff]  ;;  %v75_v25 = vld [vmem:[%s1450_s1 + $0x178] sm:$0xff]  ;;  %v81_v31 = vld [vmem:[%s1450_s1 + $0x1a8] sm:$0xff] }
  0x31   : > { %663 = vmatprep.subr.bf16.mxu1 %v662_v18  ;;  %v210_v18 = vld [vmem:[%s1450_s1 + $0x5b0] sm:$0xff]  ;;  %v696_v27 = vpack.c.bf16 %v62_v23, %v56_v22  ;;  %v87_v32 = vld [vmem:[%s1450_s1 + $0x1d8] sm:$0xff]  ;;  %v80_v35 = vld [vmem:[%s1450_s1 + $0x1a0] sm:$0xff] }
  0x32   : > { %605 = vmatpush1.bf16.msra.mxu0 %v604_v9  ;;  %v211_v9 = vld [vmem:[%s1450_s1 + $0x5b8] sm:$0xff]  ;;  %v684_v26 = vpack.c.bf16 %v216_v19, %v210_v18  ;;  %v702_v34 = vpack.c.bf16 %v87_v32, %v81_v31  ;;  %v93_v37 = vld [vmem:[%s1450_s1 + $0x208] sm:$0xff]  ;;  %v104_v48 = vld [vmem:[%s1450_s1 + $0x260] sm:$0xff] }
  0x33   : > { %607 = vmatprep.subr.bf16.mxu0 %v606_v12  ;;  %v44_v12 = vld [vmem:[%s1450_s1 + $0x80] sm:$0xff]  ;;  %v682_v17 = vpack.c.bf16 %v217_v10, %v211_v9  ;;  %v99_v38 = vld [vmem:[%s1450_s1 + $0x238] sm:$0xff]  ;;  %v105_v44 = vld [vmem:[%s1450_s1 + $0x268] sm:$0xff] }
  0x34   : > { %665 = vmatpush1.bf16.msra.mxu1 %v664_v29  ;;  %v692_v20 = vpack.c.bf16 %v50_v13, %v44_v12  ;;  %v68_v29 = vld [vmem:[%s1450_s1 + $0x140] sm:$0xff]  ;;  %v706_v40 = vpack.c.bf16 %v99_v38, %v93_v37  ;;  %v111_v45 = vld [vmem:[%s1450_s1 + $0x298] sm:$0xff]  ;;  %v117_v50 = vld [vmem:[%s1450_s1 + $0x2c8] sm:$0xff] }
  0x35   : > { %667 = vmatprep.subr.bf16.mxu1 %v666_v30  ;;  %v74_v30 = vld [vmem:[%s1450_s1 + $0x170] sm:$0xff]  ;;  %v710_v47 = vpack.c.bf16 %v111_v45, %v105_v44  ;;  %v123_v51 = vld [vmem:[%s1450_s1 + $0x2f8] sm:$0xff]  ;;  %v129_v56 = vld [vmem:[%s1450_s1 + $0x328] sm:$0xff]  ;;  %v221_v44 = vlaneseq }
  0x36   : > { %609 = vmatpush1.bf16.msra.mxu0 %v608_v21  ;;  %v694_v21 = vpack.c.bf16 %v63_v15, %v57_v14  ;;  %v714_v53 = vpack.c.bf16 %v123_v51, %v117_v50  ;;  %v135_v57 = vld [vmem:[%s1450_s1 + $0x358] sm:$0xff]  ;;  %v128_v60 = vld [vmem:[%s1450_s1 + $0x320] sm:$0xff]  ;;  %v141_v62 = vld [vmem:[%s1450_s1 + $0x388] sm:$0xff] }
  0x37   : > { %611 = vmatprep.subr.bf16.mxu0 %v610_v24  ;;  %v69_v24 = vld [vmem:[%s1450_s1 + $0x148] sm:$0xff]  ;;  %v718_v59 = vpack.c.bf16 %v135_v57, %v129_v56  ;;  %v147_v63 = vld [vmem:[%s1450_s1 + $0x3b8] sm:$0xff]  ;;  %v152_v10 = vld [vmem:[%s1450_s1 + $0x3e0] sm:$0xff]  ;;  %v222_v45 = vshrl.u32 %v221_v44, 7 }
  0x38   : > { %669 = vmatpush1.bf16.msra.mxu1 %v668_v42  ;;  %v698_v28 = vpack.c.bf16 %v75_v25, %v69_v24  ;;  %v92_v42 = vld [vmem:[%s1450_s1 + $0x200] sm:$0xff]  ;;  %v722_v2 = vpack.c.bf16 %v147_v63, %v141_v62  ;;  %v153_v5 = vld [vmem:[%s1450_s1 + $0x3e8] sm:$0xff]  ;;  %v159_v6 = vld [vmem:[%s1450_s1 + $0x418] sm:$0xff] }
  0x39   : > { %671 = vmatprep.subr.bf16.mxu1 %v670_v43  ;;  %v98_v43 = vld [vmem:[%s1450_s1 + $0x230] sm:$0xff]  ;;  %v726_v9 = vpack.c.bf16 %v159_v6, %v153_v5  ;;  %v165_v12 = vld [vmem:[%s1450_s1 + $0x448] sm:$0xff]  ;;  %v171_v13 = vld [vmem:[%s1450_s1 + $0x478] sm:$0xff] }
  0x3a   : > { %613 = vmatpush1.bf16.msra.mxu0 %v612_v33  ;;  %v700_v33 = vpack.c.bf16 %v74_v30, %v68_v29  ;;  %v730_v15 = vpack.c.bf16 %v171_v13, %v165_v12  ;;  %v177_v18 = vld [vmem:[%s1450_s1 + $0x4a8] sm:$0xff]  ;;  %v183_v19 = vld [vmem:[%s1450_s1 + $0x4d8] sm:$0xff]  ;;  %v176_v22 = vld [vmem:[%s1450_s1 + $0x4a0] sm:$0xff] }
  0x3b   : > { %615 = vmatprep.subr.bf16.mxu0 %v614_v36  ;;  %v86_v36 = vld [vmem:[%s1450_s1 + $0x1d0] sm:$0xff]  ;;  %v189_v24 = vld [vmem:[%s1450_s1 + $0x508] sm:$0xff]  ;;  %v195_v25 = vld [vmem:[%s1450_s1 + $0x538] sm:$0xff] }
  0x3c   : > { %673 = vmatpush1.bf16.msra.mxu1 %v672_v54  ;;  %v704_v39 = vpack.c.bf16 %v86_v36, %v80_v35  ;;  %v116_v54 = vld [vmem:[%s1450_s1 + $0x2c0] sm:$0xff]  ;;  %v182_v23 = vld [vmem:[%s1450_s1 + $0x4d0] sm:$0xff]  ;;  %v201_v30 = vld [vmem:[%s1450_s1 + $0x568] sm:$0xff] }
  0x3d   : > { %675 = vmatprep.subr.bf16.mxu1 %v674_v55  ;;  %v122_v55 = vld [vmem:[%s1450_s1 + $0x2f0] sm:$0xff]  ;;  %v207_v31 = vld [vmem:[%s1450_s1 + $0x598] sm:$0xff]  ;;  %v213_v36 = vld [vmem:[%s1450_s1 + $0x5c8] sm:$0xff] }
  0x3e   : > { %617 = vmatpush1.bf16.msra.mxu0 %v616_v46  ;;  %v708_v46 = vpack.c.bf16 %v98_v43, %v92_v42  ;;  %v194_v29 = vld [vmem:[%s1450_s1 + $0x530] sm:$0xff]  ;;  %v219_v37 = vld [vmem:[%s1450_s1 + $0x5f8] sm:$0xff]  ;;  %v467_v51 = vld [vmem:[%s1414_s14] sm:$0xff] }
  0x3f   : > { %619 = vmatprep.subr.bf16.mxu0 %v618_v49  ;;  %v110_v49 = vld [vmem:[%s1450_s1 + $0x290] sm:$0xff]  ;;  %v468_v56 = vld [vmem:[%s1414_s14 + $0x8] sm:$0xff] }
  0x40   : > { %677 = vmatpush1.bf16.msra.mxu1 %v676_v3  ;;  %v712_v52 = vpack.c.bf16 %v110_v49, %v104_v48  ;;  %v140_v3 = vld [vmem:[%s1450_s1 + $0x380] sm:$0xff]  ;;  %v206_v35 = vld [vmem:[%s1450_s1 + $0x590] sm:$0xff] }
  0x41   : > { %679 = vmatprep.subr.bf16.mxu1 %v678_v4  ;;  %v146_v4 = vld [vmem:[%s1450_s1 + $0x3b0] sm:$0xff] }
  0x42   : > { %621 = vmatpush1.bf16.msra.mxu0 %v620_v58  ;;  %v716_v58 = vpack.c.bf16 %v122_v55, %v116_v54  ;;  %v218_v42 = vld [vmem:[%s1450_s1 + $0x5f0] sm:$0xff] }
  0x43   : > { %687 = vmatprep.subr.bf16.mxu0 %v686_v61  ;;  %v134_v61 = vld [vmem:[%s1450_s1 + $0x350] sm:$0xff] }
  0x44   : > { %681 = vmatpush1.bf16.msra.mxu1 %v680_v16  ;;  %v720_v0 = vpack.c.bf16 %v134_v61, %v128_v60  ;;  %v164_v16 = vld [vmem:[%s1450_s1 + $0x440] sm:$0xff]  ;;  %v469_v12 = vld [vmem:[%s1414_s14 + $0x10] sm:$0xff] }
  0x45   : > { %316 = vmatmul.mubr.f32.vlgmr.msra.gmra.mrb[0].mxu0 %v1217_v7  ;;  %683 = vmatprep.subr.bf16.mxu1 %v682_v17  ;;  %v170_v17 = vld [vmem:[%s1450_s1 + $0x470] sm:$0xff] }
  0x46   : > { %689 = vmatpush1.bf16.msra.mxu0 %v688_v8  ;;  %457 = vmatprep.mubr.f32.mxu0 %v1033_v41  ;;  %v724_v8 = vpack.c.bf16 %v146_v4, %v140_v3 }
  0x47   : > { %691 = vmatprep.subr.bf16.mxu0 %v690_v11  ;;  %v158_v11 = vld [vmem:[%s1450_s1 + $0x410] sm:$0xff] }
  0x48   : > { %685 = vmatpush1.bf16.msra.mxu1 %v684_v26  ;;  %v728_v14 = vpack.c.bf16 %v158_v11, %v152_v10  ;;  %v736_v26 = vpack.c.bf16 %v182_v23, %v176_v22  ;;  %v495_v10 = vld [vmem:[%s1427_s20 + $0x18] sm:$0xff] }
  0x4a   : > { %693 = vmatpush1.bf16.msra.mxu0 %v692_v20  ;;  %v732_v20 = vpack.c.bf16 %v170_v17, %v164_v16 }
  0x4b   : > { %695 = vmatprep.subr.bf16.mxu0 %v694_v21  ;;  %387 = vmatmul.mubr.f32.vlgmr.msra.gmra.mrb[0].mxu1 %v1217_v7  ;;  %v734_v21 = vpack.c.bf16 %v183_v19, %v177_v18 }
  0x4e   : > { %697 = vmatpush1.bf16.msra.mxu0 %v696_v27  ;;  %v738_v27 = vpack.c.bf16 %v195_v25, %v189_v24  ;;  %v239_v25 = vsub.s32 4, %v222_v45 }
  0x4f   : > { %699 = vmatprep.subr.bf16.mxu0 %v698_v28  ;;  %v188_v28 = vld [vmem:[%s1450_s1 + $0x500] sm:$0xff] }
  0x50   : > { %v740_v32 = vpack.c.bf16 %v194_v29, %v188_v28 }
  0x52   : > { %701 = vmatpush1.bf16.msra.mxu0 %v700_v33  ;;  %v742_v33 = vpack.c.bf16 %v207_v31, %v201_v30 }
  0x53   : > { %703 = vmatprep.subr.bf16.mxu0 %v702_v34  ;;  %v200_v34 = vld [vmem:[%s1450_s1 + $0x560] sm:$0xff] }
  0x54   : > { %v744_v38 = vpack.c.bf16 %v206_v35, %v200_v34 }
  0x56   : > { %705 = vmatpush1.bf16.msra.mxu0 %v704_v39  ;;  %v746_v39 = vpack.c.bf16 %v219_v37, %v213_v36  ;;  %v497_v37 = vld [vmem:[%s1427_s20 + $0x28] sm:$0xff] }
  0x57   : > { %707 = vmatprep.subr.bf16.mxu0 %v706_v40  ;;  %v212_v40 = vld [vmem:[%s1450_s1 + $0x5c0] sm:$0xff] }
  0x58   : > { %v748_v43 = vpack.c.bf16 %v218_v42, %v212_v40 }
  0x5a   : > { %709 = vmatpush1.bf16.msra.mxu0 %v708_v46  ;;  %v223_v46 = vsub.s32 0, %v222_v45 }
  0x5b   : > { %711 = vmatprep.subr.bf16.mxu0 %v710_v47  ;;  %v227_v47 = vsub.s32 1, %v222_v45 }
  0x5c   : > { %v224_v48 = vrot.slane %v816_v1, %v223_v46 }
  0x5d   : > { %v228_v49 = vrot.slane %v816_v1, %v227_v47 }
  0x5e   : > { %713 = vmatpush1.bf16.msra.mxu0 %v712_v52 }
  0x5f   : > { %715 = vmatprep.subr.bf16.mxu0 %v714_v53 }
  0x62   : > { %717 = vmatpush1.bf16.msra.mxu0 %v716_v58 }
  0x63   : > { %719 = vmatprep.subr.bf16.mxu0 %v718_v59 }
  0x66   : > { %721 = vmatpush1.bf16.msra.mxu0 %v720_v0  ;;  %v235_v0 = vsub.s32 3, %v222_v45 }
  0x67   : > { %723 = vmatprep.subr.bf16.mxu0 %v722_v2  ;;  %v231_v2 = vsub.s32 2, %v222_v45 }
  0x68   : > { %v236_v3 = vrot.slane %v816_v1, %v235_v0 }
  0x69   : > { %v232_v4 = vrot.slane %v816_v1, %v231_v2 }
  0x6a   : > { %725 = vmatpush1.bf16.msra.mxu0 %v724_v8 }
  0x6b   : > { %727 = vmatprep.subr.bf16.mxu0 %v726_v9 }
  0x6e   : > { %729 = vmatpush1.bf16.msra.mxu0 %v728_v14 }
  0x6f   : > { %731 = vmatprep.subr.bf16.mxu0 %v730_v15 }
  0x72   : > { %733 = vmatpush1.bf16.msra.mxu0 %v732_v20 }
  0x73   : > { %735 = vmatprep.subr.bf16.mxu0 %v734_v21 }
  0x76   : > { %737 = vmatpush1.bf16.msra.mxu0 %v736_v26  ;;  %v243_v26 = vsub.s32 5, %v222_v45 }
  0x77   : > { %739 = vmatprep.subr.bf16.mxu0 %v738_v27  ;;  %v240_v27 = vrot.slane %v816_v1, %v239_v25 }
  0x78   : > { %v244_v28 = vrot.slane %v816_v1, %v243_v26 }
  0x7a   : > { %741 = vmatpush1.bf16.msra.mxu0 %v740_v32 }
  0x7b   : > { %743 = vmatprep.subr.bf16.mxu0 %v742_v33 }
  0x7e   : > { %745 = vmatpush1.bf16.msra.mxu0 %v744_v38 }
  0x7f   : > { %747 = vmatprep.subr.bf16.mxu0 %v746_v39 }
  0x82   : > { %749 = vmatpush1.bf16.msra.mxu0 %v748_v43 }
  0x85   : > { %458 = vmatmul.mubr.f32.vlgmr.msra.gmra.mrb[2].mxu0 %v1217_v7 }
 0x118   : > { %v317_v50 = vpop.f32.mrb[0].mxu0 }
 0x119   : > { %v318_v52 = vadd.f32 %v317_v50, %v224_v48  ;;  %v319_v53 = vpop.f32.mrb[1].mxu0 }
 0x11a   : > { %v320_v54 = vadd.f32 %v319_v53, %v228_v49 }
 0x11b   : > { %v471_v55 = vadd.f32 %v467_v51, %v318_v52 }
 0x11c   : > { %v478_v58 = vadd.f32 %v468_v56, %v320_v54 }
 0x11d   : > { %v549_v57 = vmul.f32 -1.442695, %v471_v55 }
 0x11e   : > { %v550_v59 = vmul.f32 -1.442695, %v478_v58  ;;  %v388_v60 = vpop.f32.mrb[0].mxu1 }
 0x11f   : > { %759 = vpow2.f32 %v549_v57  ;;  %v390_v61 = vpop.f32.mrb[1].mxu1  ;;  %v389_v9 = vadd.f32 %v388_v60, %v232_v4 }
 0x120   : > { %761 = vpow2.f32 %v550_v59  ;;  %v391_v6 = vadd.f32 %v390_v61, %v236_v3 }
 0x122   : > { %v498_v13 = vadd.f32 %v495_v10, %v391_v6 }
 0x124   : > { %v552_v16 = vmul.f32 -1.442695, %v498_v13 }
 0x129   : > { %v760_v62 = vpop.eup %759 }
 0x12a   : > { %v475_v63 = vadd.f32 1.0, %v760_v62  ;;  %v762_v5 = vpop.eup %761 }
 0x12b   : > { %v482_v8 = vadd.f32 1.0, %v762_v5 }
 0x12c   : > { %763 = vrcp.f32 %v475_v63 }
 0x12d   : > { %765 = vrcp.f32 %v482_v8 }
 0x136   : > { %v764_v11 = vpop.eup %763 }
 0x137   : > { %v485_v14 = vmul.f32 %v764_v11, %v389_v9  ;;  %v766_v17 = vpop.eup %765 }
 0x138   : > { %v488_v18 = vsub.f32 1.0, %v766_v17  ;;  %v490_v20 = vmul.f32 %v766_v17, %v1217_v7  ;;  %v496_v7 = vld [vmem:[%s1427_s20 + $0x20] sm:$0xff] }
 0x139   : > { %v486_v15 = vadd.f32 %v485_v14, %v469_v12 }
 0x13b   : > { %767 = vtanh.f32 %v486_v15 }
 0x13c   : > { %769 = vpow2.f32 %v552_v16 }
 0x145   : > { %v768_v19 = vpop.eup %767 }
 0x146   : > { %v489_v21 = vmul.f32 %v768_v19, %v488_v18  ;;  %v770_v22 = vpop.eup %769 }
 0x147   : > { %v502_v24 = vadd.f32 1.0, %v770_v22 }
 0x148   : > { %v491_v23 = vadd.f32 %v490_v20, %v489_v21 }
 0x149   : > { %771 = vrcp.f32 %v502_v24 }
 0x14a   : > { %519 = vst [vmem:[#allocation2] sm:$0xff] %v491_v23  ;;  %523 = vst [vmem:[%s522_s2] sm:$0xff] %v491_v23 }
 0x153   : > { %v772_v30 = vpop.eup %771 }
 0x158   : > { %v459_v29 = vpop.f32.mrb[2].mxu0 }
 0x159   : > { %v460_v31 = vadd.f32 %v459_v29, %v240_v27  ;;  %v461_v32 = vpop.f32.mrb[3].mxu0 }
 0x15a   : > { %v462_v33 = vadd.f32 %v461_v32, %v244_v28 }
 0x15b   : > { %v505_v34 = vadd.f32 %v496_v7, %v460_v31 }
 0x15c   : > { %v512_v35 = vmul.f32 %v772_v30, %v462_v33 }
 0x15d   : > { %v553_v36 = vmul.f32 -1.442695, %v505_v34 }
 0x15e   : > { %v513_v40 = vadd.f32 %v512_v35, %v497_v37 }
 0x15f   : > { %773 = vpow2.f32 %v553_v36 }
 0x169   : > { %v774_v38 = vpop.eup %773 }
 0x16a   : > { %v509_v39 = vadd.f32 1.0, %v774_v38 }
 0x16c   : > { %775 = vrcp.f32 %v509_v39 }
 0x16d   : > { %777 = vtanh.f32 %v513_v40 }
 0x176   : > { %v776_v42 = vpop.eup %775 }
 0x177   : > { %v515_v43 = vsub.f32 1.0, %v776_v42  ;;  %v778_v44 = vpop.eup %777  ;;  %v517_v45 = vmul.f32 %v776_v42, %v1033_v41  ;;  %23 = sbr.rel (!%p21_p0) target bundleno = 2 (0x2), region = 51 }
 0x179   : > { %v516_v46 = vmul.f32 %v778_v44, %v515_v43 }
 0x17b   : > { %v518_v47 = vadd.f32 %v517_v45, %v516_v46 }
 0x17d   : > { %520 = vst [vmem:[#allocation2 + $0x8] sm:$0xff] %v518_v47  ;;  %526 = vst [vmem:[%s525_s27] sm:$0xff] %v518_v47 }

// kernel: tile.13
= control target key start
LH: loop header
LB: loop body
LE: loop exit
PB: predicated region body
PF: predicated region fallthrough
CT: control target
= control target key end

     0   :  { %s22_s0 = inlined_call_operand.vmem [shape: f32[100], index: 0, kind: input, shape index: {}]   ;;  %s23_s1 = inlined_call_operand.vmem [shape: f32[4,100], index: 1, kind: output, shape index: {}]  }
   0x1   :  { %v4_v0 = vld [vmem:[%s22_s0] ss:$0 sm:$0xff] }
   0x2   :  { %5 = vst [vmem:[%s23_s1] sm:$0xf] %v4_v0 }

// kernel: tile.14
= control target key start
LH: loop header
LB: loop body
LE: loop exit
PB: predicated region body
PF: predicated region fallthrough
CT: control target
= control target key end

     0   :  { %vm13_vm0 = vcmask 228352   ;;  %vm26_vm1 = vcmask 457728   ;;  %vm40_vm2 = vcmask 687104   ;;  %vm7_vm3 = vcmask 818176   ;;  %s82_s8 = smov 44   ;;  %s83_s9 = smov 72   ;;  %s109_s0 = inlined_call_operand.vmem [shape: f32[4,100], index: 0, kind: input, shape index: {}]   ;;  %s110_s1 = inlined_call_operand.vmem [shape: f32[1,400], index: 1, kind: output, shape index: {}]  }
   0x1   :  { %v4_v0 = vld [vmem:[%s109_s0] sm:$0xf]  ;;  %s81_s0 = smov 100   ;;  %vm17_vm4 = vcmask 588800   ;;  %vm20_vm5 = vcmask 1048352   ;;  %vm44_vm6 = vcmask 130048  }
   0x2   :  { %5 = vst [vmem:[#allocation1] sm:$0xf] %v4_v0  ;;  %vm30_vm7 = vcmask 359424   ;;  %vm33_vm8 = vcmask 1048128   ;;  %vm47_vm9 = vcmask 1047904  }
   0x9   :  { %v10_v1 = vld [vmem:[#allocation1 + $0x1] sm:$0x1]   ;;  %v23_v3 = vld [vmem:[#allocation1 + $0x2] sm:$0x1]   ;;  %v37_v6 = vld [vmem:[#allocation1 + $0x3] sm:$0x1]  }
   0xa   :  { %v12_v2 = vld [vmem:[#allocation1 + $0x1] sm:$0x1]   ;;  %v25_v5 = vld [vmem:[#allocation1 + $0x2] sm:$0x1]   ;;  %v39_v7 = vld [vmem:[#allocation1 + $0x3] sm:$0x1]  }
   0xb   :  { %v14_v4 = vsel %vm13_vm0, %v12_v2, %v10_v1  ;;  %v41_v8 = vsel %vm40_vm2, %v39_v7, %v37_v6  ;;  %v6_v9 = vld [vmem:[#allocation1] sm:$0x1]   ;;  %v27_v10 = vsel %vm26_vm1, %v25_v5, %v23_v3 }
   0xc   :  { %15 = vrot.lane.b32.xlu0 %v14_v4, %s81_s0  ;;  %42 = vrot.lane.b32.xlu1 %v41_v8, %s82_s8  ;;  %8 = vst.msk [vmem:[#allocation0] sm:$0x1] %vm7_vm3, %v6_v9  }
  0x10   :  { %28 = vrot.lane.b32.xlu0 %v27_v10, %s83_s9 }
  0x7e   :  { %v16_v11 = vpop.permute.xlu0 %15   ;;  %v43_v12 = vpop.permute.xlu1 %42  }
  0x7f   :  { %19 = vst.msk [vmem:[#allocation0 + $0x8] sm:$0x1] %vm17_vm4, %v16_v11  }
  0x80   :  { %21 = vst.msk [vmem:[#allocation0] sm:$0x1] %vm20_vm5, %v16_v11  }
  0x81   :  { %46 = vst.msk [vmem:[#allocation0 + $0x18] sm:$0x1] %vm44_vm6, %v43_v12  }
  0x82   :  { %v29_v13 = vpop.permute.xlu0 %28  }
  0x83   :  { %32 = vst.msk [vmem:[#allocation0 + $0x10] sm:$0x1] %vm30_vm7, %v29_v13  }
  0x84   :  { %35 = vst.msk [vmem:[#allocation0 + $0x8] sm:$0x1] %vm33_vm8, %v29_v13  }
  0x85   :  { %49 = vst.msk [vmem:[#allocation0 + $0x10] sm:$0x1] %vm47_vm9, %v43_v12  }
  0x87   :  { %v53_v14 = vld [vmem:[#allocation0] sm:$0x1] }
  0x88   :  { %55 = vst [vmem:[%s110_s1] sm:$0x1] %v53_v14  ;;  %v68_v15 = vld [vmem:[#allocation0 + $0x18] sm:$0x1] }
  0x89   :  { %77 = vst [vmem:[%s110_s1 + $0x3] sm:$0x1] %v68_v15 }
  0x8b   :  { %v57_v16 = vld [vmem:[#allocation0 + $0x8] sm:$0x1] }
  0x8c   :  { %75 = vst [vmem:[%s110_s1 + $0x1] sm:$0x1] %v57_v16  ;;  %v62_v17 = vld [vmem:[#allocation0 + $0x10] sm:$0x1] }
  0x8d   :  { %76 = vst [vmem:[%s110_s1 + $0x2] sm:$0x1] %v62_v17 }

// kernel: reseg_forward.37
= control target key start
LH: loop header
LB: loop body
LE: loop exit
PB: predicated region body
PF: predicated region fallthrough
CT: control target
= control target key end

     0   :  { %s1155_s12 = smov 0   ;;  %s1157_s13 = smov 0   ;;  %s1349_s0 = inlined_call_operand.vmem [shape: bf16[32,256], index: 0, kind: input, shape index: {}]   ;;  %s1350_s1 = inlined_call_operand.vmem [shape: bf16[256,512], index: 1, kind: input, shape index: {}]   ;;  %s1351_s2 = inlined_call_operand.vmem [shape: f32[1,512], index: 2, kind: input, shape index: {}]   ;;  %s1352_s3 = inlined_call_operand.vmem [shape: f32[32,512], index: 3, kind: output, shape index: {}]  }
   0x1   :  { %s1159_s14 = smov 0   ;;  %s1161_s15 = smov 0  }
   0x2   :  { %s1163_s16 = smov 0  }
   0x3 LB: > { %s28_s17 = sadd.s32 1, %s1129_s15  ;;  %s914_s18 = sadd.s32 4294967295, %s1133_s16   ;;  %s1133_s16 = sphi %s1163_s16, %s13_s16   ;;  %s1129_s15 = sphi %s1161_s15, %s1357_s15   ;;  %s1125_s14 = sphi %s1159_s14, %s1356_s14   ;;  %s1121_s13 = sphi %s1157_s13, %s1355_s13   ;;  %s1117_s12 = sphi %s1155_s12, %s1354_s12  }
   0x4   : > { %p30_p0 = scmp.ge.s32.totalorder %s28_s17, 2  ;;  %p76_p1 = scmp.ne.s32.totalorder %s1121_s13, %s1117_s12 }
   0x5   : > { %p77_p2 = scmp.eq.s32.totalorder %s1133_s16, 0  ;;  %p134_p4 = scmp.eq.s32.totalorder %s914_s18, 1 }
   0x6   : > { %s1359_s17 = smov (%p30_p0, %s28_s17), 0  ;;  %s69_s20 = sadd.s32 1, %s1121_s13 }
   0x7   : > { %p78_p3 = por %p77_p2, %p76_p1  ;;  %s65_s19 = ssub.s32 %s1129_s15, %s1359_s17 }
   0x8   : > { %p67_p5 = scmp.eq.s32.totalorder %s65_s19, 0  ;;  %p1190_p6 = por %p134_p4, %p76_p1 }
   0x9   : > { %p918_p7 = scmp.ge.s32.totalorder %s1133_s16, 2 }
   0xa   : > { %s1195_s22 = scalar_select %p67_p5, %s1121_s13, %s69_s20  }
   0xb   : > { %171 = sbr.rel (%p918_p7) target bundleno = 38 (0x26), region = 20 }
  0x12   : > { %174 = sbr.rel (!%p78_p3) target bundleno = 38 (0x26), region = 24  ;;  %s176_s23 = sand.u32 (%p78_p3), 1, %s1121_s13  }
  0x13   : > { %s967_s24 = sshll.u32 (%p78_p3), %s1129_s15, 3  ;;  %s919_s25 = sshll.u32 (%p78_p3), %s176_s23, 8 }
  0x14   : > { %s1203_s28 = scalar_lea.vmem (%p78_p3), %s1350_s1, %s967_s24  ;;  %s1208_s29 = scalar_lea.vmem (%p78_p3), [#allocation3], %s919_s25 }
  0x15   : > { %v274_v0 = vld [vmem:[%s1203_s28] sm:$0xff] (%p78_p3)  ;;  %v276_v1 = vld [vmem:[%s1203_s28 + $0x10] sm:$0xff] (%p78_p3) }
  0x16   : > { %v278_v2 = vld [vmem:[%s1203_s28 + $0x20] sm:$0xff] (%p78_p3)  ;;  %275 = vst [vmem:[%s1208_s29] sm:$0xff] (%p78_p3), %v274_v0  ;;  %277 = vst [vmem:[%s1208_s29 + $0x8] sm:$0xff] (%p78_p3), %v276_v1  ;;  %v280_v3 = vld [vmem:[%s1203_s28 + $0x30] sm:$0xff] (%p78_p3) }
  0x17   : > { %279 = vst [vmem:[%s1208_s29 + $0x10] sm:$0xff] (%p78_p3), %v278_v2  ;;  %v282_v4 = vld [vmem:[%s1203_s28 + $0x40] sm:$0xff] (%p78_p3)  ;;  %v284_v5 = vld [vmem:[%s1203_s28 + $0x50] sm:$0xff] (%p78_p3)  ;;  %281 = vst [vmem:[%s1208_s29 + $0x18] sm:$0xff] (%p78_p3), %v280_v3 }
  0x18   : > { %283 = vst [vmem:[%s1208_s29 + $0x20] sm:$0xff] (%p78_p3), %v282_v4  ;;  %285 = vst [vmem:[%s1208_s29 + $0x28] sm:$0xff] (%p78_p3), %v284_v5  ;;  %v286_v6 = vld [vmem:[%s1203_s28 + $0x60] sm:$0xff] (%p78_p3)  ;;  %v288_v7 = vld [vmem:[%s1203_s28 + $0x70] sm:$0xff] (%p78_p3) }
  0x19   : > { %v290_v8 = vld [vmem:[%s1203_s28 + $0x80] sm:$0xff]  ;;  %287 = vst [vmem:[%s1208_s29 + $0x30] sm:$0xff] %v286_v6  ;;  %289 = vst [vmem:[%s1208_s29 + $0x38] sm:$0xff] %v288_v7  ;;  %v292_v9 = vld [vmem:[%s1203_s28 + $0x90] sm:$0xff] }
  0x1a   : > { %291 = vst [vmem:[%s1208_s29 + $0x40] sm:$0xff] %v290_v8  ;;  %v294_v10 = vld [vmem:[%s1203_s28 + $0xa0] sm:$0xff]  ;;  %v296_v11 = vld [vmem:[%s1203_s28 + $0xb0] sm:$0xff]  ;;  %293 = vst [vmem:[%s1208_s29 + $0x48] sm:$0xff] %v292_v9 }
  0x1b   : > { %295 = vst [vmem:[%s1208_s29 + $0x50] sm:$0xff] %v294_v10  ;;  %297 = vst [vmem:[%s1208_s29 + $0x58] sm:$0xff] %v296_v11  ;;  %v298_v12 = vld [vmem:[%s1203_s28 + $0xc0] sm:$0xff]  ;;  %v300_v13 = vld [vmem:[%s1203_s28 + $0xd0] sm:$0xff] }
  0x1c   : > { %v302_v14 = vld [vmem:[%s1203_s28 + $0xe0] sm:$0xff]  ;;  %299 = vst [vmem:[%s1208_s29 + $0x60] sm:$0xff] %v298_v12  ;;  %301 = vst [vmem:[%s1208_s29 + $0x68] sm:$0xff] %v300_v13  ;;  %v304_v15 = vld [vmem:[%s1203_s28 + $0xf0] sm:$0xff] }
  0x1d   : > { %303 = vst [vmem:[%s1208_s29 + $0x70] sm:$0xff] %v302_v14  ;;  %v306_v16 = vld [vmem:[%s1203_s28 + $0x100] sm:$0xff]  ;;  %v308_v17 = vld [vmem:[%s1203_s28 + $0x110] sm:$0xff]  ;;  %305 = vst [vmem:[%s1208_s29 + $0x78] sm:$0xff] %v304_v15 }
  0x1e   : > { %307 = vst [vmem:[%s1208_s29 + $0x80] sm:$0xff] %v306_v16  ;;  %309 = vst [vmem:[%s1208_s29 + $0x88] sm:$0xff] %v308_v17  ;;  %v310_v18 = vld [vmem:[%s1203_s28 + $0x120] sm:$0xff]  ;;  %v312_v19 = vld [vmem:[%s1203_s28 + $0x130] sm:$0xff] }
  0x1f   : > { %v314_v20 = vld [vmem:[%s1203_s28 + $0x140] sm:$0xff]  ;;  %311 = vst [vmem:[%s1208_s29 + $0x90] sm:$0xff] %v310_v18  ;;  %313 = vst [vmem:[%s1208_s29 + $0x98] sm:$0xff] %v312_v19  ;;  %v316_v21 = vld [vmem:[%s1203_s28 + $0x150] sm:$0xff] }
  0x20   : > { %315 = vst [vmem:[%s1208_s29 + $0xa0] sm:$0xff] %v314_v20  ;;  %v318_v22 = vld [vmem:[%s1203_s28 + $0x160] sm:$0xff]  ;;  %v320_v23 = vld [vmem:[%s1203_s28 + $0x170] sm:$0xff]  ;;  %317 = vst [vmem:[%s1208_s29 + $0xa8] sm:$0xff] %v316_v21 }
  0x21   : > { %319 = vst [vmem:[%s1208_s29 + $0xb0] sm:$0xff] %v318_v22  ;;  %321 = vst [vmem:[%s1208_s29 + $0xb8] sm:$0xff] %v320_v23  ;;  %v322_v24 = vld [vmem:[%s1203_s28 + $0x180] sm:$0xff]  ;;  %v324_v25 = vld [vmem:[%s1203_s28 + $0x190] sm:$0xff] }
  0x22   : > { %v326_v26 = vld [vmem:[%s1203_s28 + $0x1a0] sm:$0xff]  ;;  %323 = vst [vmem:[%s1208_s29 + $0xc0] sm:$0xff] %v322_v24  ;;  %325 = vst [vmem:[%s1208_s29 + $0xc8] sm:$0xff] %v324_v25  ;;  %v328_v27 = vld [vmem:[%s1203_s28 + $0x1b0] sm:$0xff] }
  0x23   : > { %327 = vst [vmem:[%s1208_s29 + $0xd0] sm:$0xff] %v326_v26  ;;  %v330_v28 = vld [vmem:[%s1203_s28 + $0x1c0] sm:$0xff]  ;;  %v332_v29 = vld [vmem:[%s1203_s28 + $0x1d0] sm:$0xff]  ;;  %329 = vst [vmem:[%s1208_s29 + $0xd8] sm:$0xff] %v328_v27 }
  0x24   : > { %331 = vst [vmem:[%s1208_s29 + $0xe0] sm:$0xff] %v330_v28  ;;  %333 = vst [vmem:[%s1208_s29 + $0xe8] sm:$0xff] %v332_v29  ;;  %v334_v30 = vld [vmem:[%s1203_s28 + $0x1e0] sm:$0xff]  ;;  %v336_v31 = vld [vmem:[%s1203_s28 + $0x1f0] sm:$0xff] }
  0x25   : > { %335 = vst [vmem:[%s1208_s29 + $0xf0] sm:$0xff] %v334_v30  ;;  %337 = vst [vmem:[%s1208_s29 + $0xf8] sm:$0xff] %v336_v31 }
  0x26 PF: > { %p922_p8 = scmp.ge.s32.totalorder %s1133_s16, 1  ;;  %p350_p9 = scmp.lt.s32.totalorder %s1133_s16, 3 }
  0x28   : > { %p351_p10 = pnand %p922_p8, %p350_p9 }
  0x29   : > { %s357_s30 = sand.u32 (!%p351_p10), 1, %s1117_s12   ;;  %v1091_v32 = vld [vmem:[%s1349_s0 + $0x4] ss:$8 sps:$4 sm:$0xff] (!%p351_p10)   ;;  %v1094_v33 = vld [vmem:[%s1349_s0 + $0x14] ss:$8 sps:$4 sm:$0xff] (!%p351_p10)   ;;  %s925_s20 = sshll.u32 (!%p351_p10), %s1125_s14, 1  ;;  %v732_v4 = vlaneseq (!%p351_p10) }
  0x2a   : > { %354 = sbr.rel (%p351_p10) target bundleno = 338 (0x152), region = 66  ;;  %s923_s4 = sshll.u32 (!%p351_p10), %s357_s30, 8  ;;  %682 = vmatprep.mubr.bf16.mxu0 (!%p351_p10), %v1091_v32  ;;  %692 = vmatprep.mubr.bf16.mxu1 (!%p351_p10), %v1094_v33  ;;  %v1089_v2 = vld [vmem:[%s1349_s0] ss:$8 sps:$4 sm:$0xff] (!%p351_p10)   ;;  %v1092_v3 = vld [vmem:[%s1349_s0 + $0x10] ss:$8 sps:$4 sm:$0xff] (!%p351_p10)  }
  0x2b   : > { %s1282_s9 = scalar_lea.vmem (!%p351_p10), [#allocation3], %s923_s4  ;;  %p408_p11 = scmp.lt.s32.totalorder (!%p351_p10), %s925_s20, 3  ;;  %v733_v5 = vshrl.u32 (!%p351_p10), %v732_v4, 7 }
  0x2c   : > { %v1041_v34 = vld [vmem:[%s1282_s9 + $0x4] ss:$8 sps:$4 sm:$0xff] (!%p351_p10)   ;;  %v1043_v35 = vld [vmem:[%s1282_s9] ss:$8 sps:$4 sm:$0xff] (!%p351_p10)   ;;  %v1044_v36 = vld [vmem:[%s1282_s9 + $0x14] ss:$8 sps:$4 sm:$0xff] (!%p351_p10)  }
  0x2d   : > { %650 = vmatprep.subr.bf16.mxu0 (!%p351_p10), %v1041_v34  ;;  %969 = vmatprep.subr.bf16.mxu1 (!%p351_p10), %v1041_v34  ;;  %v1046_v37 = vld [vmem:[%s1282_s9 + $0x10] ss:$8 sps:$4 sm:$0xff] (!%p351_p10)   ;;  %v1047_v38 = vld [vmem:[%s1282_s9 + $0x24] ss:$8 sps:$4 sm:$0xff] (!%p351_p10)   ;;  %v1049_v39 = vld [vmem:[%s1282_s9 + $0x20] ss:$8 sps:$4 sm:$0xff] (!%p351_p10)  }
  0x2e   : > { %651 = vmatpush1.bf16.msra.mxu0 (!%p351_p10), %v1043_v35  ;;  %985 = vmatpush1.bf16.msra.mxu1 (!%p351_p10), %v1043_v35  ;;  %v1050_v40 = vld [vmem:[%s1282_s9 + $0x34] ss:$8 sps:$4 sm:$0xff] (!%p351_p10)   ;;  %v1052_v41 = vld [vmem:[%s1282_s9 + $0x30] ss:$8 sps:$4 sm:$0xff] (!%p351_p10)   ;;  %v1053_v42 = vld [vmem:[%s1282_s9 + $0x44] ss:$8 sps:$4 sm:$0xff] (!%p351_p10)  }
  0x2f   : > { %652 = vmatprep.subr.bf16.mxu0 (!%p351_p10), %v1044_v36  ;;  %970 = vmatprep.subr.bf16.mxu1 (!%p351_p10), %v1044_v36  ;;  %v1055_v43 = vld [vmem:[%s1282_s9 + $0x40] ss:$8 sps:$4 sm:$0xff] (!%p351_p10)   ;;  %v1056_v44 = vld [vmem:[%s1282_s9 + $0x54] ss:$8 sps:$4 sm:$0xff] (!%p351_p10)   ;;  %v1058_v45 = vld [vmem:[%s1282_s9 + $0x50] ss:$8 sps:$4 sm:$0xff] (!%p351_p10)  }
  0x30   : > { %v1059_v46 = vld [vmem:[%s1282_s9 + $0x64] ss:$8 sps:$4 sm:$0xff] (!%p351_p10)   ;;  %v1061_v47 = vld [vmem:[%s1282_s9 + $0x60] ss:$8 sps:$4 sm:$0xff] (!%p351_p10)   ;;  %v1062_v48 = vld [vmem:[%s1282_s9 + $0x74] ss:$8 sps:$4 sm:$0xff] (!%p351_p10)  }
  0x31   : > { %v1064_v49 = vld [vmem:[%s1282_s9 + $0x70] ss:$8 sps:$4 sm:$0xff]   ;;  %v1065_v50 = vld [vmem:[%s1282_s9 + $0x84] ss:$8 sps:$4 sm:$0xff]   ;;  %v1067_v51 = vld [vmem:[%s1282_s9 + $0x80] ss:$8 sps:$4 sm:$0xff]  }
  0x32   : > { %653 = vmatpush1.bf16.msra.mxu0 %v1046_v37  ;;  %986 = vmatpush1.bf16.msra.mxu1 %v1046_v37  ;;  %v1068_v52 = vld [vmem:[%s1282_s9 + $0x94] ss:$8 sps:$4 sm:$0xff]   ;;  %v1070_v53 = vld [vmem:[%s1282_s9 + $0x90] ss:$8 sps:$4 sm:$0xff]   ;;  %v1071_v54 = vld [vmem:[%s1282_s9 + $0xa4] ss:$8 sps:$4 sm:$0xff]  }
  0x33   : > { %654 = vmatprep.subr.bf16.mxu0 %v1047_v38  ;;  %971 = vmatprep.subr.bf16.mxu1 %v1047_v38  ;;  %v1073_v55 = vld [vmem:[%s1282_s9 + $0xa0] ss:$8 sps:$4 sm:$0xff]   ;;  %v1074_v56 = vld [vmem:[%s1282_s9 + $0xb4] ss:$8 sps:$4 sm:$0xff]   ;;  %v1076_v57 = vld [vmem:[%s1282_s9 + $0xb0] ss:$8 sps:$4 sm:$0xff]  }
  0x34   : > { %v1077_v58 = vld [vmem:[%s1282_s9 + $0xc4] ss:$8 sps:$4 sm:$0xff]   ;;  %v1079_v59 = vld [vmem:[%s1282_s9 + $0xc0] ss:$8 sps:$4 sm:$0xff]   ;;  %v1080_v60 = vld [vmem:[%s1282_s9 + $0xd4] ss:$8 sps:$4 sm:$0xff]  }
  0x35   : > { %v1082_v61 = vld [vmem:[%s1282_s9 + $0xd0] ss:$8 sps:$4 sm:$0xff]   ;;  %v1083_v62 = vld [vmem:[%s1282_s9 + $0xe4] ss:$8 sps:$4 sm:$0xff]   ;;  %v1085_v63 = vld [vmem:[%s1282_s9 + $0xe0] ss:$8 sps:$4 sm:$0xff]  }
  0x36   : > { %655 = vmatpush1.bf16.msra.mxu0 %v1049_v39  ;;  %987 = vmatpush1.bf16.msra.mxu1 %v1049_v39  ;;  %v1086_v0 = vld [vmem:[%s1282_s9 + $0xf4] ss:$8 sps:$4 sm:$0xff]   ;;  %v1088_v1 = vld [vmem:[%s1282_s9 + $0xf0] ss:$8 sps:$4 sm:$0xff]   ;;  %s1361_s20 = smov (!%p408_p11, %s925_s20), 3  ;;  %v734_v6 = vsub.s32 0, %v733_v5 }
  0x37   : > { %656 = vmatprep.subr.bf16.mxu0 %v1050_v40  ;;  %972 = vmatprep.subr.bf16.mxu1 %v1050_v40  ;;  %s410_s25 = scalar_lea.vmem %s1351_s2, %s1361_s20  ;;  %v738_v8 = vsub.s32 1, %v733_v5  ;;  %s924_s26 = sshll.u32 %s357_s30, 6 }
  0x38   : > { %v730_v7 = vld [vmem:[%s410_s25] sm:$0x3]  ;;  %s392_s12 = scalar_lea.vmem [#allocation4], %s924_s26  ;;  %s968_s27 = sshll.u32 (%p1190_p6), %s1125_s14, 4 }
  0x39   : > { %v735_v9 = vrot.slane %v730_v7, %v734_v6  ;;  %v739_v10 = vrot.slane %v730_v7, %v738_v8  ;;  %s778_s30 = scalar_lea.vmem (%p1190_p6), %s1352_s3, %s968_s27 }
  0x3a   : > { %657 = vmatpush1.bf16.msra.mxu0 %v1052_v41  ;;  %988 = vmatpush1.bf16.msra.mxu1 %v1052_v41 }
  0x3b   : > { %658 = vmatprep.subr.bf16.mxu0 %v1053_v42  ;;  %973 = vmatprep.subr.bf16.mxu1 %v1053_v42 }
  0x3e   : > { %659 = vmatpush1.bf16.msra.mxu0 %v1055_v43  ;;  %989 = vmatpush1.bf16.msra.mxu1 %v1055_v43 }
  0x3f   : > { %660 = vmatprep.subr.bf16.mxu0 %v1056_v44  ;;  %974 = vmatprep.subr.bf16.mxu1 %v1056_v44 }
  0x42   : > { %661 = vmatpush1.bf16.msra.mxu0 %v1058_v45  ;;  %990 = vmatpush1.bf16.msra.mxu1 %v1058_v45 }
  0x43   : > { %662 = vmatprep.subr.bf16.mxu0 %v1059_v46  ;;  %975 = vmatprep.subr.bf16.mxu1 %v1059_v46 }
  0x46   : > { %663 = vmatpush1.bf16.msra.mxu0 %v1061_v47  ;;  %991 = vmatpush1.bf16.msra.mxu1 %v1061_v47 }
  0x47   : > { %664 = vmatprep.subr.bf16.mxu0 %v1062_v48  ;;  %976 = vmatprep.subr.bf16.mxu1 %v1062_v48 }
  0x4a   : > { %665 = vmatpush1.bf16.msra.mxu0 %v1064_v49  ;;  %992 = vmatpush1.bf16.msra.mxu1 %v1064_v49 }
  0x4b   : > { %666 = vmatprep.subr.bf16.mxu0 %v1065_v50  ;;  %977 = vmatprep.subr.bf16.mxu1 %v1065_v50 }
  0x4e   : > { %667 = vmatpush1.bf16.msra.mxu0 %v1067_v51  ;;  %993 = vmatpush1.bf16.msra.mxu1 %v1067_v51 }
  0x4f   : > { %668 = vmatprep.subr.bf16.mxu0 %v1068_v52  ;;  %978 = vmatprep.subr.bf16.mxu1 %v1068_v52 }
  0x52   : > { %669 = vmatpush1.bf16.msra.mxu0 %v1070_v53  ;;  %994 = vmatpush1.bf16.msra.mxu1 %v1070_v53 }
  0x53   : > { %670 = vmatprep.subr.bf16.mxu0 %v1071_v54  ;;  %979 = vmatprep.subr.bf16.mxu1 %v1071_v54 }
  0x56   : > { %671 = vmatpush1.bf16.msra.mxu0 %v1073_v55  ;;  %995 = vmatpush1.bf16.msra.mxu1 %v1073_v55 }
  0x57   : > { %672 = vmatprep.subr.bf16.mxu0 %v1074_v56  ;;  %980 = vmatprep.subr.bf16.mxu1 %v1074_v56 }
  0x5a   : > { %673 = vmatpush1.bf16.msra.mxu0 %v1076_v57  ;;  %996 = vmatpush1.bf16.msra.mxu1 %v1076_v57 }
  0x5b   : > { %674 = vmatprep.subr.bf16.mxu0 %v1077_v58  ;;  %981 = vmatprep.subr.bf16.mxu1 %v1077_v58 }
  0x5e   : > { %675 = vmatpush1.bf16.msra.mxu0 %v1079_v59  ;;  %997 = vmatpush1.bf16.msra.mxu1 %v1079_v59 }
  0x5f   : > { %676 = vmatprep.subr.bf16.mxu0 %v1080_v60  ;;  %982 = vmatprep.subr.bf16.mxu1 %v1080_v60 }
  0x62   : > { %677 = vmatpush1.bf16.msra.mxu0 %v1082_v61  ;;  %998 = vmatpush1.bf16.msra.mxu1 %v1082_v61 }
  0x63   : > { %678 = vmatprep.subr.bf16.mxu0 %v1083_v62  ;;  %983 = vmatprep.subr.bf16.mxu1 %v1083_v62 }
  0x66   : > { %679 = vmatpush1.bf16.msra.mxu0 %v1085_v63  ;;  %999 = vmatpush1.bf16.msra.mxu1 %v1085_v63 }
  0x67   : > { %680 = vmatprep.subr.bf16.mxu0 %v1086_v0  ;;  %984 = vmatprep.subr.bf16.mxu1 %v1086_v0 }
  0x6a   : > { %681 = vmatpush1.bf16.msra.mxu0 %v1088_v1  ;;  %1000 = vmatpush1.bf16.msra.mxu1 %v1088_v1 }
  0x6d   : > { %683 = vmatmul.mubr.bf16.vlgmr.msra.gmra.mrb[0].mxu0 %v1089_v2  ;;  %693 = vmatmul.mubr.bf16.vlgmr.msra.gmra.mrb[0].mxu1 %v1092_v3 }
 0x140   : > { %v684_v11 = vpop.f32.mrb[0].mxu0  ;;  %v694_v12 = vpop.f32.mrb[0].mxu1 }
 0x141   : > { %v742_v13 = vadd.f32 %v735_v9, %v684_v11  ;;  %v746_v14 = vadd.f32 %v735_v9, %v694_v12  ;;  %v686_v15 = vpop.f32.mrb[1].mxu0  ;;  %v696_v16 = vpop.f32.mrb[1].mxu1 }
 0x142   : > { %v743_v17 = vadd.f32 %v739_v10, %v686_v15  ;;  %v747_v18 = vadd.f32 %v739_v10, %v696_v16  ;;  %v688_v19 = vpop.f32.mrb[2].mxu0  ;;  %v698_v20 = vpop.f32.mrb[2].mxu1  ;;  %772 = sbr.rel (!%p1190_p6) target bundleno = 338 (0x152), region = 82 }
 0x143   : > { %v750_v21 = vmax.f32 %v742_v13, 0.0  ;;  %v754_v22 = vmax.f32 %v746_v14, 0.0  ;;  %v744_v23 = vadd.f32 %v735_v9, %v688_v19  ;;  %v748_v24 = vadd.f32 %v735_v9, %v698_v20  ;;  %v690_v25 = vpop.f32.mrb[3].mxu0  ;;  %v700_v26 = vpop.f32.mrb[3].mxu1 }
 0x144   : > { %v751_v27 = vmax.f32 %v743_v17, 0.0  ;;  %v755_v28 = vmax.f32 %v747_v18, 0.0  ;;  %v745_v29 = vadd.f32 %v739_v10, %v690_v25  ;;  %v749_v30 = vadd.f32 %v739_v10, %v700_v26 }
 0x145   : > { %758 = vst [vmem:[%s392_s12] sm:$0xff] %v750_v21  ;;  %762 = vst [vmem:[%s392_s12 + $0x20] sm:$0xff] %v754_v22  ;;  %v752_v31 = vmax.f32 %v744_v23, 0.0  ;;  %v756_v32 = vmax.f32 %v748_v24, 0.0 }
 0x146   : > { %759 = vst [vmem:[%s392_s12 + $0x8] sm:$0xff] %v751_v27  ;;  %763 = vst [vmem:[%s392_s12 + $0x28] sm:$0xff] %v755_v28  ;;  %v753_v33 = vmax.f32 %v745_v29, 0.0  ;;  %v757_v34 = vmax.f32 %v749_v30, 0.0 }
 0x147   : > { %760 = vst [vmem:[%s392_s12 + $0x10] sm:$0xff] %v752_v31  ;;  %764 = vst [vmem:[%s392_s12 + $0x30] sm:$0xff] %v756_v32 }
 0x148   : > { %761 = vst [vmem:[%s392_s12 + $0x18] sm:$0xff] %v753_v33  ;;  %765 = vst [vmem:[%s392_s12 + $0x38] sm:$0xff] %v757_v34 }
 0x14c   : > { %v791_v35 = vld [vmem:[%s392_s12] sm:$0xff] }
 0x14d   : > { %v793_v36 = vld [vmem:[%s392_s12 + $0x8] sm:$0xff]  ;;  %v799_v39 = vld [vmem:[%s392_s12 + $0x20] sm:$0xff]  ;;  %792 = vst [vmem:[%s778_s30] sm:$0xff] %v791_v35 }
 0x14e   : > { %v795_v37 = vld [vmem:[%s392_s12 + $0x10] sm:$0xff]  ;;  %v801_v40 = vld [vmem:[%s392_s12 + $0x28] sm:$0xff]  ;;  %794 = vst [vmem:[%s778_s30 + $0x8] sm:$0xff] %v793_v36  ;;  %800 = vst [vmem:[%s778_s30 + $0x40] sm:$0xff] %v799_v39 }
 0x14f   : > { %v797_v38 = vld [vmem:[%s392_s12 + $0x18] sm:$0xff]  ;;  %796 = vst [vmem:[%s778_s30 + $0x20] sm:$0xff] %v795_v37  ;;  %802 = vst [vmem:[%s778_s30 + $0x48] sm:$0xff] %v801_v40  ;;  %v803_v41 = vld [vmem:[%s392_s12 + $0x30] sm:$0xff] }
 0x150   : > { %798 = vst [vmem:[%s778_s30 + $0x28] sm:$0xff] %v797_v38  ;;  %v805_v42 = vld [vmem:[%s392_s12 + $0x38] sm:$0xff]  ;;  %804 = vst [vmem:[%s778_s30 + $0x60] sm:$0xff] %v803_v41 }
 0x151   : > { %806 = vst [vmem:[%s778_s30 + $0x68] sm:$0xff] %v805_v42 }
 0x152 PF: > { %s13_s16 = sadd.s32 1, %s1133_s16   ;;  %s1354_s12 = smov %s1121_s13 }
 0x153   : > { %p10_p12 = scmp.ge.s32.totalorder %s13_s16, 4   ;;  %s1355_s13 = smov %s1195_s22 }
 0x154   : > { %s1356_s14 = smov %s1129_s15  ;;  %s1357_s15 = smov %s1359_s17 }
 0x155   :  { %12 = sbr.rel (!%p10_p12) target bundleno = 3 (0x3), region = 142 }

// kernel: reseg_forward.38
= control target key start
LH: loop header
LB: loop body
LE: loop exit
PB: predicated region body
PF: predicated region fallthrough
CT: control target
= control target key end

     0   :  { %s1557_s12 = smov 0   ;;  %s1559_s13 = smov 0   ;;  %s1923_s0 = inlined_call_operand.vmem [shape: bf16[128,256], index: 0, kind: input, shape index: {}]   ;;  %s1924_s1 = inlined_call_operand.vmem [shape: bf16[256,512], index: 1, kind: input, shape index: {}]   ;;  %s1925_s2 = inlined_call_operand.vmem [shape: f32[1,512], index: 2, kind: input, shape index: {}]   ;;  %s1926_s3 = inlined_call_operand.vmem [shape: f32[128,512], index: 3, kind: output, shape index: {}]  }
   0x1   :  { %s1561_s14 = smov 0   ;;  %s1563_s15 = smov 0  }
   0x2   :  { %s1565_s16 = smov 0  }
   0x3 LB: > { %s28_s17 = sadd.s32 1, %s1531_s15  ;;  %s1286_s18 = sadd.s32 4294967295, %s1535_s16   ;;  %s1535_s16 = sphi %s1565_s16, %s13_s16   ;;  %s1531_s15 = sphi %s1563_s15, %s1931_s15   ;;  %s1527_s14 = sphi %s1561_s14, %s1930_s14   ;;  %s1523_s13 = sphi %s1559_s13, %s1929_s13   ;;  %s1519_s12 = sphi %s1557_s12, %s1928_s12  }
   0x4   : > { %p30_p0 = scmp.ge.s32.totalorder %s28_s17, 2  ;;  %p76_p1 = scmp.ne.s32.totalorder %s1523_s13, %s1519_s12 }
   0x5   : > { %p77_p2 = scmp.eq.s32.totalorder %s1535_s16, 0  ;;  %p134_p4 = scmp.eq.s32.totalorder %s1286_s18, 1 }
   0x6   : > { %s1933_s17 = smov (%p30_p0, %s28_s17), 0  ;;  %s69_s20 = sadd.s32 1, %s1523_s13 }
   0x7   : > { %p78_p3 = por %p77_p2, %p76_p1  ;;  %s65_s19 = ssub.s32 %s1531_s15, %s1933_s17 }
   0x8   : > { %p67_p5 = scmp.eq.s32.totalorder %s65_s19, 0  ;;  %p1592_p6 = por %p134_p4, %p76_p1 }
   0x9   : > { %p1290_p7 = scmp.ge.s32.totalorder %s1535_s16, 2 }
   0xa   : > { %s1597_s22 = scalar_select %p67_p5, %s1523_s13, %s69_s20  }
   0xb   : > { %171 = sbr.rel (%p1290_p7) target bundleno = 38 (0x26), region = 20 }
  0x12   : > { %174 = sbr.rel (!%p78_p3) target bundleno = 38 (0x26), region = 24  ;;  %s176_s23 = sand.u32 (%p78_p3), 1, %s1523_s13  }
  0x13   : > { %s1351_s24 = sshll.u32 (%p78_p3), %s1531_s15, 3  ;;  %s1291_s25 = sshll.u32 (%p78_p3), %s176_s23, 8 }
  0x14   : > { %s1605_s28 = scalar_lea.vmem (%p78_p3), %s1924_s1, %s1351_s24  ;;  %s1610_s29 = scalar_lea.vmem (%p78_p3), [#allocation3], %s1291_s25 }
  0x15   : > { %v274_v0 = vld [vmem:[%s1605_s28] sm:$0xff] (%p78_p3)  ;;  %v276_v1 = vld [vmem:[%s1605_s28 + $0x10] sm:$0xff] (%p78_p3) }
  0x16   : > { %v278_v2 = vld [vmem:[%s1605_s28 + $0x20] sm:$0xff] (%p78_p3)  ;;  %275 = vst [vmem:[%s1610_s29] sm:$0xff] (%p78_p3), %v274_v0  ;;  %277 = vst [vmem:[%s1610_s29 + $0x8] sm:$0xff] (%p78_p3), %v276_v1  ;;  %v280_v3 = vld [vmem:[%s1605_s28 + $0x30] sm:$0xff] (%p78_p3) }
  0x17   : > { %279 = vst [vmem:[%s1610_s29 + $0x10] sm:$0xff] (%p78_p3), %v278_v2  ;;  %v282_v4 = vld [vmem:[%s1605_s28 + $0x40] sm:$0xff] (%p78_p3)  ;;  %v284_v5 = vld [vmem:[%s1605_s28 + $0x50] sm:$0xff] (%p78_p3)  ;;  %281 = vst [vmem:[%s1610_s29 + $0x18] sm:$0xff] (%p78_p3), %v280_v3 }
  0x18   : > { %283 = vst [vmem:[%s1610_s29 + $0x20] sm:$0xff] (%p78_p3), %v282_v4  ;;  %285 = vst [vmem:[%s1610_s29 + $0x28] sm:$0xff] (%p78_p3), %v284_v5  ;;  %v286_v6 = vld [vmem:[%s1605_s28 + $0x60] sm:$0xff] (%p78_p3)  ;;  %v288_v7 = vld [vmem:[%s1605_s28 + $0x70] sm:$0xff] (%p78_p3) }
  0x19   : > { %v290_v8 = vld [vmem:[%s1605_s28 + $0x80] sm:$0xff]  ;;  %287 = vst [vmem:[%s1610_s29 + $0x30] sm:$0xff] %v286_v6  ;;  %289 = vst [vmem:[%s1610_s29 + $0x38] sm:$0xff] %v288_v7  ;;  %v292_v9 = vld [vmem:[%s1605_s28 + $0x90] sm:$0xff] }
  0x1a   : > { %291 = vst [vmem:[%s1610_s29 + $0x40] sm:$0xff] %v290_v8  ;;  %v294_v10 = vld [vmem:[%s1605_s28 + $0xa0] sm:$0xff]  ;;  %v296_v11 = vld [vmem:[%s1605_s28 + $0xb0] sm:$0xff]  ;;  %293 = vst [vmem:[%s1610_s29 + $0x48] sm:$0xff] %v292_v9 }
  0x1b   : > { %295 = vst [vmem:[%s1610_s29 + $0x50] sm:$0xff] %v294_v10  ;;  %297 = vst [vmem:[%s1610_s29 + $0x58] sm:$0xff] %v296_v11  ;;  %v298_v12 = vld [vmem:[%s1605_s28 + $0xc0] sm:$0xff]  ;;  %v300_v13 = vld [vmem:[%s1605_s28 + $0xd0] sm:$0xff] }
  0x1c   : > { %v302_v14 = vld [vmem:[%s1605_s28 + $0xe0] sm:$0xff]  ;;  %299 = vst [vmem:[%s1610_s29 + $0x60] sm:$0xff] %v298_v12  ;;  %301 = vst [vmem:[%s1610_s29 + $0x68] sm:$0xff] %v300_v13  ;;  %v304_v15 = vld [vmem:[%s1605_s28 + $0xf0] sm:$0xff] }
  0x1d   : > { %303 = vst [vmem:[%s1610_s29 + $0x70] sm:$0xff] %v302_v14  ;;  %v306_v16 = vld [vmem:[%s1605_s28 + $0x100] sm:$0xff]  ;;  %v308_v17 = vld [vmem:[%s1605_s28 + $0x110] sm:$0xff]  ;;  %305 = vst [vmem:[%s1610_s29 + $0x78] sm:$0xff] %v304_v15 }
  0x1e   : > { %307 = vst [vmem:[%s1610_s29 + $0x80] sm:$0xff] %v306_v16  ;;  %309 = vst [vmem:[%s1610_s29 + $0x88] sm:$0xff] %v308_v17  ;;  %v310_v18 = vld [vmem:[%s1605_s28 + $0x120] sm:$0xff]  ;;  %v312_v19 = vld [vmem:[%s1605_s28 + $0x130] sm:$0xff] }
  0x1f   : > { %v314_v20 = vld [vmem:[%s1605_s28 + $0x140] sm:$0xff]  ;;  %311 = vst [vmem:[%s1610_s29 + $0x90] sm:$0xff] %v310_v18  ;;  %313 = vst [vmem:[%s1610_s29 + $0x98] sm:$0xff] %v312_v19  ;;  %v316_v21 = vld [vmem:[%s1605_s28 + $0x150] sm:$0xff] }
  0x20   : > { %315 = vst [vmem:[%s1610_s29 + $0xa0] sm:$0xff] %v314_v20  ;;  %v318_v22 = vld [vmem:[%s1605_s28 + $0x160] sm:$0xff]  ;;  %v320_v23 = vld [vmem:[%s1605_s28 + $0x170] sm:$0xff]  ;;  %317 = vst [vmem:[%s1610_s29 + $0xa8] sm:$0xff] %v316_v21 }
  0x21   : > { %319 = vst [vmem:[%s1610_s29 + $0xb0] sm:$0xff] %v318_v22  ;;  %321 = vst [vmem:[%s1610_s29 + $0xb8] sm:$0xff] %v320_v23  ;;  %v322_v24 = vld [vmem:[%s1605_s28 + $0x180] sm:$0xff]  ;;  %v324_v25 = vld [vmem:[%s1605_s28 + $0x190] sm:$0xff] }
  0x22   : > { %v326_v26 = vld [vmem:[%s1605_s28 + $0x1a0] sm:$0xff]  ;;  %323 = vst [vmem:[%s1610_s29 + $0xc0] sm:$0xff] %v322_v24  ;;  %325 = vst [vmem:[%s1610_s29 + $0xc8] sm:$0xff] %v324_v25  ;;  %v328_v27 = vld [vmem:[%s1605_s28 + $0x1b0] sm:$0xff] }
  0x23   : > { %327 = vst [vmem:[%s1610_s29 + $0xd0] sm:$0xff] %v326_v26  ;;  %v330_v28 = vld [vmem:[%s1605_s28 + $0x1c0] sm:$0xff]  ;;  %v332_v29 = vld [vmem:[%s1605_s28 + $0x1d0] sm:$0xff]  ;;  %329 = vst [vmem:[%s1610_s29 + $0xd8] sm:$0xff] %v328_v27 }
  0x24   : > { %331 = vst [vmem:[%s1610_s29 + $0xe0] sm:$0xff] %v330_v28  ;;  %333 = vst [vmem:[%s1610_s29 + $0xe8] sm:$0xff] %v332_v29  ;;  %v334_v30 = vld [vmem:[%s1605_s28 + $0x1e0] sm:$0xff]  ;;  %v336_v31 = vld [vmem:[%s1605_s28 + $0x1f0] sm:$0xff] }
  0x25   : > { %335 = vst [vmem:[%s1610_s29 + $0xf0] sm:$0xff] %v334_v30  ;;  %337 = vst [vmem:[%s1610_s29 + $0xf8] sm:$0xff] %v336_v31 }
  0x26 PF: > { %p1294_p8 = scmp.ge.s32.totalorder %s1535_s16, 1  ;;  %p350_p9 = scmp.lt.s32.totalorder %s1535_s16, 3 }
  0x28   : > { %p351_p10 = pnand %p1294_p8, %p350_p9 }
  0x29   : > { %s357_s30 = sand.u32 (!%p351_p10), 1, %s1519_s12   ;;  %v1475_v32 = vld [vmem:[%s1923_s0 + $0x4] ss:$8 sps:$4 sm:$0xff] (!%p351_p10)   ;;  %v1473_v2 = vld [vmem:[%s1923_s0] ss:$8 sps:$4 sm:$0xff] (!%p351_p10)   ;;  %s1297_s26 = sshll.u32 (!%p351_p10), %s1527_s14, 1  ;;  %v984_v16 = vlaneseq (!%p351_p10) }
  0x2a   : > { %354 = sbr.rel (%p351_p10) target bundleno = 363 (0x16b), region = 66  ;;  %s1676_s4 = sshll.u32 (!%p351_p10), %s357_s30, 8  ;;  %v1478_v33 = vld [vmem:[%s1923_s0 + $0x44] ss:$8 sps:$4 sm:$0xff] (!%p351_p10)   ;;  %802 = vmatprep.mubr.bf16.mxu0 (!%p351_p10), %v1475_v32  ;;  %v1476_v3 = vld [vmem:[%s1923_s0 + $0x40] ss:$8 sps:$4 sm:$0xff] (!%p351_p10)  }
  0x2b   : > { %s1685_s9 = scalar_lea.vmem (!%p351_p10), [#allocation3], %s1676_s4  ;;  %842 = vmatprep.mubr.bf16.mxu1 (!%p351_p10), %v1478_v33  ;;  %v1479_v4 = vld [vmem:[%s1923_s0 + $0x14] ss:$8 sps:$4 sm:$0xff] (!%p351_p10)   ;;  %v1483_v6 = vld [vmem:[%s1923_s0 + $0x10] ss:$8 sps:$4 sm:$0xff] (!%p351_p10)   ;;  %p408_p11 = scmp.lt.s32.totalorder (!%p351_p10), %s1297_s26, 3 }
  0x2c   : > { %v1425_v34 = vld [vmem:[%s1685_s9 + $0x4] ss:$8 sps:$4 sm:$0xff] (!%p351_p10)   ;;  %v1427_v35 = vld [vmem:[%s1685_s9] ss:$8 sps:$4 sm:$0xff] (!%p351_p10)   ;;  %v1428_v36 = vld [vmem:[%s1685_s9 + $0x14] ss:$8 sps:$4 sm:$0xff] (!%p351_p10)  }
  0x2d   : > { %770 = vmatprep.subr.bf16.mxu0 (!%p351_p10), %v1425_v34  ;;  %1353 = vmatprep.subr.bf16.mxu1 (!%p351_p10), %v1425_v34  ;;  %v1430_v37 = vld [vmem:[%s1685_s9 + $0x10] ss:$8 sps:$4 sm:$0xff] (!%p351_p10)   ;;  %v1431_v38 = vld [vmem:[%s1685_s9 + $0x24] ss:$8 sps:$4 sm:$0xff] (!%p351_p10)   ;;  %v1433_v39 = vld [vmem:[%s1685_s9 + $0x20] ss:$8 sps:$4 sm:$0xff] (!%p351_p10)  }
  0x2e   : > { %771 = vmatpush1.bf16.msra.mxu0 (!%p351_p10), %v1427_v35  ;;  %1369 = vmatpush1.bf16.msra.mxu1 (!%p351_p10), %v1427_v35  ;;  %v1434_v40 = vld [vmem:[%s1685_s9 + $0x34] ss:$8 sps:$4 sm:$0xff] (!%p351_p10)   ;;  %v1436_v41 = vld [vmem:[%s1685_s9 + $0x30] ss:$8 sps:$4 sm:$0xff] (!%p351_p10)   ;;  %v1437_v42 = vld [vmem:[%s1685_s9 + $0x44] ss:$8 sps:$4 sm:$0xff] (!%p351_p10)  }
  0x2f   : > { %772 = vmatprep.subr.bf16.mxu0 (!%p351_p10), %v1428_v36  ;;  %1354 = vmatprep.subr.bf16.mxu1 (!%p351_p10), %v1428_v36  ;;  %v1439_v43 = vld [vmem:[%s1685_s9 + $0x40] ss:$8 sps:$4 sm:$0xff] (!%p351_p10)   ;;  %v1440_v44 = vld [vmem:[%s1685_s9 + $0x54] ss:$8 sps:$4 sm:$0xff] (!%p351_p10)   ;;  %v1442_v45 = vld [vmem:[%s1685_s9 + $0x50] ss:$8 sps:$4 sm:$0xff] (!%p351_p10)  }
  0x30   : > { %v1443_v46 = vld [vmem:[%s1685_s9 + $0x64] ss:$8 sps:$4 sm:$0xff] (!%p351_p10)   ;;  %v1445_v47 = vld [vmem:[%s1685_s9 + $0x60] ss:$8 sps:$4 sm:$0xff] (!%p351_p10)   ;;  %v1446_v48 = vld [vmem:[%s1685_s9 + $0x74] ss:$8 sps:$4 sm:$0xff] (!%p351_p10)  }
  0x31   : > { %v1448_v49 = vld [vmem:[%s1685_s9 + $0x70] ss:$8 sps:$4 sm:$0xff]   ;;  %v1449_v50 = vld [vmem:[%s1685_s9 + $0x84] ss:$8 sps:$4 sm:$0xff]   ;;  %v1451_v51 = vld [vmem:[%s1685_s9 + $0x80] ss:$8 sps:$4 sm:$0xff]  }
  0x32   : > { %773 = vmatpush1.bf16.msra.mxu0 %v1430_v37  ;;  %1370 = vmatpush1.bf16.msra.mxu1 %v1430_v37  ;;  %v1452_v52 = vld [vmem:[%s1685_s9 + $0x94] ss:$8 sps:$4 sm:$0xff]   ;;  %v1454_v53 = vld [vmem:[%s1685_s9 + $0x90] ss:$8 sps:$4 sm:$0xff]   ;;  %v1455_v54 = vld [vmem:[%s1685_s9 + $0xa4] ss:$8 sps:$4 sm:$0xff]  }
  0x33   : > { %774 = vmatprep.subr.bf16.mxu0 %v1431_v38  ;;  %1355 = vmatprep.subr.bf16.mxu1 %v1431_v38  ;;  %v1457_v55 = vld [vmem:[%s1685_s9 + $0xa0] ss:$8 sps:$4 sm:$0xff]   ;;  %v1458_v56 = vld [vmem:[%s1685_s9 + $0xb4] ss:$8 sps:$4 sm:$0xff]   ;;  %v1460_v57 = vld [vmem:[%s1685_s9 + $0xb0] ss:$8 sps:$4 sm:$0xff]  }
  0x34   : > { %v1461_v58 = vld [vmem:[%s1685_s9 + $0xc4] ss:$8 sps:$4 sm:$0xff]   ;;  %v1463_v59 = vld [vmem:[%s1685_s9 + $0xc0] ss:$8 sps:$4 sm:$0xff]   ;;  %v1464_v60 = vld [vmem:[%s1685_s9 + $0xd4] ss:$8 sps:$4 sm:$0xff]  }
  0x35   : > { %v1466_v61 = vld [vmem:[%s1685_s9 + $0xd0] ss:$8 sps:$4 sm:$0xff]   ;;  %v1467_v62 = vld [vmem:[%s1685_s9 + $0xe4] ss:$8 sps:$4 sm:$0xff]   ;;  %v1469_v63 = vld [vmem:[%s1685_s9 + $0xe0] ss:$8 sps:$4 sm:$0xff]  }
  0x36   : > { %775 = vmatpush1.bf16.msra.mxu0 %v1433_v39  ;;  %1371 = vmatpush1.bf16.msra.mxu1 %v1433_v39  ;;  %v1470_v0 = vld [vmem:[%s1685_s9 + $0xf4] ss:$8 sps:$4 sm:$0xff]   ;;  %v1472_v1 = vld [vmem:[%s1685_s9 + $0xf0] ss:$8 sps:$4 sm:$0xff]   ;;  %v1485_v8 = vld [vmem:[%s1923_s0 + $0x24] ss:$8 sps:$4 sm:$0xff]  }
  0x37   : > { %776 = vmatprep.subr.bf16.mxu0 %v1434_v40  ;;  %1356 = vmatprep.subr.bf16.mxu1 %v1434_v40  ;;  %v1481_v5 = vld [vmem:[%s1923_s0 + $0x54] ss:$8 sps:$4 sm:$0xff]   ;;  %v1484_v7 = vld [vmem:[%s1923_s0 + $0x50] ss:$8 sps:$4 sm:$0xff]   ;;  %v1487_v9 = vld [vmem:[%s1923_s0 + $0x64] ss:$8 sps:$4 sm:$0xff]  }
  0x38   : > { %v1489_v10 = vld [vmem:[%s1923_s0 + $0x20] ss:$8 sps:$4 sm:$0xff]   ;;  %v1491_v12 = vld [vmem:[%s1923_s0 + $0x34] ss:$8 sps:$4 sm:$0xff]   ;;  %v1495_v14 = vld [vmem:[%s1923_s0 + $0x30] ss:$8 sps:$4 sm:$0xff]  }
  0x39   : > { %v1490_v11 = vld [vmem:[%s1923_s0 + $0x60] ss:$8 sps:$4 sm:$0xff]   ;;  %v1493_v13 = vld [vmem:[%s1923_s0 + $0x74] ss:$8 sps:$4 sm:$0xff]   ;;  %v1496_v15 = vld [vmem:[%s1923_s0 + $0x70] ss:$8 sps:$4 sm:$0xff]  }
  0x3a   : > { %777 = vmatpush1.bf16.msra.mxu0 %v1436_v41  ;;  %1372 = vmatpush1.bf16.msra.mxu1 %v1436_v41  ;;  %s1935_s26 = smov (!%p408_p11, %s1297_s26), 3  ;;  %v985_v17 = vshrl.u32 %v984_v16, 7  ;;  %s1778_s30 = scalar_lea.vmem [#allocation4], %s1676_s4 }
  0x3b   : > { %778 = vmatprep.subr.bf16.mxu0 %v1437_v42  ;;  %1357 = vmatprep.subr.bf16.mxu1 %v1437_v42  ;;  %s410_s29 = scalar_lea.vmem %s1925_s2, %s1935_s26  ;;  %s1352_s4 = sshll.u32 (%p1592_p6), %s1527_s14, 4 }
  0x3c   : > { %v986_v18 = vsub.s32 0, %v985_v17  ;;  %v982_v19 = vld [vmem:[%s410_s29] sm:$0x3]  ;;  %v990_v20 = vsub.s32 1, %v985_v17  ;;  %s1845_s7 = scalar_lea.vmem (%p1592_p6), %s1926_s3, %s1352_s4 }
  0x3e   : > { %779 = vmatpush1.bf16.msra.mxu0 %v1439_v43  ;;  %1373 = vmatpush1.bf16.msra.mxu1 %v1439_v43  ;;  %v1765_v21 = vrot.slane %v982_v19, %v986_v18  ;;  %v1767_v22 = vrot.slane %v982_v19, %v990_v20 }
  0x3f   : > { %780 = vmatprep.subr.bf16.mxu0 %v1440_v44  ;;  %1358 = vmatprep.subr.bf16.mxu1 %v1440_v44 }
  0x42   : > { %781 = vmatpush1.bf16.msra.mxu0 %v1442_v45  ;;  %1374 = vmatpush1.bf16.msra.mxu1 %v1442_v45 }
  0x43   : > { %782 = vmatprep.subr.bf16.mxu0 %v1443_v46  ;;  %1359 = vmatprep.subr.bf16.mxu1 %v1443_v46 }
  0x46   : > { %783 = vmatpush1.bf16.msra.mxu0 %v1445_v47  ;;  %1375 = vmatpush1.bf16.msra.mxu1 %v1445_v47 }
  0x47   : > { %784 = vmatprep.subr.bf16.mxu0 %v1446_v48  ;;  %1360 = vmatprep.subr.bf16.mxu1 %v1446_v48 }
  0x4a   : > { %785 = vmatpush1.bf16.msra.mxu0 %v1448_v49  ;;  %1376 = vmatpush1.bf16.msra.mxu1 %v1448_v49 }
  0x4b   : > { %786 = vmatprep.subr.bf16.mxu0 %v1449_v50  ;;  %1361 = vmatprep.subr.bf16.mxu1 %v1449_v50 }
  0x4e   : > { %787 = vmatpush1.bf16.msra.mxu0 %v1451_v51  ;;  %1377 = vmatpush1.bf16.msra.mxu1 %v1451_v51 }
  0x4f   : > { %788 = vmatprep.subr.bf16.mxu0 %v1452_v52  ;;  %1362 = vmatprep.subr.bf16.mxu1 %v1452_v52 }
  0x52   : > { %789 = vmatpush1.bf16.msra.mxu0 %v1454_v53  ;;  %1378 = vmatpush1.bf16.msra.mxu1 %v1454_v53 }
  0x53   : > { %790 = vmatprep.subr.bf16.mxu0 %v1455_v54  ;;  %1363 = vmatprep.subr.bf16.mxu1 %v1455_v54 }
  0x56   : > { %791 = vmatpush1.bf16.msra.mxu0 %v1457_v55  ;;  %1379 = vmatpush1.bf16.msra.mxu1 %v1457_v55 }
  0x57   : > { %792 = vmatprep.subr.bf16.mxu0 %v1458_v56  ;;  %1364 = vmatprep.subr.bf16.mxu1 %v1458_v56 }
  0x5a   : > { %793 = vmatpush1.bf16.msra.mxu0 %v1460_v57  ;;  %1380 = vmatpush1.bf16.msra.mxu1 %v1460_v57 }
  0x5b   : > { %794 = vmatprep.subr.bf16.mxu0 %v1461_v58  ;;  %1365 = vmatprep.subr.bf16.mxu1 %v1461_v58 }
  0x5e   : > { %795 = vmatpush1.bf16.msra.mxu0 %v1463_v59  ;;  %1381 = vmatpush1.bf16.msra.mxu1 %v1463_v59 }
  0x5f   : > { %796 = vmatprep.subr.bf16.mxu0 %v1464_v60  ;;  %1366 = vmatprep.subr.bf16.mxu1 %v1464_v60 }
  0x62   : > { %797 = vmatpush1.bf16.msra.mxu0 %v1466_v61  ;;  %1382 = vmatpush1.bf16.msra.mxu1 %v1466_v61 }
  0x63   : > { %798 = vmatprep.subr.bf16.mxu0 %v1467_v62  ;;  %1367 = vmatprep.subr.bf16.mxu1 %v1467_v62 }
  0x66   : > { %799 = vmatpush1.bf16.msra.mxu0 %v1469_v63  ;;  %1383 = vmatpush1.bf16.msra.mxu1 %v1469_v63 }
  0x67   : > { %800 = vmatprep.subr.bf16.mxu0 %v1470_v0  ;;  %1368 = vmatprep.subr.bf16.mxu1 %v1470_v0 }
  0x6a   : > { %801 = vmatpush1.bf16.msra.mxu0 %v1472_v1  ;;  %1384 = vmatpush1.bf16.msra.mxu1 %v1472_v1 }
  0x6d   : > { %803 = vmatmul.mubr.bf16.vlgmr.msra.gmra.mrb[0].mxu0 %v1473_v2  ;;  %843 = vmatmul.mubr.bf16.vlgmr.msra.gmra.mrb[0].mxu1 %v1476_v3 }
  0x6e   : > { %812 = vmatprep.mubr.bf16.mxu0 %v1479_v4  ;;  %852 = vmatprep.mubr.bf16.mxu1 %v1481_v5 }
  0x75   : > { %813 = vmatmul.mubr.bf16.gmra.mrb[4].mxu0 %v1483_v6  ;;  %853 = vmatmul.mubr.bf16.gmra.mrb[4].mxu1 %v1484_v7 }
  0x76   : > { %822 = vmatprep.mubr.bf16.mxu0 %v1485_v8  ;;  %862 = vmatprep.mubr.bf16.mxu1 %v1487_v9 }
  0x7d   : > { %823 = vmatmul.mubr.bf16.gmra.mrb[8].mxu0 %v1489_v10  ;;  %863 = vmatmul.mubr.bf16.gmra.mrb[8].mxu1 %v1490_v11 }
  0x7e   : > { %832 = vmatprep.mubr.bf16.mxu0 %v1491_v12  ;;  %872 = vmatprep.mubr.bf16.mxu1 %v1493_v13 }
  0x85   : > { %833 = vmatmul.mubr.bf16.gmra.mrb[12].mxu0 %v1495_v14  ;;  %873 = vmatmul.mubr.bf16.gmra.mrb[12].mxu1 %v1496_v15 }
 0x140   : > { %v804_v23 = vpop.f32.mrb[0].mxu0  ;;  %v844_v24 = vpop.f32.mrb[0].mxu1 }
 0x141   : > { %v994_v25 = vadd.f32 %v1765_v21, %v804_v23  ;;  %v1010_v26 = vadd.f32 %v1765_v21, %v844_v24  ;;  %v806_v27 = vpop.f32.mrb[1].mxu0  ;;  %v846_v28 = vpop.f32.mrb[1].mxu1 }
 0x142   : > { %v995_v29 = vadd.f32 %v1767_v22, %v806_v27  ;;  %v1011_v30 = vadd.f32 %v1767_v22, %v846_v28  ;;  %v808_v31 = vpop.f32.mrb[2].mxu0  ;;  %v848_v32 = vpop.f32.mrb[2].mxu1 }
 0x143   : > { %v1026_v33 = vmax.f32 %v994_v25, 0.0  ;;  %v1042_v34 = vmax.f32 %v1010_v26, 0.0  ;;  %v996_v35 = vadd.f32 %v1765_v21, %v808_v31  ;;  %v1012_v36 = vadd.f32 %v1765_v21, %v848_v32  ;;  %v810_v37 = vpop.f32.mrb[3].mxu0  ;;  %v850_v38 = vpop.f32.mrb[3].mxu1 }
 0x144   : > { %v1027_v39 = vmax.f32 %v995_v29, 0.0  ;;  %v1043_v40 = vmax.f32 %v1011_v30, 0.0  ;;  %v997_v41 = vadd.f32 %v1767_v22, %v810_v37  ;;  %v1013_v42 = vadd.f32 %v1767_v22, %v850_v38 }
 0x145   : > { %1058 = vst [vmem:[%s1778_s30] sm:$0xff] %v1026_v33  ;;  %1074 = vst [vmem:[%s1778_s30 + $0x80] sm:$0xff] %v1042_v34  ;;  %v1028_v43 = vmax.f32 %v996_v35, 0.0  ;;  %v1044_v44 = vmax.f32 %v1012_v36, 0.0 }
 0x146   : > { %1059 = vst [vmem:[%s1778_s30 + $0x8] sm:$0xff] %v1027_v39  ;;  %1075 = vst [vmem:[%s1778_s30 + $0x88] sm:$0xff] %v1043_v40  ;;  %v1029_v45 = vmax.f32 %v997_v41, 0.0  ;;  %v1045_v46 = vmax.f32 %v1013_v42, 0.0 }
 0x147   : > { %1060 = vst [vmem:[%s1778_s30 + $0x10] sm:$0xff] %v1028_v43  ;;  %1076 = vst [vmem:[%s1778_s30 + $0x90] sm:$0xff] %v1044_v44 }
 0x148   : > { %1061 = vst [vmem:[%s1778_s30 + $0x18] sm:$0xff] %v1029_v45  ;;  %1077 = vst [vmem:[%s1778_s30 + $0x98] sm:$0xff] %v1045_v46  ;;  %v814_v47 = vpop.f32.mrb[4].mxu0  ;;  %v854_v48 = vpop.f32.mrb[4].mxu1 }
 0x149   : > { %v998_v49 = vadd.f32 %v1765_v21, %v814_v47  ;;  %v1014_v50 = vadd.f32 %v1765_v21, %v854_v48  ;;  %v816_v51 = vpop.f32.mrb[5].mxu0  ;;  %v856_v52 = vpop.f32.mrb[5].mxu1 }
 0x14a   : > { %v999_v53 = vadd.f32 %v1767_v22, %v816_v51  ;;  %v1015_v54 = vadd.f32 %v1767_v22, %v856_v52  ;;  %v818_v55 = vpop.f32.mrb[6].mxu0  ;;  %v858_v56 = vpop.f32.mrb[6].mxu1 }
 0x14b   : > { %v1030_v57 = vmax.f32 %v998_v49, 0.0  ;;  %v1046_v58 = vmax.f32 %v1014_v50, 0.0  ;;  %v1000_v59 = vadd.f32 %v1765_v21, %v818_v55  ;;  %v1016_v60 = vadd.f32 %v1765_v21, %v858_v56  ;;  %v820_v61 = vpop.f32.mrb[7].mxu0  ;;  %v860_v62 = vpop.f32.mrb[7].mxu1 }
 0x14c   : > { %v1031_v63 = vmax.f32 %v999_v53, 0.0  ;;  %v1047_v0 = vmax.f32 %v1015_v54, 0.0  ;;  %v1001_v1 = vadd.f32 %v1767_v22, %v820_v61  ;;  %v1017_v2 = vadd.f32 %v1767_v22, %v860_v62 }
 0x14d   : > { %1062 = vst [vmem:[%s1778_s30 + $0x20] sm:$0xff] %v1030_v57  ;;  %1078 = vst [vmem:[%s1778_s30 + $0xa0] sm:$0xff] %v1046_v58  ;;  %v1032_v3 = vmax.f32 %v1000_v59, 0.0  ;;  %v1048_v4 = vmax.f32 %v1016_v60, 0.0 }
 0x14e   : > { %1063 = vst [vmem:[%s1778_s30 + $0x28] sm:$0xff] %v1031_v63  ;;  %1079 = vst [vmem:[%s1778_s30 + $0xa8] sm:$0xff] %v1047_v0  ;;  %v1033_v5 = vmax.f32 %v1001_v1, 0.0  ;;  %v1049_v6 = vmax.f32 %v1017_v2, 0.0  ;;  %v1119_v57 = vld [vmem:[%s1778_s30 + $0x10] sm:$0xff] (%p1592_p6) }
 0x14f   : > { %1064 = vst [vmem:[%s1778_s30 + $0x30] sm:$0xff] %v1032_v3  ;;  %1080 = vst [vmem:[%s1778_s30 + $0xb0] sm:$0xff] %v1048_v4  ;;  %v1121_v58 = vld [vmem:[%s1778_s30 + $0x18] sm:$0xff] (%p1592_p6) }
 0x150   : > { %1065 = vst [vmem:[%s1778_s30 + $0x38] sm:$0xff] %v1033_v5  ;;  %1081 = vst [vmem:[%s1778_s30 + $0xb8] sm:$0xff] %v1049_v6  ;;  %v824_v7 = vpop.f32.mrb[8].mxu0  ;;  %v864_v8 = vpop.f32.mrb[8].mxu1 }
 0x151   : > { %v1002_v9 = vadd.f32 %v1765_v21, %v824_v7  ;;  %v1018_v10 = vadd.f32 %v1765_v21, %v864_v8  ;;  %v826_v11 = vpop.f32.mrb[9].mxu0  ;;  %v866_v12 = vpop.f32.mrb[9].mxu1  ;;  %1120 = vst [vmem:[%s1845_s7 + $0x20] sm:$0xff] (%p1592_p6), %v1119_v57  ;;  %1122 = vst [vmem:[%s1845_s7 + $0x28] sm:$0xff] (%p1592_p6), %v1121_v58  ;;  %v1147_v7 = vld [vmem:[%s1778_s30 + $0x80] sm:$0xff] (%p1592_p6)  ;;  %v1149_v8 = vld [vmem:[%s1778_s30 + $0x88] sm:$0xff] (%p1592_p6) }
 0x152   : > { %v1003_v13 = vadd.f32 %v1767_v22, %v826_v11  ;;  %v1019_v14 = vadd.f32 %v1767_v22, %v866_v12  ;;  %v828_v15 = vpop.f32.mrb[10].mxu0  ;;  %v868_v16 = vpop.f32.mrb[10].mxu1  ;;  %1148 = vst [vmem:[%s1845_s7 + $0x100] sm:$0xff] (%p1592_p6), %v1147_v7  ;;  %1150 = vst [vmem:[%s1845_s7 + $0x108] sm:$0xff] (%p1592_p6), %v1149_v8 }
 0x153   : > { %v1034_v17 = vmax.f32 %v1002_v9, 0.0  ;;  %v1050_v18 = vmax.f32 %v1018_v10, 0.0  ;;  %v1004_v19 = vadd.f32 %v1765_v21, %v828_v15  ;;  %v1020_v20 = vadd.f32 %v1765_v21, %v868_v16  ;;  %v830_v23 = vpop.f32.mrb[11].mxu0  ;;  %v870_v24 = vpop.f32.mrb[11].mxu1  ;;  %v1151_v9 = vld [vmem:[%s1778_s30 + $0x90] sm:$0xff] (%p1592_p6)  ;;  %v1153_v10 = vld [vmem:[%s1778_s30 + $0x98] sm:$0xff] (%p1592_p6) }
 0x154   : > { %v1035_v25 = vmax.f32 %v1003_v13, 0.0  ;;  %v1051_v26 = vmax.f32 %v1019_v14, 0.0  ;;  %v1005_v27 = vadd.f32 %v1767_v22, %v830_v23  ;;  %v1021_v28 = vadd.f32 %v1767_v22, %v870_v24  ;;  %v1123_v59 = vld [vmem:[%s1778_s30 + $0x20] sm:$0xff] (%p1592_p6)  ;;  %1152 = vst [vmem:[%s1845_s7 + $0x120] sm:$0xff] (%p1592_p6), %v1151_v9  ;;  %1154 = vst [vmem:[%s1845_s7 + $0x128] sm:$0xff] (%p1592_p6), %v1153_v10 }
 0x155   : > { %1066 = vst [vmem:[%s1778_s30 + $0x40] sm:$0xff] %v1034_v17  ;;  %1082 = vst [vmem:[%s1778_s30 + $0xc0] sm:$0xff] %v1050_v18  ;;  %v1036_v29 = vmax.f32 %v1004_v19, 0.0  ;;  %v1052_v30 = vmax.f32 %v1020_v20, 0.0  ;;  %v1125_v60 = vld [vmem:[%s1778_s30 + $0x28] sm:$0xff] (%p1592_p6)  ;;  %v1155_v11 = vld [vmem:[%s1778_s30 + $0xa0] sm:$0xff] (%p1592_p6) }
 0x156   : > { %1067 = vst [vmem:[%s1778_s30 + $0x48] sm:$0xff] %v1035_v25  ;;  %1083 = vst [vmem:[%s1778_s30 + $0xc8] sm:$0xff] %v1051_v26  ;;  %v1037_v31 = vmax.f32 %v1005_v27, 0.0  ;;  %v1053_v32 = vmax.f32 %v1021_v28, 0.0  ;;  %v1127_v61 = vld [vmem:[%s1778_s30 + $0x30] sm:$0xff] (%p1592_p6)  ;;  %v1157_v12 = vld [vmem:[%s1778_s30 + $0xa8] sm:$0xff] (%p1592_p6) }
 0x157   : > { %1068 = vst [vmem:[%s1778_s30 + $0x50] sm:$0xff] %v1036_v29  ;;  %1084 = vst [vmem:[%s1778_s30 + $0xd0] sm:$0xff] %v1052_v30  ;;  %v1129_v62 = vld [vmem:[%s1778_s30 + $0x38] sm:$0xff] (%p1592_p6)  ;;  %v1159_v13 = vld [vmem:[%s1778_s30 + $0xb0] sm:$0xff] (%p1592_p6) }
 0x158   : > { %1069 = vst [vmem:[%s1778_s30 + $0x58] sm:$0xff] %v1037_v31  ;;  %1085 = vst [vmem:[%s1778_s30 + $0xd8] sm:$0xff] %v1053_v32  ;;  %v834_v33 = vpop.f32.mrb[12].mxu0  ;;  %v874_v34 = vpop.f32.mrb[12].mxu1  ;;  %v1161_v14 = vld [vmem:[%s1778_s30 + $0xb8] sm:$0xff] (%p1592_p6) }
 0x159   : > { %v1006_v35 = vadd.f32 %v1765_v21, %v834_v33  ;;  %v1022_v36 = vadd.f32 %v1765_v21, %v874_v34  ;;  %v836_v37 = vpop.f32.mrb[13].mxu0  ;;  %v876_v38 = vpop.f32.mrb[13].mxu1  ;;  %1124 = vst [vmem:[%s1845_s7 + $0x40] sm:$0xff] (%p1592_p6), %v1123_v59  ;;  %1126 = vst [vmem:[%s1845_s7 + $0x48] sm:$0xff] (%p1592_p6), %v1125_v60 }
 0x15a   : > { %v1007_v39 = vadd.f32 %v1767_v22, %v836_v37  ;;  %v1023_v40 = vadd.f32 %v1767_v22, %v876_v38  ;;  %v838_v41 = vpop.f32.mrb[14].mxu0  ;;  %v878_v42 = vpop.f32.mrb[14].mxu1  ;;  %1096 = sbr.rel (!%p1592_p6) target bundleno = 363 (0x16b), region = 82  ;;  %1128 = vst [vmem:[%s1845_s7 + $0x60] sm:$0xff] (%p1592_p6), %v1127_v61  ;;  %1130 = vst [vmem:[%s1845_s7 + $0x68] sm:$0xff] (%p1592_p6), %v1129_v62 }
 0x15b   : > { %v1038_v43 = vmax.f32 %v1006_v35, 0.0  ;;  %v1054_v44 = vmax.f32 %v1022_v36, 0.0  ;;  %v1008_v45 = vadd.f32 %v1765_v21, %v838_v41  ;;  %v1024_v46 = vadd.f32 %v1765_v21, %v878_v42  ;;  %v840_v47 = vpop.f32.mrb[15].mxu0  ;;  %v880_v48 = vpop.f32.mrb[15].mxu1  ;;  %v1115_v21 = vld [vmem:[%s1778_s30] sm:$0xff] (%p1592_p6)  ;;  %1156 = vst [vmem:[%s1845_s7 + $0x140] sm:$0xff] (%p1592_p6), %v1155_v11 }
 0x15c   : > { %v1039_v49 = vmax.f32 %v1007_v39, 0.0  ;;  %v1055_v50 = vmax.f32 %v1023_v40, 0.0  ;;  %v1009_v51 = vadd.f32 %v1767_v22, %v840_v47  ;;  %v1025_v52 = vadd.f32 %v1767_v22, %v880_v48  ;;  %v1117_v22 = vld [vmem:[%s1778_s30 + $0x8] sm:$0xff] (%p1592_p6)  ;;  %1116 = vst [vmem:[%s1845_s7] sm:$0xff] (%p1592_p6), %v1115_v21  ;;  %v1131_v63 = vld [vmem:[%s1778_s30 + $0x40] sm:$0xff] (%p1592_p6)  ;;  %1158 = vst [vmem:[%s1845_s7 + $0x148] sm:$0xff] (%p1592_p6), %v1157_v12 }
 0x15d   : > { %1070 = vst [vmem:[%s1778_s30 + $0x60] sm:$0xff] %v1038_v43  ;;  %1086 = vst [vmem:[%s1778_s30 + $0xe0] sm:$0xff] %v1054_v44  ;;  %v1040_v53 = vmax.f32 %v1008_v45, 0.0  ;;  %v1056_v54 = vmax.f32 %v1024_v46, 0.0  ;;  %v1133_v0 = vld [vmem:[%s1778_s30 + $0x48] sm:$0xff] (%p1592_p6)  ;;  %v1163_v15 = vld [vmem:[%s1778_s30 + $0xc0] sm:$0xff] (%p1592_p6) }
 0x15e   : > { %1071 = vst [vmem:[%s1778_s30 + $0x68] sm:$0xff] %v1039_v49  ;;  %1087 = vst [vmem:[%s1778_s30 + $0xe8] sm:$0xff] %v1055_v50  ;;  %v1041_v55 = vmax.f32 %v1009_v51, 0.0  ;;  %v1057_v56 = vmax.f32 %v1025_v52, 0.0  ;;  %v1135_v1 = vld [vmem:[%s1778_s30 + $0x50] sm:$0xff] (%p1592_p6)  ;;  %v1165_v16 = vld [vmem:[%s1778_s30 + $0xc8] sm:$0xff] (%p1592_p6) }
 0x15f   : > { %1072 = vst [vmem:[%s1778_s30 + $0x70] sm:$0xff] %v1040_v53  ;;  %1088 = vst [vmem:[%s1778_s30 + $0xf0] sm:$0xff] %v1056_v54  ;;  %v1137_v2 = vld [vmem:[%s1778_s30 + $0x58] sm:$0xff] (%p1592_p6)  ;;  %v1167_v17 = vld [vmem:[%s1778_s30 + $0xd0] sm:$0xff] (%p1592_p6) }
 0x160   : > { %1073 = vst [vmem:[%s1778_s30 + $0x78] sm:$0xff] %v1041_v55  ;;  %1089 = vst [vmem:[%s1778_s30 + $0xf8] sm:$0xff] %v1057_v56  ;;  %v1169_v18 = vld [vmem:[%s1778_s30 + $0xd8] sm:$0xff] (%p1592_p6) }
 0x161   : > { %1118 = vst [vmem:[%s1845_s7 + $0x8] sm:$0xff] %v1117_v22  ;;  %1132 = vst [vmem:[%s1845_s7 + $0x80] sm:$0xff] %v1131_v63 }
 0x162   : > { %1134 = vst [vmem:[%s1845_s7 + $0x88] sm:$0xff] %v1133_v0  ;;  %1136 = vst [vmem:[%s1845_s7 + $0xa0] sm:$0xff] %v1135_v1 }
 0x163   : > { %1138 = vst [vmem:[%s1845_s7 + $0xa8] sm:$0xff] %v1137_v2  ;;  %1160 = vst [vmem:[%s1845_s7 + $0x160] sm:$0xff] %v1159_v13 }
 0x164   : > { %v1139_v3 = vld [vmem:[%s1778_s30 + $0x60] sm:$0xff]  ;;  %1162 = vst [vmem:[%s1845_s7 + $0x168] sm:$0xff] %v1161_v14  ;;  %1164 = vst [vmem:[%s1845_s7 + $0x180] sm:$0xff] %v1163_v15 }
 0x165   : > { %v1141_v4 = vld [vmem:[%s1778_s30 + $0x68] sm:$0xff]  ;;  %1140 = vst [vmem:[%s1845_s7 + $0xc0] sm:$0xff] %v1139_v3  ;;  %1166 = vst [vmem:[%s1845_s7 + $0x188] sm:$0xff] %v1165_v16  ;;  %v1171_v19 = vld [vmem:[%s1778_s30 + $0xe0] sm:$0xff] }
 0x166   : > { %v1143_v5 = vld [vmem:[%s1778_s30 + $0x70] sm:$0xff]  ;;  %1142 = vst [vmem:[%s1845_s7 + $0xc8] sm:$0xff] %v1141_v4  ;;  %1168 = vst [vmem:[%s1845_s7 + $0x1a0] sm:$0xff] %v1167_v17  ;;  %v1173_v20 = vld [vmem:[%s1778_s30 + $0xe8] sm:$0xff] }
 0x167   : > { %1144 = vst [vmem:[%s1845_s7 + $0xe0] sm:$0xff] %v1143_v5  ;;  %v1145_v6 = vld [vmem:[%s1778_s30 + $0x78] sm:$0xff]  ;;  %1170 = vst [vmem:[%s1845_s7 + $0x1a8] sm:$0xff] %v1169_v18  ;;  %v1175_v23 = vld [vmem:[%s1778_s30 + $0xf0] sm:$0xff] }
 0x168   : > { %1146 = vst [vmem:[%s1845_s7 + $0xe8] sm:$0xff] %v1145_v6  ;;  %1172 = vst [vmem:[%s1845_s7 + $0x1c0] sm:$0xff] %v1171_v19  ;;  %v1177_v24 = vld [vmem:[%s1778_s30 + $0xf8] sm:$0xff] }
 0x169   : > { %1174 = vst [vmem:[%s1845_s7 + $0x1c8] sm:$0xff] %v1173_v20  ;;  %1176 = vst [vmem:[%s1845_s7 + $0x1e0] sm:$0xff] %v1175_v23 }
 0x16a   : > { %1178 = vst [vmem:[%s1845_s7 + $0x1e8] sm:$0xff] %v1177_v24 }
 0x16b PF: > { %s13_s16 = sadd.s32 1, %s1535_s16   ;;  %s1928_s12 = smov %s1523_s13 }
 0x16c   : > { %p10_p12 = scmp.ge.s32.totalorder %s13_s16, 4   ;;  %s1929_s13 = smov %s1597_s22 }
 0x16d   : > { %s1930_s14 = smov %s1531_s15  ;;  %s1931_s15 = smov %s1933_s17 }
 0x16e   :  { %12 = sbr.rel (!%p10_p12) target bundleno = 3 (0x3), region = 142 }

// kernel: reseg_forward.39
= control target key start
LH: loop header
LB: loop body
LE: loop exit
PB: predicated region body
PF: predicated region fallthrough
CT: control target
= control target key end

     0   :  { %s1425_s12 = smov 0   ;;  %s1427_s13 = smov 0   ;;  %s1618_s0 = inlined_call_operand.vmem [shape: bf16[512,256], index: 0, kind: input, shape index: {}]   ;;  %s1619_s1 = inlined_call_operand.vmem [shape: bf16[256,128], index: 1, kind: input, shape index: {}]   ;;  %s1620_s2 = inlined_call_operand.vmem [shape: f32[1,128], index: 2, kind: input, shape index: {}]   ;;  %s1621_s3 = inlined_call_operand.vmem [shape: f32[512,128], index: 3, kind: output, shape index: {}]  }
   0x1   :  { %s1429_s14 = smov 0  }
   0x2 LB: > { %s32_s15 = sadd.s32 1, %s1399_s13  ;;  %p1107_p0 = scmp.ge.s32.totalorder %s1403_s14, 1  ;;  %s1403_s14 = sphi %s1429_s14, %s13_s14   ;;  %s1399_s13 = sphi %s1427_s13, %s1623_s13   ;;  %s1395_s12 = sphi %s1425_s12, %s1622_s12  }
   0x3   : > { %p34_p1 = scmp.ge.s32.totalorder %s32_s15, 2  ;;  %p191_p2 = scmp.lt.s32.totalorder %s1403_s14, 3 }
   0x5   : > { %s1625_s15 = smov (%p34_p1, %s32_s15), 0  ;;  %p192_p3 = pnand %p1107_p0, %p191_p2 }
   0x6   : > { %v1317_v0 = vld [vmem:[%s1619_s1 + $0x40] sm:$0xff] (!%p192_p3)   ;;  %s1108_s18 = sshll.u32 (!%p192_p3), %s1395_s12, 5  ;;  %v1319_v2 = vld [vmem:[%s1619_s1 + $0x48] sm:$0xff] (!%p192_p3)   ;;  %v1321_v4 = vld [vmem:[%s1619_s1 + $0x50] sm:$0xff] (!%p192_p3)  }
   0x7   : > { %195 = sbr.rel (%p192_p3) target bundleno = 315 (0x13b), region = 32  ;;  %v1318_v1 = vld [vmem:[%s1619_s1] sm:$0xff] (!%p192_p3)   ;;  %1165 = vmatprep.subr.bf16.mxu0 (!%p192_p3), %v1317_v0  ;;  %1277 = vmatprep.subr.bf16.mxu1 (!%p192_p3), %v1317_v0  ;;  %v1320_v3 = vld [vmem:[%s1619_s1 + $0x8] sm:$0xff] (!%p192_p3)   ;;  %p236_p4 = scmp.lt.s32.totalorder (!%p192_p3), %s1108_s18, 63  ;;  %v1322_v5 = vld [vmem:[%s1619_s1 + $0x10] sm:$0xff] (!%p192_p3)  }
   0x8   : > { %1166 = vmatpush3.bf16.msra.mxu0 (!%p192_p3), %v1318_v1  ;;  %1285 = vmatpush3.bf16.msra.mxu1 (!%p192_p3), %v1318_v1  ;;  %v1323_v6 = vld [vmem:[%s1619_s1 + $0x58] sm:$0xff] (!%p192_p3)   ;;  %v1325_v8 = vld [vmem:[%s1619_s1 + $0x60] sm:$0xff] (!%p192_p3)   ;;  %v1327_v10 = vld [vmem:[%s1619_s1 + $0x68] sm:$0xff] (!%p192_p3)  }
   0x9   : > { %1167 = vmatprep.subr.bf16.mxu0 (!%p192_p3), %v1319_v2  ;;  %1278 = vmatprep.subr.bf16.mxu1 (!%p192_p3), %v1319_v2  ;;  %v1324_v7 = vld [vmem:[%s1619_s1 + $0x18] sm:$0xff] (!%p192_p3)   ;;  %v1326_v9 = vld [vmem:[%s1619_s1 + $0x20] sm:$0xff] (!%p192_p3)   ;;  %v1328_v13 = vld [vmem:[%s1619_s1 + $0x28] sm:$0xff] (!%p192_p3)  }
   0xa   : > { %v1329_v14 = vld [vmem:[%s1619_s1 + $0x70] sm:$0xff] (!%p192_p3)   ;;  %v1331_v16 = vld [vmem:[%s1619_s1 + $0x78] sm:$0xff] (!%p192_p3)   ;;  %v1536_v51 = vld [vmem:[%s1620_s2] ss:$0 sm:$0xff] (!%p192_p3) }
   0xb   : > { %v1330_v15 = vld [vmem:[%s1619_s1 + $0x30] sm:$0xff] (!%p192_p3)   ;;  %v1332_v17 = vld [vmem:[%s1619_s1 + $0x38] sm:$0xff] (!%p192_p3)  }
   0xc   : > { %1168 = vmatpush3.bf16.msra.mxu0 (!%p192_p3), %v1320_v3  ;;  %1286 = vmatpush3.bf16.msra.mxu1 (!%p192_p3), %v1320_v3 }
   0xd   : > { %1169 = vmatprep.subr.bf16.mxu0 (!%p192_p3), %v1321_v4  ;;  %1279 = vmatprep.subr.bf16.mxu1 (!%p192_p3), %v1321_v4 }
   0xe   : > { %s1627_s18 = smov (!%p236_p4, %s1108_s18), 63 }
   0xf   : > { %s1164_s6 = sshll.u32 %s1627_s18, 3 }
  0x10   : > { %1170 = vmatpush3.bf16.msra.mxu0 %v1322_v5  ;;  %1287 = vmatpush3.bf16.msra.mxu1 %v1322_v5  ;;  %s1478_s11 = scalar_lea.vmem %s1618_s0, %s1164_s6  ;;  %s1543_s8 = scalar_lea.vmem %s1621_s3, %s1164_s6 }
  0x11   : > { %1171 = vmatprep.subr.bf16.mxu0 %v1323_v6  ;;  %1280 = vmatprep.subr.bf16.mxu1 %v1323_v6  ;;  %v1335_v11 = vld [vmem:[%s1478_s11 + $0x4] ss:$8 sps:$4 sm:$0xff]   ;;  %v1333_v18 = vld [vmem:[%s1478_s11] ss:$8 sps:$4 sm:$0xff]   ;;  %v1339_v20 = vld [vmem:[%s1478_s11 + $0x14] ss:$8 sps:$4 sm:$0xff]  }
  0x12   : > { %v1338_v12 = vld [vmem:[%s1478_s11 + $0x84] ss:$8 sps:$4 sm:$0xff]   ;;  %688 = vmatprep.mubr.bf16.mxu0 %v1335_v11  ;;  %v1336_v19 = vld [vmem:[%s1478_s11 + $0x80] ss:$8 sps:$4 sm:$0xff]   ;;  %v1341_v21 = vld [vmem:[%s1478_s11 + $0x94] ss:$8 sps:$4 sm:$0xff]  }
  0x13   : > { %752 = vmatprep.mubr.bf16.mxu1 %v1338_v12  ;;  %v1343_v22 = vld [vmem:[%s1478_s11 + $0x10] ss:$8 sps:$4 sm:$0xff]   ;;  %v1345_v24 = vld [vmem:[%s1478_s11 + $0x24] ss:$8 sps:$4 sm:$0xff]   ;;  %v1349_v26 = vld [vmem:[%s1478_s11 + $0x20] ss:$8 sps:$4 sm:$0xff]  }
  0x14   : > { %1172 = vmatpush3.bf16.msra.mxu0 %v1324_v7  ;;  %1288 = vmatpush3.bf16.msra.mxu1 %v1324_v7  ;;  %v1344_v23 = vld [vmem:[%s1478_s11 + $0x90] ss:$8 sps:$4 sm:$0xff]   ;;  %v1347_v25 = vld [vmem:[%s1478_s11 + $0xa4] ss:$8 sps:$4 sm:$0xff]   ;;  %v1350_v27 = vld [vmem:[%s1478_s11 + $0xa0] ss:$8 sps:$4 sm:$0xff]  }
  0x15   : > { %1173 = vmatprep.subr.bf16.mxu0 %v1325_v8  ;;  %1281 = vmatprep.subr.bf16.mxu1 %v1325_v8  ;;  %v1351_v28 = vld [vmem:[%s1478_s11 + $0x34] ss:$8 sps:$4 sm:$0xff]   ;;  %v1355_v30 = vld [vmem:[%s1478_s11 + $0x30] ss:$8 sps:$4 sm:$0xff]   ;;  %v1357_v32 = vld [vmem:[%s1478_s11 + $0x44] ss:$8 sps:$4 sm:$0xff]  }
  0x16   : > { %v1353_v29 = vld [vmem:[%s1478_s11 + $0xb4] ss:$8 sps:$4 sm:$0xff]   ;;  %v1356_v31 = vld [vmem:[%s1478_s11 + $0xb0] ss:$8 sps:$4 sm:$0xff]   ;;  %v1359_v33 = vld [vmem:[%s1478_s11 + $0xc4] ss:$8 sps:$4 sm:$0xff]  }
  0x17   : > { %v1361_v34 = vld [vmem:[%s1478_s11 + $0x40] ss:$8 sps:$4 sm:$0xff]   ;;  %v1363_v36 = vld [vmem:[%s1478_s11 + $0x54] ss:$8 sps:$4 sm:$0xff]   ;;  %v1367_v38 = vld [vmem:[%s1478_s11 + $0x50] ss:$8 sps:$4 sm:$0xff]  }
  0x18   : > { %1174 = vmatpush3.bf16.msra.mxu0 %v1326_v9  ;;  %1289 = vmatpush3.bf16.msra.mxu1 %v1326_v9  ;;  %v1362_v35 = vld [vmem:[%s1478_s11 + $0xc0] ss:$8 sps:$4 sm:$0xff]   ;;  %v1365_v37 = vld [vmem:[%s1478_s11 + $0xd4] ss:$8 sps:$4 sm:$0xff]   ;;  %v1368_v39 = vld [vmem:[%s1478_s11 + $0xd0] ss:$8 sps:$4 sm:$0xff]  }
  0x19   : > { %1175 = vmatprep.subr.bf16.mxu0 %v1327_v10  ;;  %1282 = vmatprep.subr.bf16.mxu1 %v1327_v10  ;;  %v1369_v40 = vld [vmem:[%s1478_s11 + $0x64] ss:$8 sps:$4 sm:$0xff]   ;;  %v1373_v42 = vld [vmem:[%s1478_s11 + $0x60] ss:$8 sps:$4 sm:$0xff]   ;;  %v1375_v44 = vld [vmem:[%s1478_s11 + $0x74] ss:$8 sps:$4 sm:$0xff]  }
  0x1a   : > { %v1371_v41 = vld [vmem:[%s1478_s11 + $0xe4] ss:$8 sps:$4 sm:$0xff]   ;;  %v1374_v43 = vld [vmem:[%s1478_s11 + $0xe0] ss:$8 sps:$4 sm:$0xff]   ;;  %v1377_v45 = vld [vmem:[%s1478_s11 + $0xf4] ss:$8 sps:$4 sm:$0xff]  }
  0x1b   : > { %v1379_v46 = vld [vmem:[%s1478_s11 + $0x70] ss:$8 sps:$4 sm:$0xff]  }
  0x1c   : > { %1176 = vmatpush3.bf16.msra.mxu0 %v1328_v13  ;;  %1290 = vmatpush3.bf16.msra.mxu1 %v1328_v13  ;;  %v1380_v47 = vld [vmem:[%s1478_s11 + $0xf0] ss:$8 sps:$4 sm:$0xff]  }
  0x1d   : > { %1177 = vmatprep.subr.bf16.mxu0 %v1329_v14  ;;  %1283 = vmatprep.subr.bf16.mxu1 %v1329_v14 }
  0x20   : > { %1178 = vmatpush3.bf16.msra.mxu0 %v1330_v15  ;;  %1291 = vmatpush3.bf16.msra.mxu1 %v1330_v15 }
  0x21   : > { %1179 = vmatprep.subr.bf16.mxu0 %v1331_v16  ;;  %1284 = vmatprep.subr.bf16.mxu1 %v1331_v16 }
  0x24   : > { %1180 = vmatpush3.bf16.msra.mxu0 %v1332_v17  ;;  %1292 = vmatpush3.bf16.msra.mxu1 %v1332_v17 }
  0x27   : > { %689 = vmatmul.mubr.bf16.vlgmr.msra.gmra.mrb[0].mxu0 %v1333_v18  ;;  %753 = vmatmul.mubr.bf16.vlgmr.msra.gmra.mrb[0].mxu1 %v1336_v19 }
  0x28   : > { %696 = vmatprep.mubr.bf16.mxu0 %v1339_v20  ;;  %760 = vmatprep.mubr.bf16.mxu1 %v1341_v21 }
  0x2f   : > { %697 = vmatmul.mubr.bf16.gmra.mrb[4].mxu0 %v1343_v22  ;;  %761 = vmatmul.mubr.bf16.gmra.mrb[4].mxu1 %v1344_v23 }
  0x30   : > { %704 = vmatprep.mubr.bf16.mxu0 %v1345_v24  ;;  %768 = vmatprep.mubr.bf16.mxu1 %v1347_v25 }
  0x37   : > { %705 = vmatmul.mubr.bf16.gmra.mrb[8].mxu0 %v1349_v26  ;;  %769 = vmatmul.mubr.bf16.gmra.mrb[8].mxu1 %v1350_v27 }
  0x38   : > { %712 = vmatprep.mubr.bf16.mxu0 %v1351_v28  ;;  %776 = vmatprep.mubr.bf16.mxu1 %v1353_v29 }
  0x3f   : > { %713 = vmatmul.mubr.bf16.gmra.mrb[12].mxu0 %v1355_v30  ;;  %777 = vmatmul.mubr.bf16.gmra.mrb[12].mxu1 %v1356_v31 }
  0x40   : > { %720 = vmatprep.mubr.bf16.mxu0 %v1357_v32  ;;  %784 = vmatprep.mubr.bf16.mxu1 %v1359_v33 }
  0x47   : > { %721 = vmatmul.mubr.bf16.gmra.mrb[16].mxu0 %v1361_v34  ;;  %785 = vmatmul.mubr.bf16.gmra.mrb[16].mxu1 %v1362_v35 }
  0x48   : > { %728 = vmatprep.mubr.bf16.mxu0 %v1363_v36  ;;  %792 = vmatprep.mubr.bf16.mxu1 %v1365_v37 }
  0x4f   : > { %729 = vmatmul.mubr.bf16.gmra.mrb[20].mxu0 %v1367_v38  ;;  %793 = vmatmul.mubr.bf16.gmra.mrb[20].mxu1 %v1368_v39 }
  0x50   : > { %736 = vmatprep.mubr.bf16.mxu0 %v1369_v40  ;;  %800 = vmatprep.mubr.bf16.mxu1 %v1371_v41 }
  0x57   : > { %737 = vmatmul.mubr.bf16.gmra.mrb[24].mxu0 %v1373_v42  ;;  %801 = vmatmul.mubr.bf16.gmra.mrb[24].mxu1 %v1374_v43 }
  0x58   : > { %744 = vmatprep.mubr.bf16.mxu0 %v1375_v44  ;;  %808 = vmatprep.mubr.bf16.mxu1 %v1377_v45 }
  0x5f   : > { %745 = vmatmul.mubr.bf16.gmra.mrb[28].mxu0 %v1379_v46  ;;  %809 = vmatmul.mubr.bf16.gmra.mrb[28].mxu1 %v1380_v47 }
  0xfa   : > { %v1181_v48 = vpop.f32.mrb[0].mxu0  ;;  %v1229_v49 = vpop.f32.mrb[0].mxu1 }
  0xfb   : > { %v1182_v50 = vpop.f32.mrb[1].mxu0  ;;  %v1230_v52 = vpop.f32.mrb[1].mxu1 }
  0xfc   : > { %v1183_v53 = vadd.f32 %v1182_v50, %v1181_v48  ;;  %v1231_v54 = vadd.f32 %v1230_v52, %v1229_v49  ;;  %v1184_v55 = vpop.f32.mrb[2].mxu0  ;;  %v1232_v56 = vpop.f32.mrb[2].mxu1 }
  0xfd   : > { %v1185_v57 = vpop.f32.mrb[3].mxu0  ;;  %v1233_v58 = vpop.f32.mrb[3].mxu1 }
  0xfe   : > { %v923_v59 = vadd.f32 %v1183_v53, %v1536_v51  ;;  %v939_v60 = vadd.f32 %v1231_v54, %v1536_v51  ;;  %v1186_v61 = vadd.f32 %v1185_v57, %v1184_v55  ;;  %v1234_v62 = vadd.f32 %v1233_v58, %v1232_v56 }
 0x100   : > { %955 = vst [vmem:[%s1543_s8] sm:$0xff] %v923_v59  ;;  %971 = vst [vmem:[%s1543_s8 + $0x80] sm:$0xff] %v939_v60  ;;  %v924_v63 = vadd.f32 %v1186_v61, %v1536_v51  ;;  %v940_v0 = vadd.f32 %v1234_v62, %v1536_v51 }
 0x102   : > { %956 = vst [vmem:[%s1543_s8 + $0x8] sm:$0xff] %v924_v63  ;;  %972 = vst [vmem:[%s1543_s8 + $0x88] sm:$0xff] %v940_v0  ;;  %v1187_v1 = vpop.f32.mrb[4].mxu0  ;;  %v1235_v2 = vpop.f32.mrb[4].mxu1 }
 0x103   : > { %v1188_v3 = vpop.f32.mrb[5].mxu0  ;;  %v1236_v4 = vpop.f32.mrb[5].mxu1 }
 0x104   : > { %v1189_v5 = vadd.f32 %v1188_v3, %v1187_v1  ;;  %v1237_v6 = vadd.f32 %v1236_v4, %v1235_v2  ;;  %v1190_v7 = vpop.f32.mrb[6].mxu0  ;;  %v1238_v8 = vpop.f32.mrb[6].mxu1 }
 0x105   : > { %v1191_v9 = vpop.f32.mrb[7].mxu0  ;;  %v1239_v10 = vpop.f32.mrb[7].mxu1 }
 0x106   : > { %v925_v11 = vadd.f32 %v1189_v5, %v1536_v51  ;;  %v941_v12 = vadd.f32 %v1237_v6, %v1536_v51  ;;  %v1192_v13 = vadd.f32 %v1191_v9, %v1190_v7  ;;  %v1240_v14 = vadd.f32 %v1239_v10, %v1238_v8 }
 0x108   : > { %957 = vst [vmem:[%s1543_s8 + $0x10] sm:$0xff] %v925_v11  ;;  %973 = vst [vmem:[%s1543_s8 + $0x90] sm:$0xff] %v941_v12  ;;  %v926_v15 = vadd.f32 %v1192_v13, %v1536_v51  ;;  %v942_v16 = vadd.f32 %v1240_v14, %v1536_v51 }
 0x10a   : > { %958 = vst [vmem:[%s1543_s8 + $0x18] sm:$0xff] %v926_v15  ;;  %974 = vst [vmem:[%s1543_s8 + $0x98] sm:$0xff] %v942_v16  ;;  %v1193_v17 = vpop.f32.mrb[8].mxu0  ;;  %v1241_v18 = vpop.f32.mrb[8].mxu1 }
 0x10b   : > { %v1194_v19 = vpop.f32.mrb[9].mxu0  ;;  %v1242_v20 = vpop.f32.mrb[9].mxu1 }
 0x10c   : > { %v1195_v21 = vadd.f32 %v1194_v19, %v1193_v17  ;;  %v1243_v22 = vadd.f32 %v1242_v20, %v1241_v18  ;;  %v1196_v23 = vpop.f32.mrb[10].mxu0  ;;  %v1244_v24 = vpop.f32.mrb[10].mxu1 }
 0x10d   : > { %v1197_v25 = vpop.f32.mrb[11].mxu0  ;;  %v1245_v26 = vpop.f32.mrb[11].mxu1 }
 0x10e   : > { %v927_v27 = vadd.f32 %v1195_v21, %v1536_v51  ;;  %v943_v28 = vadd.f32 %v1243_v22, %v1536_v51  ;;  %v1198_v29 = vadd.f32 %v1197_v25, %v1196_v23  ;;  %v1246_v30 = vadd.f32 %v1245_v26, %v1244_v24 }
 0x110   : > { %959 = vst [vmem:[%s1543_s8 + $0x20] sm:$0xff] %v927_v27  ;;  %975 = vst [vmem:[%s1543_s8 + $0xa0] sm:$0xff] %v943_v28  ;;  %v928_v31 = vadd.f32 %v1198_v29, %v1536_v51  ;;  %v944_v32 = vadd.f32 %v1246_v30, %v1536_v51 }
 0x112   : > { %960 = vst [vmem:[%s1543_s8 + $0x28] sm:$0xff] %v928_v31  ;;  %976 = vst [vmem:[%s1543_s8 + $0xa8] sm:$0xff] %v944_v32  ;;  %v1199_v33 = vpop.f32.mrb[12].mxu0  ;;  %v1247_v34 = vpop.f32.mrb[12].mxu1 }
 0x113   : > { %v1200_v35 = vpop.f32.mrb[13].mxu0  ;;  %v1248_v36 = vpop.f32.mrb[13].mxu1 }
 0x114   : > { %v1201_v37 = vadd.f32 %v1200_v35, %v1199_v33  ;;  %v1249_v38 = vadd.f32 %v1248_v36, %v1247_v34  ;;  %v1202_v39 = vpop.f32.mrb[14].mxu0  ;;  %v1250_v40 = vpop.f32.mrb[14].mxu1 }
 0x115   : > { %v1203_v41 = vpop.f32.mrb[15].mxu0  ;;  %v1251_v42 = vpop.f32.mrb[15].mxu1 }
 0x116   : > { %v929_v43 = vadd.f32 %v1201_v37, %v1536_v51  ;;  %v945_v44 = vadd.f32 %v1249_v38, %v1536_v51  ;;  %v1204_v45 = vadd.f32 %v1203_v41, %v1202_v39  ;;  %v1252_v46 = vadd.f32 %v1251_v42, %v1250_v40 }
 0x118   : > { %961 = vst [vmem:[%s1543_s8 + $0x30] sm:$0xff] %v929_v43  ;;  %977 = vst [vmem:[%s1543_s8 + $0xb0] sm:$0xff] %v945_v44  ;;  %v930_v47 = vadd.f32 %v1204_v45, %v1536_v51  ;;  %v946_v48 = vadd.f32 %v1252_v46, %v1536_v51 }
 0x11a   : > { %962 = vst [vmem:[%s1543_s8 + $0x38] sm:$0xff] %v930_v47  ;;  %978 = vst [vmem:[%s1543_s8 + $0xb8] sm:$0xff] %v946_v48  ;;  %v1205_v49 = vpop.f32.mrb[16].mxu0  ;;  %v1253_v50 = vpop.f32.mrb[16].mxu1 }
 0x11b   : > { %v1206_v52 = vpop.f32.mrb[17].mxu0  ;;  %v1254_v53 = vpop.f32.mrb[17].mxu1 }
 0x11c   : > { %v1207_v54 = vadd.f32 %v1206_v52, %v1205_v49  ;;  %v1255_v55 = vadd.f32 %v1254_v53, %v1253_v50  ;;  %v1208_v56 = vpop.f32.mrb[18].mxu0  ;;  %v1256_v57 = vpop.f32.mrb[18].mxu1 }
 0x11d   : > { %v1209_v58 = vpop.f32.mrb[19].mxu0  ;;  %v1257_v59 = vpop.f32.mrb[19].mxu1 }
 0x11e   : > { %v931_v60 = vadd.f32 %v1207_v54, %v1536_v51  ;;  %v947_v61 = vadd.f32 %v1255_v55, %v1536_v51  ;;  %v1210_v62 = vadd.f32 %v1209_v58, %v1208_v56  ;;  %v1258_v63 = vadd.f32 %v1257_v59, %v1256_v57 }
 0x120   : > { %963 = vst [vmem:[%s1543_s8 + $0x40] sm:$0xff] %v931_v60  ;;  %979 = vst [vmem:[%s1543_s8 + $0xc0] sm:$0xff] %v947_v61  ;;  %v932_v0 = vadd.f32 %v1210_v62, %v1536_v51  ;;  %v948_v1 = vadd.f32 %v1258_v63, %v1536_v51 }
 0x122   : > { %964 = vst [vmem:[%s1543_s8 + $0x48] sm:$0xff] %v932_v0  ;;  %980 = vst [vmem:[%s1543_s8 + $0xc8] sm:$0xff] %v948_v1  ;;  %v1211_v2 = vpop.f32.mrb[20].mxu0  ;;  %v1259_v3 = vpop.f32.mrb[20].mxu1 }
 0x123   : > { %v1212_v4 = vpop.f32.mrb[21].mxu0  ;;  %v1260_v5 = vpop.f32.mrb[21].mxu1 }
 0x124   : > { %v1213_v6 = vadd.f32 %v1212_v4, %v1211_v2  ;;  %v1261_v7 = vadd.f32 %v1260_v5, %v1259_v3  ;;  %v1214_v8 = vpop.f32.mrb[22].mxu0  ;;  %v1262_v9 = vpop.f32.mrb[22].mxu1 }
 0x125   : > { %v1215_v10 = vpop.f32.mrb[23].mxu0  ;;  %v1263_v11 = vpop.f32.mrb[23].mxu1 }
 0x126   : > { %v933_v12 = vadd.f32 %v1213_v6, %v1536_v51  ;;  %v949_v13 = vadd.f32 %v1261_v7, %v1536_v51  ;;  %v1216_v14 = vadd.f32 %v1215_v10, %v1214_v8  ;;  %v1264_v15 = vadd.f32 %v1263_v11, %v1262_v9 }
 0x128   : > { %965 = vst [vmem:[%s1543_s8 + $0x50] sm:$0xff] %v933_v12  ;;  %981 = vst [vmem:[%s1543_s8 + $0xd0] sm:$0xff] %v949_v13  ;;  %v934_v16 = vadd.f32 %v1216_v14, %v1536_v51  ;;  %v950_v17 = vadd.f32 %v1264_v15, %v1536_v51 }
 0x12a   : > { %966 = vst [vmem:[%s1543_s8 + $0x58] sm:$0xff] %v934_v16  ;;  %982 = vst [vmem:[%s1543_s8 + $0xd8] sm:$0xff] %v950_v17  ;;  %v1217_v18 = vpop.f32.mrb[24].mxu0  ;;  %v1265_v19 = vpop.f32.mrb[24].mxu1 }
 0x12b   : > { %v1218_v20 = vpop.f32.mrb[25].mxu0  ;;  %v1266_v21 = vpop.f32.mrb[25].mxu1 }
 0x12c   : > { %v1219_v22 = vadd.f32 %v1218_v20, %v1217_v18  ;;  %v1267_v23 = vadd.f32 %v1266_v21, %v1265_v19  ;;  %v1220_v24 = vpop.f32.mrb[26].mxu0  ;;  %v1268_v25 = vpop.f32.mrb[26].mxu1 }
 0x12d   : > { %v1221_v26 = vpop.f32.mrb[27].mxu0  ;;  %v1269_v27 = vpop.f32.mrb[27].mxu1 }
 0x12e   : > { %v935_v28 = vadd.f32 %v1219_v22, %v1536_v51  ;;  %v951_v29 = vadd.f32 %v1267_v23, %v1536_v51  ;;  %v1222_v30 = vadd.f32 %v1221_v26, %v1220_v24  ;;  %v1270_v31 = vadd.f32 %v1269_v27, %v1268_v25 }
 0x130   : > { %967 = vst [vmem:[%s1543_s8 + $0x60] sm:$0xff] %v935_v28  ;;  %983 = vst [vmem:[%s1543_s8 + $0xe0] sm:$0xff] %v951_v29  ;;  %v936_v32 = vadd.f32 %v1222_v30, %v1536_v51  ;;  %v952_v33 = vadd.f32 %v1270_v31, %v1536_v51 }
 0x132   : > { %968 = vst [vmem:[%s1543_s8 + $0x68] sm:$0xff] %v936_v32  ;;  %984 = vst [vmem:[%s1543_s8 + $0xe8] sm:$0xff] %v952_v33  ;;  %v1223_v34 = vpop.f32.mrb[28].mxu0  ;;  %v1271_v35 = vpop.f32.mrb[28].mxu1 }
 0x133   : > { %v1224_v36 = vpop.f32.mrb[29].mxu0  ;;  %v1272_v37 = vpop.f32.mrb[29].mxu1 }
 0x134   : > { %v1225_v38 = vadd.f32 %v1224_v36, %v1223_v34  ;;  %v1273_v39 = vadd.f32 %v1272_v37, %v1271_v35  ;;  %v1226_v40 = vpop.f32.mrb[30].mxu0  ;;  %v1274_v41 = vpop.f32.mrb[30].mxu1 }
 0x135   : > { %v1227_v42 = vpop.f32.mrb[31].mxu0  ;;  %v1275_v43 = vpop.f32.mrb[31].mxu1 }
 0x136   : > { %v937_v44 = vadd.f32 %v1225_v38, %v1536_v51  ;;  %v953_v45 = vadd.f32 %v1273_v39, %v1536_v51  ;;  %v1228_v46 = vadd.f32 %v1227_v42, %v1226_v40  ;;  %v1276_v47 = vadd.f32 %v1275_v43, %v1274_v41 }
 0x138   : > { %969 = vst [vmem:[%s1543_s8 + $0x70] sm:$0xff] %v937_v44  ;;  %985 = vst [vmem:[%s1543_s8 + $0xf0] sm:$0xff] %v953_v45  ;;  %v938_v48 = vadd.f32 %v1228_v46, %v1536_v51  ;;  %v954_v49 = vadd.f32 %v1276_v47, %v1536_v51 }
 0x13a   : > { %970 = vst [vmem:[%s1543_s8 + $0x78] sm:$0xff] %v938_v48  ;;  %986 = vst [vmem:[%s1543_s8 + $0xf8] sm:$0xff] %v954_v49 }
 0x13b PF: > { %s13_s14 = sadd.s32 1, %s1403_s14   ;;  %s1622_s12 = smov %s1399_s13 }
 0x13c   : > { %p10_p5 = scmp.ge.s32.totalorder %s13_s14, 4   ;;  %s1623_s13 = smov %s1625_s15 }
 0x13e   :  { %12 = sbr.rel (!%p10_p5) target bundleno = 2 (0x2), region = 76 }

</bundles_post_ra>
